<compile_context>
chip_gen: v5e
topology: v5e:2x2
jax: 0.10.0
libtpu: 0.0.40
codegen_flags: <defaults>
</compile_context>

<pallas_src>
import numpy as np
import jax
import jax.numpy as jnp
from jax.experimental import pallas as pl
from jax.experimental.pallas import tpu as pltpu


# ---------------------------------------------------------------------------
# Single fused kernel: one batch element per grid step.
# ---------------------------------------------------------------------------
def _nn_kernel(p1_ref, w1_ref, b1_ref, w2_ref, b2_ref, w3_ref, b3_ref,
               wf1_ref, bf1_ref, wf2_ref, bf2_ref, o_ref,
               hp1, a1p, p2, hp2, a2p, p3, hp3):
    f32 = jnp.float32

    def conv_pool(acc, H, W, hp_ref):
        # acc: (H*W, C) conv+bias output, rows in (h, w) order.
        C = acc.shape[-1]
        y = acc.reshape(H // 2, 2, W, C)              # leading-dim split (layout-preserving)
        hp_ref[...] = jnp.maximum(y[:, 0], y[:, 1])   # pool along H (VPU)
        # pool along W via sublane-strided reads (even / odd columns)
        return jnp.maximum(hp_ref[:, pl.ds(0, W // 2, stride=2), :],
                           hp_ref[:, pl.ds(1, W // 2, stride=2), :])

    def build_patches(ap_ref, p_ref, H, W, Cin):
        # im2col into VMEM scratch: columns ordered (kh, kw, cin).
        for kh in range(5):
            for kw in range(5):
                j = kh * 5 + kw
                win = ap_ref[kh:kh + H, kw:kw + W, :]          # (H, W, Cin)
                p_ref[:, j * Cin:(j + 1) * Cin] = win.reshape(H * W, Cin)

    # ---- conv1 (im2col built in wrapper) + bias + 2x2 max-pool -> (16,16,32)
    acc1 = jnp.dot(p1_ref[0], w1_ref[...], preferred_element_type=f32) + b1_ref[...]
    pooled1 = conv_pool(acc1, 32, 32, hp1)            # (16, 16, 32)

    # ---- conv2 + bias + pool -> (8, 8, 32)
    a1p[...] = jnp.zeros_like(a1p)
    a1p[2:18, 2:18, :] = pooled1
    build_patches(a1p, p2, 16, 16, 32)                # (256, 800)
    acc2 = jnp.dot(p2[...], w2_ref[...], preferred_element_type=f32) + b2_ref[...]
    pooled2 = conv_pool(acc2, 16, 16, hp2)            # (8, 8, 32)

    # ---- conv3 + bias + pool -> (4, 4, 64)
    a2p[...] = jnp.zeros_like(a2p)
    a2p[2:10, 2:10, :] = pooled2
    build_patches(a2p, p3, 8, 8, 32)                  # (64, 800)
    acc3 = jnp.dot(p3[...], w3_ref[...], preferred_element_type=f32) + b3_ref[...]
    pooled3 = conv_pool(acc3, 8, 8, hp3)              # (4, 4, 64)

    # ---- flatten + fc1 + fc2 (fc1 weight rows pre-permuted to (h, w, c) order)
    h1 = bf1_ref[...]                                 # (1, 64)
    for h in range(4):
        for w in range(4):
            k = h * 4 + w
            h1 = h1 + jnp.dot(pooled3[h:h + 1, w, :], wf1_ref[k],
                              preferred_element_type=f32)
    out = jnp.dot(h1, wf2_ref[...], preferred_element_type=f32) + bf2_ref[...]
    o_ref[0] = out                                    # (1, 10)


# ---------------------------------------------------------------------------
# Wrapper: layout plumbing (NCHW->NHWC, conv1 im2col, weight re-layouts) + call.
# ---------------------------------------------------------------------------
def nn_forward(x_nchw, params):
    (w1c, b1c), (w2c, b2c), (w3c, b3c), (wf1, bf1), (wf2, bf2) = params
    N = x_nchw.shape[0]

    # NCHW -> NHWC, pad, build conv1 im2col patches (column order = kh, kw, cin).
    x = jnp.transpose(x_nchw, (0, 2, 3, 1))
    xp = jnp.pad(x, ((0, 0), (2, 2), (2, 2), (0, 0)))
    cols = [xp[:, kh:kh + 32, kw:kw + 32, :]
            for kh in range(5) for kw in range(5)]
    p1 = jnp.concatenate(cols, axis=-1).reshape(N, 32 * 32, 75)

    # Conv weights: OIHW -> (kh, kw, cin, cout) -> (25*cin, cout).
    w1 = jnp.transpose(w1c, (2, 3, 1, 0)).reshape(75, 32)
    w2 = jnp.transpose(w2c, (2, 3, 1, 0)).reshape(800, 32)
    w3 = jnp.transpose(w3c, (2, 3, 1, 0)).reshape(800, 64)
    # fc1: rows permuted from PyTorch NCHW-flatten (c*16 + h*4 + w) to the
    # kernel's (h*4 + w, c) grouping -> shape (16, 64, 64).
    wf1k = jnp.transpose(wf1.reshape(64, 64, 4, 4), (2, 3, 1, 0)).reshape(16, 64, 64)
    wf2k = wf2.T                                      # (64, 10)

    out = pl.pallas_call(
        _nn_kernel,
        out_shape=jax.ShapeDtypeStruct((N, 1, 10), jnp.float32),
        grid_spec=pltpu.PrefetchScalarGridSpec(
            num_scalar_prefetch=0,
            grid=(N,),
            in_specs=[
                pl.BlockSpec((1, 1024, 75), lambda n: (n, 0, 0)),   # conv1 patches
                pl.BlockSpec((75, 32), lambda n: (0, 0)),           # w1
                pl.BlockSpec((1, 32), lambda n: (0, 0)),            # b1
                pl.BlockSpec((800, 32), lambda n: (0, 0)),          # w2
                pl.BlockSpec((1, 32), lambda n: (0, 0)),            # b2
                pl.BlockSpec((800, 64), lambda n: (0, 0)),          # w3
                pl.BlockSpec((1, 64), lambda n: (0, 0)),            # b3
                pl.BlockSpec((16, 64, 64), lambda n: (0, 0, 0)),    # fc1 weight
                pl.BlockSpec((1, 64), lambda n: (0, 0)),            # fc1 bias
                pl.BlockSpec((64, 10), lambda n: (0, 0)),           # fc2 weight
                pl.BlockSpec((1, 10), lambda n: (0, 0)),            # fc2 bias
            ],
            out_specs=pl.BlockSpec((1, 1, 10), lambda n: (n, 0, 0)),
            scratch_shapes=[
                pltpu.VMEM((16, 32, 32), jnp.float32),   # hp1 (H-pooled conv1)
                pltpu.VMEM((20, 20, 32), jnp.float32),   # a1p (padded act for conv2)
                pltpu.VMEM((256, 800), jnp.float32),     # p2  (conv2 im2col)
                pltpu.VMEM((8, 16, 32), jnp.float32),    # hp2
                pltpu.VMEM((12, 12, 32), jnp.float32),   # a2p
                pltpu.VMEM((64, 800), jnp.float32),      # p3
                pltpu.VMEM((4, 8, 64), jnp.float32),     # hp3
            ],
        ),
        compiler_params=pltpu.CompilerParams(
            dimension_semantics=("parallel",)),
    )(p1, w1, b1c.reshape(1, -1), w2, b2c.reshape(1, -1),
      w3, b3c.reshape(1, -1), wf1k, bf1.reshape(1, -1),
      wf2k, bf2.reshape(1, -1))
    return out.reshape(N, 10)


# ---------------------------------------------------------------------------
# Pure-JAX reference (correctness check only).
# ---------------------------------------------------------------------------
def ref_forward(x, params):
    (w1c, b1c), (w2c, b2c), (w3c, b3c), (wf1, bf1), (wf2, bf2) = params
    y = x
    for (w, b) in [(w1c, b1c), (w2c, b2c), (w3c, b3c)]:
        y = jax.lax.conv_general_dilated(
            y, w, (1, 1), ((2, 2), (2, 2)),
            dimension_numbers=('NCHW', 'OIHW', 'NCHW'),
            precision=jax.lax.Precision.HIGHEST) + b[None, :, None, None]
        y = jax.lax.reduce_window(y, -jnp.inf, jax.lax.max,
                                  (1, 1, 2, 2), (1, 1, 2, 2), 'VALID')
    y = y.reshape(y.shape[0], -1)
    y = jnp.dot(y, wf1.T, precision=jax.lax.Precision.HIGHEST) + bf1
    y = jnp.dot(y, wf2.T, precision=jax.lax.Precision.HIGHEST) + bf2
    return y


if __name__ == "__main__":
    key = jax.random.PRNGKey(0)
    ks = jax.random.split(key, 11)

    def uinit(k, shape, fan_in):
        bound = 1.0 / np.sqrt(fan_in)
        return jax.random.uniform(k, shape, jnp.float32, -bound, bound)

    # PyTorch-native parameter shapes (OIHW convs, (out, in) linears).
    params = (
        (uinit(ks[0], (32, 3, 5, 5), 3 * 25),   uinit(ks[1], (32,), 3 * 25)),
        (uinit(ks[2], (32, 32, 5, 5), 32 * 25), uinit(ks[3], (32,), 32 * 25)),
        (uinit(ks[4], (64, 32, 5, 5), 32 * 25), uinit(ks[5], (64,), 32 * 25)),
        (uinit(ks[6], (64, 1024), 1024),        uinit(ks[7], (64,), 1024)),
        (uinit(ks[8], (10, 64), 64),            uinit(ks[9], (10,), 64)),
    )

    # fc1 expects 1024 = 64 * 4 * 4 features -> input spatial must be 32x32.
    x = jax.random.normal(ks[10], (2, 3, 32, 32), jnp.float32)

    fwd = jax.jit(nn_forward)
    out = jax.block_until_ready(fwd(x, params))

    ref = jax.block_until_ready(ref_forward(x, params))
    np.testing.assert_allclose(np.asarray(out), np.asarray(ref),
                               rtol=1e-3, atol=1e-3)
    print("KERNEL_OK")
</pallas_src>

<mosaic_0001>
module attributes {stable_mosaic.version = 11 : i64} {
  func.func @_nn_kernel(%arg0: i32, %arg1: memref<1x1024x75xf32, #tpu.memory_space<vmem>>, %arg2: memref<75x32xf32, #tpu.memory_space<vmem>>, %arg3: memref<1x32xf32, #tpu.memory_space<vmem>>, %arg4: memref<800x32xf32, #tpu.memory_space<vmem>>, %arg5: memref<1x32xf32, #tpu.memory_space<vmem>>, %arg6: memref<800x64xf32, #tpu.memory_space<vmem>>, %arg7: memref<1x64xf32, #tpu.memory_space<vmem>>, %arg8: memref<16x64x64xf32, #tpu.memory_space<vmem>>, %arg9: memref<1x64xf32, #tpu.memory_space<vmem>>, %arg10: memref<64x10xf32, #tpu.memory_space<vmem>>, %arg11: memref<1x10xf32, #tpu.memory_space<vmem>>, %arg12: memref<1x1x10xf32, #tpu.memory_space<vmem>>, %arg13: memref<16x32x32xf32, #tpu.memory_space<vmem>>, %arg14: memref<20x20x32xf32, #tpu.memory_space<vmem>>, %arg15: memref<256x800xf32, #tpu.memory_space<vmem>>, %arg16: memref<8x16x32xf32, #tpu.memory_space<vmem>>, %arg17: memref<12x12x32xf32, #tpu.memory_space<vmem>>, %arg18: memref<64x800xf32, #tpu.memory_space<vmem>>, %arg19: memref<4x8x64xf32, #tpu.memory_space<vmem>>) attributes {dimension_semantics = [#tpu.dimension_semantics<parallel>], iteration_bounds = array<i64: 2>, scalar_prefetch = 0 : i64, scratch_operands = 7 : i64, tpu.core_type = #tpu.core_type<tc>, window_params = [{transform_indices = @transform_0, window_bounds = array<i64: 1, 1024, 75>}, {pipeline_mode = #tpu.pipeline_mode<synchronous>, transform_indices = @transform_1, window_bounds = array<i64: 75, 32>}, {pipeline_mode = #tpu.pipeline_mode<synchronous>, transform_indices = @transform_2, window_bounds = array<i64: 1, 32>}, {pipeline_mode = #tpu.pipeline_mode<synchronous>, transform_indices = @transform_3, window_bounds = array<i64: 800, 32>}, {pipeline_mode = #tpu.pipeline_mode<synchronous>, transform_indices = @transform_4, window_bounds = array<i64: 1, 32>}, {pipeline_mode = #tpu.pipeline_mode<synchronous>, transform_indices = @transform_5, window_bounds = array<i64: 800, 64>}, {pipeline_mode = #tpu.pipeline_mode<synchronous>, transform_indices = @transform_6, window_bounds = array<i64: 1, 64>}, {pipeline_mode = #tpu.pipeline_mode<synchronous>, transform_indices = @transform_7, window_bounds = array<i64: 16, 64, 64>}, {pipeline_mode = #tpu.pipeline_mode<synchronous>, transform_indices = @transform_8, window_bounds = array<i64: 1, 64>}, {pipeline_mode = #tpu.pipeline_mode<synchronous>, transform_indices = @transform_9, window_bounds = array<i64: 64, 10>}, {pipeline_mode = #tpu.pipeline_mode<synchronous>, transform_indices = @transform_10, window_bounds = array<i64: 1, 10>}, {transform_indices = @transform_11, window_bounds = array<i64: 1, 1, 10>}]} {
    %c0 = arith.constant 0 : index
    %c0_0 = arith.constant 0 : index
    %c0_1 = arith.constant 0 : index
    %0 = vector.load %arg1[%c0, %c0_0, %c0_1] : memref<1x1024x75xf32, #tpu.memory_space<vmem>>, vector<1x1024x75xf32>
    %1 = vector.shape_cast %0 : vector<1x1024x75xf32> to vector<1024x75xf32>
    %c0_2 = arith.constant 0 : index
    %c0_3 = arith.constant 0 : index
    %2 = vector.load %arg2[%c0_2, %c0_3] : memref<75x32xf32, #tpu.memory_space<vmem>>, vector<75x32xf32>
    %cst = arith.constant dense<0.000000e+00> : vector<1024x32xf32>
    %3 = tpu.matmul %1, %2, %cst {dimension_numbers = #tpu.dot_dimension_numbers<[1], [0], [0], [1], [0, 0, 1, 1], [], []>} : vector<1024x75xf32>, vector<75x32xf32>, vector<1024x32xf32> -> vector<1024x32xf32>
    %c0_4 = arith.constant 0 : index
    %c0_5 = arith.constant 0 : index
    %4 = vector.load %arg3[%c0_4, %c0_5] : memref<1x32xf32, #tpu.memory_space<vmem>>, vector<1x32xf32>
    %5 = vector.broadcast %4 : vector<1x32xf32> to vector<1024x32xf32>
    %6 = arith.addf %3, %5 : vector<1024x32xf32>
    %7 = vector.shape_cast %6 : vector<1024x32xf32> to vector<16x2x32x32xf32>
    %8 = vector.extract_strided_slice %7 {offsets = [0, 0, 0, 0], sizes = [16, 1, 32, 32], strides = [1, 1, 1, 1]} : vector<16x2x32x32xf32> to vector<16x1x32x32xf32>
    %9 = vector.shape_cast %8 : vector<16x1x32x32xf32> to vector<16x32x32xf32>
    %10 = vector.extract_strided_slice %7 {offsets = [0, 1, 0, 0], sizes = [16, 1, 32, 32], strides = [1, 1, 1, 1]} : vector<16x2x32x32xf32> to vector<16x1x32x32xf32>
    %11 = vector.shape_cast %10 : vector<16x1x32x32xf32> to vector<16x32x32xf32>
    %12 = arith.maximumf %9, %11 : vector<16x32x32xf32>
    %c0_6 = arith.constant 0 : index
    %c0_7 = arith.constant 0 : index
    %c0_8 = arith.constant 0 : index
    %13 = vector.load %arg13[%c0_6, %c0_7, %c0_8] : memref<16x32x32xf32, #tpu.memory_space<vmem>>, vector<16x32x32xf32>
    tpu.vector_store %arg13[%c0_6, %c0_7, %c0_8], %12 {strides = array<i32>} : memref<16x32x32xf32, #tpu.memory_space<vmem>>, vector<16x32x32xf32>,
    %c0_9 = arith.constant 0 : index
    %c0_10 = arith.constant 0 : index
    %c0_11 = arith.constant 0 : index
    %14 = tpu.strided_load %arg13[%c0_9, %c0_10, %c0_11] {strides = array<i32: 1, 2, 1>} : memref<16x32x32xf32, #tpu.memory_space<vmem>>, vector<16x16x32xf32>
    %c0_12 = arith.constant 0 : index
    %c1 = arith.constant 1 : index
    %c0_13 = arith.constant 0 : index
    %15 = tpu.strided_load %arg13[%c0_12, %c1, %c0_13] {strides = array<i32: 1, 2, 1>} : memref<16x32x32xf32, #tpu.memory_space<vmem>>, vector<16x16x32xf32>
    %16 = arith.maximumf %14, %15 : vector<16x16x32xf32>
    %cst_14 = arith.constant 0.000000e+00 : f32
    %17 = vector.broadcast %cst_14 : f32 to vector<20x20x32xf32>
    %c0_15 = arith.constant 0 : index
    %c0_16 = arith.constant 0 : index
    %c0_17 = arith.constant 0 : index
    %18 = vector.load %arg14[%c0_15, %c0_16, %c0_17] : memref<20x20x32xf32, #tpu.memory_space<vmem>>, vector<20x20x32xf32>
    tpu.vector_store %arg14[%c0_15, %c0_16, %c0_17], %17 {strides = array<i32>} : memref<20x20x32xf32, #tpu.memory_space<vmem>>, vector<20x20x32xf32>,
    %c2 = arith.constant 2 : index
    %c2_18 = arith.constant 2 : index
    %c0_19 = arith.constant 0 : index
    %19 = vector.load %arg14[%c2, %c2_18, %c0_19] : memref<20x20x32xf32, #tpu.memory_space<vmem>>, vector<16x16x32xf32>
    tpu.vector_store %arg14[%c2, %c2_18, %c0_19], %16 {strides = array<i32>} : memref<20x20x32xf32, #tpu.memory_space<vmem>>, vector<16x16x32xf32>,
    %c0_20 = arith.constant 0 : index
    %c0_21 = arith.constant 0 : index
    %c0_22 = arith.constant 0 : index
    %20 = vector.load %arg14[%c0_20, %c0_21, %c0_22] : memref<20x20x32xf32, #tpu.memory_space<vmem>>, vector<16x16x32xf32>
    %21 = vector.shape_cast %20 : vector<16x16x32xf32> to vector<256x32xf32>
    %c0_23 = arith.constant 0 : index
    %c0_24 = arith.constant 0 : index
    %22 = vector.load %arg15[%c0_23, %c0_24] : memref<256x800xf32, #tpu.memory_space<vmem>>, vector<256x32xf32>
    tpu.vector_store %arg15[%c0_23, %c0_24], %21 {strides = array<i32>} : memref<256x800xf32, #tpu.memory_space<vmem>>, vector<256x32xf32>,
    %c0_25 = arith.constant 0 : index
    %c1_26 = arith.constant 1 : index
    %c0_27 = arith.constant 0 : index
    %23 = vector.load %arg14[%c0_25, %c1_26, %c0_27] : memref<20x20x32xf32, #tpu.memory_space<vmem>>, vector<16x16x32xf32>
    %24 = vector.shape_cast %23 : vector<16x16x32xf32> to vector<256x32xf32>
    %c0_28 = arith.constant 0 : index
    %c32 = arith.constant 32 : index
    %25 = vector.load %arg15[%c0_28, %c32] : memref<256x800xf32, #tpu.memory_space<vmem>>, vector<256x32xf32>
    tpu.vector_store %arg15[%c0_28, %c32], %24 {strides = array<i32>} : memref<256x800xf32, #tpu.memory_space<vmem>>, vector<256x32xf32>,
    %c0_29 = arith.constant 0 : index
    %c2_30 = arith.constant 2 : index
    %c0_31 = arith.constant 0 : index
    %26 = vector.load %arg14[%c0_29, %c2_30, %c0_31] : memref<20x20x32xf32, #tpu.memory_space<vmem>>, vector<16x16x32xf32>
    %27 = vector.shape_cast %26 : vector<16x16x32xf32> to vector<256x32xf32>
    %c0_32 = arith.constant 0 : index
    %c64 = arith.constant 64 : index
    %28 = vector.load %arg15[%c0_32, %c64] : memref<256x800xf32, #tpu.memory_space<vmem>>, vector<256x32xf32>
    tpu.vector_store %arg15[%c0_32, %c64], %27 {strides = array<i32>} : memref<256x800xf32, #tpu.memory_space<vmem>>, vector<256x32xf32>,
    %c0_33 = arith.constant 0 : index
    %c3 = arith.constant 3 : index
    %c0_34 = arith.constant 0 : index
    %29 = vector.load %arg14[%c0_33, %c3, %c0_34] : memref<20x20x32xf32, #tpu.memory_space<vmem>>, vector<16x16x32xf32>
    %30 = vector.shape_cast %29 : vector<16x16x32xf32> to vector<256x32xf32>
    %c0_35 = arith.constant 0 : index
    %c96 = arith.constant 96 : index
    %31 = vector.load %arg15[%c0_35, %c96] : memref<256x800xf32, #tpu.memory_space<vmem>>, vector<256x32xf32>
    tpu.vector_store %arg15[%c0_35, %c96], %30 {strides = array<i32>} : memref<256x800xf32, #tpu.memory_space<vmem>>, vector<256x32xf32>,
    %c0_36 = arith.constant 0 : index
    %c4 = arith.constant 4 : index
    %c0_37 = arith.constant 0 : index
    %32 = vector.load %arg14[%c0_36, %c4, %c0_37] : memref<20x20x32xf32, #tpu.memory_space<vmem>>, vector<16x16x32xf32>
    %33 = vector.shape_cast %32 : vector<16x16x32xf32> to vector<256x32xf32>
    %c0_38 = arith.constant 0 : index
    %c128 = arith.constant 128 : index
    %34 = vector.load %arg15[%c0_38, %c128] : memref<256x800xf32, #tpu.memory_space<vmem>>, vector<256x32xf32>
    tpu.vector_store %arg15[%c0_38, %c128], %33 {strides = array<i32>} : memref<256x800xf32, #tpu.memory_space<vmem>>, vector<256x32xf32>,
    %c1_39 = arith.constant 1 : index
    %c0_40 = arith.constant 0 : index
    %c0_41 = arith.constant 0 : index
    %35 = vector.load %arg14[%c1_39, %c0_40, %c0_41] : memref<20x20x32xf32, #tpu.memory_space<vmem>>, vector<16x16x32xf32>
    %36 = vector.shape_cast %35 : vector<16x16x32xf32> to vector<256x32xf32>
    %c0_42 = arith.constant 0 : index
    %c160 = arith.constant 160 : index
    %37 = vector.load %arg15[%c0_42, %c160] : memref<256x800xf32, #tpu.memory_space<vmem>>, vector<256x32xf32>
    tpu.vector_store %arg15[%c0_42, %c160], %36 {strides = array<i32>} : memref<256x800xf32, #tpu.memory_space<vmem>>, vector<256x32xf32>,
    %c1_43 = arith.constant 1 : index
    %c1_44 = arith.constant 1 : index
    %c0_45 = arith.constant 0 : index
    %38 = vector.load %arg14[%c1_43, %c1_44, %c0_45] : memref<20x20x32xf32, #tpu.memory_space<vmem>>, vector<16x16x32xf32>
    %39 = vector.shape_cast %38 : vector<16x16x32xf32> to vector<256x32xf32>
    %c0_46 = arith.constant 0 : index
    %c192 = arith.constant 192 : index
    %40 = vector.load %arg15[%c0_46, %c192] : memref<256x800xf32, #tpu.memory_space<vmem>>, vector<256x32xf32>
    tpu.vector_store %arg15[%c0_46, %c192], %39 {strides = array<i32>} : memref<256x800xf32, #tpu.memory_space<vmem>>, vector<256x32xf32>,
    %c1_47 = arith.constant 1 : index
    %c2_48 = arith.constant 2 : index
    %c0_49 = arith.constant 0 : index
    %41 = vector.load %arg14[%c1_47, %c2_48, %c0_49] : memref<20x20x32xf32, #tpu.memory_space<vmem>>, vector<16x16x32xf32>
    %42 = vector.shape_cast %41 : vector<16x16x32xf32> to vector<256x32xf32>
    %c0_50 = arith.constant 0 : index
    %c224 = arith.constant 224 : index
    %43 = vector.load %arg15[%c0_50, %c224] : memref<256x800xf32, #tpu.memory_space<vmem>>, vector<256x32xf32>
    tpu.vector_store %arg15[%c0_50, %c224], %42 {strides = array<i32>} : memref<256x800xf32, #tpu.memory_space<vmem>>, vector<256x32xf32>,
    %c1_51 = arith.constant 1 : index
    %c3_52 = arith.constant 3 : index
    %c0_53 = arith.constant 0 : index
    %44 = vector.load %arg14[%c1_51, %c3_52, %c0_53] : memref<20x20x32xf32, #tpu.memory_space<vmem>>, vector<16x16x32xf32>
    %45 = vector.shape_cast %44 : vector<16x16x32xf32> to vector<256x32xf32>
    %c0_54 = arith.constant 0 : index
    %c256 = arith.constant 256 : index
    %46 = vector.load %arg15[%c0_54, %c256] : memref<256x800xf32, #tpu.memory_space<vmem>>, vector<256x32xf32>
    tpu.vector_store %arg15[%c0_54, %c256], %45 {strides = array<i32>} : memref<256x800xf32, #tpu.memory_space<vmem>>, vector<256x32xf32>,
    %c1_55 = arith.constant 1 : index
    %c4_56 = arith.constant 4 : index
    %c0_57 = arith.constant 0 : index
    %47 = vector.load %arg14[%c1_55, %c4_56, %c0_57] : memref<20x20x32xf32, #tpu.memory_space<vmem>>, vector<16x16x32xf32>
    %48 = vector.shape_cast %47 : vector<16x16x32xf32> to vector<256x32xf32>
    %c0_58 = arith.constant 0 : index
    %c288 = arith.constant 288 : index
    %49 = vector.load %arg15[%c0_58, %c288] : memref<256x800xf32, #tpu.memory_space<vmem>>, vector<256x32xf32>
    tpu.vector_store %arg15[%c0_58, %c288], %48 {strides = array<i32>} : memref<256x800xf32, #tpu.memory_space<vmem>>, vector<256x32xf32>,
    %c2_59 = arith.constant 2 : index
    %c0_60 = arith.constant 0 : index
    %c0_61 = arith.constant 0 : index
    %50 = vector.load %arg14[%c2_59, %c0_60, %c0_61] : memref<20x20x32xf32, #tpu.memory_space<vmem>>, vector<16x16x32xf32>
    %51 = vector.shape_cast %50 : vector<16x16x32xf32> to vector<256x32xf32>
    %c0_62 = arith.constant 0 : index
    %c320 = arith.constant 320 : index
    %52 = vector.load %arg15[%c0_62, %c320] : memref<256x800xf32, #tpu.memory_space<vmem>>, vector<256x32xf32>
    tpu.vector_store %arg15[%c0_62, %c320], %51 {strides = array<i32>} : memref<256x800xf32, #tpu.memory_space<vmem>>, vector<256x32xf32>,
    %c2_63 = arith.constant 2 : index
    %c1_64 = arith.constant 1 : index
    %c0_65 = arith.constant 0 : index
    %53 = vector.load %arg14[%c2_63, %c1_64, %c0_65] : memref<20x20x32xf32, #tpu.memory_space<vmem>>, vector<16x16x32xf32>
    %54 = vector.shape_cast %53 : vector<16x16x32xf32> to vector<256x32xf32>
    %c0_66 = arith.constant 0 : index
    %c352 = arith.constant 352 : index
    %55 = vector.load %arg15[%c0_66, %c352] : memref<256x800xf32, #tpu.memory_space<vmem>>, vector<256x32xf32>
    tpu.vector_store %arg15[%c0_66, %c352], %54 {strides = array<i32>} : memref<256x800xf32, #tpu.memory_space<vmem>>, vector<256x32xf32>,
    %c2_67 = arith.constant 2 : index
    %c2_68 = arith.constant 2 : index
    %c0_69 = arith.constant 0 : index
    %56 = vector.load %arg14[%c2_67, %c2_68, %c0_69] : memref<20x20x32xf32, #tpu.memory_space<vmem>>, vector<16x16x32xf32>
    %57 = vector.shape_cast %56 : vector<16x16x32xf32> to vector<256x32xf32>
    %c0_70 = arith.constant 0 : index
    %c384 = arith.constant 384 : index
    %58 = vector.load %arg15[%c0_70, %c384] : memref<256x800xf32, #tpu.memory_space<vmem>>, vector<256x32xf32>
    tpu.vector_store %arg15[%c0_70, %c384], %57 {strides = array<i32>} : memref<256x800xf32, #tpu.memory_space<vmem>>, vector<256x32xf32>,
    %c2_71 = arith.constant 2 : index
    %c3_72 = arith.constant 3 : index
    %c0_73 = arith.constant 0 : index
    %59 = vector.load %arg14[%c2_71, %c3_72, %c0_73] : memref<20x20x32xf32, #tpu.memory_space<vmem>>, vector<16x16x32xf32>
    %60 = vector.shape_cast %59 : vector<16x16x32xf32> to vector<256x32xf32>
    %c0_74 = arith.constant 0 : index
    %c416 = arith.constant 416 : index
    %61 = vector.load %arg15[%c0_74, %c416] : memref<256x800xf32, #tpu.memory_space<vmem>>, vector<256x32xf32>
    tpu.vector_store %arg15[%c0_74, %c416], %60 {strides = array<i32>} : memref<256x800xf32, #tpu.memory_space<vmem>>, vector<256x32xf32>,
    %c2_75 = arith.constant 2 : index
    %c4_76 = arith.constant 4 : index
    %c0_77 = arith.constant 0 : index
    %62 = vector.load %arg14[%c2_75, %c4_76, %c0_77] : memref<20x20x32xf32, #tpu.memory_space<vmem>>, vector<16x16x32xf32>
    %63 = vector.shape_cast %62 : vector<16x16x32xf32> to vector<256x32xf32>
    %c0_78 = arith.constant 0 : index
    %c448 = arith.constant 448 : index
    %64 = vector.load %arg15[%c0_78, %c448] : memref<256x800xf32, #tpu.memory_space<vmem>>, vector<256x32xf32>
    tpu.vector_store %arg15[%c0_78, %c448], %63 {strides = array<i32>} : memref<256x800xf32, #tpu.memory_space<vmem>>, vector<256x32xf32>,
    %c3_79 = arith.constant 3 : index
    %c0_80 = arith.constant 0 : index
    %c0_81 = arith.constant 0 : index
    %65 = vector.load %arg14[%c3_79, %c0_80, %c0_81] : memref<20x20x32xf32, #tpu.memory_space<vmem>>, vector<16x16x32xf32>
    %66 = vector.shape_cast %65 : vector<16x16x32xf32> to vector<256x32xf32>
    %c0_82 = arith.constant 0 : index
    %c480 = arith.constant 480 : index
    %67 = vector.load %arg15[%c0_82, %c480] : memref<256x800xf32, #tpu.memory_space<vmem>>, vector<256x32xf32>
    tpu.vector_store %arg15[%c0_82, %c480], %66 {strides = array<i32>} : memref<256x800xf32, #tpu.memory_space<vmem>>, vector<256x32xf32>,
    %c3_83 = arith.constant 3 : index
    %c1_84 = arith.constant 1 : index
    %c0_85 = arith.constant 0 : index
    %68 = vector.load %arg14[%c3_83, %c1_84, %c0_85] : memref<20x20x32xf32, #tpu.memory_space<vmem>>, vector<16x16x32xf32>
    %69 = vector.shape_cast %68 : vector<16x16x32xf32> to vector<256x32xf32>
    %c0_86 = arith.constant 0 : index
    %c512 = arith.constant 512 : index
    %70 = vector.load %arg15[%c0_86, %c512] : memref<256x800xf32, #tpu.memory_space<vmem>>, vector<256x32xf32>
    tpu.vector_store %arg15[%c0_86, %c512], %69 {strides = array<i32>} : memref<256x800xf32, #tpu.memory_space<vmem>>, vector<256x32xf32>,
    %c3_87 = arith.constant 3 : index
    %c2_88 = arith.constant 2 : index
    %c0_89 = arith.constant 0 : index
    %71 = vector.load %arg14[%c3_87, %c2_88, %c0_89] : memref<20x20x32xf32, #tpu.memory_space<vmem>>, vector<16x16x32xf32>
    %72 = vector.shape_cast %71 : vector<16x16x32xf32> to vector<256x32xf32>
    %c0_90 = arith.constant 0 : index
    %c544 = arith.constant 544 : index
    %73 = vector.load %arg15[%c0_90, %c544] : memref<256x800xf32, #tpu.memory_space<vmem>>, vector<256x32xf32>
    tpu.vector_store %arg15[%c0_90, %c544], %72 {strides = array<i32>} : memref<256x800xf32, #tpu.memory_space<vmem>>, vector<256x32xf32>,
    %c3_91 = arith.constant 3 : index
    %c3_92 = arith.constant 3 : index
    %c0_93 = arith.constant 0 : index
    %74 = vector.load %arg14[%c3_91, %c3_92, %c0_93] : memref<20x20x32xf32, #tpu.memory_space<vmem>>, vector<16x16x32xf32>
    %75 = vector.shape_cast %74 : vector<16x16x32xf32> to vector<256x32xf32>
    %c0_94 = arith.constant 0 : index
    %c576 = arith.constant 576 : index
    %76 = vector.load %arg15[%c0_94, %c576] : memref<256x800xf32, #tpu.memory_space<vmem>>, vector<256x32xf32>
    tpu.vector_store %arg15[%c0_94, %c576], %75 {strides = array<i32>} : memref<256x800xf32, #tpu.memory_space<vmem>>, vector<256x32xf32>,
    %c3_95 = arith.constant 3 : index
    %c4_96 = arith.constant 4 : index
    %c0_97 = arith.constant 0 : index
    %77 = vector.load %arg14[%c3_95, %c4_96, %c0_97] : memref<20x20x32xf32, #tpu.memory_space<vmem>>, vector<16x16x32xf32>
    %78 = vector.shape_cast %77 : vector<16x16x32xf32> to vector<256x32xf32>
    %c0_98 = arith.constant 0 : index
    %c608 = arith.constant 608 : index
    %79 = vector.load %arg15[%c0_98, %c608] : memref<256x800xf32, #tpu.memory_space<vmem>>, vector<256x32xf32>
    tpu.vector_store %arg15[%c0_98, %c608], %78 {strides = array<i32>} : memref<256x800xf32, #tpu.memory_space<vmem>>, vector<256x32xf32>,
    %c4_99 = arith.constant 4 : index
    %c0_100 = arith.constant 0 : index
    %c0_101 = arith.constant 0 : index
    %80 = vector.load %arg14[%c4_99, %c0_100, %c0_101] : memref<20x20x32xf32, #tpu.memory_space<vmem>>, vector<16x16x32xf32>
    %81 = vector.shape_cast %80 : vector<16x16x32xf32> to vector<256x32xf32>
    %c0_102 = arith.constant 0 : index
    %c640 = arith.constant 640 : index
    %82 = vector.load %arg15[%c0_102, %c640] : memref<256x800xf32, #tpu.memory_space<vmem>>, vector<256x32xf32>
    tpu.vector_store %arg15[%c0_102, %c640], %81 {strides = array<i32>} : memref<256x800xf32, #tpu.memory_space<vmem>>, vector<256x32xf32>,
    %c4_103 = arith.constant 4 : index
    %c1_104 = arith.constant 1 : index
    %c0_105 = arith.constant 0 : index
    %83 = vector.load %arg14[%c4_103, %c1_104, %c0_105] : memref<20x20x32xf32, #tpu.memory_space<vmem>>, vector<16x16x32xf32>
    %84 = vector.shape_cast %83 : vector<16x16x32xf32> to vector<256x32xf32>
    %c0_106 = arith.constant 0 : index
    %c672 = arith.constant 672 : index
    %85 = vector.load %arg15[%c0_106, %c672] : memref<256x800xf32, #tpu.memory_space<vmem>>, vector<256x32xf32>
    tpu.vector_store %arg15[%c0_106, %c672], %84 {strides = array<i32>} : memref<256x800xf32, #tpu.memory_space<vmem>>, vector<256x32xf32>,
    %c4_107 = arith.constant 4 : index
    %c2_108 = arith.constant 2 : index
    %c0_109 = arith.constant 0 : index
    %86 = vector.load %arg14[%c4_107, %c2_108, %c0_109] : memref<20x20x32xf32, #tpu.memory_space<vmem>>, vector<16x16x32xf32>
    %87 = vector.shape_cast %86 : vector<16x16x32xf32> to vector<256x32xf32>
    %c0_110 = arith.constant 0 : index
    %c704 = arith.constant 704 : index
    %88 = vector.load %arg15[%c0_110, %c704] : memref<256x800xf32, #tpu.memory_space<vmem>>, vector<256x32xf32>
    tpu.vector_store %arg15[%c0_110, %c704], %87 {strides = array<i32>} : memref<256x800xf32, #tpu.memory_space<vmem>>, vector<256x32xf32>,
    %c4_111 = arith.constant 4 : index
    %c3_112 = arith.constant 3 : index
    %c0_113 = arith.constant 0 : index
    %89 = vector.load %arg14[%c4_111, %c3_112, %c0_113] : memref<20x20x32xf32, #tpu.memory_space<vmem>>, vector<16x16x32xf32>
    %90 = vector.shape_cast %89 : vector<16x16x32xf32> to vector<256x32xf32>
    %c0_114 = arith.constant 0 : index
    %c736 = arith.constant 736 : index
    %91 = vector.load %arg15[%c0_114, %c736] : memref<256x800xf32, #tpu.memory_space<vmem>>, vector<256x32xf32>
    tpu.vector_store %arg15[%c0_114, %c736], %90 {strides = array<i32>} : memref<256x800xf32, #tpu.memory_space<vmem>>, vector<256x32xf32>,
    %c4_115 = arith.constant 4 : index
    %c4_116 = arith.constant 4 : index
    %c0_117 = arith.constant 0 : index
    %92 = vector.load %arg14[%c4_115, %c4_116, %c0_117] : memref<20x20x32xf32, #tpu.memory_space<vmem>>, vector<16x16x32xf32>
    %93 = vector.shape_cast %92 : vector<16x16x32xf32> to vector<256x32xf32>
    %c0_118 = arith.constant 0 : index
    %c768 = arith.constant 768 : index
    %94 = vector.load %arg15[%c0_118, %c768] : memref<256x800xf32, #tpu.memory_space<vmem>>, vector<256x32xf32>
    tpu.vector_store %arg15[%c0_118, %c768], %93 {strides = array<i32>} : memref<256x800xf32, #tpu.memory_space<vmem>>, vector<256x32xf32>,
    %c0_119 = arith.constant 0 : index
    %c0_120 = arith.constant 0 : index
    %95 = vector.load %arg15[%c0_119, %c0_120] : memref<256x800xf32, #tpu.memory_space<vmem>>, vector<256x800xf32>
    %c0_121 = arith.constant 0 : index
    %c0_122 = arith.constant 0 : index
    %96 = vector.load %arg4[%c0_121, %c0_122] : memref<800x32xf32, #tpu.memory_space<vmem>>, vector<800x32xf32>
    %cst_123 = arith.constant dense<0.000000e+00> : vector<256x32xf32>
    %97 = tpu.matmul %95, %96, %cst_123 {dimension_numbers = #tpu.dot_dimension_numbers<[1], [0], [0], [1], [0, 0, 1, 1], [], []>} : vector<256x800xf32>, vector<800x32xf32>, vector<256x32xf32> -> vector<256x32xf32>
    %c0_124 = arith.constant 0 : index
    %c0_125 = arith.constant 0 : index
    %98 = vector.load %arg5[%c0_124, %c0_125] : memref<1x32xf32, #tpu.memory_space<vmem>>, vector<1x32xf32>
    %99 = vector.broadcast %98 : vector<1x32xf32> to vector<256x32xf32>
    %100 = arith.addf %97, %99 : vector<256x32xf32>
    %101 = vector.shape_cast %100 : vector<256x32xf32> to vector<8x2x16x32xf32>
    %102 = vector.extract_strided_slice %101 {offsets = [0, 0, 0, 0], sizes = [8, 1, 16, 32], strides = [1, 1, 1, 1]} : vector<8x2x16x32xf32> to vector<8x1x16x32xf32>
    %103 = vector.shape_cast %102 : vector<8x1x16x32xf32> to vector<8x16x32xf32>
    %104 = vector.extract_strided_slice %101 {offsets = [0, 1, 0, 0], sizes = [8, 1, 16, 32], strides = [1, 1, 1, 1]} : vector<8x2x16x32xf32> to vector<8x1x16x32xf32>
    %105 = vector.shape_cast %104 : vector<8x1x16x32xf32> to vector<8x16x32xf32>
    %106 = arith.maximumf %103, %105 : vector<8x16x32xf32>
    %c0_126 = arith.constant 0 : index
    %c0_127 = arith.constant 0 : index
    %c0_128 = arith.constant 0 : index
    %107 = vector.load %arg16[%c0_126, %c0_127, %c0_128] : memref<8x16x32xf32, #tpu.memory_space<vmem>>, vector<8x16x32xf32>
    tpu.vector_store %arg16[%c0_126, %c0_127, %c0_128], %106 {strides = array<i32>} : memref<8x16x32xf32, #tpu.memory_space<vmem>>, vector<8x16x32xf32>,
    %c0_129 = arith.constant 0 : index
    %c0_130 = arith.constant 0 : index
    %c0_131 = arith.constant 0 : index
    %108 = tpu.strided_load %arg16[%c0_129, %c0_130, %c0_131] {strides = array<i32: 1, 2, 1>} : memref<8x16x32xf32, #tpu.memory_space<vmem>>, vector<8x8x32xf32>
    %c0_132 = arith.constant 0 : index
    %c1_133 = arith.constant 1 : index
    %c0_134 = arith.constant 0 : index
    %109 = tpu.strided_load %arg16[%c0_132, %c1_133, %c0_134] {strides = array<i32: 1, 2, 1>} : memref<8x16x32xf32, #tpu.memory_space<vmem>>, vector<8x8x32xf32>
    %110 = arith.maximumf %108, %109 : vector<8x8x32xf32>
    %cst_135 = arith.constant 0.000000e+00 : f32
    %111 = vector.broadcast %cst_135 : f32 to vector<12x12x32xf32>
    %c0_136 = arith.constant 0 : index
    %c0_137 = arith.constant 0 : index
    %c0_138 = arith.constant 0 : index
    %112 = vector.load %arg17[%c0_136, %c0_137, %c0_138] : memref<12x12x32xf32, #tpu.memory_space<vmem>>, vector<12x12x32xf32>
    tpu.vector_store %arg17[%c0_136, %c0_137, %c0_138], %111 {strides = array<i32>} : memref<12x12x32xf32, #tpu.memory_space<vmem>>, vector<12x12x32xf32>,
    %c2_139 = arith.constant 2 : index
    %c2_140 = arith.constant 2 : index
    %c0_141 = arith.constant 0 : index
    %113 = vector.load %arg17[%c2_139, %c2_140, %c0_141] : memref<12x12x32xf32, #tpu.memory_space<vmem>>, vector<8x8x32xf32>
    tpu.vector_store %arg17[%c2_139, %c2_140, %c0_141], %110 {strides = array<i32>} : memref<12x12x32xf32, #tpu.memory_space<vmem>>, vector<8x8x32xf32>,
    %c0_142 = arith.constant 0 : index
    %c0_143 = arith.constant 0 : index
    %c0_144 = arith.constant 0 : index
    %114 = vector.load %arg17[%c0_142, %c0_143, %c0_144] : memref<12x12x32xf32, #tpu.memory_space<vmem>>, vector<8x8x32xf32>
    %115 = vector.shape_cast %114 : vector<8x8x32xf32> to vector<64x32xf32>
    %c0_145 = arith.constant 0 : index
    %c0_146 = arith.constant 0 : index
    %116 = vector.load %arg18[%c0_145, %c0_146] : memref<64x800xf32, #tpu.memory_space<vmem>>, vector<64x32xf32>
    tpu.vector_store %arg18[%c0_145, %c0_146], %115 {strides = array<i32>} : memref<64x800xf32, #tpu.memory_space<vmem>>, vector<64x32xf32>,
    %c0_147 = arith.constant 0 : index
    %c1_148 = arith.constant 1 : index
    %c0_149 = arith.constant 0 : index
    %117 = vector.load %arg17[%c0_147, %c1_148, %c0_149] : memref<12x12x32xf32, #tpu.memory_space<vmem>>, vector<8x8x32xf32>
    %118 = vector.shape_cast %117 : vector<8x8x32xf32> to vector<64x32xf32>
    %c0_150 = arith.constant 0 : index
    %c32_151 = arith.constant 32 : index
    %119 = vector.load %arg18[%c0_150, %c32_151] : memref<64x800xf32, #tpu.memory_space<vmem>>, vector<64x32xf32>
    tpu.vector_store %arg18[%c0_150, %c32_151], %118 {strides = array<i32>} : memref<64x800xf32, #tpu.memory_space<vmem>>, vector<64x32xf32>,
    %c0_152 = arith.constant 0 : index
    %c2_153 = arith.constant 2 : index
    %c0_154 = arith.constant 0 : index
    %120 = vector.load %arg17[%c0_152, %c2_153, %c0_154] : memref<12x12x32xf32, #tpu.memory_space<vmem>>, vector<8x8x32xf32>
    %121 = vector.shape_cast %120 : vector<8x8x32xf32> to vector<64x32xf32>
    %c0_155 = arith.constant 0 : index
    %c64_156 = arith.constant 64 : index
    %122 = vector.load %arg18[%c0_155, %c64_156] : memref<64x800xf32, #tpu.memory_space<vmem>>, vector<64x32xf32>
    tpu.vector_store %arg18[%c0_155, %c64_156], %121 {strides = array<i32>} : memref<64x800xf32, #tpu.memory_space<vmem>>, vector<64x32xf32>,
    %c0_157 = arith.constant 0 : index
    %c3_158 = arith.constant 3 : index
    %c0_159 = arith.constant 0 : index
    %123 = vector.load %arg17[%c0_157, %c3_158, %c0_159] : memref<12x12x32xf32, #tpu.memory_space<vmem>>, vector<8x8x32xf32>
    %124 = vector.shape_cast %123 : vector<8x8x32xf32> to vector<64x32xf32>
    %c0_160 = arith.constant 0 : index
    %c96_161 = arith.constant 96 : index
    %125 = vector.load %arg18[%c0_160, %c96_161] : memref<64x800xf32, #tpu.memory_space<vmem>>, vector<64x32xf32>
    tpu.vector_store %arg18[%c0_160, %c96_161], %124 {strides = array<i32>} : memref<64x800xf32, #tpu.memory_space<vmem>>, vector<64x32xf32>,
    %c0_162 = arith.constant 0 : index
    %c4_163 = arith.constant 4 : index
    %c0_164 = arith.constant 0 : index
    %126 = vector.load %arg17[%c0_162, %c4_163, %c0_164] : memref<12x12x32xf32, #tpu.memory_space<vmem>>, vector<8x8x32xf32>
    %127 = vector.shape_cast %126 : vector<8x8x32xf32> to vector<64x32xf32>
    %c0_165 = arith.constant 0 : index
    %c128_166 = arith.constant 128 : index
    %128 = vector.load %arg18[%c0_165, %c128_166] : memref<64x800xf32, #tpu.memory_space<vmem>>, vector<64x32xf32>
    tpu.vector_store %arg18[%c0_165, %c128_166], %127 {strides = array<i32>} : memref<64x800xf32, #tpu.memory_space<vmem>>, vector<64x32xf32>,
    %c1_167 = arith.constant 1 : index
    %c0_168 = arith.constant 0 : index
    %c0_169 = arith.constant 0 : index
    %129 = vector.load %arg17[%c1_167, %c0_168, %c0_169] : memref<12x12x32xf32, #tpu.memory_space<vmem>>, vector<8x8x32xf32>
    %130 = vector.shape_cast %129 : vector<8x8x32xf32> to vector<64x32xf32>
    %c0_170 = arith.constant 0 : index
    %c160_171 = arith.constant 160 : index
    %131 = vector.load %arg18[%c0_170, %c160_171] : memref<64x800xf32, #tpu.memory_space<vmem>>, vector<64x32xf32>
    tpu.vector_store %arg18[%c0_170, %c160_171], %130 {strides = array<i32>} : memref<64x800xf32, #tpu.memory_space<vmem>>, vector<64x32xf32>,
    %c1_172 = arith.constant 1 : index
    %c1_173 = arith.constant 1 : index
    %c0_174 = arith.constant 0 : index
    %132 = vector.load %arg17[%c1_172, %c1_173, %c0_174] : memref<12x12x32xf32, #tpu.memory_space<vmem>>, vector<8x8x32xf32>
    %133 = vector.shape_cast %132 : vector<8x8x32xf32> to vector<64x32xf32>
    %c0_175 = arith.constant 0 : index
    %c192_176 = arith.constant 192 : index
    %134 = vector.load %arg18[%c0_175, %c192_176] : memref<64x800xf32, #tpu.memory_space<vmem>>, vector<64x32xf32>
    tpu.vector_store %arg18[%c0_175, %c192_176], %133 {strides = array<i32>} : memref<64x800xf32, #tpu.memory_space<vmem>>, vector<64x32xf32>,
    %c1_177 = arith.constant 1 : index
    %c2_178 = arith.constant 2 : index
    %c0_179 = arith.constant 0 : index
    %135 = vector.load %arg17[%c1_177, %c2_178, %c0_179] : memref<12x12x32xf32, #tpu.memory_space<vmem>>, vector<8x8x32xf32>
    %136 = vector.shape_cast %135 : vector<8x8x32xf32> to vector<64x32xf32>
    %c0_180 = arith.constant 0 : index
    %c224_181 = arith.constant 224 : index
    %137 = vector.load %arg18[%c0_180, %c224_181] : memref<64x800xf32, #tpu.memory_space<vmem>>, vector<64x32xf32>
    tpu.vector_store %arg18[%c0_180, %c224_181], %136 {strides = array<i32>} : memref<64x800xf32, #tpu.memory_space<vmem>>, vector<64x32xf32>,
    %c1_182 = arith.constant 1 : index
    %c3_183 = arith.constant 3 : index
    %c0_184 = arith.constant 0 : index
    %138 = vector.load %arg17[%c1_182, %c3_183, %c0_184] : memref<12x12x32xf32, #tpu.memory_space<vmem>>, vector<8x8x32xf32>
    %139 = vector.shape_cast %138 : vector<8x8x32xf32> to vector<64x32xf32>
    %c0_185 = arith.constant 0 : index
    %c256_186 = arith.constant 256 : index
    %140 = vector.load %arg18[%c0_185, %c256_186] : memref<64x800xf32, #tpu.memory_space<vmem>>, vector<64x32xf32>
    tpu.vector_store %arg18[%c0_185, %c256_186], %139 {strides = array<i32>} : memref<64x800xf32, #tpu.memory_space<vmem>>, vector<64x32xf32>,
    %c1_187 = arith.constant 1 : index
    %c4_188 = arith.constant 4 : index
    %c0_189 = arith.constant 0 : index
    %141 = vector.load %arg17[%c1_187, %c4_188, %c0_189] : memref<12x12x32xf32, #tpu.memory_space<vmem>>, vector<8x8x32xf32>
    %142 = vector.shape_cast %141 : vector<8x8x32xf32> to vector<64x32xf32>
    %c0_190 = arith.constant 0 : index
    %c288_191 = arith.constant 288 : index
    %143 = vector.load %arg18[%c0_190, %c288_191] : memref<64x800xf32, #tpu.memory_space<vmem>>, vector<64x32xf32>
    tpu.vector_store %arg18[%c0_190, %c288_191], %142 {strides = array<i32>} : memref<64x800xf32, #tpu.memory_space<vmem>>, vector<64x32xf32>,
    %c2_192 = arith.constant 2 : index
    %c0_193 = arith.constant 0 : index
    %c0_194 = arith.constant 0 : index
    %144 = vector.load %arg17[%c2_192, %c0_193, %c0_194] : memref<12x12x32xf32, #tpu.memory_space<vmem>>, vector<8x8x32xf32>
    %145 = vector.shape_cast %144 : vector<8x8x32xf32> to vector<64x32xf32>
    %c0_195 = arith.constant 0 : index
    %c320_196 = arith.constant 320 : index
    %146 = vector.load %arg18[%c0_195, %c320_196] : memref<64x800xf32, #tpu.memory_space<vmem>>, vector<64x32xf32>
    tpu.vector_store %arg18[%c0_195, %c320_196], %145 {strides = array<i32>} : memref<64x800xf32, #tpu.memory_space<vmem>>, vector<64x32xf32>,
    %c2_197 = arith.constant 2 : index
    %c1_198 = arith.constant 1 : index
    %c0_199 = arith.constant 0 : index
    %147 = vector.load %arg17[%c2_197, %c1_198, %c0_199] : memref<12x12x32xf32, #tpu.memory_space<vmem>>, vector<8x8x32xf32>
    %148 = vector.shape_cast %147 : vector<8x8x32xf32> to vector<64x32xf32>
    %c0_200 = arith.constant 0 : index
    %c352_201 = arith.constant 352 : index
    %149 = vector.load %arg18[%c0_200, %c352_201] : memref<64x800xf32, #tpu.memory_space<vmem>>, vector<64x32xf32>
    tpu.vector_store %arg18[%c0_200, %c352_201], %148 {strides = array<i32>} : memref<64x800xf32, #tpu.memory_space<vmem>>, vector<64x32xf32>,
    %c2_202 = arith.constant 2 : index
    %c2_203 = arith.constant 2 : index
    %c0_204 = arith.constant 0 : index
    %150 = vector.load %arg17[%c2_202, %c2_203, %c0_204] : memref<12x12x32xf32, #tpu.memory_space<vmem>>, vector<8x8x32xf32>
    %151 = vector.shape_cast %150 : vector<8x8x32xf32> to vector<64x32xf32>
    %c0_205 = arith.constant 0 : index
    %c384_206 = arith.constant 384 : index
    %152 = vector.load %arg18[%c0_205, %c384_206] : memref<64x800xf32, #tpu.memory_space<vmem>>, vector<64x32xf32>
    tpu.vector_store %arg18[%c0_205, %c384_206], %151 {strides = array<i32>} : memref<64x800xf32, #tpu.memory_space<vmem>>, vector<64x32xf32>,
    %c2_207 = arith.constant 2 : index
    %c3_208 = arith.constant 3 : index
    %c0_209 = arith.constant 0 : index
    %153 = vector.load %arg17[%c2_207, %c3_208, %c0_209] : memref<12x12x32xf32, #tpu.memory_space<vmem>>, vector<8x8x32xf32>
    %154 = vector.shape_cast %153 : vector<8x8x32xf32> to vector<64x32xf32>
    %c0_210 = arith.constant 0 : index
    %c416_211 = arith.constant 416 : index
    %155 = vector.load %arg18[%c0_210, %c416_211] : memref<64x800xf32, #tpu.memory_space<vmem>>, vector<64x32xf32>
    tpu.vector_store %arg18[%c0_210, %c416_211], %154 {strides = array<i32>} : memref<64x800xf32, #tpu.memory_space<vmem>>, vector<64x32xf32>,
    %c2_212 = arith.constant 2 : index
    %c4_213 = arith.constant 4 : index
    %c0_214 = arith.constant 0 : index
    %156 = vector.load %arg17[%c2_212, %c4_213, %c0_214] : memref<12x12x32xf32, #tpu.memory_space<vmem>>, vector<8x8x32xf32>
    %157 = vector.shape_cast %156 : vector<8x8x32xf32> to vector<64x32xf32>
    %c0_215 = arith.constant 0 : index
    %c448_216 = arith.constant 448 : index
    %158 = vector.load %arg18[%c0_215, %c448_216] : memref<64x800xf32, #tpu.memory_space<vmem>>, vector<64x32xf32>
    tpu.vector_store %arg18[%c0_215, %c448_216], %157 {strides = array<i32>} : memref<64x800xf32, #tpu.memory_space<vmem>>, vector<64x32xf32>,
    %c3_217 = arith.constant 3 : index
    %c0_218 = arith.constant 0 : index
    %c0_219 = arith.constant 0 : index
    %159 = vector.load %arg17[%c3_217, %c0_218, %c0_219] : memref<12x12x32xf32, #tpu.memory_space<vmem>>, vector<8x8x32xf32>
    %160 = vector.shape_cast %159 : vector<8x8x32xf32> to vector<64x32xf32>
    %c0_220 = arith.constant 0 : index
    %c480_221 = arith.constant 480 : index
    %161 = vector.load %arg18[%c0_220, %c480_221] : memref<64x800xf32, #tpu.memory_space<vmem>>, vector<64x32xf32>
    tpu.vector_store %arg18[%c0_220, %c480_221], %160 {strides = array<i32>} : memref<64x800xf32, #tpu.memory_space<vmem>>, vector<64x32xf32>,
    %c3_222 = arith.constant 3 : index
    %c1_223 = arith.constant 1 : index
    %c0_224 = arith.constant 0 : index
    %162 = vector.load %arg17[%c3_222, %c1_223, %c0_224] : memref<12x12x32xf32, #tpu.memory_space<vmem>>, vector<8x8x32xf32>
    %163 = vector.shape_cast %162 : vector<8x8x32xf32> to vector<64x32xf32>
    %c0_225 = arith.constant 0 : index
    %c512_226 = arith.constant 512 : index
    %164 = vector.load %arg18[%c0_225, %c512_226] : memref<64x800xf32, #tpu.memory_space<vmem>>, vector<64x32xf32>
    tpu.vector_store %arg18[%c0_225, %c512_226], %163 {strides = array<i32>} : memref<64x800xf32, #tpu.memory_space<vmem>>, vector<64x32xf32>,
    %c3_227 = arith.constant 3 : index
    %c2_228 = arith.constant 2 : index
    %c0_229 = arith.constant 0 : index
    %165 = vector.load %arg17[%c3_227, %c2_228, %c0_229] : memref<12x12x32xf32, #tpu.memory_space<vmem>>, vector<8x8x32xf32>
    %166 = vector.shape_cast %165 : vector<8x8x32xf32> to vector<64x32xf32>
    %c0_230 = arith.constant 0 : index
    %c544_231 = arith.constant 544 : index
    %167 = vector.load %arg18[%c0_230, %c544_231] : memref<64x800xf32, #tpu.memory_space<vmem>>, vector<64x32xf32>
    tpu.vector_store %arg18[%c0_230, %c544_231], %166 {strides = array<i32>} : memref<64x800xf32, #tpu.memory_space<vmem>>, vector<64x32xf32>,
    %c3_232 = arith.constant 3 : index
    %c3_233 = arith.constant 3 : index
    %c0_234 = arith.constant 0 : index
    %168 = vector.load %arg17[%c3_232, %c3_233, %c0_234] : memref<12x12x32xf32, #tpu.memory_space<vmem>>, vector<8x8x32xf32>
    %169 = vector.shape_cast %168 : vector<8x8x32xf32> to vector<64x32xf32>
    %c0_235 = arith.constant 0 : index
    %c576_236 = arith.constant 576 : index
    %170 = vector.load %arg18[%c0_235, %c576_236] : memref<64x800xf32, #tpu.memory_space<vmem>>, vector<64x32xf32>
    tpu.vector_store %arg18[%c0_235, %c576_236], %169 {strides = array<i32>} : memref<64x800xf32, #tpu.memory_space<vmem>>, vector<64x32xf32>,
    %c3_237 = arith.constant 3 : index
    %c4_238 = arith.constant 4 : index
    %c0_239 = arith.constant 0 : index
    %171 = vector.load %arg17[%c3_237, %c4_238, %c0_239] : memref<12x12x32xf32, #tpu.memory_space<vmem>>, vector<8x8x32xf32>
    %172 = vector.shape_cast %171 : vector<8x8x32xf32> to vector<64x32xf32>
    %c0_240 = arith.constant 0 : index
    %c608_241 = arith.constant 608 : index
    %173 = vector.load %arg18[%c0_240, %c608_241] : memref<64x800xf32, #tpu.memory_space<vmem>>, vector<64x32xf32>
    tpu.vector_store %arg18[%c0_240, %c608_241], %172 {strides = array<i32>} : memref<64x800xf32, #tpu.memory_space<vmem>>, vector<64x32xf32>,
    %c4_242 = arith.constant 4 : index
    %c0_243 = arith.constant 0 : index
    %c0_244 = arith.constant 0 : index
    %174 = vector.load %arg17[%c4_242, %c0_243, %c0_244] : memref<12x12x32xf32, #tpu.memory_space<vmem>>, vector<8x8x32xf32>
    %175 = vector.shape_cast %174 : vector<8x8x32xf32> to vector<64x32xf32>
    %c0_245 = arith.constant 0 : index
    %c640_246 = arith.constant 640 : index
    %176 = vector.load %arg18[%c0_245, %c640_246] : memref<64x800xf32, #tpu.memory_space<vmem>>, vector<64x32xf32>
    tpu.vector_store %arg18[%c0_245, %c640_246], %175 {strides = array<i32>} : memref<64x800xf32, #tpu.memory_space<vmem>>, vector<64x32xf32>,
    %c4_247 = arith.constant 4 : index
    %c1_248 = arith.constant 1 : index
    %c0_249 = arith.constant 0 : index
    %177 = vector.load %arg17[%c4_247, %c1_248, %c0_249] : memref<12x12x32xf32, #tpu.memory_space<vmem>>, vector<8x8x32xf32>
    %178 = vector.shape_cast %177 : vector<8x8x32xf32> to vector<64x32xf32>
    %c0_250 = arith.constant 0 : index
    %c672_251 = arith.constant 672 : index
    %179 = vector.load %arg18[%c0_250, %c672_251] : memref<64x800xf32, #tpu.memory_space<vmem>>, vector<64x32xf32>
    tpu.vector_store %arg18[%c0_250, %c672_251], %178 {strides = array<i32>} : memref<64x800xf32, #tpu.memory_space<vmem>>, vector<64x32xf32>,
    %c4_252 = arith.constant 4 : index
    %c2_253 = arith.constant 2 : index
    %c0_254 = arith.constant 0 : index
    %180 = vector.load %arg17[%c4_252, %c2_253, %c0_254] : memref<12x12x32xf32, #tpu.memory_space<vmem>>, vector<8x8x32xf32>
    %181 = vector.shape_cast %180 : vector<8x8x32xf32> to vector<64x32xf32>
    %c0_255 = arith.constant 0 : index
    %c704_256 = arith.constant 704 : index
    %182 = vector.load %arg18[%c0_255, %c704_256] : memref<64x800xf32, #tpu.memory_space<vmem>>, vector<64x32xf32>
    tpu.vector_store %arg18[%c0_255, %c704_256], %181 {strides = array<i32>} : memref<64x800xf32, #tpu.memory_space<vmem>>, vector<64x32xf32>,
    %c4_257 = arith.constant 4 : index
    %c3_258 = arith.constant 3 : index
    %c0_259 = arith.constant 0 : index
    %183 = vector.load %arg17[%c4_257, %c3_258, %c0_259] : memref<12x12x32xf32, #tpu.memory_space<vmem>>, vector<8x8x32xf32>
    %184 = vector.shape_cast %183 : vector<8x8x32xf32> to vector<64x32xf32>
    %c0_260 = arith.constant 0 : index
    %c736_261 = arith.constant 736 : index
    %185 = vector.load %arg18[%c0_260, %c736_261] : memref<64x800xf32, #tpu.memory_space<vmem>>, vector<64x32xf32>
    tpu.vector_store %arg18[%c0_260, %c736_261], %184 {strides = array<i32>} : memref<64x800xf32, #tpu.memory_space<vmem>>, vector<64x32xf32>,
    %c4_262 = arith.constant 4 : index
    %c4_263 = arith.constant 4 : index
    %c0_264 = arith.constant 0 : index
    %186 = vector.load %arg17[%c4_262, %c4_263, %c0_264] : memref<12x12x32xf32, #tpu.memory_space<vmem>>, vector<8x8x32xf32>
    %187 = vector.shape_cast %186 : vector<8x8x32xf32> to vector<64x32xf32>
    %c0_265 = arith.constant 0 : index
    %c768_266 = arith.constant 768 : index
    %188 = vector.load %arg18[%c0_265, %c768_266] : memref<64x800xf32, #tpu.memory_space<vmem>>, vector<64x32xf32>
    tpu.vector_store %arg18[%c0_265, %c768_266], %187 {strides = array<i32>} : memref<64x800xf32, #tpu.memory_space<vmem>>, vector<64x32xf32>,
    %c0_267 = arith.constant 0 : index
    %c0_268 = arith.constant 0 : index
    %189 = vector.load %arg18[%c0_267, %c0_268] : memref<64x800xf32, #tpu.memory_space<vmem>>, vector<64x800xf32>
    %c0_269 = arith.constant 0 : index
    %c0_270 = arith.constant 0 : index
    %190 = vector.load %arg6[%c0_269, %c0_270] : memref<800x64xf32, #tpu.memory_space<vmem>>, vector<800x64xf32>
    %cst_271 = arith.constant dense<0.000000e+00> : vector<64x64xf32>
    %191 = tpu.matmul %189, %190, %cst_271 {dimension_numbers = #tpu.dot_dimension_numbers<[1], [0], [0], [1], [0, 0, 1, 1], [], []>} : vector<64x800xf32>, vector<800x64xf32>, vector<64x64xf32> -> vector<64x64xf32>
    %c0_272 = arith.constant 0 : index
    %c0_273 = arith.constant 0 : index
    %192 = vector.load %arg7[%c0_272, %c0_273] : memref<1x64xf32, #tpu.memory_space<vmem>>, vector<1x64xf32>
    %193 = vector.broadcast %192 : vector<1x64xf32> to vector<64x64xf32>
    %194 = arith.addf %191, %193 : vector<64x64xf32>
    %195 = vector.shape_cast %194 : vector<64x64xf32> to vector<4x2x8x64xf32>
    %196 = vector.extract_strided_slice %195 {offsets = [0, 0, 0, 0], sizes = [4, 1, 8, 64], strides = [1, 1, 1, 1]} : vector<4x2x8x64xf32> to vector<4x1x8x64xf32>
    %197 = vector.shape_cast %196 : vector<4x1x8x64xf32> to vector<4x8x64xf32>
    %198 = vector.extract_strided_slice %195 {offsets = [0, 1, 0, 0], sizes = [4, 1, 8, 64], strides = [1, 1, 1, 1]} : vector<4x2x8x64xf32> to vector<4x1x8x64xf32>
    %199 = vector.shape_cast %198 : vector<4x1x8x64xf32> to vector<4x8x64xf32>
    %200 = arith.maximumf %197, %199 : vector<4x8x64xf32>
    %c0_274 = arith.constant 0 : index
    %c0_275 = arith.constant 0 : index
    %c0_276 = arith.constant 0 : index
    %201 = vector.load %arg19[%c0_274, %c0_275, %c0_276] : memref<4x8x64xf32, #tpu.memory_space<vmem>>, vector<4x8x64xf32>
    tpu.vector_store %arg19[%c0_274, %c0_275, %c0_276], %200 {strides = array<i32>} : memref<4x8x64xf32, #tpu.memory_space<vmem>>, vector<4x8x64xf32>,
    %c0_277 = arith.constant 0 : index
    %c0_278 = arith.constant 0 : index
    %c0_279 = arith.constant 0 : index
    %202 = tpu.strided_load %arg19[%c0_277, %c0_278, %c0_279] {strides = array<i32: 1, 2, 1>} : memref<4x8x64xf32, #tpu.memory_space<vmem>>, vector<4x4x64xf32>
    %c0_280 = arith.constant 0 : index
    %c1_281 = arith.constant 1 : index
    %c0_282 = arith.constant 0 : index
    %203 = tpu.strided_load %arg19[%c0_280, %c1_281, %c0_282] {strides = array<i32: 1, 2, 1>} : memref<4x8x64xf32, #tpu.memory_space<vmem>>, vector<4x4x64xf32>
    %204 = arith.maximumf %202, %203 : vector<4x4x64xf32>
    %c0_283 = arith.constant 0 : index
    %c0_284 = arith.constant 0 : index
    %205 = vector.load %arg9[%c0_283, %c0_284] : memref<1x64xf32, #tpu.memory_space<vmem>>, vector<1x64xf32>
    %206 = vector.extract_strided_slice %204 {offsets = [0, 0, 0], sizes = [1, 1, 64], strides = [1, 1, 1]} : vector<4x4x64xf32> to vector<1x1x64xf32>
    %207 = vector.shape_cast %206 : vector<1x1x64xf32> to vector<1x64xf32>
    %c0_285 = arith.constant 0 : index
    %c0_286 = arith.constant 0 : index
    %c0_287 = arith.constant 0 : index
    %208 = vector.load %arg8[%c0_285, %c0_286, %c0_287] : memref<16x64x64xf32, #tpu.memory_space<vmem>>, vector<1x64x64xf32>
    %209 = vector.shape_cast %208 : vector<1x64x64xf32> to vector<64x64xf32>
    %cst_288 = arith.constant dense<0.000000e+00> : vector<1x64xf32>
    %210 = tpu.matmul %207, %209, %cst_288 {dimension_numbers = #tpu.dot_dimension_numbers<[1], [0], [0], [1], [0, 0, 1, 1], [], []>} : vector<1x64xf32>, vector<64x64xf32>, vector<1x64xf32> -> vector<1x64xf32>
    %211 = arith.addf %205, %210 : vector<1x64xf32>
    %212 = vector.extract_strided_slice %204 {offsets = [0, 1, 0], sizes = [1, 1, 64], strides = [1, 1, 1]} : vector<4x4x64xf32> to vector<1x1x64xf32>
    %213 = vector.shape_cast %212 : vector<1x1x64xf32> to vector<1x64xf32>
    %c1_289 = arith.constant 1 : index
    %c0_290 = arith.constant 0 : index
    %c0_291 = arith.constant 0 : index
    %214 = vector.load %arg8[%c1_289, %c0_290, %c0_291] : memref<16x64x64xf32, #tpu.memory_space<vmem>>, vector<1x64x64xf32>
    %215 = vector.shape_cast %214 : vector<1x64x64xf32> to vector<64x64xf32>
    %cst_292 = arith.constant dense<0.000000e+00> : vector<1x64xf32>
    %216 = tpu.matmul %213, %215, %cst_292 {dimension_numbers = #tpu.dot_dimension_numbers<[1], [0], [0], [1], [0, 0, 1, 1], [], []>} : vector<1x64xf32>, vector<64x64xf32>, vector<1x64xf32> -> vector<1x64xf32>
    %217 = arith.addf %211, %216 : vector<1x64xf32>
    %218 = vector.extract_strided_slice %204 {offsets = [0, 2, 0], sizes = [1, 1, 64], strides = [1, 1, 1]} : vector<4x4x64xf32> to vector<1x1x64xf32>
    %219 = vector.shape_cast %218 : vector<1x1x64xf32> to vector<1x64xf32>
    %c2_293 = arith.constant 2 : index
    %c0_294 = arith.constant 0 : index
    %c0_295 = arith.constant 0 : index
    %220 = vector.load %arg8[%c2_293, %c0_294, %c0_295] : memref<16x64x64xf32, #tpu.memory_space<vmem>>, vector<1x64x64xf32>
    %221 = vector.shape_cast %220 : vector<1x64x64xf32> to vector<64x64xf32>
    %cst_296 = arith.constant dense<0.000000e+00> : vector<1x64xf32>
    %222 = tpu.matmul %219, %221, %cst_296 {dimension_numbers = #tpu.dot_dimension_numbers<[1], [0], [0], [1], [0, 0, 1, 1], [], []>} : vector<1x64xf32>, vector<64x64xf32>, vector<1x64xf32> -> vector<1x64xf32>
    %223 = arith.addf %217, %222 : vector<1x64xf32>
    %224 = vector.extract_strided_slice %204 {offsets = [0, 3, 0], sizes = [1, 1, 64], strides = [1, 1, 1]} : vector<4x4x64xf32> to vector<1x1x64xf32>
    %225 = vector.shape_cast %224 : vector<1x1x64xf32> to vector<1x64xf32>
    %c3_297 = arith.constant 3 : index
    %c0_298 = arith.constant 0 : index
    %c0_299 = arith.constant 0 : index
    %226 = vector.load %arg8[%c3_297, %c0_298, %c0_299] : memref<16x64x64xf32, #tpu.memory_space<vmem>>, vector<1x64x64xf32>
    %227 = vector.shape_cast %226 : vector<1x64x64xf32> to vector<64x64xf32>
    %cst_300 = arith.constant dense<0.000000e+00> : vector<1x64xf32>
    %228 = tpu.matmul %225, %227, %cst_300 {dimension_numbers = #tpu.dot_dimension_numbers<[1], [0], [0], [1], [0, 0, 1, 1], [], []>} : vector<1x64xf32>, vector<64x64xf32>, vector<1x64xf32> -> vector<1x64xf32>
    %229 = arith.addf %223, %228 : vector<1x64xf32>
    %230 = vector.extract_strided_slice %204 {offsets = [1, 0, 0], sizes = [1, 1, 64], strides = [1, 1, 1]} : vector<4x4x64xf32> to vector<1x1x64xf32>
    %231 = vector.shape_cast %230 : vector<1x1x64xf32> to vector<1x64xf32>
    %c4_301 = arith.constant 4 : index
    %c0_302 = arith.constant 0 : index
    %c0_303 = arith.constant 0 : index
    %232 = vector.load %arg8[%c4_301, %c0_302, %c0_303] : memref<16x64x64xf32, #tpu.memory_space<vmem>>, vector<1x64x64xf32>
    %233 = vector.shape_cast %232 : vector<1x64x64xf32> to vector<64x64xf32>
    %cst_304 = arith.constant dense<0.000000e+00> : vector<1x64xf32>
    %234 = tpu.matmul %231, %233, %cst_304 {dimension_numbers = #tpu.dot_dimension_numbers<[1], [0], [0], [1], [0, 0, 1, 1], [], []>} : vector<1x64xf32>, vector<64x64xf32>, vector<1x64xf32> -> vector<1x64xf32>
    %235 = arith.addf %229, %234 : vector<1x64xf32>
    %236 = vector.extract_strided_slice %204 {offsets = [1, 1, 0], sizes = [1, 1, 64], strides = [1, 1, 1]} : vector<4x4x64xf32> to vector<1x1x64xf32>
    %237 = vector.shape_cast %236 : vector<1x1x64xf32> to vector<1x64xf32>
    %c5 = arith.constant 5 : index
    %c0_305 = arith.constant 0 : index
    %c0_306 = arith.constant 0 : index
    %238 = vector.load %arg8[%c5, %c0_305, %c0_306] : memref<16x64x64xf32, #tpu.memory_space<vmem>>, vector<1x64x64xf32>
    %239 = vector.shape_cast %238 : vector<1x64x64xf32> to vector<64x64xf32>
    %cst_307 = arith.constant dense<0.000000e+00> : vector<1x64xf32>
    %240 = tpu.matmul %237, %239, %cst_307 {dimension_numbers = #tpu.dot_dimension_numbers<[1], [0], [0], [1], [0, 0, 1, 1], [], []>} : vector<1x64xf32>, vector<64x64xf32>, vector<1x64xf32> -> vector<1x64xf32>
    %241 = arith.addf %235, %240 : vector<1x64xf32>
    %242 = vector.extract_strided_slice %204 {offsets = [1, 2, 0], sizes = [1, 1, 64], strides = [1, 1, 1]} : vector<4x4x64xf32> to vector<1x1x64xf32>
    %243 = vector.shape_cast %242 : vector<1x1x64xf32> to vector<1x64xf32>
    %c6 = arith.constant 6 : index
    %c0_308 = arith.constant 0 : index
    %c0_309 = arith.constant 0 : index
    %244 = vector.load %arg8[%c6, %c0_308, %c0_309] : memref<16x64x64xf32, #tpu.memory_space<vmem>>, vector<1x64x64xf32>
    %245 = vector.shape_cast %244 : vector<1x64x64xf32> to vector<64x64xf32>
    %cst_310 = arith.constant dense<0.000000e+00> : vector<1x64xf32>
    %246 = tpu.matmul %243, %245, %cst_310 {dimension_numbers = #tpu.dot_dimension_numbers<[1], [0], [0], [1], [0, 0, 1, 1], [], []>} : vector<1x64xf32>, vector<64x64xf32>, vector<1x64xf32> -> vector<1x64xf32>
    %247 = arith.addf %241, %246 : vector<1x64xf32>
    %248 = vector.extract_strided_slice %204 {offsets = [1, 3, 0], sizes = [1, 1, 64], strides = [1, 1, 1]} : vector<4x4x64xf32> to vector<1x1x64xf32>
    %249 = vector.shape_cast %248 : vector<1x1x64xf32> to vector<1x64xf32>
    %c7 = arith.constant 7 : index
    %c0_311 = arith.constant 0 : index
    %c0_312 = arith.constant 0 : index
    %250 = vector.load %arg8[%c7, %c0_311, %c0_312] : memref<16x64x64xf32, #tpu.memory_space<vmem>>, vector<1x64x64xf32>
    %251 = vector.shape_cast %250 : vector<1x64x64xf32> to vector<64x64xf32>
    %cst_313 = arith.constant dense<0.000000e+00> : vector<1x64xf32>
    %252 = tpu.matmul %249, %251, %cst_313 {dimension_numbers = #tpu.dot_dimension_numbers<[1], [0], [0], [1], [0, 0, 1, 1], [], []>} : vector<1x64xf32>, vector<64x64xf32>, vector<1x64xf32> -> vector<1x64xf32>
    %253 = arith.addf %247, %252 : vector<1x64xf32>
    %254 = vector.extract_strided_slice %204 {offsets = [2, 0, 0], sizes = [1, 1, 64], strides = [1, 1, 1]} : vector<4x4x64xf32> to vector<1x1x64xf32>
    %255 = vector.shape_cast %254 : vector<1x1x64xf32> to vector<1x64xf32>
    %c8 = arith.constant 8 : index
    %c0_314 = arith.constant 0 : index
    %c0_315 = arith.constant 0 : index
    %256 = vector.load %arg8[%c8, %c0_314, %c0_315] : memref<16x64x64xf32, #tpu.memory_space<vmem>>, vector<1x64x64xf32>
    %257 = vector.shape_cast %256 : vector<1x64x64xf32> to vector<64x64xf32>
    %cst_316 = arith.constant dense<0.000000e+00> : vector<1x64xf32>
    %258 = tpu.matmul %255, %257, %cst_316 {dimension_numbers = #tpu.dot_dimension_numbers<[1], [0], [0], [1], [0, 0, 1, 1], [], []>} : vector<1x64xf32>, vector<64x64xf32>, vector<1x64xf32> -> vector<1x64xf32>
    %259 = arith.addf %253, %258 : vector<1x64xf32>
    %260 = vector.extract_strided_slice %204 {offsets = [2, 1, 0], sizes = [1, 1, 64], strides = [1, 1, 1]} : vector<4x4x64xf32> to vector<1x1x64xf32>
    %261 = vector.shape_cast %260 : vector<1x1x64xf32> to vector<1x64xf32>
    %c9 = arith.constant 9 : index
    %c0_317 = arith.constant 0 : index
    %c0_318 = arith.constant 0 : index
    %262 = vector.load %arg8[%c9, %c0_317, %c0_318] : memref<16x64x64xf32, #tpu.memory_space<vmem>>, vector<1x64x64xf32>
    %263 = vector.shape_cast %262 : vector<1x64x64xf32> to vector<64x64xf32>
    %cst_319 = arith.constant dense<0.000000e+00> : vector<1x64xf32>
    %264 = tpu.matmul %261, %263, %cst_319 {dimension_numbers = #tpu.dot_dimension_numbers<[1], [0], [0], [1], [0, 0, 1, 1], [], []>} : vector<1x64xf32>, vector<64x64xf32>, vector<1x64xf32> -> vector<1x64xf32>
    %265 = arith.addf %259, %264 : vector<1x64xf32>
    %266 = vector.extract_strided_slice %204 {offsets = [2, 2, 0], sizes = [1, 1, 64], strides = [1, 1, 1]} : vector<4x4x64xf32> to vector<1x1x64xf32>
    %267 = vector.shape_cast %266 : vector<1x1x64xf32> to vector<1x64xf32>
    %c10 = arith.constant 10 : index
    %c0_320 = arith.constant 0 : index
    %c0_321 = arith.constant 0 : index
    %268 = vector.load %arg8[%c10, %c0_320, %c0_321] : memref<16x64x64xf32, #tpu.memory_space<vmem>>, vector<1x64x64xf32>
    %269 = vector.shape_cast %268 : vector<1x64x64xf32> to vector<64x64xf32>
    %cst_322 = arith.constant dense<0.000000e+00> : vector<1x64xf32>
    %270 = tpu.matmul %267, %269, %cst_322 {dimension_numbers = #tpu.dot_dimension_numbers<[1], [0], [0], [1], [0, 0, 1, 1], [], []>} : vector<1x64xf32>, vector<64x64xf32>, vector<1x64xf32> -> vector<1x64xf32>
    %271 = arith.addf %265, %270 : vector<1x64xf32>
    %272 = vector.extract_strided_slice %204 {offsets = [2, 3, 0], sizes = [1, 1, 64], strides = [1, 1, 1]} : vector<4x4x64xf32> to vector<1x1x64xf32>
    %273 = vector.shape_cast %272 : vector<1x1x64xf32> to vector<1x64xf32>
    %c11 = arith.constant 11 : index
    %c0_323 = arith.constant 0 : index
    %c0_324 = arith.constant 0 : index
    %274 = vector.load %arg8[%c11, %c0_323, %c0_324] : memref<16x64x64xf32, #tpu.memory_space<vmem>>, vector<1x64x64xf32>
    %275 = vector.shape_cast %274 : vector<1x64x64xf32> to vector<64x64xf32>
    %cst_325 = arith.constant dense<0.000000e+00> : vector<1x64xf32>
    %276 = tpu.matmul %273, %275, %cst_325 {dimension_numbers = #tpu.dot_dimension_numbers<[1], [0], [0], [1], [0, 0, 1, 1], [], []>} : vector<1x64xf32>, vector<64x64xf32>, vector<1x64xf32> -> vector<1x64xf32>
    %277 = arith.addf %271, %276 : vector<1x64xf32>
    %278 = vector.extract_strided_slice %204 {offsets = [3, 0, 0], sizes = [1, 1, 64], strides = [1, 1, 1]} : vector<4x4x64xf32> to vector<1x1x64xf32>
    %279 = vector.shape_cast %278 : vector<1x1x64xf32> to vector<1x64xf32>
    %c12 = arith.constant 12 : index
    %c0_326 = arith.constant 0 : index
    %c0_327 = arith.constant 0 : index
    %280 = vector.load %arg8[%c12, %c0_326, %c0_327] : memref<16x64x64xf32, #tpu.memory_space<vmem>>, vector<1x64x64xf32>
    %281 = vector.shape_cast %280 : vector<1x64x64xf32> to vector<64x64xf32>
    %cst_328 = arith.constant dense<0.000000e+00> : vector<1x64xf32>
    %282 = tpu.matmul %279, %281, %cst_328 {dimension_numbers = #tpu.dot_dimension_numbers<[1], [0], [0], [1], [0, 0, 1, 1], [], []>} : vector<1x64xf32>, vector<64x64xf32>, vector<1x64xf32> -> vector<1x64xf32>
    %283 = arith.addf %277, %282 : vector<1x64xf32>
    %284 = vector.extract_strided_slice %204 {offsets = [3, 1, 0], sizes = [1, 1, 64], strides = [1, 1, 1]} : vector<4x4x64xf32> to vector<1x1x64xf32>
    %285 = vector.shape_cast %284 : vector<1x1x64xf32> to vector<1x64xf32>
    %c13 = arith.constant 13 : index
    %c0_329 = arith.constant 0 : index
    %c0_330 = arith.constant 0 : index
    %286 = vector.load %arg8[%c13, %c0_329, %c0_330] : memref<16x64x64xf32, #tpu.memory_space<vmem>>, vector<1x64x64xf32>
    %287 = vector.shape_cast %286 : vector<1x64x64xf32> to vector<64x64xf32>
    %cst_331 = arith.constant dense<0.000000e+00> : vector<1x64xf32>
    %288 = tpu.matmul %285, %287, %cst_331 {dimension_numbers = #tpu.dot_dimension_numbers<[1], [0], [0], [1], [0, 0, 1, 1], [], []>} : vector<1x64xf32>, vector<64x64xf32>, vector<1x64xf32> -> vector<1x64xf32>
    %289 = arith.addf %283, %288 : vector<1x64xf32>
    %290 = vector.extract_strided_slice %204 {offsets = [3, 2, 0], sizes = [1, 1, 64], strides = [1, 1, 1]} : vector<4x4x64xf32> to vector<1x1x64xf32>
    %291 = vector.shape_cast %290 : vector<1x1x64xf32> to vector<1x64xf32>
    %c14 = arith.constant 14 : index
    %c0_332 = arith.constant 0 : index
    %c0_333 = arith.constant 0 : index
    %292 = vector.load %arg8[%c14, %c0_332, %c0_333] : memref<16x64x64xf32, #tpu.memory_space<vmem>>, vector<1x64x64xf32>
    %293 = vector.shape_cast %292 : vector<1x64x64xf32> to vector<64x64xf32>
    %cst_334 = arith.constant dense<0.000000e+00> : vector<1x64xf32>
    %294 = tpu.matmul %291, %293, %cst_334 {dimension_numbers = #tpu.dot_dimension_numbers<[1], [0], [0], [1], [0, 0, 1, 1], [], []>} : vector<1x64xf32>, vector<64x64xf32>, vector<1x64xf32> -> vector<1x64xf32>
    %295 = arith.addf %289, %294 : vector<1x64xf32>
    %296 = vector.extract_strided_slice %204 {offsets = [3, 3, 0], sizes = [1, 1, 64], strides = [1, 1, 1]} : vector<4x4x64xf32> to vector<1x1x64xf32>
    %297 = vector.shape_cast %296 : vector<1x1x64xf32> to vector<1x64xf32>
    %c15 = arith.constant 15 : index
    %c0_335 = arith.constant 0 : index
    %c0_336 = arith.constant 0 : index
    %298 = vector.load %arg8[%c15, %c0_335, %c0_336] : memref<16x64x64xf32, #tpu.memory_space<vmem>>, vector<1x64x64xf32>
    %299 = vector.shape_cast %298 : vector<1x64x64xf32> to vector<64x64xf32>
    %cst_337 = arith.constant dense<0.000000e+00> : vector<1x64xf32>
    %300 = tpu.matmul %297, %299, %cst_337 {dimension_numbers = #tpu.dot_dimension_numbers<[1], [0], [0], [1], [0, 0, 1, 1], [], []>} : vector<1x64xf32>, vector<64x64xf32>, vector<1x64xf32> -> vector<1x64xf32>
    %301 = arith.addf %295, %300 : vector<1x64xf32>
    %c0_338 = arith.constant 0 : index
    %c0_339 = arith.constant 0 : index
    %302 = vector.load %arg10[%c0_338, %c0_339] : memref<64x10xf32, #tpu.memory_space<vmem>>, vector<64x10xf32>
    %cst_340 = arith.constant dense<0.000000e+00> : vector<1x10xf32>
    %303 = tpu.matmul %301, %302, %cst_340 {dimension_numbers = #tpu.dot_dimension_numbers<[1], [0], [0], [1], [0, 0, 1, 1], [], []>} : vector<1x64xf32>, vector<64x10xf32>, vector<1x10xf32> -> vector<1x10xf32>
    %c0_341 = arith.constant 0 : index
    %c0_342 = arith.constant 0 : index
    %304 = vector.load %arg11[%c0_341, %c0_342] : memref<1x10xf32, #tpu.memory_space<vmem>>, vector<1x10xf32>
    %305 = arith.addf %303, %304 : vector<1x10xf32>
    %c0_343 = arith.constant 0 : index
    %c0_344 = arith.constant 0 : index
    %c0_345 = arith.constant 0 : index
    %306 = vector.load %arg12[%c0_343, %c0_344, %c0_345] : memref<1x1x10xf32, #tpu.memory_space<vmem>>, vector<1x1x10xf32>
    %307 = vector.shape_cast %306 : vector<1x1x10xf32> to vector<1x10xf32>
    %308 = vector.shape_cast %305 : vector<1x10xf32> to vector<1x1x10xf32>
    tpu.vector_store %arg12[%c0_343, %c0_344, %c0_345], %308 {strides = array<i32>} : memref<1x1x10xf32, #tpu.memory_space<vmem>>, vector<1x1x10xf32>,
    return
  }
  func.func @transform_0(%arg0: i32) -> (i32, i32, i32) {
    %c0_i32 = arith.constant 0 : i32
    %c0_i32_0 = arith.constant 0 : i32
    %c0_i32_1 = arith.constant 0 : i32
    return %arg0, %c0_i32, %c0_i32_0 : i32, i32, i32
  }
  func.func @transform_1(%arg0: i32) -> (i32, i32) {
    %c0_i32 = arith.constant 0 : i32
    %c0_i32_0 = arith.constant 0 : i32
    %c0_i32_1 = arith.constant 0 : i32
    return %c0_i32, %c0_i32_0 : i32, i32
  }
  func.func @transform_2(%arg0: i32) -> (i32, i32) {
    %c0_i32 = arith.constant 0 : i32
    %c0_i32_0 = arith.constant 0 : i32
    %c0_i32_1 = arith.constant 0 : i32
    return %c0_i32, %c0_i32_0 : i32, i32
  }
  func.func @transform_3(%arg0: i32) -> (i32, i32) {
    %c0_i32 = arith.constant 0 : i32
    %c0_i32_0 = arith.constant 0 : i32
    %c0_i32_1 = arith.constant 0 : i32
    return %c0_i32, %c0_i32_0 : i32, i32
  }
  func.func @transform_4(%arg0: i32) -> (i32, i32) {
    %c0_i32 = arith.constant 0 : i32
    %c0_i32_0 = arith.constant 0 : i32
    %c0_i32_1 = arith.constant 0 : i32
    return %c0_i32, %c0_i32_0 : i32, i32
  }
  func.func @transform_5(%arg0: i32) -> (i32, i32) {
    %c0_i32 = arith.constant 0 : i32
    %c0_i32_0 = arith.constant 0 : i32
    %c0_i32_1 = arith.constant 0 : i32
    return %c0_i32, %c0_i32_0 : i32, i32
  }
  func.func @transform_6(%arg0: i32) -> (i32, i32) {
    %c0_i32 = arith.constant 0 : i32
    %c0_i32_0 = arith.constant 0 : i32
    %c0_i32_1 = arith.constant 0 : i32
    return %c0_i32, %c0_i32_0 : i32, i32
  }
  func.func @transform_7(%arg0: i32) -> (i32, i32, i32) {
    %c0_i32 = arith.constant 0 : i32
    %c0_i32_0 = arith.constant 0 : i32
    %c0_i32_1 = arith.constant 0 : i32
    %c0_i32_2 = arith.constant 0 : i32
    return %c0_i32, %c0_i32_0, %c0_i32_1 : i32, i32, i32
  }
  func.func @transform_8(%arg0: i32) -> (i32, i32) {
    %c0_i32 = arith.constant 0 : i32
    %c0_i32_0 = arith.constant 0 : i32
    %c0_i32_1 = arith.constant 0 : i32
    return %c0_i32, %c0_i32_0 : i32, i32
  }
  func.func @transform_9(%arg0: i32) -> (i32, i32) {
    %c0_i32 = arith.constant 0 : i32
    %c0_i32_0 = arith.constant 0 : i32
    %c0_i32_1 = arith.constant 0 : i32
    return %c0_i32, %c0_i32_0 : i32, i32
  }
  func.func @transform_10(%arg0: i32) -> (i32, i32) {
    %c0_i32 = arith.constant 0 : i32
    %c0_i32_0 = arith.constant 0 : i32
    %c0_i32_1 = arith.constant 0 : i32
    return %c0_i32, %c0_i32_0 : i32, i32
  }
  func.func @transform_11(%arg0: i32) -> (i32, i32, i32) {
    %c0_i32 = arith.constant 0 : i32
    %c0_i32_0 = arith.constant 0 : i32
    %c0_i32_1 = arith.constant 0 : i32
    return %arg0, %c0_i32, %c0_i32_0 : i32, i32, i32
  }
}

</mosaic_0001>

<bundles_post_ra>
// kernel: nn_forward.1
= control target key start
LH: loop header
LB: loop body
LE: loop exit
PB: predicated region body
PF: predicated region fallthrough
CT: control target
= control target key end

     0   :  { %s15249_s0 = inlined_call_operand.vmem [shape: f32[2,1024,75], index: 0, kind: input, shape index: {}]   ;;  %s15250_s1 = inlined_call_operand.vmem [shape: f32[75,32], index: 1, kind: input, shape index: {}]   ;;  %s15251_s2 = inlined_call_operand.vmem [shape: f32[1,32], index: 2, kind: input, shape index: {}]   ;;  %s15252_s3 = inlined_call_operand.vmem [shape: f32[800,32], index: 3, kind: input, shape index: {}]   ;;  %s15253_s4 = inlined_call_operand.vmem [shape: f32[1,32], index: 4, kind: input, shape index: {}]   ;;  %s15254_s5 = inlined_call_operand.vmem [shape: f32[800,64], index: 5, kind: input, shape index: {}]   ;;  %s15255_s6 = inlined_call_operand.vmem [shape: f32[1,64], index: 6, kind: input, shape index: {}]   ;;  %s15256_s7 = inlined_call_operand.vmem [shape: f32[16,64,64], index: 7, kind: input, shape index: {}]   ;;  %s15257_s8 = inlined_call_operand.vmem [shape: f32[1,64], index: 8, kind: input, shape index: {}]   ;;  %s15258_s9 = inlined_call_operand.vmem [shape: f32[64,10], index: 9, kind: input, shape index: {}]   ;;  %s15259_s10 = inlined_call_operand.vmem [shape: f32[1,10], index: 10, kind: input, shape index: {}]   ;;  %s15260_s11 = inlined_call_operand.hbm [shape: f32[2,1,10], index: 11, kind: output, shape index: {}]  }
   0x1   :  { %15274 = sst [smem:[#allocation99_spill]] %s15249_s0 }
   0x2   :  { %15275 = sst [smem:[#allocation100_spill]] %s15250_s1 }
   0x3   :  { %16 = vsyncpa [#allocation10], 0 }
   0x4   :  { %18 = vsyncpa [#allocation10 + $0x1], 0  ;;  %s9559_s17 = smov 0   ;;  %s9561_s18 = smov 0  }
   0x5   :  { %s9563_s19 = smov 0   ;;  %s9565_s20 = smov 0  }
   0x6 LB: > { %s9580_s21 = sadd.s32 4294967295, %s9493_s20   ;;  %s9035_s22 = sadd.s32 4294967294, %s9493_s20   ;;  %s9493_s20 = sphi %s9565_s20, %s15474_s20   ;;  %s9489_s19 = sphi %s9563_s19, %s15473_s19   ;;  %s9485_s18 = sphi %s9561_s18, %s15472_s18   ;;  %s9481_s17 = sphi %s9559_s17, %s15471_s17  }
   0x7   : > { %s9584_s23 = sadd.s32 1, %s9493_s20   ;;  %s267_s24 = sadd.s32 1, %s9489_s19 }
   0x8   : > { %s264_s25 = ssub.s32 %s9493_s20, %s9584_s23  ;;  %p277_p0 = scmp.ne.s32.totalorder %s9489_s19, %s9485_s18 }
   0x9   : > { %p265_p1 = scmp.eq.s32.totalorder %s264_s25, 0  ;;  %p278_p2 = scmp.eq.s32.totalorder %s9580_s21, 1 }
   0xa   : > { %p283_p3 = scmp.ne.s32.totalorder %s9485_s18, %s9481_s17  ;;  %p284_p4 = scmp.eq.s32.totalorder %s9035_s22, 1 }
   0xb   : > { %s9595_s26 = scalar_select %p265_p1, %s9489_s19, %s267_s24  }
   0xc   : > { %p9597_p5 = por %p278_p2, %p277_p0  ;;  %p9601_p6 = por %p284_p4, %p283_p3 }
   0xd   : > { %p9038_p7 = scmp.ge.s32.totalorder %s9493_s20, 1  ;;  %p340_p8 = scmp.lt.s32.totalorder %s9493_s20, 3 }
   0xf   : > { %p341_p9 = pnand %p9038_p7, %p340_p8 }
  0x11   : > { %344 = sbr.rel (%p341_p9) target bundleno = 2683 (0xa7b), region = 64 }
  0x16   : > { %s15278_s1 = sld [smem:[#allocation100_spill]]  ;;  %vm911_vm0 = vcmask 1042432   ;;  %p379_p10 = scmp.lt.s32.totalorder %s9580_s21, 1  ;;  %vm526_vm1 = vcmask 613376   ;;  %vm1380_vm2 = vcmask 261120   ;;  %v9495_v23 = vmov 0.0  }
  0x17   : > { %s15279_s0 = sld [smem:[#allocation99_spill]]  ;;  %1608 = vst.msk [vmem:[#allocation3 + $0x18] sm:$0xff] %vm1380_vm2, %v9495_v23  ;;  %vm1606_vm3 = vcmask 257024   ;;  %s15261_s16 = smov 64   ;;  %vm1922_vm4 = vcmask 523520   ;;  %vm2115_vm5 = vcmask 785920  }
  0x18   : > { %s380_s29 = scalar_select %p379_p10, %s9580_s21, 1  ;;  %1609 = vst.msk [vmem:[#allocation3 + $0x20] sm:$0xff] %vm1380_vm2, %v9495_v23  ;;  %vm2308_vm6 = vcmask 1048320   ;;  %vm8381_vm7 = vcmask 523264   ;;  %vm8965_vm8 = vcmask 73728  }
  0x19   : > { %1604 = vst.msk [vmem:[#allocation3] sm:$0xff] %vm1380_vm2, %v9495_v23  ;;  %s15270_s22 = smov 96   ;;  %s15291_s24 = smov 96  }
  0x1a   : > { %s9349_s15 = sshll.u32 %s380_s29, 10  ;;  %1605 = vst.msk [vmem:[#allocation3 + $0x8] sm:$0xff] %vm1380_vm2, %v9495_v23  ;;  %s15293_s14 = smov 32  }
  0x1b   : > { %1611 = vst.msk [vmem:[#allocation3 + $0x30] sm:$0xff] %vm1380_vm2, %v9495_v23 }
  0x1c   : > { %v521_v0 = vld [vmem:[%s15278_s1 + $0x48] sm:$0x7]  ;;  %v520_v1 = vld [vmem:[%s15278_s1 + $0x40] sm:$0xff]  ;;  %v519_v2 = vld [vmem:[%s15278_s1 + $0x38] sm:$0xff]  ;;  %1612 = vst.msk [vmem:[#allocation3 + $0x38] sm:$0xff] %vm1380_vm2, %v9495_v23 }
  0x1d   : > { %9041 = vmatpush.msk.msra.mxu0 %vm911_vm0, %v521_v0  ;;  %9350 = vmatpush.msk.msra.mxu1 %vm911_vm0, %v521_v0  ;;  %v518_v3 = vld [vmem:[%s15278_s1 + $0x30] sm:$0xff]  ;;  %v517_v4 = vld [vmem:[%s15278_s1 + $0x28] sm:$0xff]  ;;  %v516_v5 = vld [vmem:[%s15278_s1 + $0x20] sm:$0xff]  ;;  %s9639_s13 = scalar_lea.vmem %s15279_s0, %s9349_s15  ;;  %1614 = vst.msk [vmem:[#allocation3 + $0x48] sm:$0xff] %vm1380_vm2, %v9495_v23  ;;  %s15272_s15 = smov 32  }
  0x1e   : > { %9351 = vmatpush.msk.msra.mxu2 %vm911_vm0, %v521_v0  ;;  %9352 = vmatpush.msk.msra.mxu3 %vm911_vm0, %v521_v0  ;;  %v515_v6 = vld [vmem:[%s15278_s1 + $0x18] sm:$0xff]  ;;  %v514_v7 = vld [vmem:[%s15278_s1 + $0x10] sm:$0xff]  ;;  %v513_v8 = vld [vmem:[%s15278_s1 + $0x8] sm:$0xff]  ;;  %1615 = vst.msk [vmem:[#allocation3 + $0x50] sm:$0xff] %vm1380_vm2, %v9495_v23  ;;  %s377_s0 = sand.u32 1, %s9485_s18  }
  0x1f   : > { %922 = vmatpush.msra.mxu0 %v520_v1  ;;  %9353 = vmatpush.msra.mxu1 %v520_v1  ;;  %v512_v9 = vld [vmem:[%s15278_s1] sm:$0xff]  ;;  %v495_v11 = vld [vmem:[%s9639_s13 + $0x378] sm:$0xff]  ;;  %v385_v13 = vld [vmem:[%s9639_s13 + $0x8] sm:$0xff]  ;;  %1617 = vst.msk [vmem:[#allocation3 + $0x60] sm:$0xff] %vm1380_vm2, %v9495_v23  ;;  %s8968_s25 = scalar_lea.sflag [#allocation10], %s377_s0 }
  0x20   : > { %9354 = vmatpush.msra.mxu2 %v520_v1  ;;  %9355 = vmatpush.msra.mxu3 %v520_v1  ;;  %v384_v10 = vld [vmem:[%s9639_s13] sm:$0xff]  ;;  %v501_v15 = vld [vmem:[%s9639_s13 + $0x3a8] sm:$0xff]  ;;  %v386_v16 = vld [vmem:[%s9639_s13 + $0x10] sm:$0xff]  ;;  %1618 = vst.msk [vmem:[#allocation3 + $0x68] sm:$0xff] %vm1380_vm2, %v9495_v23 }
  0x21   : > { %923 = vmatpush.msra.mxu0 %v519_v2  ;;  %9356 = vmatpush.msra.mxu1 %v519_v2  ;;  %v500_v12 = vld [vmem:[%s9639_s13 + $0x3a0] sm:$0xff]  ;;  %v497_v17 = vld [vmem:[%s9639_s13 + $0x388] sm:$0xff]  ;;  %v502_v18 = vld [vmem:[%s9639_s13 + $0x3b0] sm:$0xff]  ;;  %1620 = vst.msk [vmem:[#allocation3 + $0x78] sm:$0xff] %vm1380_vm2, %v9495_v23 }
  0x22   : > { %9357 = vmatpush.msra.mxu2 %v519_v2  ;;  %9358 = vmatpush.msra.mxu3 %v519_v2  ;;  %v496_v14 = vld [vmem:[%s9639_s13 + $0x380] sm:$0xff]  ;;  %v387_v19 = vld [vmem:[%s9639_s13 + $0x18] sm:$0xff]  ;;  %v498_v20 = vld [vmem:[%s9639_s13 + $0x390] sm:$0xff]  ;;  %1621 = vst.msk [vmem:[#allocation3 + $0x80] sm:$0xff] %vm1380_vm2, %v9495_v23 }
  0x23   : > { %924 = vmatpush.msra.mxu0 %v518_v3  ;;  %9359 = vmatpush.msra.mxu1 %v518_v3  ;;  %v503_v21 = vld [vmem:[%s9639_s13 + $0x3b8] sm:$0xff]  ;;  %v508_v22 = vld [vmem:[%s9639_s13 + $0x3e0] sm:$0xff]  ;;  %v509_v28 = vld [vmem:[%s9639_s13 + $0x3e8] sm:$0xff]  ;;  %1623 = vst.msk [vmem:[#allocation3 + $0x90] sm:$0xff] %vm1380_vm2, %v9495_v23 }
  0x24   : > { %9360 = vmatpush.msra.mxu2 %v518_v3  ;;  %9361 = vmatpush.msra.mxu3 %v518_v3  ;;  %v388_v24 = vld [vmem:[%s9639_s13 + $0x20] sm:$0xff]  ;;  %v499_v25 = vld [vmem:[%s9639_s13 + $0x398] sm:$0xff]  ;;  %v389_v29 = vld [vmem:[%s9639_s13 + $0x28] sm:$0xff]  ;;  %1624 = vst.msk [vmem:[#allocation3 + $0x98] sm:$0xff] %vm1380_vm2, %v9495_v23 }
  0x25   : > { %925 = vmatpush.msra.mxu0 %v517_v4  ;;  %9362 = vmatpush.msra.mxu1 %v517_v4  ;;  %v504_v26 = vld [vmem:[%s9639_s13 + $0x3c0] sm:$0xff]  ;;  %v505_v30 = vld [vmem:[%s9639_s13 + $0x3c8] sm:$0xff]  ;;  %1626 = vst.msk [vmem:[#allocation3 + $0xa8] sm:$0xff] %vm1380_vm2, %v9495_v23  ;;  %v390_v31 = vld [vmem:[%s9639_s13 + $0x30] sm:$0xff] }
  0x26   : > { %9363 = vmatpush.msra.mxu2 %v517_v4  ;;  %9364 = vmatpush.msra.mxu3 %v517_v4  ;;  %v9692_v27 = vld [vmem:[#allocation3 + $0x19] sm:$0xff]  ;;  %1627 = vst.msk [vmem:[#allocation3 + $0xb0] sm:$0xff] %vm1380_vm2, %v9495_v23  ;;  %v506_v33 = vld [vmem:[%s9639_s13 + $0x3d0] sm:$0xff]  ;;  %v1762_v35 = vld [vmem:[#allocation3 + $0x1] sm:$0xff] }
  0x27   : > { %926 = vmatpush.msra.mxu0 %v516_v5  ;;  %9365 = vmatpush.msra.mxu1 %v516_v5  ;;  %1629 = vst.msk [vmem:[#allocation3 + $0xc0] sm:$0xff] %vm1380_vm2, %v9495_v23  ;;  %v391_v32 = vld [vmem:[%s9639_s13 + $0x38] sm:$0xff]  ;;  %v510_v34 = vld [vmem:[%s9639_s13 + $0x3f0] sm:$0xff]  ;;  %v392_v36 = vld [vmem:[%s9639_s13 + $0x40] sm:$0xff] }
  0x28   : > { %9366 = vmatpush.msra.mxu2 %v516_v5  ;;  %9367 = vmatpush.msra.mxu3 %v516_v5  ;;  %1630 = vst.msk [vmem:[#allocation3 + $0xc8] sm:$0xff] %vm1380_vm2, %v9495_v23  ;;  %v507_v37 = vld [vmem:[%s9639_s13 + $0x3d8] sm:$0xff]  ;;  %v393_v39 = vld [vmem:[%s9639_s13 + $0x48] sm:$0xff]  ;;  %v394_v40 = vld [vmem:[%s9639_s13 + $0x50] sm:$0xff] }
  0x29   : > { %927 = vmatpush.msra.mxu0 %v515_v6  ;;  %9368 = vmatpush.msra.mxu1 %v515_v6  ;;  %1632 = vst.msk [vmem:[#allocation3 + $0xd8] sm:$0xff] %vm1380_vm2, %v9495_v23  ;;  %v511_v38 = vld [vmem:[%s9639_s13 + $0x3f8] sm:$0xff]  ;;  %v1955_v44 = vld [vmem:[#allocation3 + $0x2] sm:$0xff]  ;;  %v398_v55 = vld [vmem:[%s9639_s13 + $0x70] sm:$0xff] }
  0x2a   : > { %9369 = vmatpush.msra.mxu2 %v515_v6  ;;  %9370 = vmatpush.msra.mxu3 %v515_v6  ;;  %1633 = vst.msk [vmem:[#allocation3 + $0xe0] sm:$0xff] %vm1380_vm2, %v9495_v23  ;;  %v395_v42 = vld [vmem:[%s9639_s13 + $0x58] sm:$0xff]  ;;  %v396_v47 = vld [vmem:[%s9639_s13 + $0x60] sm:$0xff]  ;;  %v397_v51 = vld [vmem:[%s9639_s13 + $0x68] sm:$0xff] }
  0x2b   : > { %928 = vmatpush.msra.mxu0 %v514_v7  ;;  %9371 = vmatpush.msra.mxu1 %v514_v7  ;;  %1635 = vst.msk [vmem:[#allocation3 + $0xf0] sm:$0xff] %vm1380_vm2, %v9495_v23  ;;  %v1957_v45 = vld [vmem:[#allocation3 + $0x1a] sm:$0xff]  ;;  %v2148_v49 = vld [vmem:[#allocation3 + $0x3] sm:$0xff] }
  0x2c   : > { %9372 = vmatpush.msra.mxu2 %v514_v7  ;;  %9373 = vmatpush.msra.mxu3 %v514_v7  ;;  %1636 = vst.msk [vmem:[#allocation3 + $0xf8] sm:$0xff] %vm1380_vm2, %v9495_v23  ;;  %v2150_v50 = vld [vmem:[#allocation3 + $0x1b] sm:$0xff]  ;;  %v401_v3 = vld [vmem:[%s9639_s13 + $0x88] sm:$0xff] }
  0x2d   : > { %929 = vmatpush.msra.mxu0 %v513_v8  ;;  %9374 = vmatpush.msra.mxu1 %v513_v8  ;;  %1638 = vst.msk [vmem:[#allocation3 + $0x108] sm:$0xff] %vm1380_vm2, %v9495_v23  ;;  %v2406_v54 = vld [vmem:[#allocation3 + $0x18] sm:$0xff]  ;;  %v2407_v56 = vld [vmem:[#allocation3 + $0x20] sm:$0xff] }
  0x2e   : > { %9375 = vmatpush.msra.mxu2 %v513_v8  ;;  %9376 = vmatpush.msra.mxu3 %v513_v8  ;;  %1639 = vst.msk [vmem:[#allocation3 + $0x110] sm:$0xff] %vm1380_vm2, %v9495_v23  ;;  %v399_v57 = vld [vmem:[%s9639_s13 + $0x78] sm:$0xff]  ;;  %v400_v60 = vld [vmem:[%s9639_s13 + $0x80] sm:$0xff] }
  0x2f   : > { %930 = vmatpush.msra.mxu0 %v512_v9  ;;  %9377 = vmatpush.msra.mxu1 %v512_v9  ;;  %1641 = vst.msk [vmem:[#allocation3 + $0x120] sm:$0xff] %vm1380_vm2, %v9495_v23  ;;  %v3046_v62 = vld [vmem:[#allocation3 + $0x1c] sm:$0xff] }
  0x30   : > { %9042 = vmatmul.msk.f32.vlgmr.msra.gmra.mxu0 %vm526_vm1, %v384_v10  ;;  %9153 = vmatmul.msk.f32.vlgmr.msra.gmra.mxu1 %vm526_vm1, %v495_v11  ;;  %1642 = vst.msk [vmem:[#allocation3 + $0x128] sm:$0xff] %vm1380_vm2, %v9495_v23  ;;  %v9918_v0 = vld [vmem:[%s15251_s2] ss:$0 sm:$0xff]  ;;  %v402_v11 = vld [vmem:[%s9639_s13 + $0x90] sm:$0xff] }
  0x31   : > { %9378 = vmatpush.msra.mxu2 %v512_v9  ;;  %9379 = vmatpush.msra.mxu3 %v512_v9  ;;  %1644 = vst.msk [vmem:[#allocation3 + $0x138] sm:$0xff] %vm1380_vm2, %v9495_v23 }
  0x32   : > { %9158 = vmatmul.msk.f32.vlgmr.msra.gmra.mxu2 %vm526_vm1, %v500_v12  ;;  %9166 = vmatmul.msk.f32.vlgmr.msra.gmra.mxu3 %vm526_vm1, %v508_v22  ;;  %1645 = vst.msk [vmem:[#allocation3 + $0x140] sm:$0xff] %vm1380_vm2, %v9495_v23 }
  0x33   : > { %1830 = vrot.lane.b32.xlu1 %v9692_v27, %s15272_s15  ;;  %1647 = vst.msk [vmem:[#allocation3 + $0x150] sm:$0xff] %vm1380_vm2, %v9495_v23  ;;  %1826 = vrot.lane.b32.xlu0 %v1762_v35, %s15272_s15 }
  0x34   : > { %1648 = vst.msk [vmem:[#allocation3 + $0x158] sm:$0xff] %vm1380_vm2, %v9495_v23  ;;  %2019 = vrot.lane.b32.xlu2 %v1955_v44, %s15261_s16 }
  0x35   : > { %1650 = vst.msk [vmem:[#allocation3 + $0x168] sm:$0xff] %vm1380_vm2, %v9495_v23 }
  0x36   : > { %1651 = vst.msk [vmem:[#allocation3 + $0x170] sm:$0xff] %vm1380_vm2, %v9495_v23 }
  0x37   : > { %1653 = vst.msk [vmem:[#allocation3 + $0x180] sm:$0xff] %vm1380_vm2, %v9495_v23 }
  0x38   : > { %9043 = vmatmul.msk.f32.gmra.mxu0 %vm526_vm1, %v385_v13  ;;  %9154 = vmatmul.msk.f32.gmra.mxu1 %vm526_vm1, %v496_v14  ;;  %1654 = vst.msk [vmem:[#allocation3 + $0x188] sm:$0xff] %vm1380_vm2, %v9495_v23 }
  0x39   : > { %1656 = vst.msk [vmem:[#allocation3 + $0x198] sm:$0xff] %vm1380_vm2, %v9495_v23 }
  0x3a   : > { %9159 = vmatmul.msk.f32.gmra.mxu2 %vm526_vm1, %v501_v15  ;;  %9167 = vmatmul.msk.f32.gmra.mxu3 %vm526_vm1, %v509_v28  ;;  %1657 = vst.msk [vmem:[#allocation3 + $0x1a0] sm:$0xff] %vm1380_vm2, %v9495_v23 }
  0x3b   : > { %1659 = vst.msk [vmem:[#allocation3 + $0x1b0] sm:$0xff] %vm1380_vm2, %v9495_v23 }
  0x3c   : > { %1660 = vst.msk [vmem:[#allocation3 + $0x1b8] sm:$0xff] %vm1380_vm2, %v9495_v23 }
  0x3d   : > { %1662 = vst.msk [vmem:[#allocation3 + $0x1c8] sm:$0xff] %vm1380_vm2, %v9495_v23 }
  0x3e   : > { %1663 = vst.msk [vmem:[#allocation3 + $0x1d0] sm:$0xff] %vm1380_vm2, %v9495_v23 }
  0x3f   : > { %6894 = vst.msk [vmem:[#allocation6] sm:$0xff] %vm1380_vm2, %v9495_v23 }
  0x40   : > { %9044 = vmatmul.msk.f32.gmra.mxu0 %vm526_vm1, %v386_v16  ;;  %9155 = vmatmul.msk.f32.gmra.mxu1 %vm526_vm1, %v497_v17  ;;  %6896 = vst.msk [vmem:[#allocation6 + $0x10] sm:$0xff] %vm1380_vm2, %v9495_v23 }
  0x41   : > { %6898 = vst.msk [vmem:[#allocation6 + $0x20] sm:$0xff] %vm1380_vm2, %v9495_v23 }
  0x42   : > { %9160 = vmatmul.msk.f32.gmra.mxu2 %vm526_vm1, %v502_v18  ;;  %9168 = vmatmul.msk.f32.gmra.mxu3 %vm526_vm1, %v510_v34  ;;  %6900 = vst.msk [vmem:[#allocation6 + $0x30] sm:$0xff] %vm1380_vm2, %v9495_v23  ;;  %v4101_v61 = vld [vmem:[#allocation3 + $0x1b0] sm:$0xff]  ;;  %v403_v18 = vld [vmem:[%s9639_s13 + $0x98] sm:$0xff] }
  0x43   : > { %6902 = vst.msk [vmem:[#allocation6 + $0x40] sm:$0xff] %vm1380_vm2, %v9495_v23  ;;  %v4102_v8 = vld [vmem:[#allocation3 + $0x1b8] sm:$0xff] }
  0x44   : > { %6904 = vst.msk [vmem:[#allocation6 + $0x50] sm:$0xff] %vm1380_vm2, %v9495_v23 }
  0x45   : > { %6906 = vst.msk [vmem:[#allocation6 + $0x60] sm:$0xff] %vm1380_vm2, %v9495_v23 }
  0x46   : > { %6908 = vst.msk [vmem:[#allocation6 + $0x70] sm:$0xff] %vm1380_vm2, %v9495_v23 }
  0x47   : > { %6910 = vst.msk [vmem:[#allocation6 + $0x80] sm:$0xff] %vm1380_vm2, %v9495_v23 }
  0x48   : > { %9045 = vmatmul.msk.f32.gmra.mxu0 %vm526_vm1, %v387_v19  ;;  %9156 = vmatmul.msk.f32.gmra.mxu1 %vm526_vm1, %v498_v20  ;;  %6912 = vst.msk [vmem:[#allocation6 + $0x90] sm:$0xff] %vm1380_vm2, %v9495_v23 }
  0x49   : > { %6914 = vst.msk [vmem:[#allocation6 + $0xa0] sm:$0xff] %vm1380_vm2, %v9495_v23 }
  0x4a   : > { %9161 = vmatmul.msk.f32.gmra.mxu2 %vm526_vm1, %v503_v21  ;;  %9169 = vmatmul.msk.f32.gmra.mxu3 %vm526_vm1, %v511_v38  ;;  %6916 = vst.msk [vmem:[#allocation6 + $0xb0] sm:$0xff] %vm1380_vm2, %v9495_v23 }
  0x4b   : > { %1610 = vst.msk [vmem:[#allocation3 + $0x28] sm:$0xf] %vm1606_vm3, %v9495_v23 }
  0x4c   : > { %1607 = vst.msk [vmem:[#allocation3 + $0x10] sm:$0xf] %vm1606_vm3, %v9495_v23 }
  0x4d   : > { %1613 = vst.msk [vmem:[#allocation3 + $0x40] sm:$0xf] %vm1606_vm3, %v9495_v23 }
  0x4e   : > { %1616 = vst.msk [vmem:[#allocation3 + $0x58] sm:$0xf] %vm1606_vm3, %v9495_v23 }
  0x4f   : > { %1619 = vst.msk [vmem:[#allocation3 + $0x70] sm:$0xf] %vm1606_vm3, %v9495_v23 }
  0x50   : > { %9046 = vmatmul.msk.f32.gmra.mxu0 %vm526_vm1, %v388_v24  ;;  %9157 = vmatmul.msk.f32.gmra.mxu1 %vm526_vm1, %v499_v25  ;;  %1622 = vst.msk [vmem:[#allocation3 + $0x88] sm:$0xf] %vm1606_vm3, %v9495_v23 }
  0x51   : > { %1625 = vst.msk [vmem:[#allocation3 + $0xa0] sm:$0xf] %vm1606_vm3, %v9495_v23 }
  0x52   : > { %9162 = vmatmul.msk.f32.gmra.mxu2 %vm526_vm1, %v504_v26  ;;  %v9823_v41 = vld [vmem:[#allocation3 + $0x21] sm:$0xff]  ;;  %1628 = vst.msk [vmem:[#allocation3 + $0xb8] sm:$0xf] %vm1606_vm3, %v9495_v23 }
  0x53   : > { %1832 = vrot.lane.b32.xlu1 %v9823_v41, %s15272_s15  ;;  %1631 = vst.msk [vmem:[#allocation3 + $0xd0] sm:$0xf] %vm1606_vm3, %v9495_v23  ;;  %v1763_v43 = vld [vmem:[#allocation3 + $0x9] sm:$0xff] }
  0x54   : > { %1634 = vst.msk [vmem:[#allocation3 + $0xe8] sm:$0xf] %vm1606_vm3, %v9495_v23  ;;  %1828 = vrot.lane.b32.xlu0 %v1763_v43, %s15272_s15  ;;  %v1956_v46 = vld [vmem:[#allocation3 + $0xa] sm:$0xff]  ;;  %v1958_v48 = vld [vmem:[#allocation3 + $0x22] sm:$0xff] }
  0x55   : > { %1637 = vst.msk [vmem:[#allocation3 + $0x100] sm:$0xf] %vm1606_vm3, %v9495_v23  ;;  %2025 = vrot.lane.b32.xlu2 %v1958_v48, %s15261_s16  ;;  %v2149_v52 = vld [vmem:[#allocation3 + $0xb] sm:$0xff]  ;;  %v2151_v53 = vld [vmem:[#allocation3 + $0x23] sm:$0xff] }
  0x56   : > { %1640 = vst.msk [vmem:[#allocation3 + $0x118] sm:$0xf] %vm1606_vm3, %v9495_v23  ;;  %v3047_v63 = vld [vmem:[#allocation3 + $0x24] sm:$0xff] }
  0x57   : > { %1643 = vst.msk [vmem:[#allocation3 + $0x130] sm:$0xf] %vm1606_vm3, %v9495_v23 }
  0x58   : > { %9047 = vmatmul.msk.f32.gmra.mxu0 %vm526_vm1, %v389_v29  ;;  %1646 = vst.msk [vmem:[#allocation3 + $0x148] sm:$0xf] %vm1606_vm3, %v9495_v23 }
  0x59   : > { %1649 = vst.msk [vmem:[#allocation3 + $0x160] sm:$0xf] %vm1606_vm3, %v9495_v23 }
  0x5a   : > { %9163 = vmatmul.msk.f32.gmra.mxu2 %vm526_vm1, %v505_v30  ;;  %1652 = vst.msk [vmem:[#allocation3 + $0x178] sm:$0xf] %vm1606_vm3, %v9495_v23  ;;  %v404_v30 = vld [vmem:[%s9639_s13 + $0xa0] sm:$0xff] }
  0x5b   : > { %1655 = vst.msk [vmem:[#allocation3 + $0x190] sm:$0xf] %vm1606_vm3, %v9495_v23  ;;  %2023 = vrot.lane.b32.xlu1 %v1957_v45, %s15261_s16 }
  0x5c   : > { %1658 = vst.msk [vmem:[#allocation3 + $0x1a8] sm:$0xf] %vm1606_vm3, %v9495_v23  ;;  %2021 = vrot.lane.b32.xlu0 %v1956_v46, %s15261_s16 }
  0x5d   : > { %1661 = vst.msk [vmem:[#allocation3 + $0x1c0] sm:$0xf] %vm1606_vm3, %v9495_v23  ;;  %2214 = vrot.lane.b32.xlu2 %v2149_v52, %s15270_s22 }
  0x5e   : > { %1664 = vst.msk [vmem:[#allocation3 + $0x1d8] sm:$0xf] %vm1606_vm3, %v9495_v23 }
  0x5f   : > { %6895 = vst.msk [vmem:[#allocation6 + $0x8] sm:$0xf] %vm1606_vm3, %v9495_v23 }
  0x60   : > { %9048 = vmatmul.msk.f32.gmra.mxu0 %vm526_vm1, %v390_v31  ;;  %6897 = vst.msk [vmem:[#allocation6 + $0x18] sm:$0xf] %vm1606_vm3, %v9495_v23 }
  0x61   : > { %6899 = vst.msk [vmem:[#allocation6 + $0x28] sm:$0xf] %vm1606_vm3, %v9495_v23 }
  0x62   : > { %9164 = vmatmul.msk.f32.gmra.mxu2 %vm526_vm1, %v506_v33  ;;  %6901 = vst.msk [vmem:[#allocation6 + $0x38] sm:$0xf] %vm1606_vm3, %v9495_v23 }
  0x63   : > { %6903 = vst.msk [vmem:[#allocation6 + $0x48] sm:$0xf] %vm1606_vm3, %v9495_v23  ;;  %2212 = vrot.lane.b32.xlu1 %v2148_v49, %s15270_s22  ;;  %v1698_v49 = vld [vmem:[#allocation3] sm:$0xff] }
  0x64   : > { %6905 = vst.msk [vmem:[#allocation6 + $0x58] sm:$0xf] %vm1606_vm3, %v9495_v23  ;;  %2216 = vrot.lane.b32.xlu0 %v2150_v50, %s15270_s22 }
  0x65   : > { %6907 = vst.msk [vmem:[#allocation6 + $0x68] sm:$0xf] %vm1606_vm3, %v9495_v23  ;;  %2662 = vrot.lane.b32.xlu2 %v9692_v27, %s15261_s16 }
  0x66   : > { %6909 = vst.msk [vmem:[#allocation6 + $0x78] sm:$0xf] %vm1606_vm3, %v9495_v23 }
  0x67   : > { %6911 = vst.msk [vmem:[#allocation6 + $0x88] sm:$0xf] %vm1606_vm3, %v9495_v23 }
  0x68   : > { %9049 = vmatmul.msk.f32.gmra.mxu0 %vm526_vm1, %v391_v32  ;;  %6913 = vst.msk [vmem:[#allocation6 + $0x98] sm:$0xf] %vm1606_vm3, %v9495_v23 }
  0x69   : > { %6915 = vst.msk [vmem:[#allocation6 + $0xa8] sm:$0xf] %vm1606_vm3, %v9495_v23 }
  0x6a   : > { %9165 = vmatmul.msk.f32.gmra.mxu2 %vm526_vm1, %v507_v37  ;;  %6917 = vst.msk [vmem:[#allocation6 + $0xb8] sm:$0xf] %vm1606_vm3, %v9495_v23 }
  0x6b   : > { %2218 = vrot.lane.b32.xlu1 %v2151_v53, %s15270_s22  ;;  %1732 = vst.msk [vmem:[#allocation4 + $0x70] sm:$0xff] %vm1380_vm2, %v2406_v54 }
  0x6c   : > { %2470 = vrot.lane.b32.xlu0 %v2406_v54, %s15272_s15  ;;  %1733 = vst.msk [vmem:[#allocation4 + $0xa8] sm:$0xff] %vm1380_vm2, %v2407_v56 }
  0x6d   : > { %3015 = vst.msk [vmem:[#allocation4 + $0x48] sm:$0xff] %vm1380_vm2, %v2151_v53  ;;  %2856 = vrot.lane.b32.xlu2 %v1958_v48, %s15270_s22 }
  0x6e   : > { %3014 = vst.msk [vmem:[#allocation4 + $0x10] sm:$0xff] %vm1380_vm2, %v2150_v50 }
  0x6f   : > { %2375 = vst.msk [vmem:[#allocation4 + $0x78] sm:$0xff] %vm1380_vm2, %v3046_v62 }
  0x70   : > { %9050 = vmatmul.msk.f32.gmra.mxu0 %vm526_vm1, %v392_v36  ;;  %1730 = vst.msk [vmem:[#allocation4] sm:$0xff] %vm1380_vm2, %v1698_v49 }
  0x73   : > { %2472 = vrot.lane.b32.xlu1 %v2407_v56, %s15272_s15 }
  0x74   : > { %2664 = vrot.lane.b32.xlu0 %v9823_v41, %s15261_s16 }
  0x75   : > { %4195 = vrot.lane.b32.xlu2 %v4101_v61, %s15270_s22 }
  0x78   : > { %9051 = vmatmul.msk.f32.gmra.mxu0 %vm526_vm1, %v393_v39 }
  0x7b   : > { %2854 = vrot.lane.b32.xlu1 %v1957_v45, %s15270_s22 }
  0x7c   : > { %3110 = vrot.lane.b32.xlu0 %v3046_v62, %s15272_s15 }
  0x80   : > { %9052 = vmatmul.msk.f32.gmra.mxu0 %vm526_vm1, %v394_v40 }
  0x83   : > { %3112 = vrot.lane.b32.xlu1 %v3047_v63, %s15272_s15 }
  0x88   : > { %9053 = vmatmul.msk.f32.gmra.mxu0 %vm526_vm1, %v395_v42  ;;  %v405_v42 = vld [vmem:[%s9639_s13 + $0xa8] sm:$0xff] }
  0x8b   : > { %4197 = vrot.lane.b32.xlu1 %v4102_v8, %s15270_s22 }
  0x90   : > { %9054 = vmatmul.msk.f32.gmra.mxu0 %vm526_vm1, %v396_v47 }
  0x98   : > { %9055 = vmatmul.msk.f32.gmra.mxu0 %vm526_vm1, %v397_v51 }
  0xa0   : > { %9056 = vmatmul.msk.f32.gmra.mxu0 %vm526_vm1, %v398_v55 }
  0xa5   : > { %v1831_v21 = vpop.permute.xlu1 %1830  ;;  %v1827_v61 = vpop.permute.xlu0 %1826 }
  0xa6   : > { %1925 = vst.msk [vmem:[#allocation4 + $0x70] sm:$0xff] %vm1922_vm4, %v1831_v21  ;;  %v5863_v21 = vld [vmem:[%s15252_s3 + $0xf8] sm:$0xff] }
  0xa7   : > { %1923 = vst.msk [vmem:[#allocation4] sm:$0xff] %vm1922_vm4, %v1827_v61  ;;  %6145 = vmatpush.msrb.mxu2 %v5863_v21  ;;  %v409_v61 = vld [vmem:[%s9639_s13 + $0xc8] sm:$0xff] }
  0xa8   : > { %9057 = vmatmul.msk.f32.gmra.mxu0 %vm526_vm1, %v399_v57 }
  0xad   : > { %v932_v58 = vpop.f32.mrf.mxu0  ;;  %v9907_v59 = vpop.f32.mrf.mxu1 }
  0xae   : > { %v933_v27 = vadd.f32 %v9918_v0, %v932_v58  ;;  %v406_v58 = vld [vmem:[%s9639_s13 + $0xb0] sm:$0xff] }
  0xb0   : > { %9058 = vmatmul.msk.f32.gmra.mxu0 %vm526_vm1, %v400_v60 }
  0xb5   : > { %v935_v1 = vpop.f32.mrf.mxu0  ;;  %v1268_v2 = vpop.f32.mrf.mxu1 }
  0xb6   : > { %v1269_v4 = vadd.f32 %v9918_v0, %v1268_v2  ;;  %v1280_v5 = vpop.f32.mrf.mxu2  ;;  %v936_v37 = vadd.f32 %v9918_v0, %v935_v1  ;;  %v1304_v48 = vpop.f32.mrf.mxu3 }
  0xb7   : > { %v1281_v6 = vadd.f32 %v9918_v0, %v1280_v5  ;;  %v1305_v53 = vadd.f32 %v9918_v0, %v1304_v48  ;;  %v5844_v48 = vld [vmem:[%s15252_s3 + $0x60] sm:$0xff] }
  0xb8   : > { %9059 = vmatmul.msk.f32.gmra.mxu0 %vm526_vm1, %v401_v3 }
  0xb9   : > { %v1372_v7 = vmax.f32 %v1269_v4, %v1281_v6 }
  0xbb   : > { %1437 = vst.msk [vmem:[#allocation2 + $0x1c0] sm:$0xff] %vm1380_vm2, %v1372_v7  ;;  %v1699_v7 = vld [vmem:[#allocation3 + $0x8] sm:$0xff] }
  0xbc   : > { %1731 = vst.msk [vmem:[#allocation4 + $0x38] sm:$0xff] %vm1380_vm2, %v1699_v7  ;;  %v5855_v7 = vld [vmem:[%s15252_s3 + $0xb8] sm:$0xff] }
  0xbd   : > { %v9926_v9 = vpop.f32.mrf.mxu0  ;;  %v1271_v10 = vpop.f32.mrf.mxu1 }
  0xbe   : > { %v1272_v12 = vadd.f32 %v9918_v0, %v1271_v10  ;;  %v1283_v13 = vpop.f32.mrf.mxu2  ;;  %v939_v55 = vadd.f32 %v9918_v0, %v9926_v9  ;;  %v1307_v3 = vpop.f32.mrf.mxu3 }
  0xbf   : > { %v1284_v14 = vadd.f32 %v9918_v0, %v1283_v13  ;;  %v1308_v6 = vadd.f32 %v9918_v0, %v1307_v3 }
  0xc0   : > { %9060 = vmatmul.msk.f32.gmra.mxu0 %vm526_vm1, %v402_v11 }
  0xc1   : > { %v1373_v15 = vmax.f32 %v1272_v12, %v1284_v14  ;;  %v2020_v12 = vpop.permute.xlu2 %2019  ;;  %v407_v14 = vld [vmem:[%s9639_s13 + $0xb8] sm:$0xff] }
  0xc2   : > { %2116 = vst.msk [vmem:[#allocation4] sm:$0xff] %vm2115_vm5, %v2020_v12  ;;  %v5854_v12 = vld [vmem:[%s15252_s3 + $0xb0] sm:$0xff] }
  0xc3   : > { %1438 = vst.msk [vmem:[#allocation2 + $0x1c8] sm:$0xff] %vm1380_vm2, %v1373_v15 }
  0xc5   : > { %v9934_v16 = vpop.f32.mrf.mxu0  ;;  %v1274_v17 = vpop.f32.mrf.mxu1 }
  0xc6   : > { %v1275_v19 = vadd.f32 %v9918_v0, %v1274_v17  ;;  %v1286_v20 = vpop.f32.mrf.mxu2  ;;  %v942_v8 = vadd.f32 %v9918_v0, %v9934_v16  ;;  %v1833_v3 = vpop.permute.xlu1 %1832 }
  0xc7   : > { %v1287_v22 = vadd.f32 %v9918_v0, %v1286_v20  ;;  %1926 = vst.msk [vmem:[#allocation4 + $0xa8] sm:$0xff] %vm1922_vm4, %v1833_v3 }
  0xc8   : > { %9061 = vmatmul.msk.f32.gmra.mxu0 %vm526_vm1, %v403_v18 }
  0xc9   : > { %v1374_v23 = vmax.f32 %v1275_v19, %v1287_v22  ;;  %v5847_v22 = vld [vmem:[%s15252_s3 + $0x78] sm:$0xff] }
  0xca   : > { %v1501_v24 = vld [vmem:[#allocation2 + $0x1c0] ss:$2 sm:$0xff]  ;;  %v1565_v25 = vld [vmem:[#allocation2 + $0x1c1] ss:$2 sm:$0xff]  ;;  %6032 = vmatpush.msrb.mxu1 %v5847_v22 }
  0xcb   : > { %v1600_v26 = vmax.f32 %v1501_v24, %v1565_v25  ;;  %1439 = vst.msk [vmem:[#allocation2 + $0x1d0] sm:$0xff] %vm1380_vm2, %v1374_v23  ;;  %v1310_v24 = vpop.f32.mrf.mxu3  ;;  %v5862_v25 = vld [vmem:[%s15252_s3 + $0xf0] sm:$0xff] }
  0xcc   : > { %6146 = vmatpush.msrb.mxu2 %v5862_v25  ;;  %v5837_v25 = vld [vmem:[%s15252_s3 + $0x28] sm:$0xff] }
  0xcd   : > { %1694 = vst.msk [vmem:[#allocation3 + $0x182] sm:$0xff] %vm1380_vm2, %v1600_v26  ;;  %v944_v28 = vpop.f32.mrf.mxu0  ;;  %v1277_v29 = vpop.f32.mrf.mxu1  ;;  %v5846_v26 = vld [vmem:[%s15252_s3 + $0x70] sm:$0xff] }
  0xce   : > { %v945_v31 = vadd.f32 %v9918_v0, %v944_v28  ;;  %v1278_v32 = vadd.f32 %v9918_v0, %v1277_v29  ;;  %v1289_v33 = vpop.f32.mrf.mxu2  ;;  %v1311_v29 = vadd.f32 %v9918_v0, %v1310_v24  ;;  %6033 = vmatpush.msrb.mxu1 %v5846_v26  ;;  %v5852_v26 = vld [vmem:[%s15252_s3 + $0xa0] sm:$0xff] }
  0xcf   : > { %v1290_v34 = vadd.f32 %v9918_v0, %v1289_v33 }
  0xd0   : > { %v1316_v35 = vmax.f32 %v933_v27, %v945_v31  ;;  %9062 = vmatmul.msk.f32.gmra.mxu0 %vm526_vm1, %v404_v30  ;;  %v5861_v30 = vld [vmem:[%s15252_s3 + $0xe8] sm:$0xff] }
  0xd1   : > { %v1375_v36 = vmax.f32 %v1278_v32, %v1290_v34  ;;  %v408_v34 = vld [vmem:[%s9639_s13 + $0xc0] sm:$0xff]  ;;  %6147 = vmatpush.msrb.mxu2 %v5861_v30 }
  0xd2   : > { %1381 = vst.msk [vmem:[#allocation2] sm:$0xff] %vm1380_vm2, %v1316_v35 }
  0xd3   : > { %1440 = vst.msk [vmem:[#allocation2 + $0x1d8] sm:$0xff] %vm1380_vm2, %v1375_v36 }
  0xd4   : > { %v2820_v38 = vld [vmem:[#allocation3 + $0x182] sm:$0xff] }
  0xd5   : > { %v2628_v39 = vld [vmem:[#allocation3 + $0x181] sm:$0xff]  ;;  %2914 = vrot.lane.b32.xlu1 %v2820_v38, %s15270_s22  ;;  %v947_v41 = vpop.f32.mrf.mxu0  ;;  %3682 = vst.msk [vmem:[#allocation4 + $0x638] sm:$0xff] %vm1380_vm2, %v2820_v38 }
  0xd6   : > { %v2436_v40 = vld [vmem:[#allocation3 + $0x180] sm:$0xff]  ;;  %2722 = vrot.lane.b32.xlu2 %v2628_v39, %s15261_s16  ;;  %v948_v45 = vadd.f32 %v9918_v0, %v947_v41  ;;  %v1292_v47 = vpop.f32.mrf.mxu2 }
  0xd7   : > { %v9956_v43 = vld [vmem:[#allocation3 + $0x181] sm:$0xff]  ;;  %2530 = vrot.lane.b32.xlu0 %v2436_v40, %s15272_s15  ;;  %v1293_v52 = vadd.f32 %v9918_v0, %v1292_v47 }
  0xd8   : > { %v4928_v44 = vld [vmem:[#allocation3 + $0x180] sm:$0xff]  ;;  %4321 = vst.msk [vmem:[#allocation4 + $0x5d0] sm:$0xff] %vm1380_vm2, %v9956_v43  ;;  %v1317_v46 = vmax.f32 %v936_v37, %v948_v45  ;;  %9063 = vmatmul.msk.f32.gmra.mxu0 %vm526_vm1, %v405_v42  ;;  %v5845_v42 = vld [vmem:[%s15252_s3 + $0x68] sm:$0xff] }
  0xd9   : > { %4960 = vst.msk [vmem:[#allocation4 + $0x568] sm:$0xff] %vm1380_vm2, %v4928_v44  ;;  %v1376_v56 = vmax.f32 %v1293_v52, %v1305_v53  ;;  %v5860_v44 = vld [vmem:[%s15252_s3 + $0xe0] sm:$0xff]  ;;  %6034 = vmatpush.msrb.mxu1 %v5845_v42  ;;  %v5859_v52 = vld [vmem:[%s15252_s3 + $0xd8] sm:$0xff]  ;;  %v5850_v42 = vld [vmem:[%s15252_s3 + $0x90] sm:$0xff] }
  0xda   : > { %v1503_v50 = vld [vmem:[#allocation2 + $0x1d0] ss:$2 sm:$0xff]  ;;  %v1567_v51 = vld [vmem:[#allocation2 + $0x1d1] ss:$2 sm:$0xff]  ;;  %1382 = vst.msk [vmem:[#allocation2 + $0x8] sm:$0xff] %vm1380_vm2, %v1317_v46  ;;  %6148 = vmatpush.msrb.mxu2 %v5860_v44  ;;  %v5849_v44 = vld [vmem:[%s15252_s3 + $0x88] sm:$0xff] }
  0xdb   : > { %v1601_v54 = vmax.f32 %v1503_v50, %v1567_v51  ;;  %1441 = vst.msk [vmem:[#allocation2 + $0x1e0] sm:$0xff] %vm1380_vm2, %v1376_v56  ;;  %v1313_v51 = vpop.f32.mrf.mxu3  ;;  %6035 = vmatpush.msrb.mxu1 %v5844_v48  ;;  %v5843_v53 = vld [vmem:[%s15252_s3 + $0x58] sm:$0xff]  ;;  %v5858_v56 = vld [vmem:[%s15252_s3 + $0xd0] sm:$0xff] }
  0xdc   : > { %6149 = vmatpush.msrb.mxu2 %v5859_v52 }
  0xdd   : > { %1695 = vst.msk [vmem:[#allocation3 + $0x18a] sm:$0xff] %vm1380_vm2, %v1601_v54  ;;  %v950_v57 = vpop.f32.mrf.mxu0  ;;  %6036 = vmatpush.msrb.mxu1 %v5843_v53  ;;  %v412_v53 = vld [vmem:[%s9639_s13 + $0xe0] sm:$0xff] }
  0xde   : > { %3550 = vrot.lane.b32.xlu2 %v2628_v39, %s15270_s22  ;;  %v951_v60 = vadd.f32 %v9918_v0, %v950_v57  ;;  %v1295_v2 = vpop.f32.mrf.mxu2  ;;  %v5842_v57 = vld [vmem:[%s15252_s3 + $0x50] sm:$0xff]  ;;  %6150 = vmatpush.msrb.mxu2 %v5858_v56 }
  0xdf   : > { %3358 = vrot.lane.b32.xlu0 %v2436_v40, %s15261_s16  ;;  %v1296_v5 = vadd.f32 %v9918_v0, %v1295_v2  ;;  %6037 = vmatpush.msrb.mxu1 %v5842_v57  ;;  %v5856_v2 = vld [vmem:[%s15252_s3 + $0xc0] sm:$0xff] }
  0xe0   : > { %v1318_v62 = vmax.f32 %v939_v55, %v951_v60  ;;  %9064 = vmatmul.msk.f32.gmra.mxu0 %vm526_vm1, %v406_v58  ;;  %v1314_v55 = vadd.f32 %v9918_v0, %v1313_v51  ;;  %v2342_v58 = vld [vmem:[#allocation3 + $0xc] sm:$0xff] }
  0xe1   : > { %v1445_v63 = vld [vmem:[#allocation2] ss:$2 sm:$0xff]  ;;  %v1509_v1 = vld [vmem:[#allocation2 + $0x1] ss:$2 sm:$0xff]  ;;  %v1377_v11 = vmax.f32 %v1296_v5, %v1308_v6  ;;  %2374 = vst.msk [vmem:[#allocation4 + $0x40] sm:$0xff] %vm1380_vm2, %v2342_v58  ;;  %v2026_v5 = vpop.permute.xlu2 %2025 }
  0xe2   : > { %v1572_v4 = vmax.f32 %v1445_v63, %v1509_v1  ;;  %1383 = vst.msk [vmem:[#allocation2 + $0x10] sm:$0xff] %vm1380_vm2, %v1318_v62  ;;  %v5857_v63 = vld [vmem:[%s15252_s3 + $0xc8] sm:$0xff]  ;;  %v5840_v6 = vld [vmem:[%s15252_s3 + $0x40] sm:$0xff] }
  0xe3   : > { %1442 = vst.msk [vmem:[#allocation2 + $0x1e8] sm:$0xff] %vm1380_vm2, %v1377_v11  ;;  %v5841_v1 = vld [vmem:[%s15252_s3 + $0x48] sm:$0xff]  ;;  %6151 = vmatpush.msrb.mxu2 %v5857_v63  ;;  %v5839_v11 = vld [vmem:[%s15252_s3 + $0x38] sm:$0xff] }
  0xe4   : > { %1666 = vst.msk [vmem:[#allocation3 + $0x32] sm:$0xff] %vm1380_vm2, %v1572_v4  ;;  %v9985_v9 = vld [vmem:[#allocation3 + $0x188] sm:$0xff]  ;;  %v1829_v4 = vpop.permute.xlu0 %1828  ;;  %6038 = vmatpush.msrb.mxu1 %v5841_v1 }
  0xe5   : > { %v9987_v10 = vld [vmem:[#allocation3 + $0x189] sm:$0xff]  ;;  %2532 = vrot.lane.b32.xlu1 %v9985_v9, %s15272_s15  ;;  %v953_v13 = vpop.f32.mrf.mxu0  ;;  %1924 = vst.msk [vmem:[#allocation4 + $0x38] sm:$0xff] %vm1922_vm4, %v1829_v4  ;;  %6152 = vmatpush.msrb.mxu2 %v5856_v2 }
  0xe6   : > { %4187 = vrot.lane.b32.xlu2 %v2436_v40, %s15270_s22  ;;  %v9994_v15 = vld [vmem:[#allocation3 + $0x183] sm:$0xff]  ;;  %v954_v16 = vadd.f32 %v9918_v0, %v953_v13  ;;  %v10000_v18 = vld [vmem:[#allocation3 + $0x18b] sm:$0xff]  ;;  %v1298_v23 = vpop.f32.mrf.mxu2  ;;  %2119 = vst.msk [vmem:[#allocation4 + $0xa8] sm:$0xff] %vm2115_vm5, %v2026_v5  ;;  %6039 = vmatpush.msrb.mxu1 %v5840_v6 }
  0xe7   : > { %2724 = vrot.lane.b32.xlu0 %v9987_v10, %s15261_s16  ;;  %v2821_v17 = vld [vmem:[#allocation3 + $0x18a] sm:$0xff]  ;;  %3045 = vst.msk [vmem:[#allocation4 + $0x6d8] sm:$0xff] %vm1380_vm2, %v10000_v18  ;;  %v1299_v28 = vadd.f32 %v9918_v0, %v1298_v23  ;;  %s15283_s16 = smov 64   ;;  %6153 = vmatpush.msrb.mxu2 %v5855_v7 }
  0xe8   : > { %v1319_v19 = vmax.f32 %v942_v8, %v954_v16  ;;  %9065 = vmatmul.msk.f32.gmra.mxu0 %vm526_vm1, %v407_v14  ;;  %3044 = vst.msk [vmem:[#allocation4 + $0x6a0] sm:$0xff] %vm1380_vm2, %v9994_v15  ;;  %v4929_v20 = vld [vmem:[#allocation3 + $0x188] sm:$0xff]  ;;  %6040 = vmatpush.msrb.mxu1 %v5839_v11 }
  0xe9   : > { %3683 = vst.msk [vmem:[#allocation4 + $0x670] sm:$0xff] %vm1380_vm2, %v2821_v17  ;;  %v10021_v27 = vld [vmem:[#allocation3 + $0x189] sm:$0xff]  ;;  %v1378_v39 = vmax.f32 %v1299_v28, %v1311_v29  ;;  %6154 = vmatpush.msrb.mxu2 %v5854_v12  ;;  %v5836_v29 = vld [vmem:[%s15252_s3 + $0x20] sm:$0xff] }
  0xea   : > { %1384 = vst.msk [vmem:[#allocation2 + $0x18] sm:$0xff] %vm1380_vm2, %v1319_v19  ;;  %v10033_v33 = vld [vmem:[#allocation3 + $0x18c] sm:$0xff]  ;;  %v10041_v35 = vld [vmem:[#allocation3 + $0x184] sm:$0xff] }
  0xeb   : > { %15280 = vst [vmem:[#allocation12_spill] sm:$0xff] %v10021_v27  ;;  %v10028_v31 = vld [vmem:[#allocation3 + $0x30] sm:$0xff]  ;;  %v1505_v37 = vld [vmem:[#allocation2 + $0x1e0] ss:$2 sm:$0xff]  ;;  %v1569_v38 = vld [vmem:[#allocation2 + $0x1e1] ss:$2 sm:$0xff] }
  0xec   : > { %v10030_v32 = vld [vmem:[#allocation3 + $0x32] sm:$0xff]  ;;  %4961 = vst.msk [vmem:[#allocation4 + $0x5a0] sm:$0xff] %vm1380_vm2, %v4929_v20  ;;  %v1602_v40 = vmax.f32 %v1505_v37, %v1569_v38  ;;  %v10049_v41 = vld [vmem:[#allocation3 + $0x184] sm:$0xff]  ;;  %v2022_v28 = vpop.permute.xlu0 %2021 }
  0xed   : > { %1734 = vst.msk [vmem:[#allocation4 + $0xe0] sm:$0xff] %vm1380_vm2, %v10028_v31  ;;  %3172 = vrot.lane.b32.xlu1 %v10033_v33, %s15272_s15  ;;  %v10043_v36 = vpop.f32.mrf.mxu0  ;;  %v10060_v45 = vld [vmem:[#allocation3 + $0x18c] sm:$0xff]  ;;  %v2341_v8 = vld [vmem:[#allocation3 + $0x4] sm:$0xff]  ;;  %v5835_v38 = vld [vmem:[%s15252_s3 + $0x18] sm:$0xff] }
  0xee   : > { %2916 = vrot.lane.b32.xlu2 %v2821_v17, %s15270_s22  ;;  %3654 = vst.msk [vmem:[#allocation4 + $0x18] sm:$0xff] %vm1380_vm2, %v10030_v32  ;;  %v1301_v50 = vpop.f32.mrf.mxu2  ;;  %v5838_v17 = vld [vmem:[%s15252_s3 + $0x30] sm:$0xff]  ;;  %v5853_v23 = vld [vmem:[%s15252_s3 + $0xa8] sm:$0xff]  ;;  %v957_v51 = vadd.f32 %v9918_v0, %v10043_v36 }
  0xef   : > { %3170 = vrot.lane.b32.xlu0 %v10041_v35, %s15272_s15  ;;  %15281 = vst [vmem:[#allocation13_spill] sm:$0xff] %v10049_v41  ;;  %v1302_v54 = vadd.f32 %v9918_v0, %v1301_v50  ;;  %6041 = vmatpush.msrb.mxu1 %v5838_v17  ;;  %v5832_v50 = vld [vmem:[%s15252_s3] sm:$0xff]  ;;  %v413_v1 = vld [vmem:[%s9639_s13 + $0xe8] sm:$0xff]  ;;  %v414_v17 = vld [vmem:[%s9639_s13 + $0xf0] sm:$0xff] }
  0xf0   : > { %4322 = vst.msk [vmem:[#allocation4 + $0x608] sm:$0xff] %vm1380_vm2, %v10021_v27  ;;  %9066 = vmatmul.msk.f32.gmra.mxu0 %vm526_vm1, %v408_v34  ;;  %6155 = vmatpush.msrb.mxu2 %v5853_v23  ;;  %v2215_v34 = vpop.permute.xlu2 %2214 }
  0xf1   : > { %1443 = vst.msk [vmem:[#allocation2 + $0x1f0] sm:$0xff] %vm1380_vm2, %v1378_v39  ;;  %v1447_v46 = vld [vmem:[#allocation2 + $0x10] ss:$2 sm:$0xff]  ;;  %v1511_v47 = vld [vmem:[#allocation2 + $0x11] ss:$2 sm:$0xff]  ;;  %v1379_v62 = vmax.f32 %v1302_v54, %v1314_v55  ;;  %6042 = vmatpush.msrb.mxu1 %v5837_v25 }
  0xf2   : > { %15282 = vst [vmem:[#allocation14_spill] sm:$0xff] %v10060_v45  ;;  %v1573_v49 = vmax.f32 %v1447_v46, %v1511_v47  ;;  %6156 = vmatpush.msrb.mxu2 %v5852_v26 }
  0xf3   : > { %1696 = vst.msk [vmem:[#allocation3 + $0x19a] sm:$0xff] %vm1380_vm2, %v1602_v40  ;;  %6043 = vmatpush.msrb.mxu1 %v5836_v29  ;;  %v411_v40 = vld [vmem:[%s9639_s13 + $0xd8] sm:$0xff] }
  0xf4   : > { %5600 = vst.msk [vmem:[#allocation4 + $0x570] sm:$0xff] %vm1380_vm2, %v10049_v41  ;;  %v2217_v48 = vpop.permute.xlu0 %2216 }
  0xf5   : > { %5601 = vst.msk [vmem:[#allocation4 + $0x5a8] sm:$0xff] %vm1380_vm2, %v10060_v45  ;;  %3360 = vrot.lane.b32.xlu1 %v9985_v9, %s15283_s16  ;;  %v10090_v60 = vpop.f32.mrf.mxu0  ;;  %6044 = vmatpush.msrb.mxu1 %v5835_v38 }
  0xf6   : > { %1667 = vst.msk [vmem:[#allocation3 + $0x3a] sm:$0xff] %vm1380_vm2, %v1573_v49  ;;  %4189 = vrot.lane.b32.xlu2 %v9985_v9, %s15270_s22  ;;  %v10115_v9 = vld [vmem:[#allocation3 + $0x31] sm:$0xff]  ;;  %v5848_v49 = vld [vmem:[%s15252_s3 + $0x80] sm:$0xff] }
  0xf7   : > { %3552 = vrot.lane.b32.xlu0 %v9987_v10, %s15270_s22  ;;  %1444 = vst.msk [vmem:[#allocation2 + $0x1f8] sm:$0xff] %vm1380_vm2, %v1379_v62  ;;  %v410_v10 = vld [vmem:[%s9639_s13 + $0xd0] sm:$0xff]  ;;  %v960_v62 = vadd.f32 %v9918_v0, %v10090_v60 }
  0xf8   : > { %9067 = vmatmul.msk.f32.gmra.mxu0 %vm526_vm1, %v409_v61  ;;  %2373 = vst.msk [vmem:[#allocation4 + $0x8] sm:$0xff] %vm1380_vm2, %v2341_v8  ;;  %v2663_v55 = vpop.permute.xlu2 %2662 }
  0xf9   : > { %2117 = vst.msk [vmem:[#allocation4 + $0x38] sm:$0xff] %vm2115_vm5, %v2022_v28 }
  0xfa   : > { %2310 = vst.msk [vmem:[#allocation4 + $0x38] sm:$0xff] %vm2308_vm6, %v2215_v34  ;;  %v3652_v47 = vld [vmem:[#allocation3 + $0x19a] sm:$0xff] }
  0xfb   : > { %3684 = vst.msk [vmem:[#allocation4 + $0x6a8] sm:$0xff] %vm1380_vm2, %v3652_v47  ;;  %v10226_v61 = vld [vmem:[#allocation3 + $0x199] sm:$0xff] }
  0xfc   : > { %v2471_v58 = vpop.permute.xlu0 %2470  ;;  %15284 = vst [vmem:[#allocation15_spill] sm:$0xff] %v10226_v61  ;;  %v4930_v5 = vld [vmem:[#allocation3 + $0x198] sm:$0xff] }
  0xfd   : > { %v10126_v13 = vld [vmem:[#allocation3 + $0x3b] sm:$0xff]  ;;  %3998 = vrot.lane.b32.xlu1 %v10041_v35, %s15283_s16  ;;  %v10134_v16 = vpop.f32.mrf.mxu0  ;;  %v10141_v20 = vld [vmem:[#allocation3 + $0x33] sm:$0xff]  ;;  %2566 = vst.msk [vmem:[#allocation4 + $0x8] sm:$0xff] %vm1922_vm4, %v2471_v58 }
  0xfe   : > { %v10128_v14 = vld [vmem:[#allocation3 + $0x38] sm:$0xff]  ;;  %1834 = vrot.lane.b32.xlu2 %v10115_v9, %s15272_s15  ;;  %3016 = vst.msk [vmem:[#allocation4 + $0x80] sm:$0xff] %vm1380_vm2, %v10141_v20  ;;  %v963_v11 = vadd.f32 %v9918_v0, %v10134_v16 }
  0xff   : > { %v10139_v19 = vld [vmem:[#allocation3 + $0x3a] sm:$0xff]  ;;  %1735 = vst.msk [vmem:[#allocation4 + $0x118] sm:$0xff] %vm1380_vm2, %v10128_v14  ;;  %3806 = vrot.lane.b32.xlu0 %v9994_v15, %s15272_s15  ;;  %v2024_v15 = vpop.permute.xlu1 %2023 }
 0x100   : > { %v1507_v21 = vld [vmem:[#allocation2 + $0x1f0] ss:$2 sm:$0xff]  ;;  %v1571_v22 = vld [vmem:[#allocation2 + $0x1f1] ss:$2 sm:$0xff]  ;;  %3017 = vst.msk [vmem:[#allocation4 + $0xb8] sm:$0xff] %vm1380_vm2, %v10126_v13  ;;  %9068 = vmatmul.msk.f32.gmra.mxu0 %vm526_vm1, %v410_v10  ;;  %v2857_v8 = vpop.permute.xlu2 %2856 }
 0x101   : > { %v1603_v24 = vmax.f32 %v1507_v21, %v1571_v22  ;;  %3655 = vst.msk [vmem:[#allocation4 + $0x50] sm:$0xff] %vm1380_vm2, %v10139_v19  ;;  %v10168_v30 = vld [vmem:[#allocation3 + $0x34] sm:$0xff]  ;;  %v2346_v37 = vld [vmem:[#allocation3 + $0x3c] sm:$0xff] }
 0x102   : > { %2118 = vst.msk [vmem:[#allocation4 + $0x70] sm:$0xff] %vm2115_vm5, %v2024_v15  ;;  %v5851_v35 = vld [vmem:[%s15252_s3 + $0x98] sm:$0xff] }
 0x103   : > { %1697 = vst.msk [vmem:[#allocation3 + $0x1a2] sm:$0xff] %vm1380_vm2, %v1603_v24  ;;  %6157 = vmatpush.msrb.mxu2 %v5851_v35  ;;  %v5615_v4 = vld [vmem:[#allocation4 + $0x38] sm:$0xff] }
 0x104   : > { %2377 = vst.msk [vmem:[#allocation4 + $0xe8] sm:$0xff] %vm1380_vm2, %v10168_v30  ;;  %v10270_v29 = vld [vmem:[#allocation3 + $0x39] sm:$0xff] }
 0x105   : > { %4000 = vrot.lane.b32.xlu1 %v10033_v33, %s15283_s16  ;;  %v10182_v39 = vpop.f32.mrf.mxu0  ;;  %v5834_v33 = vld [vmem:[%s15252_s3 + $0x10] sm:$0xff]  ;;  %2378 = vst.msk [vmem:[#allocation4 + $0x120] sm:$0xff] %vm1380_vm2, %v2346_v37  ;;  %6158 = vmatpush.msrb.mxu2 %v5850_v42  ;;  %v415_v37 = vld [vmem:[%s9639_s13 + $0xf8] sm:$0xff] }
 0x106   : > { %2474 = vrot.lane.b32.xlu2 %v10028_v31, %s15272_s15  ;;  %6045 = vmatpush.msrb.mxu1 %v5834_v33  ;;  %2311 = vst.msk [vmem:[#allocation4 + $0x70] sm:$0xff] %vm2308_vm6, %v2217_v48  ;;  %v966_v28 = vadd.f32 %v9918_v0, %v10182_v39  ;;  %v3049_v47 = vld [vmem:[#allocation3 + $0x3c] sm:$0xff] }
 0x107   : > { %3808 = vrot.lane.b32.xlu0 %v10000_v18, %s15272_s15  ;;  %v2213_v46 = vpop.permute.xlu1 %2212  ;;  %v5833_v18 = vld [vmem:[%s15252_s3 + $0x8] sm:$0xff]  ;;  %6159 = vmatpush.msrb.mxu2 %v5849_v44  ;;  %2758 = vst.msk [vmem:[#allocation4 + $0x8] sm:$0xff] %vm2115_vm5, %v2663_v55 }
 0x108   : > { %9069 = vmatmul.msk.f32.gmra.mxu0 %vm526_vm1, %v411_v40  ;;  %2309 = vst.msk [vmem:[#allocation4] sm:$0xff] %vm2308_vm6, %v2213_v46  ;;  %6046 = vmatpush.msrb.mxu1 %v5833_v18  ;;  %v10276_v35 = vpop.permute.xlu2 %4195 }
 0x109   : > { %6160 = vmatpush.msrb.mxu2 %v5848_v49  ;;  %4323 = vst.msk [vmem:[#allocation4 + $0x640] sm:$0xff] %vm1380_vm2, %v10226_v61  ;;  %v416_v49 = vld [vmem:[%s9639_s13 + $0x100] sm:$0xff] }
 0x10a   : > { %6047 = vmatpush.msrb.mxu1 %v5832_v50  ;;  %v10235_v2 = vld [vmem:[#allocation3 + $0x1a1] sm:$0xff]  ;;  %4962 = vst.msk [vmem:[#allocation4 + $0x5d8] sm:$0xff] %vm1380_vm2, %v4930_v5 }
 0x10b   : > { %15285 = vst [vmem:[#allocation16_spill] sm:$0xff] %v10235_v2  ;;  %v10237_v3 = vld [vmem:[#allocation3 + $0x19c] sm:$0xff] }
 0x10c   : > { %15286 = vst [vmem:[#allocation17_spill] sm:$0xff] %v10237_v3  ;;  %v4931_v10 = vld [vmem:[#allocation3 + $0x1a0] sm:$0xff] }
 0x10d   : > { %2666 = vrot.lane.b32.xlu1 %v10115_v9, %s15283_s16  ;;  %v968_v52 = vpop.f32.mrf.mxu0  ;;  %4324 = vst.msk [vmem:[#allocation4 + $0x678] sm:$0xff] %vm1380_vm2, %v10235_v2  ;;  %v5622_v22 = vld [vmem:[#allocation4 + $0x70] sm:$0xff] }
 0x10e   : > { %3302 = vrot.lane.b32.xlu2 %v10028_v31, %s15283_s16  ;;  %v969_v54 = vadd.f32 %v9918_v0, %v968_v52  ;;  %v3268_v31 = vld [vmem:[#allocation3 + $0x198] sm:$0xff]  ;;  %5602 = vst.msk [vmem:[#allocation4 + $0x5e0] sm:$0xff] %vm1380_vm2, %v10237_v3  ;;  %v3653_v52 = vld [vmem:[#allocation3 + $0x1a2] sm:$0xff] }
 0x10f   : > { %2027 = vrot.lane.b32.xlu0 %v10030_v32, %s15283_s16  ;;  %v2219_v56 = vpop.permute.xlu1 %2218  ;;  %v5608_v36 = vld [vmem:[#allocation4] sm:$0xff]  ;;  %4963 = vst.msk [vmem:[#allocation4 + $0x610] sm:$0xff] %vm1380_vm2, %v4931_v10 }
 0x110   : > { %v1320_v57 = vmax.f32 %v957_v51, %v969_v54  ;;  %9070 = vmatmul.msk.f32.gmra.mxu0 %vm526_vm1, %v412_v53  ;;  %2312 = vst.msk [vmem:[#allocation4 + $0xa8] sm:$0xff] %vm2308_vm6, %v2219_v56  ;;  %6048 = vmatmul.f32.vlgmr.msrb.gmra.mxu1 %v5608_v36  ;;  %v417_v56 = vld [vmem:[%s9639_s13 + $0x108] sm:$0xff] }
 0x111   : > { %3685 = vst.msk [vmem:[#allocation4 + $0x6e0] sm:$0xff] %vm1380_vm2, %v3653_v52  ;;  %v10318_v36 = vld [vmem:[#allocation3 + $0x1a4] sm:$0xff] }
 0x112   : > { %1385 = vst.msk [vmem:[#allocation2 + $0x20] sm:$0xff] %vm1380_vm2, %v1320_v57  ;;  %v3717_v52 = vld [vmem:[#allocation3 + $0x1a3] sm:$0xff] }
 0x113   : > { %15287 = vst [vmem:[#allocation18_spill] sm:$0xff] %v10318_v36 }
 0x114   : > { %5603 = vst.msk [vmem:[#allocation4 + $0x618] sm:$0xff] %vm1380_vm2, %v10318_v36 }
 0x115   : > { %3494 = vrot.lane.b32.xlu1 %v10115_v9, %s15270_s22  ;;  %v971_v63 = vpop.f32.mrf.mxu0  ;;  %v3460_v9 = vld [vmem:[#allocation3 + $0x199] sm:$0xff] }
 0x116   : > { %3362 = vrot.lane.b32.xlu2 %v3268_v31, %s15283_s16  ;;  %v972_v60 = vadd.f32 %v9918_v0, %v971_v63  ;;  %v418_v63 = vld [vmem:[%s9639_s13 + $0x110] sm:$0xff] }
 0x117   : > { %2858 = vrot.lane.b32.xlu0 %v10030_v32, %s15270_s22  ;;  %v2473_v6 = vpop.permute.xlu1 %2472  ;;  %v2665_v32 = vpop.permute.xlu0 %2664  ;;  %v5629_v39 = vld [vmem:[#allocation4 + $0xa8] sm:$0xff] }
 0x118   : > { %v1321_v7 = vmax.f32 %v960_v62, %v972_v60  ;;  %9071 = vmatmul.msk.f32.gmra.mxu0 %vm526_vm1, %v413_v1  ;;  %2567 = vst.msk [vmem:[#allocation4 + $0x40] sm:$0xff] %vm1922_vm4, %v2473_v6  ;;  %6051 = vmatmul.f32.gmra.mxu1 %v5615_v4 }
 0x119   : > { %2759 = vst.msk [vmem:[#allocation4 + $0x40] sm:$0xff] %vm2115_vm5, %v2665_v32  ;;  %v419_v32 = vld [vmem:[%s9639_s13 + $0x118] sm:$0xff] }
 0x11a   : > { %1386 = vst.msk [vmem:[#allocation2 + $0x28] sm:$0xff] %vm1380_vm2, %v1321_v7 }
 0x11b   : > { %2951 = vst.msk [vmem:[#allocation4 + $0x40] sm:$0xff] %vm2308_vm6, %v2857_v8 }
 0x11d   : > { %3554 = vrot.lane.b32.xlu1 %v3460_v9, %s15270_s22  ;;  %v974_v12 = vpop.f32.mrf.mxu0 }
 0x11e   : > { %4191 = vrot.lane.b32.xlu2 %v3268_v31, %s15270_s22  ;;  %v975_v21 = vadd.f32 %v9918_v0, %v974_v12  ;;  %v3269_v12 = vld [vmem:[#allocation3 + $0x1a0] sm:$0xff] }
 0x11f   : > { %2222 = vrot.lane.b32.xlu0 %v10126_v13, %s15270_s22  ;;  %v2855_v23 = vpop.permute.xlu1 %2854  ;;  %v3111_v15 = vpop.permute.xlu0 %3110 }
 0x120   : > { %v1322_v24 = vmax.f32 %v963_v11, %v975_v21  ;;  %9072 = vmatmul.msk.f32.gmra.mxu0 %vm526_vm1, %v414_v17  ;;  %2950 = vst.msk [vmem:[#allocation4 + $0x8] sm:$0xff] %vm2308_vm6, %v2855_v23  ;;  %6054 = vmatmul.f32.gmra.mxu1 %v5622_v22  ;;  %v3461_v11 = vld [vmem:[#allocation3 + $0x1a1] sm:$0xff] }
 0x121   : > { %v1449_v16 = vld [vmem:[#allocation2 + $0x20] ss:$2 sm:$0xff]  ;;  %v1513_v25 = vld [vmem:[#allocation2 + $0x21] ss:$2 sm:$0xff]  ;;  %3206 = vst.msk [vmem:[#allocation4 + $0x10] sm:$0xff] %vm1922_vm4, %v3111_v15  ;;  %v5879_v15 = vld [vmem:[%s15252_s3 + $0x178] sm:$0xff] }
 0x122   : > { %v1574_v26 = vmax.f32 %v1449_v16, %v1513_v25  ;;  %1387 = vst.msk [vmem:[#allocation2 + $0x30] sm:$0xff] %vm1380_vm2, %v1322_v24  ;;  %v5616_v50 = vld [vmem:[#allocation4 + $0x40] sm:$0xff]  ;;  %6258 = vmatpush.msrb.mxu3 %v5879_v15  ;;  %v5870_v15 = vld [vmem:[%s15252_s3 + $0x130] sm:$0xff] }
 0x123   : > { %v420_v21 = vld [vmem:[%s9639_s13 + $0x120] sm:$0xff] }
 0x124   : > { %1668 = vst.msk [vmem:[#allocation3 + $0x4a] sm:$0xff] %vm1380_vm2, %v1574_v26  ;;  %v3716_v26 = vld [vmem:[#allocation3 + $0x19b] sm:$0xff] }
 0x125   : > { %2029 = vrot.lane.b32.xlu1 %v10139_v19, %s15283_s16  ;;  %v977_v34 = vpop.f32.mrf.mxu0 }
 0x126   : > { %1836 = vrot.lane.b32.xlu2 %v10270_v29, %s15272_s15  ;;  %v978_v38 = vadd.f32 %v9918_v0, %v977_v34  ;;  %v5878_v34 = vld [vmem:[%s15252_s3 + $0x170] sm:$0xff] }
 0x127   : > { %2476 = vrot.lane.b32.xlu0 %v10128_v14, %s15272_s15  ;;  %v5609_v40 = vld [vmem:[#allocation4 + $0x8] sm:$0xff]  ;;  %v3113_v33 = vpop.permute.xlu1 %3112  ;;  %6259 = vmatpush.msrb.mxu3 %v5878_v34 }
 0x128   : > { %v1323_v42 = vmax.f32 %v966_v28, %v978_v38  ;;  %9073 = vmatmul.msk.f32.gmra.mxu0 %vm526_vm1, %v415_v37  ;;  %6161 = vmatmul.f32.vlgmr.msrb.gmra.mxu2 %v5609_v40  ;;  %3207 = vst.msk [vmem:[#allocation4 + $0x48] sm:$0xff] %vm1922_vm4, %v3113_v33  ;;  %v5877_v40 = vld [vmem:[%s15252_s3 + $0x168] sm:$0xff] }
 0x129   : > { %6057 = vmatmul.f32.gmra.mxu1 %v5629_v39  ;;  %6260 = vmatpush.msrb.mxu3 %v5877_v40  ;;  %v5867_v40 = vld [vmem:[%s15252_s3 + $0x118] sm:$0xff] }
 0x12a   : > { %1388 = vst.msk [vmem:[#allocation2 + $0x38] sm:$0xff] %vm1380_vm2, %v1323_v42 }
 0x12b   : > { %v10285_v44 = vld [vmem:[#allocation3 + $0x48] sm:$0xff] }
 0x12c   : > { %v10287_v46 = vld [vmem:[#allocation3 + $0x49] sm:$0xff]  ;;  %1736 = vst.msk [vmem:[#allocation4 + $0x150] sm:$0xff] %vm1380_vm2, %v10285_v44 }
 0x12d   : > { %v10289_v18 = vld [vmem:[#allocation3 + $0x4a] sm:$0xff]  ;;  %2860 = vrot.lane.b32.xlu1 %v10139_v19, %s15270_s22  ;;  %v980_v48 = vpop.f32.mrf.mxu0  ;;  %4295 = vst.msk [vmem:[#allocation4 + $0x20] sm:$0xff] %vm1380_vm2, %v10287_v46 }
 0x12e   : > { %2220 = vrot.lane.b32.xlu2 %v10141_v20, %s15270_s22  ;;  %3656 = vst.msk [vmem:[#allocation4 + $0x88] sm:$0xff] %vm1380_vm2, %v10289_v18  ;;  %v981_v10 = vadd.f32 %v9918_v0, %v980_v48  ;;  %v5875_v48 = vld [vmem:[%s15252_s3 + $0x158] sm:$0xff] }
 0x12f   : > { %3116 = vrot.lane.b32.xlu0 %v3049_v47, %s15272_s15  ;;  %v10358_v6 = vpop.permute.xlu1 %4197 }
 0x130   : > { %v10303_v51 = vpop.permute.xlu2 %2722  ;;  %9074 = vmatmul.msk.f32.gmra.mxu0 %vm526_vm1, %v416_v49  ;;  %6164 = vmatmul.f32.gmra.mxu2 %v5616_v50 }
 0x131   : > { %v1451_v19 = vld [vmem:[#allocation2 + $0x30] ss:$2 sm:$0xff]  ;;  %v1515_v53 = vld [vmem:[#allocation2 + $0x31] ss:$2 sm:$0xff] }
 0x132   : > { %v1575_v54 = vmax.f32 %v1451_v19, %v1515_v53  ;;  %v422_v53 = vld [vmem:[%s9639_s13 + $0x130] sm:$0xff] }
 0x134   : > { %1669 = vst.msk [vmem:[#allocation3 + $0x52] sm:$0xff] %vm1380_vm2, %v1575_v54  ;;  %v5874_v54 = vld [vmem:[%s15252_s3 + $0x150] sm:$0xff] }
 0x135   : > { %3942 = vrot.lane.b32.xlu1 %v10168_v30, %s15283_s16  ;;  %v983_v55 = vpop.f32.mrf.mxu0 }
 0x136   : > { %2668 = vrot.lane.b32.xlu2 %v10270_v29, %s15283_s16  ;;  %v984_v25 = vadd.f32 %v9918_v0, %v983_v55 }
 0x137   : > { %3304 = vrot.lane.b32.xlu0 %v10128_v14, %s15283_s16 }
 0x138   : > { %v10315_v57 = vpop.permute.xlu2 %3550  ;;  %9075 = vmatmul.msk.f32.gmra.mxu0 %vm526_vm1, %v417_v56 }
 0x13b   : > { %v10320_v58 = vld [vmem:[#allocation3 + $0x4b] sm:$0xff]  ;;  %v10326_v62 = vld [vmem:[#allocation3 + $0x53] sm:$0xff] }
 0x13c   : > { %v10324_v31 = vld [vmem:[#allocation3 + $0x52] sm:$0xff]  ;;  %3018 = vst.msk [vmem:[#allocation4 + $0xf0] sm:$0xff] %vm1380_vm2, %v10320_v58 }
 0x13d   : > { %3944 = vrot.lane.b32.xlu1 %v3049_v47, %s15283_s16  ;;  %v10333_v14 = vpop.f32.mrf.mxu0  ;;  %v10336_v1 = vld [vmem:[#allocation3 + $0x50] sm:$0xff]  ;;  %3019 = vst.msk [vmem:[#allocation4 + $0x128] sm:$0xff] %vm1380_vm2, %v10326_v62  ;;  %v5876_v47 = vld [vmem:[%s15252_s3 + $0x160] sm:$0xff] }
 0x13e   : > { %3114 = vrot.lane.b32.xlu2 %v10168_v30, %s15272_s15  ;;  %v4264_v60 = vld [vmem:[#allocation3 + $0x51] sm:$0xff]  ;;  %1737 = vst.msk [vmem:[#allocation4 + $0x188] sm:$0xff] %vm1380_vm2, %v10336_v1  ;;  %v987_v49 = vadd.f32 %v9918_v0, %v10333_v14  ;;  %6261 = vmatpush.msrb.mxu3 %v5876_v47  ;;  %v424_v47 = vld [vmem:[%s9639_s13 + $0x140] sm:$0xff] }
 0x13f   : > { %3750 = vrot.lane.b32.xlu0 %v10141_v20, %s15272_s15  ;;  %v10342_v4 = vld [vmem:[#allocation3 + $0x4c] sm:$0xff]  ;;  %v10348_v30 = vld [vmem:[#allocation3 + $0x54] sm:$0xff]  ;;  %3657 = vst.msk [vmem:[#allocation4 + $0xc0] sm:$0xff] %vm1380_vm2, %v10324_v31  ;;  %v3908_v20 = vld [vmem:[#allocation3 + $0x19c] sm:$0xff] }
 0x140   : > { %v10346_v5 = vpop.permute.xlu2 %4187  ;;  %9076 = vmatmul.msk.f32.gmra.mxu0 %vm526_vm1, %v418_v63  ;;  %4296 = vst.msk [vmem:[#allocation4 + $0x58] sm:$0xff] %vm1380_vm2, %v4264_v60  ;;  %v10419_v50 = vld [vmem:[#allocation3 + $0x51] sm:$0xff]  ;;  %6262 = vmatpush.msrb.mxu3 %v5875_v48  ;;  %v5873_v63 = vld [vmem:[%s15252_s3 + $0x148] sm:$0xff] }
 0x141   : > { %2379 = vst.msk [vmem:[#allocation4 + $0x158] sm:$0xff] %vm1380_vm2, %v10342_v4  ;;  %v5866_v48 = vld [vmem:[%s15252_s3 + $0x110] sm:$0xff] }
 0x142   : > { %2380 = vst.msk [vmem:[#allocation4 + $0x190] sm:$0xff] %vm1380_vm2, %v10348_v30  ;;  %6263 = vmatpush.msrb.mxu3 %v5874_v54 }
 0x144   : > { %6264 = vmatpush.msrb.mxu3 %v5873_v63 }
 0x145   : > { %4002 = vrot.lane.b32.xlu1 %v3908_v20, %s15283_s16  ;;  %v10363_v7 = vpop.f32.mrf.mxu0 }
 0x146   : > { %3496 = vrot.lane.b32.xlu2 %v10270_v29, %s15270_s22  ;;  %v421_v29 = vld [vmem:[%s9639_s13 + $0x128] sm:$0xff] }
 0x147   : > { %3752 = vrot.lane.b32.xlu0 %v10126_v13, %s15272_s15  ;;  %v10380_v22 = vpop.permute.xlu1 %2914 }
 0x148   : > { %v10368_v8 = vpop.permute.xlu2 %2916  ;;  %9077 = vmatmul.msk.f32.gmra.mxu0 %vm526_vm1, %v419_v32 }
 0x149   : > { %v10370_v9 = vpop.permute.xlu0 %2530 }
 0x14d   : > { %2478 = vrot.lane.b32.xlu1 %v10285_v44, %s15272_s15  ;;  %v992_v17 = vpop.f32.mrf.mxu0 }
 0x14e   : > { %3556 = vrot.lane.b32.xlu2 %v3461_v11, %s15270_s22  ;;  %v993_v13 = vadd.f32 %v9918_v0, %v992_v17  ;;  %v5872_v11 = vld [vmem:[%s15252_s3 + $0x140] sm:$0xff]  ;;  %v5871_v17 = vld [vmem:[%s15252_s3 + $0x138] sm:$0xff] }
 0x14f   : > { %3364 = vrot.lane.b32.xlu0 %v3269_v12, %s15283_s16  ;;  %6265 = vmatpush.msrb.mxu3 %v5872_v11 }
 0x150   : > { %v10382_v23 = vpop.permute.xlu2 %4189  ;;  %v1324_v24 = vmax.f32 %v981_v10, %v993_v13  ;;  %9078 = vmatmul.msk.f32.gmra.mxu0 %vm526_vm1, %v420_v21  ;;  %v990_v21 = vadd.f32 %v9918_v0, %v10363_v7  ;;  %v3909_v13 = vld [vmem:[#allocation3 + $0x1a4] sm:$0xff] }
 0x151   : > { %v10384_v16 = vpop.permute.xlu0 %3358  ;;  %6266 = vmatpush.msrb.mxu3 %v5871_v17 }
 0x152   : > { %1389 = vst.msk [vmem:[#allocation2 + $0x40] sm:$0xff] %vm1380_vm2, %v1324_v24 }
 0x153   : > { %6267 = vmatpush.msrb.mxu3 %v5870_v15 }
 0x155   : > { %3306 = vrot.lane.b32.xlu1 %v10285_v44, %s15283_s16  ;;  %v995_v28 = vpop.f32.mrf.mxu0 }
 0x156   : > { %4193 = vrot.lane.b32.xlu2 %v3269_v12, %s15270_s22  ;;  %v996_v37 = vadd.f32 %v9918_v0, %v995_v28 }
 0x157   : > { %3810 = vrot.lane.b32.xlu0 %v3716_v26, %s15272_s15  ;;  %v10401_v38 = vpop.permute.xlu1 %2532 }
 0x158   : > { %v1835_v39 = vpop.permute.xlu2 %1834  ;;  %v1325_v42 = vmax.f32 %v984_v25, %v996_v37  ;;  %9079 = vmatmul.msk.f32.gmra.mxu0 %vm526_vm1, %v421_v29  ;;  %v423_v25 = vld [vmem:[%s9639_s13 + $0x138] sm:$0xff]  ;;  %v5869_v29 = vld [vmem:[%s15252_s3 + $0x128] sm:$0xff] }
 0x159   : > { %v10406_v33 = vpop.permute.xlu0 %2724  ;;  %1927 = vst.msk [vmem:[#allocation4 + $0xe0] sm:$0xff] %vm1922_vm4, %v1835_v39  ;;  %v5868_v39 = vld [vmem:[%s15252_s3 + $0x120] sm:$0xff]  ;;  %6268 = vmatpush.msrb.mxu3 %v5869_v29 }
 0x15a   : > { %1390 = vst.msk [vmem:[#allocation2 + $0x48] sm:$0xff] %vm1380_vm2, %v1325_v42 }
 0x15b   : > { %6269 = vmatpush.msrb.mxu3 %v5868_v39 }
 0x15d   : > { %1840 = vrot.lane.b32.xlu1 %v10419_v50, %s15272_s15  ;;  %v998_v19 = vpop.f32.mrf.mxu0  ;;  %6270 = vmatpush.msrb.mxu3 %v5867_v40  ;;  %v427_v40 = vld [vmem:[%s9639_s13 + $0x158] sm:$0xff] }
 0x15e   : > { %3812 = vrot.lane.b32.xlu2 %v3717_v52, %s15272_s15  ;;  %v999_v55 = vadd.f32 %v9918_v0, %v998_v19  ;;  %v10460_v0 = vld [vmem:[%s15251_s2] ss:$0 sm:$0xff]  ;;  %v5865_v19 = vld [vmem:[%s15252_s3 + $0x108] sm:$0xff] }
 0x15f   : > { %1838 = vrot.lane.b32.xlu0 %v10287_v46, %s15272_s15  ;;  %v3173_v56 = vpop.permute.xlu1 %3172  ;;  %6271 = vmatpush.msrb.mxu3 %v5866_v48 }
 0x160   : > { %v2475_v14 = vpop.permute.xlu2 %2474  ;;  %v1326_v60 = vmax.f32 %v987_v49, %v999_v55  ;;  %3237 = vst.msk [vmem:[#allocation4 + $0x6d8] sm:$0xff] %vm1922_vm4, %v3173_v56  ;;  %9080 = vmatmul.msk.f32.gmra.mxu0 %vm526_vm1, %v422_v53 }
 0x161   : > { %v3171_v20 = vpop.permute.xlu0 %3170  ;;  %v1453_v32 = vld [vmem:[#allocation2 + $0x40] ss:$2 sm:$0xff]  ;;  %v1517_v10 = vld [vmem:[#allocation2 + $0x41] ss:$2 sm:$0xff]  ;;  %2568 = vst.msk [vmem:[#allocation4 + $0x78] sm:$0xff] %vm1922_vm4, %v2475_v14  ;;  %6272 = vmatpush.msrb.mxu3 %v5865_v19 }
 0x162   : > { %3236 = vst.msk [vmem:[#allocation4 + $0x6a0] sm:$0xff] %vm1922_vm4, %v3171_v20  ;;  %v1576_v12 = vmax.f32 %v1453_v32, %v1517_v10  ;;  %v5864_v14 = vld [vmem:[%s15252_s3 + $0x100] sm:$0xff]  ;;  %v425_v20 = vld [vmem:[%s9639_s13 + $0x148] sm:$0xff] }
 0x163   : > { %1391 = vst.msk [vmem:[#allocation2 + $0x50] sm:$0xff] %vm1380_vm2, %v1326_v60  ;;  %6273 = vmatpush.msrb.mxu3 %v5864_v14 }
 0x164   : > { %1670 = vst.msk [vmem:[#allocation3 + $0x62] sm:$0xff] %vm1380_vm2, %v1576_v12 }
 0x165   : > { %2224 = vrot.lane.b32.xlu1 %v10320_v58, %s15270_s22  ;;  %v1001_v24 = vpop.f32.mrf.mxu0 }
 0x166   : > { %4004 = vrot.lane.b32.xlu2 %v3909_v13, %s15283_s16  ;;  %v1002_v7 = vadd.f32 %v10460_v0, %v1001_v24  ;;  %v426_v24 = vld [vmem:[%s9639_s13 + $0x150] sm:$0xff] }
 0x167   : > { %2670 = vrot.lane.b32.xlu0 %v10287_v46, %s15283_s16  ;;  %v10463_v26 = vpop.permute.xlu1 %3360 }
 0x168   : > { %v3303_v28 = vpop.permute.xlu2 %3302  ;;  %v1327_v34 = vmax.f32 %v990_v21, %v1002_v7  ;;  %9081 = vmatmul.msk.f32.gmra.mxu0 %vm526_vm1, %v423_v25 }
 0x169   : > { %v10468_v37 = vpop.permute.xlu0 %3552  ;;  %3398 = vst.msk [vmem:[#allocation4 + $0x10] sm:$0xff] %vm2115_vm5, %v3303_v28 }
 0x16a   : > { %1392 = vst.msk [vmem:[#allocation2 + $0x58] sm:$0xff] %vm1380_vm2, %v1327_v34 }
 0x16b   : > { %v10496_v54 = vld [vmem:[#allocation3 + $0x60] sm:$0xff] }
 0x16c   : > { %1738 = vst.msk [vmem:[#allocation4 + $0x1c0] sm:$0xff] %vm1380_vm2, %v10496_v54  ;;  %v3626_v63 = vld [vmem:[#allocation3 + $0x62] sm:$0xff] }
 0x16d   : > { %2672 = vrot.lane.b32.xlu1 %v10419_v50, %s15283_s16  ;;  %v10483_v42 = vpop.f32.mrf.mxu0  ;;  %4936 = vst.msk [vmem:[#allocation4 + $0x28] sm:$0xff] %vm1380_vm2, %v10496_v54  ;;  %v4265_v12 = vld [vmem:[#allocation3 + $0x61] sm:$0xff] }
 0x16e   : > { %2031 = vrot.lane.b32.xlu2 %v10289_v18, %s15283_s16  ;;  %3658 = vst.msk [vmem:[#allocation4 + $0xf8] sm:$0xff] %vm1380_vm2, %v3626_v63 }
 0x16f   : > { %3498 = vrot.lane.b32.xlu0 %v10287_v46, %s15270_s22  ;;  %v3999_v49 = vpop.permute.xlu1 %3998  ;;  %4297 = vst.msk [vmem:[#allocation4 + $0x90] sm:$0xff] %vm1380_vm2, %v4265_v12 }
 0x170   : > { %v3363_v52 = vpop.permute.xlu2 %3362  ;;  %9082 = vmatmul.msk.f32.gmra.mxu0 %vm526_vm1, %v424_v47 }
 0x171   : > { %v3807_v53 = vpop.permute.xlu0 %3806  ;;  %3428 = vst.msk [vmem:[#allocation4 + $0x6a0] sm:$0xff] %vm2115_vm5, %v3363_v52  ;;  %v1455_v55 = vld [vmem:[#allocation2 + $0x50] ss:$2 sm:$0xff]  ;;  %v1519_v56 = vld [vmem:[#allocation2 + $0x51] ss:$2 sm:$0xff] }
 0x172   : > { %3874 = vst.msk [vmem:[#allocation4 + $0x638] sm:$0xff] %vm1922_vm4, %v3807_v53  ;;  %v1577_v46 = vmax.f32 %v1455_v55, %v1519_v56  ;;  %v1005_v53 = vadd.f32 %v10460_v0, %v10483_v42  ;;  %v428_v56 = vld [vmem:[%s9639_s13 + $0x160] sm:$0xff] }
 0x173   : > { %4066 = vst.msk [vmem:[#allocation4 + $0x638] sm:$0xff] %vm2115_vm5, %v3999_v49 }
 0x174   : > { %1671 = vst.msk [vmem:[#allocation3 + $0x6a] sm:$0xff] %vm1380_vm2, %v1577_v46 }
 0x175   : > { %3118 = vrot.lane.b32.xlu1 %v10342_v4, %s15272_s15  ;;  %v10510_v60 = vpop.f32.mrf.mxu0 }
 0x176   : > { %2862 = vrot.lane.b32.xlu2 %v10289_v18, %s15270_s22  ;;  %v1008_v12 = vadd.f32 %v10460_v0, %v10510_v60 }
 0x177   : > { %4391 = vrot.lane.b32.xlu0 %v10289_v18, %s15272_s15  ;;  %v4001_v32 = vpop.permute.xlu1 %4000 }
 0x178   : > { %v4192_v10 = vpop.permute.xlu2 %4191  ;;  %9083 = vmatmul.msk.f32.gmra.mxu0 %vm526_vm1, %v425_v20 }
 0x179   : > { %v3809_v11 = vpop.permute.xlu0 %3808  ;;  %4259 = vst.msk [vmem:[#allocation4 + $0x638] sm:$0xff] %vm2308_vm6, %v4192_v10 }
 0x17a   : > { %3875 = vst.msk [vmem:[#allocation4 + $0x670] sm:$0xff] %vm1922_vm4, %v3809_v11 }
 0x17b   : > { %4067 = vst.msk [vmem:[#allocation4 + $0x670] sm:$0xff] %vm2115_vm5, %v4001_v32  ;;  %v10522_v17 = vld [vmem:[#allocation3 + $0x68] sm:$0xff] }
 0x17c   : > { %v10524_v21 = vld [vmem:[#allocation3 + $0x63] sm:$0xff]  ;;  %1739 = vst.msk [vmem:[#allocation4 + $0x1f8] sm:$0xff] %vm1380_vm2, %v10522_v17  ;;  %v10549_v7 = vld [vmem:[#allocation3 + $0x6b] sm:$0xff] }
 0x17d   : > { %v10527_v18 = vld [vmem:[#allocation3 + $0x64] sm:$0xff]  ;;  %3500 = vrot.lane.b32.xlu1 %v10419_v50, %s15270_s22  ;;  %v10535_v13 = vpop.f32.mrf.mxu0  ;;  %3020 = vst.msk [vmem:[#allocation4 + $0x160] sm:$0xff] %vm1380_vm2, %v10524_v21  ;;  %v2350_v29 = vld [vmem:[#allocation3 + $0x6c] sm:$0xff] }
 0x17e   : > { %4135 = vrot.lane.b32.xlu2 %v10285_v44, %s15270_s22  ;;  %2381 = vst.msk [vmem:[#allocation4 + $0x1c8] sm:$0xff] %vm1380_vm2, %v10527_v18  ;;  %v2344_v50 = vld [vmem:[#allocation3 + $0x24] sm:$0xff]  ;;  %v5545_v19 = vld [vmem:[#allocation3 + $0x6c] sm:$0xff] }
 0x17f   : > { %2033 = vrot.lane.b32.xlu0 %v10324_v31, %s15283_s16  ;;  %v2667_v25 = vpop.permute.xlu1 %2666  ;;  %4937 = vst.msk [vmem:[#allocation4 + $0x60] sm:$0xff] %vm1380_vm2, %v10522_v17  ;;  %v10552_v28 = vld [vmem:[#allocation3 + $0x6a] sm:$0xff] }
 0x180   : > { %v1837_v15 = vpop.permute.xlu2 %1836  ;;  %2760 = vst.msk [vmem:[#allocation4 + $0x78] sm:$0xff] %vm2115_vm5, %v2667_v25  ;;  %9084 = vmatmul.msk.f32.gmra.mxu0 %vm526_vm1, %v426_v24  ;;  %v4266_v34 = vld [vmem:[#allocation3 + $0x69] sm:$0xff] }
 0x181   : > { %v2028_v44 = vpop.permute.xlu0 %2027  ;;  %1928 = vst.msk [vmem:[#allocation4 + $0x118] sm:$0xff] %vm1922_vm4, %v1837_v15  ;;  %v5544_v52 = vld [vmem:[#allocation3 + $0x64] sm:$0xff] }
 0x182   : > { %2120 = vst.msk [vmem:[#allocation4 + $0xe0] sm:$0xff] %vm2115_vm5, %v2028_v44  ;;  %v429_v25 = vld [vmem:[%s9639_s13 + $0x168] sm:$0xff] }
 0x183   : > { %2376 = vst.msk [vmem:[#allocation4 + $0xb0] sm:$0xff] %vm1380_vm2, %v2344_v50 }
 0x184   : > { %3021 = vst.msk [vmem:[#allocation4 + $0x198] sm:$0xff] %vm1380_vm2, %v10549_v7 }
 0x185   : > { %3946 = vrot.lane.b32.xlu1 %v10342_v4, %s15283_s16  ;;  %v10561_v39 = vpop.f32.mrf.mxu0  ;;  %3659 = vst.msk [vmem:[#allocation4 + $0x130] sm:$0xff] %vm1380_vm2, %v10552_v28 }
 0x186   : > { %2226 = vrot.lane.b32.xlu2 %v10326_v62, %s15270_s22  ;;  %2382 = vst.msk [vmem:[#allocation4 + $0x200] sm:$0xff] %vm1380_vm2, %v2350_v29 }
 0x187   : > { %2864 = vrot.lane.b32.xlu0 %v10324_v31, %s15270_s22  ;;  %v3495_v47 = vpop.permute.xlu1 %3494  ;;  %4298 = vst.msk [vmem:[#allocation4 + $0xc8] sm:$0xff] %vm1380_vm2, %v4266_v34 }
 0x188   : > { %v2221_v48 = vpop.permute.xlu2 %2220  ;;  %3590 = vst.msk [vmem:[#allocation4 + $0x10] sm:$0xff] %vm2308_vm6, %v3495_v47  ;;  %9085 = vmatmul.msk.f32.gmra.mxu0 %vm526_vm1, %v427_v40  ;;  %v430_v40 = vld [vmem:[%s9639_s13 + $0x170] sm:$0xff] }
 0x189   : > { %v2859_v49 = vpop.permute.xlu0 %2858  ;;  %2313 = vst.msk [vmem:[#allocation4 + $0xe0] sm:$0xff] %vm2308_vm6, %v2221_v48 }
 0x18a   : > { %2952 = vst.msk [vmem:[#allocation4 + $0x78] sm:$0xff] %vm2308_vm6, %v2859_v49 }
 0x18b   : > { %5576 = vst.msk [vmem:[#allocation4 + $0x30] sm:$0xff] %vm1380_vm2, %v5544_v52 }
 0x18c   : > { %5577 = vst.msk [vmem:[#allocation4 + $0x68] sm:$0xff] %vm1380_vm2, %v5545_v19 }
 0x18d   : > { %3948 = vrot.lane.b32.xlu1 %v10348_v30, %s15283_s16  ;;  %v1016_v55 = vpop.f32.mrf.mxu0 }
 0x18e   : > { %2480 = vrot.lane.b32.xlu2 %v10336_v1, %s15272_s15  ;;  %v1017_v46 = vadd.f32 %v10460_v0, %v1016_v55 }
 0x18f   : > { %3754 = vrot.lane.b32.xlu0 %v10320_v58, %s15272_s15  ;;  %v3555_v14 = vpop.permute.xlu1 %3554  ;;  %v5610_v20 = vld [vmem:[#allocation4 + $0x10] sm:$0xff] }
 0x190   : > { %v2669_v63 = vpop.permute.xlu2 %2668  ;;  %v1328_v42 = vmax.f32 %v1005_v53, %v1017_v46  ;;  %3620 = vst.msk [vmem:[#allocation4 + $0x6a0] sm:$0xff] %vm2308_vm6, %v3555_v14  ;;  %6274 = vmatmul.f32.vlgmr.msrb.gmra.mxu3 %v5610_v20  ;;  %9086 = vmatmul.msk.f32.gmra.mxu0 %vm526_vm1, %v428_v56  ;;  %v5636_v11 = vld [vmem:[#allocation4 + $0xe0] sm:$0xff]  ;;  %v431_v14 = vld [vmem:[%s9639_s13 + $0x178] sm:$0xff] }
 0x191   : > { %v2223_v32 = vpop.permute.xlu0 %2222  ;;  %v5623_v10 = vld [vmem:[#allocation4 + $0x78] sm:$0xff]  ;;  %6060 = vmatmul.f32.gmra.mxu1 %v5636_v11  ;;  %v1963_v56 = vld [vmem:[#allocation3 + $0x62] sm:$0xff] }
 0x192   : > { %6167 = vmatmul.f32.gmra.mxu2 %v5623_v10  ;;  %1393 = vst.msk [vmem:[#allocation2 + $0x60] sm:$0xff] %vm1380_vm2, %v1328_v42 }
 0x195   : > { %4583 = vrot.lane.b32.xlu1 %v10320_v58, %s15283_s16  ;;  %v1019_v24 = vpop.f32.mrf.mxu0  ;;  %v1011_v58 = vadd.f32 %v10460_v0, %v10535_v13 }
 0x196   : > { %3120 = vrot.lane.b32.xlu2 %v10348_v30, %s15272_s15  ;;  %v1020_v15 = vadd.f32 %v10460_v0, %v1019_v24 }
 0x197   : > { %3756 = vrot.lane.b32.xlu0 %v10326_v62, %s15272_s15  ;;  %v2030_v44 = vpop.permute.xlu1 %2029 }
 0x198   : > { %v3115_v50 = vpop.permute.xlu2 %3114  ;;  %v1329_v29 = vmax.f32 %v1008_v12, %v1020_v15  ;;  %2121 = vst.msk [vmem:[#allocation4 + $0x118] sm:$0xff] %vm2115_vm5, %v2030_v44  ;;  %9087 = vmatmul.msk.f32.gmra.mxu0 %vm526_vm1, %v429_v25 }
 0x199   : > { %v2477_v60 = vpop.permute.xlu0 %2476  ;;  %2314 = vst.msk [vmem:[#allocation4 + $0x118] sm:$0xff] %vm2308_vm6, %v2223_v32 }
 0x19a   : > { %1394 = vst.msk [vmem:[#allocation2 + $0x68] sm:$0xff] %vm1380_vm2, %v1329_v29 }
 0x19b   : > { %2569 = vst.msk [vmem:[#allocation4 + $0xb0] sm:$0xff] %vm1922_vm4, %v2477_v60  ;;  %v433_v60 = vld [vmem:[%s9639_s13 + $0x188] sm:$0xff] }
 0x19c   : > { %2761 = vst.msk [vmem:[#allocation4 + $0xb0] sm:$0xff] %vm2115_vm5, %v2669_v63 }
 0x19d   : > { %3208 = vst.msk [vmem:[#allocation4 + $0x80] sm:$0xff] %vm1922_vm4, %v3115_v50  ;;  %4585 = vrot.lane.b32.xlu1 %v10326_v62, %s15283_s16  ;;  %v1022_v34 = vpop.f32.mrf.mxu0  ;;  %v4968_v50 = vld [vmem:[#allocation3 + $0x61] sm:$0xff] }
 0x19e   : > { %3308 = vrot.lane.b32.xlu2 %v10336_v1, %s15283_s16  ;;  %v1023_v47 = vadd.f32 %v10460_v0, %v1022_v34 }
 0x19f   : > { %4775 = vrot.lane.b32.xlu0 %v10342_v4, %s15270_s22  ;;  %v2861_v48 = vpop.permute.xlu1 %2860  ;;  %v1014_v4 = vadd.f32 %v10460_v0, %v10561_v39 }
 0x1a0   : > { %v3497_v49 = vpop.permute.xlu2 %3496  ;;  %v1330_v13 = vmax.f32 %v1011_v58, %v1023_v47  ;;  %2953 = vst.msk [vmem:[#allocation4 + $0xb0] sm:$0xff] %vm2308_vm6, %v2861_v48  ;;  %9088 = vmatmul.msk.f32.gmra.mxu0 %vm526_vm1, %v430_v40  ;;  %v5643_v62 = vld [vmem:[#allocation4 + $0x118] sm:$0xff] }
 0x1a1   : > { %v3117_v52 = vpop.permute.xlu0 %3116  ;;  %v1457_v19 = vld [vmem:[#allocation2 + $0x60] ss:$2 sm:$0xff]  ;;  %v1521_v53 = vld [vmem:[#allocation2 + $0x61] ss:$2 sm:$0xff]  ;;  %6063 = vmatmul.f32.gmra.mxu1 %v5643_v62 }
 0x1a2   : > { %3209 = vst.msk [vmem:[#allocation4 + $0xb8] sm:$0xff] %vm1922_vm4, %v3117_v52  ;;  %v1578_v55 = vmax.f32 %v1457_v19, %v1521_v53  ;;  %v434_v19 = vld [vmem:[%s9639_s13 + $0x190] sm:$0xff] }
 0x1a3   : > { %1395 = vst.msk [vmem:[#allocation2 + $0x70] sm:$0xff] %vm1380_vm2, %v1330_v13 }
 0x1a4   : > { %1672 = vst.msk [vmem:[#allocation3 + $0x7a] sm:$0xff] %vm1380_vm2, %v1578_v55 }
 0x1a5   : > { %2035 = vrot.lane.b32.xlu1 %v1963_v56, %s15283_s16  ;;  %v1025_v46 = vpop.f32.mrf.mxu0 }
 0x1a6   : > { %4137 = vrot.lane.b32.xlu2 %v10336_v1, %s15270_s22  ;;  %v1026_v63 = vadd.f32 %v10460_v0, %v1025_v46  ;;  %v432_v1 = vld [vmem:[%s9639_s13 + $0x180] sm:$0xff] }
 0x1a7   : > { %4393 = vrot.lane.b32.xlu0 %v10324_v31, %s15272_s15  ;;  %v3943_v20 = vpop.permute.xlu1 %3942  ;;  %v5630_v32 = vld [vmem:[#allocation4 + $0xb0] sm:$0xff] }
 0x1a8   : > { %v3557_v42 = vpop.permute.xlu2 %3556  ;;  %v1331_v39 = vmax.f32 %v1014_v4, %v1026_v63  ;;  %6170 = vmatmul.f32.gmra.mxu2 %v5630_v32  ;;  %9089 = vmatmul.msk.f32.gmra.mxu0 %vm526_vm1, %v431_v14  ;;  %v10696_v63 = vld [vmem:[#allocation3 + $0x69] sm:$0xff]  ;;  %v435_v32 = vld [vmem:[%s9639_s13 + $0x198] sm:$0xff] }
 0x1a9   : > { %v3305_v10 = vpop.permute.xlu0 %3304 }
 0x1aa   : > { %3399 = vst.msk [vmem:[#allocation4 + $0x48] sm:$0xff] %vm2115_vm5, %v3305_v10 }
 0x1ab   : > { %1396 = vst.msk [vmem:[#allocation2 + $0x78] sm:$0xff] %vm1380_vm2, %v1331_v39  ;;  %v10656_v47 = vld [vmem:[#allocation3 + $0x78] sm:$0xff] }
 0x1ac   : > { %3591 = vst.msk [vmem:[#allocation4 + $0x48] sm:$0xff] %vm2308_vm6, %v3497_v49  ;;  %v10666_v13 = vld [vmem:[#allocation3 + $0x7a] sm:$0xff] }
 0x1ad   : > { %2866 = vrot.lane.b32.xlu1 %v1963_v56, %s15270_s22  ;;  %v10637_v31 = vpop.f32.mrf.mxu0  ;;  %1740 = vst.msk [vmem:[#allocation4 + $0x230] sm:$0xff] %vm1380_vm2, %v10656_v47  ;;  %v10692_v14 = vld [vmem:[#allocation3 + $0x79] sm:$0xff] }
 0x1ae   : > { %4777 = vrot.lane.b32.xlu2 %v10348_v30, %s15270_s22  ;;  %3660 = vst.msk [vmem:[#allocation4 + $0x168] sm:$0xff] %vm1380_vm2, %v10666_v13 }
 0x1af   : > { %2482 = vrot.lane.b32.xlu0 %v10496_v54, %s15272_s15  ;;  %v3945_v11 = vpop.permute.xlu1 %3944  ;;  %4299 = vst.msk [vmem:[#allocation4 + $0x100] sm:$0xff] %vm1380_vm2, %v10692_v14 }
 0x1b0   : > { %v4194_v12 = vpop.permute.xlu2 %4193  ;;  %9090 = vmatmul.msk.f32.gmra.mxu0 %vm526_vm1, %v432_v1 }
 0x1b1   : > { %v3751_v24 = vpop.permute.xlu0 %3750  ;;  %4260 = vst.msk [vmem:[#allocation4 + $0x670] sm:$0xff] %vm2308_vm6, %v4194_v12  ;;  %v1029_v12 = vadd.f32 %v10460_v0, %v10637_v31 }
 0x1b2   : > { %v1459_v25 = vld [vmem:[#allocation2 + $0x70] ss:$2 sm:$0xff]  ;;  %v1523_v15 = vld [vmem:[#allocation2 + $0x71] ss:$2 sm:$0xff]  ;;  %3846 = vst.msk [vmem:[#allocation4 + $0x18] sm:$0xff] %vm1922_vm4, %v3751_v24 }
 0x1b3   : > { %v1579_v44 = vmax.f32 %v1459_v25, %v1523_v15  ;;  %4038 = vst.msk [vmem:[#allocation4 + $0x18] sm:$0xff] %vm2115_vm5, %v3943_v20  ;;  %v5617_v30 = vld [vmem:[#allocation4 + $0x48] sm:$0xff] }
 0x1b4   : > { %6277 = vmatmul.f32.gmra.mxu3 %v5617_v30  ;;  %v10722_v24 = vld [vmem:[#allocation3 + $0x6c] sm:$0xff] }
 0x1b5   : > { %1673 = vst.msk [vmem:[#allocation3 + $0x82] sm:$0xff] %vm1380_vm2, %v1579_v44  ;;  %5032 = vrot.lane.b32.xlu1 %v4968_v50, %s15272_s15  ;;  %v10649_v29 = vpop.f32.mrf.mxu0 }
 0x1b6   : > { %1842 = vrot.lane.b32.xlu2 %v4968_v50, %s15272_s15 }
 0x1b7   : > { %3310 = vrot.lane.b32.xlu0 %v10496_v54, %s15283_s16  ;;  %v4003_v58 = vpop.permute.xlu1 %4002 }
 0x1b8   : > { %v3813_v34 = vpop.permute.xlu2 %3812  ;;  %9091 = vmatmul.msk.f32.gmra.mxu0 %vm526_vm1, %v433_v60 }
 0x1b9   : > { %v3753_v40 = vpop.permute.xlu0 %3752  ;;  %3877 = vst.msk [vmem:[#allocation4 + $0x6e0] sm:$0xff] %vm1922_vm4, %v3813_v34  ;;  %v1032_v34 = vadd.f32 %v10460_v0, %v10649_v29 }
 0x1ba   : > { %3847 = vst.msk [vmem:[#allocation4 + $0x50] sm:$0xff] %vm1922_vm4, %v3753_v40 }
 0x1bb   : > { %4039 = vst.msk [vmem:[#allocation4 + $0x50] sm:$0xff] %vm2115_vm5, %v3945_v11 }
 0x1bc   : > { %v10660_v48 = vld [vmem:[#allocation3 + $0x7c] sm:$0xff]  ;;  %v10718_v11 = vld [vmem:[#allocation3 + $0x84] sm:$0xff] }
 0x1bd   : > { %v10662_v49 = vld [vmem:[#allocation3 + $0x80] sm:$0xff]  ;;  %2230 = vrot.lane.b32.xlu1 %v10549_v7, %s15270_s22  ;;  %v10675_v62 = vpop.f32.mrf.mxu0  ;;  %2383 = vst.msk [vmem:[#allocation4 + $0x238] sm:$0xff] %vm1380_vm2, %v10660_v48 }
 0x1be   : > { %v10668_v52 = vld [vmem:[#allocation3 + $0x7b] sm:$0xff]  ;;  %1741 = vst.msk [vmem:[#allocation4 + $0x268] sm:$0xff] %vm1380_vm2, %v10662_v49  ;;  %2674 = vrot.lane.b32.xlu2 %v4968_v50, %s15283_s16  ;;  %v10711_v10 = vld [vmem:[#allocation3 + $0x83] sm:$0xff] }
 0x1bf   : > { %3022 = vst.msk [vmem:[#allocation4 + $0x1d0] sm:$0xff] %vm1380_vm2, %v10668_v52  ;;  %5224 = vrot.lane.b32.xlu0 %v1963_v56, %s15283_s16  ;;  %v2479_v53 = vpop.permute.xlu1 %2478  ;;  %v4906_v56 = vld [vmem:[#allocation3 + $0x78] sm:$0xff]  ;;  %v4907_v46 = vld [vmem:[#allocation3 + $0x80] sm:$0xff] }
 0x1c0   : > { %v4005_v55 = vpop.permute.xlu2 %4004  ;;  %2570 = vst.msk [vmem:[#allocation4 + $0xe8] sm:$0xff] %vm1922_vm4, %v2479_v53  ;;  %9092 = vmatmul.msk.f32.gmra.mxu0 %vm526_vm1, %v434_v19  ;;  %v10714_v1 = vld [vmem:[#allocation3 + $0x82] sm:$0xff] }
 0x1c1   : > { %v3365_v4 = vpop.permute.xlu0 %3364  ;;  %4069 = vst.msk [vmem:[#allocation4 + $0x6e0] sm:$0xff] %vm2115_vm5, %v4005_v55  ;;  %v10726_v25 = vld [vmem:[#allocation3 + $0x81] sm:$0xff] }
 0x1c2   : > { %3429 = vst.msk [vmem:[#allocation4 + $0x6d8] sm:$0xff] %vm2115_vm5, %v3365_v4  ;;  %v5546_v60 = vld [vmem:[#allocation3 + $0x7c] sm:$0xff]  ;;  %v437_v19 = vld [vmem:[%s9639_s13 + $0x1a8] sm:$0xff] }
 0x1c3   : > { %3621 = vst.msk [vmem:[#allocation4 + $0x6d8] sm:$0xff] %vm2308_vm6, %v3557_v42 }
 0x1c4   : > { %4262 = vst.msk [vmem:[#allocation4 + $0x6e0] sm:$0xff] %vm2308_vm6, %v10358_v6 }
 0x1c5   : > { %2484 = vrot.lane.b32.xlu1 %v10522_v17, %s15272_s15  ;;  %v10699_v20 = vpop.f32.mrf.mxu0  ;;  %4938 = vst.msk [vmem:[#allocation4 + $0x98] sm:$0xff] %vm1380_vm2, %v4906_v56 }
 0x1c6   : > { %3502 = vrot.lane.b32.xlu2 %v4968_v50, %s15270_s22  ;;  %4939 = vst.msk [vmem:[#allocation4 + $0xd0] sm:$0xff] %vm1380_vm2, %v4907_v46  ;;  %v1035_v46 = vadd.f32 %v10460_v0, %v10675_v62 }
 0x1c7   : > { %1844 = vrot.lane.b32.xlu0 %v10696_v63, %s15272_s15  ;;  %v3307_v6 = vpop.permute.xlu1 %3306  ;;  %3023 = vst.msk [vmem:[#allocation4 + $0x208] sm:$0xff] %vm1380_vm2, %v10711_v10 }
 0x1c8   : > { %v2032_v42 = vpop.permute.xlu2 %2031  ;;  %3400 = vst.msk [vmem:[#allocation4 + $0x80] sm:$0xff] %vm2115_vm5, %v3307_v6  ;;  %9093 = vmatmul.msk.f32.gmra.mxu0 %vm526_vm1, %v435_v32  ;;  %v438_v6 = vld [vmem:[%s9639_s13 + $0x1b0] sm:$0xff] }
 0x1c9   : > { %v3811_v39 = vpop.permute.xlu0 %3810  ;;  %3661 = vst.msk [vmem:[#allocation4 + $0x1a0] sm:$0xff] %vm1380_vm2, %v10714_v1 }
 0x1ca   : > { %3876 = vst.msk [vmem:[#allocation4 + $0x6a8] sm:$0xff] %vm1922_vm4, %v3811_v39 }
 0x1cb   : > { %4068 = vst.msk [vmem:[#allocation4 + $0x6a8] sm:$0xff] %vm2115_vm5, %v4003_v58  ;;  %v5547_v58 = vld [vmem:[#allocation3 + $0x84] sm:$0xff] }
 0x1cc   : > { %4261 = vst.msk [vmem:[#allocation4 + $0x6a8] sm:$0xff] %vm2308_vm6, %v10276_v35  ;;  %v436_v35 = vld [vmem:[%s9639_s13 + $0x1a0] sm:$0xff] }
 0x1cd   : > { %3124 = vrot.lane.b32.xlu1 %v10722_v24, %s15272_s15  ;;  %v1040_v15 = vpop.f32.mrf.mxu0  ;;  %2384 = vst.msk [vmem:[#allocation4 + $0x270] sm:$0xff] %vm1380_vm2, %v10718_v11 }
 0x1ce   : > { %4139 = vrot.lane.b32.xlu2 %v10496_v54, %s15270_s22  ;;  %v1041_v31 = vadd.f32 %v10460_v0, %v1040_v15  ;;  %4300 = vst.msk [vmem:[#allocation4 + $0x138] sm:$0xff] %vm1380_vm2, %v10726_v25 }
 0x1cf   : > { %2228 = vrot.lane.b32.xlu0 %v10524_v21, %s15270_s22  ;;  %v1841_v44 = vpop.permute.xlu1 %1840  ;;  %5578 = vst.msk [vmem:[#allocation4 + $0xa0] sm:$0xff] %vm1380_vm2, %v5546_v60  ;;  %v439_v60 = vld [vmem:[%s9639_s13 + $0x1b8] sm:$0xff] }
 0x1d0   : > { %v2863_v30 = vpop.permute.xlu2 %2862  ;;  %v1332_v54 = vmax.f32 %v1029_v12, %v1041_v31  ;;  %1930 = vst.msk [vmem:[#allocation4 + $0x188] sm:$0xff] %vm1922_vm4, %v1841_v44  ;;  %9094 = vmatmul.msk.f32.gmra.mxu0 %vm526_vm1, %v436_v35 }
 0x1d1   : > { %v1839_v50 = vpop.permute.xlu0 %1838  ;;  %5579 = vst.msk [vmem:[#allocation4 + $0xd8] sm:$0xff] %vm1380_vm2, %v5547_v58 }
 0x1d2   : > { %1929 = vst.msk [vmem:[#allocation4 + $0x150] sm:$0xff] %vm1922_vm4, %v1839_v50 }
 0x1d3   : > { %1397 = vst.msk [vmem:[#allocation2 + $0x80] sm:$0xff] %vm1380_vm2, %v1332_v54 }
 0x1d4   : > { %2122 = vst.msk [vmem:[#allocation4 + $0x150] sm:$0xff] %vm2115_vm5, %v2032_v42 }
 0x1d5   : > { %3312 = vrot.lane.b32.xlu1 %v10522_v17, %s15283_s16  ;;  %v1043_v40 = vpop.f32.mrf.mxu0 }
 0x1d6   : > { %2037 = vrot.lane.b32.xlu2 %v10552_v28, %s15283_s16  ;;  %v1044_v53 = vadd.f32 %v10460_v0, %v1043_v40 }
 0x1d7   : > { %2676 = vrot.lane.b32.xlu0 %v10696_v63, %s15283_s16  ;;  %v2225_v55 = vpop.permute.xlu1 %2224 }
 0x1d8   : > { %v4136_v29 = vpop.permute.xlu2 %4135  ;;  %v1333_v4 = vmax.f32 %v1032_v34, %v1044_v53  ;;  %2315 = vst.msk [vmem:[#allocation4 + $0x150] sm:$0xff] %vm2308_vm6, %v2225_v55  ;;  %9095 = vmatmul.msk.f32.gmra.mxu0 %vm526_vm1, %v437_v19 }
 0x1d9   : > { %v2671_v56 = vpop.permute.xlu0 %2670  ;;  %4231 = vst.msk [vmem:[#allocation4 + $0x18] sm:$0xff] %vm2308_vm6, %v4136_v29 }
 0x1da   : > { %2762 = vst.msk [vmem:[#allocation4 + $0xe8] sm:$0xff] %vm2115_vm5, %v2671_v56 }
 0x1db   : > { %1398 = vst.msk [vmem:[#allocation2 + $0x88] sm:$0xff] %vm1380_vm2, %v1333_v4 }
 0x1dc   : > { %2954 = vst.msk [vmem:[#allocation4 + $0xe8] sm:$0xff] %vm2308_vm6, %v2863_v30 }
 0x1dd   : > { %3950 = vrot.lane.b32.xlu1 %v10527_v18, %s15283_s16  ;;  %v1046_v32 = vpop.f32.mrf.mxu0 }
 0x1de   : > { %2868 = vrot.lane.b32.xlu2 %v10552_v28, %s15270_s22  ;;  %v1047_v42 = vadd.f32 %v10460_v0, %v1046_v32  ;;  %v1772_v32 = vld [vmem:[#allocation3 + $0x79] sm:$0xff] }
 0x1df   : > { %3122 = vrot.lane.b32.xlu0 %v10527_v18, %s15272_s15  ;;  %v2673_v39 = vpop.permute.xlu1 %2672  ;;  %v5650_v15 = vld [vmem:[#allocation4 + $0x150] sm:$0xff]  ;;  %v1038_v18 = vadd.f32 %v10460_v0, %v10699_v20 }
 0x1e0   : > { %v2227_v12 = vpop.permute.xlu2 %2226  ;;  %v1334_v35 = vmax.f32 %v1035_v46, %v1047_v42  ;;  %6066 = vmatmul.f32.gmra.mxu1 %v5650_v15  ;;  %9096 = vmatmul.msk.f32.gmra.mxu0 %vm526_vm1, %v438_v6  ;;  %v441_v6 = vld [vmem:[%s9639_s13 + $0x1c8] sm:$0xff] }
 0x1e1   : > { %v3499_v62 = vpop.permute.xlu0 %3498 }
 0x1e2   : > { %v1461_v31 = vld [vmem:[#allocation2 + $0x80] ss:$2 sm:$0xff]  ;;  %v1525_v44 = vld [vmem:[#allocation2 + $0x81] ss:$2 sm:$0xff]  ;;  %3592 = vst.msk [vmem:[#allocation4 + $0x80] sm:$0xff] %vm2308_vm6, %v3499_v62 }
 0x1e3   : > { %v1580_v30 = vmax.f32 %v1461_v31, %v1525_v44  ;;  %1399 = vst.msk [vmem:[#allocation2 + $0x90] sm:$0xff] %vm1380_vm2, %v1334_v35  ;;  %v5637_v54 = vld [vmem:[#allocation4 + $0xe8] sm:$0xff] }
 0x1e4   : > { %6173 = vmatmul.f32.gmra.mxu2 %v5637_v54  ;;  %v442_v54 = vld [vmem:[%s9639_s13 + $0x1d0] sm:$0xff] }
 0x1e5   : > { %1674 = vst.msk [vmem:[#allocation3 + $0x92] sm:$0xff] %vm1380_vm2, %v1580_v30  ;;  %3952 = vrot.lane.b32.xlu1 %v10722_v24, %s15283_s16  ;;  %v1049_v50 = vpop.f32.mrf.mxu0  ;;  %v440_v24 = vld [vmem:[%s9639_s13 + $0x1c0] sm:$0xff] }
 0x1e6   : > { %4141 = vrot.lane.b32.xlu2 %v10522_v17, %s15270_s22  ;;  %v1050_v58 = vadd.f32 %v10460_v0, %v1049_v50 }
 0x1e7   : > { %3504 = vrot.lane.b32.xlu0 %v10696_v63, %s15270_s22  ;;  %v3119_v34 = vpop.permute.xlu1 %3118 }
 0x1e8   : > { %v2481_v40 = vpop.permute.xlu2 %2480  ;;  %v1335_v19 = vmax.f32 %v1038_v18, %v1050_v58  ;;  %3210 = vst.msk [vmem:[#allocation4 + $0xf0] sm:$0xff] %vm1922_vm4, %v3119_v34  ;;  %9097 = vmatmul.msk.f32.gmra.mxu0 %vm526_vm1, %v439_v60 }
 0x1e9   : > { %v4392_v20 = vpop.permute.xlu0 %4391  ;;  %v5624_v53 = vld [vmem:[#allocation4 + $0x80] sm:$0xff]  ;;  %2571 = vst.msk [vmem:[#allocation4 + $0x120] sm:$0xff] %vm1922_vm4, %v2481_v40 }
 0x1ea   : > { %4487 = vst.msk [vmem:[#allocation4 + $0x20] sm:$0xff] %vm1922_vm4, %v4392_v20  ;;  %6280 = vmatmul.f32.gmra.mxu3 %v5624_v53 }
 0x1eb   : > { %1400 = vst.msk [vmem:[#allocation2 + $0x98] sm:$0xff] %vm1380_vm2, %v1335_v19 }
 0x1ec   : > { %2763 = vst.msk [vmem:[#allocation4 + $0x120] sm:$0xff] %vm2115_vm5, %v2673_v39  ;;  %v10825_v31 = vld [vmem:[#allocation3 + $0x92] sm:$0xff] }
 0x1ed   : > { %5226 = vrot.lane.b32.xlu1 %v10552_v28, %s15283_s16  ;;  %v10799_v17 = vpop.f32.mrf.mxu0  ;;  %3662 = vst.msk [vmem:[#allocation4 + $0x1d8] sm:$0xff] %vm1380_vm2, %v10825_v31  ;;  %v10851_v34 = vld [vmem:[#allocation3 + $0x91] sm:$0xff] }
 0x1ee   : > { %5416 = vrot.lane.b32.xlu2 %v10524_v21, %s15270_s22  ;;  %v4908_v19 = vld [vmem:[#allocation3 + $0x90] sm:$0xff]  ;;  %4301 = vst.msk [vmem:[#allocation4 + $0x170] sm:$0xff] %vm1380_vm2, %v10851_v34 }
 0x1ef   : > { %3758 = vrot.lane.b32.xlu0 %v10524_v21, %s15272_s15  ;;  %v3501_v55 = vpop.permute.xlu1 %3500  ;;  %4940 = vst.msk [vmem:[#allocation4 + $0x108] sm:$0xff] %vm1380_vm2, %v4908_v19 }
 0x1f0   : > { %v3121_v29 = vpop.permute.xlu2 %3120  ;;  %9098 = vmatmul.msk.f32.gmra.mxu0 %vm526_vm1, %v440_v24 }
 0x1f1   : > { %v2034_v4 = vpop.permute.xlu0 %2033  ;;  %3211 = vst.msk [vmem:[#allocation4 + $0x128] sm:$0xff] %vm1922_vm4, %v3121_v29 }
 0x1f2   : > { %v1463_v56 = vld [vmem:[#allocation2 + $0x90] ss:$2 sm:$0xff]  ;;  %v1527_v46 = vld [vmem:[#allocation2 + $0x91] ss:$2 sm:$0xff]  ;;  %2123 = vst.msk [vmem:[#allocation4 + $0x188] sm:$0xff] %vm2115_vm5, %v2034_v4 }
 0x1f3   : > { %v1581_v28 = vmax.f32 %v1463_v56, %v1527_v46  ;;  %2316 = vst.msk [vmem:[#allocation4 + $0x188] sm:$0xff] %vm2308_vm6, %v2227_v12  ;;  %v10819_v12 = vld [vmem:[#allocation3 + $0x90] sm:$0xff] }
 0x1f4   : > { %1742 = vst.msk [vmem:[#allocation4 + $0x2a0] sm:$0xff] %vm1380_vm2, %v10819_v12 }
 0x1f5   : > { %1675 = vst.msk [vmem:[#allocation3 + $0x9a] sm:$0xff] %vm1380_vm2, %v1581_v28  ;;  %1846 = vrot.lane.b32.xlu1 %v1772_v32, %s15272_s15  ;;  %v10812_v21 = vpop.f32.mrf.mxu0 }
 0x1f6   : > { %5418 = vrot.lane.b32.xlu2 %v10549_v7, %s15270_s22 }
 0x1f7   : > { %3760 = vrot.lane.b32.xlu0 %v10549_v7, %s15272_s15  ;;  %v3947_v42 = vpop.permute.xlu1 %3946 }
 0x1f8   : > { %v3309_v39 = vpop.permute.xlu2 %3308  ;;  %9099 = vmatmul.msk.f32.gmra.mxu0 %vm526_vm1, %v441_v6  ;;  %v1053_v6 = vadd.f32 %v10460_v0, %v10799_v17 }
 0x1f9   : > { %v2865_v15 = vpop.permute.xlu0 %2864  ;;  %3401 = vst.msk [vmem:[#allocation4 + $0xb8] sm:$0xff] %vm2115_vm5, %v3309_v39  ;;  %v444_v39 = vld [vmem:[%s9639_s13 + $0x1e0] sm:$0xff] }
 0x1fa   : > { %2955 = vst.msk [vmem:[#allocation4 + $0x120] sm:$0xff] %vm2308_vm6, %v2865_v15  ;;  %v5657_v35 = vld [vmem:[#allocation4 + $0x188] sm:$0xff] }
 0x1fb   : > { %3593 = vst.msk [vmem:[#allocation4 + $0xb8] sm:$0xff] %vm2308_vm6, %v3501_v55  ;;  %6069 = vmatmul.f32.gmra.mxu1 %v5657_v35  ;;  %v443_v55 = vld [vmem:[%s9639_s13 + $0x1d8] sm:$0xff] }
 0x1fc   : > { %v10823_v62 = vld [vmem:[#allocation3 + $0x93] sm:$0xff]  ;;  %v10874_v46 = vld [vmem:[#allocation3 + $0x9b] sm:$0xff] }
 0x1fd   : > { %v10829_v7 = vld [vmem:[#allocation3 + $0x94] sm:$0xff]  ;;  %3024 = vst.msk [vmem:[#allocation4 + $0x240] sm:$0xff] %vm1380_vm2, %v10823_v62  ;;  %2678 = vrot.lane.b32.xlu1 %v1772_v32, %s15283_s16  ;;  %v10838_v30 = vpop.f32.mrf.mxu0 }
 0x1fe   : > { %v10831_v44 = vld [vmem:[#allocation3 + $0x98] sm:$0xff]  ;;  %2486 = vrot.lane.b32.xlu2 %v10656_v47, %s15272_s15  ;;  %2385 = vst.msk [vmem:[#allocation4 + $0x2a8] sm:$0xff] %vm1380_vm2, %v10829_v7 }
 0x1ff   : > { %1743 = vst.msk [vmem:[#allocation4 + $0x2d8] sm:$0xff] %vm1380_vm2, %v10831_v44  ;;  %5034 = vrot.lane.b32.xlu0 %v10696_v63, %s15272_s15  ;;  %v3949_v18 = vpop.permute.xlu1 %3948  ;;  %v10855_v40 = vld [vmem:[#allocation3 + $0x99] sm:$0xff] }
 0x200   : > { %v4138_v50 = vpop.permute.xlu2 %4137  ;;  %9100 = vmatmul.msk.f32.gmra.mxu0 %vm526_vm1, %v442_v54  ;;  %v4909_v20 = vld [vmem:[#allocation3 + $0x98] sm:$0xff]  ;;  %4302 = vst.msk [vmem:[#allocation4 + $0x1a8] sm:$0xff] %vm1380_vm2, %v10855_v40 }
 0x201   : > { %v3755_v60 = vpop.permute.xlu0 %3754  ;;  %4232 = vst.msk [vmem:[#allocation4 + $0x50] sm:$0xff] %vm2308_vm6, %v4138_v50  ;;  %v5644_v58 = vld [vmem:[#allocation4 + $0x120] sm:$0xff]  ;;  %v5548_v53 = vld [vmem:[#allocation3 + $0x94] sm:$0xff]  ;;  %v1056_v50 = vadd.f32 %v10460_v0, %v10812_v21 }
 0x202   : > { %3848 = vst.msk [vmem:[#allocation4 + $0x88] sm:$0xff] %vm1922_vm4, %v3755_v60  ;;  %6176 = vmatmul.f32.gmra.mxu2 %v5644_v58  ;;  %v5631_v63 = vld [vmem:[#allocation4 + $0xb8] sm:$0xff]  ;;  %v445_v58 = vld [vmem:[%s9639_s13 + $0x1e8] sm:$0xff] }
 0x203   : > { %4040 = vst.msk [vmem:[#allocation4 + $0x88] sm:$0xff] %vm2115_vm5, %v3947_v42  ;;  %6283 = vmatmul.f32.gmra.mxu3 %v5631_v63  ;;  %v10877_v28 = vld [vmem:[#allocation3 + $0x9a] sm:$0xff] }
 0x204   : > { %4941 = vst.msk [vmem:[#allocation4 + $0x140] sm:$0xff] %vm1380_vm2, %v4909_v20 }
 0x205   : > { %3506 = vrot.lane.b32.xlu1 %v1772_v32, %s15270_s22  ;;  %v10863_v24 = vpop.f32.mrf.mxu0  ;;  %5580 = vst.msk [vmem:[#allocation4 + $0x110] sm:$0xff] %vm1380_vm2, %v5548_v53  ;;  %v10880_v32 = vld [vmem:[#allocation3 + $0x9c] sm:$0xff] }
 0x206   : > { %3314 = vrot.lane.b32.xlu2 %v10656_v47, %s15283_s16  ;;  %3025 = vst.msk [vmem:[#allocation4 + $0x278] sm:$0xff] %vm1380_vm2, %v10874_v46 }
 0x207   : > { %2039 = vrot.lane.b32.xlu0 %v10666_v13, %s15283_s16  ;;  %v4584_v29 = vpop.permute.xlu1 %4583  ;;  %3663 = vst.msk [vmem:[#allocation4 + $0x210] sm:$0xff] %vm1380_vm2, %v10877_v28 }
 0x208   : > { %v4778_v4 = vpop.permute.xlu2 %4777  ;;  %4679 = vst.msk [vmem:[#allocation4 + $0x20] sm:$0xff] %vm2115_vm5, %v4584_v29  ;;  %9101 = vmatmul.msk.f32.gmra.mxu0 %vm526_vm1, %v443_v55  ;;  %v446_v29 = vld [vmem:[%s9639_s13 + $0x1f0] sm:$0xff] }
 0x209   : > { %v3757_v56 = vpop.permute.xlu0 %3756  ;;  %2386 = vst.msk [vmem:[#allocation4 + $0x2e0] sm:$0xff] %vm1380_vm2, %v10880_v32 }
 0x20a   : > { %3849 = vst.msk [vmem:[#allocation4 + $0xc0] sm:$0xff] %vm1922_vm4, %v3757_v56 }
 0x20b   : > { %4041 = vst.msk [vmem:[#allocation4 + $0xc0] sm:$0xff] %vm2115_vm5, %v3949_v18 }
 0x20d   : > { %2041 = vrot.lane.b32.xlu1 %v10714_v1, %s15283_s16  ;;  %v1064_v42 = vpop.f32.mrf.mxu0 }
 0x20e   : > { %4143 = vrot.lane.b32.xlu2 %v10656_v47, %s15270_s22  ;;  %v1065_v15 = vadd.f32 %v10460_v0, %v1064_v42  ;;  %v5549_v47 = vld [vmem:[#allocation3 + $0x9c] sm:$0xff] }
 0x20f   : > { %2870 = vrot.lane.b32.xlu0 %v10666_v13, %s15270_s22  ;;  %v4586_v17 = vpop.permute.xlu1 %4585  ;;  %v10904_v13 = vld [vmem:[#allocation3 + $0x81] sm:$0xff]  ;;  %5581 = vst.msk [vmem:[#allocation4 + $0x148] sm:$0xff] %vm1380_vm2, %v5549_v47 }
 0x210   : > { %v1336_v35 = vmax.f32 %v1053_v6, %v1065_v15  ;;  %v1843_v18 = vpop.permute.xlu2 %1842  ;;  %9102 = vmatmul.msk.f32.gmra.mxu0 %vm526_vm1, %v444_v39 }
 0x211   : > { %v4776_v54 = vpop.permute.xlu0 %4775  ;;  %1931 = vst.msk [vmem:[#allocation4 + $0x1c0] sm:$0xff] %vm1922_vm4, %v1843_v18  ;;  %v447_v18 = vld [vmem:[%s9639_s13 + $0x1f8] sm:$0xff] }
 0x212   : > { %4871 = vst.msk [vmem:[#allocation4 + $0x20] sm:$0xff] %vm2308_vm6, %v4776_v54 }
 0x213   : > { %1401 = vst.msk [vmem:[#allocation2 + $0xa0] sm:$0xff] %vm1380_vm2, %v1336_v35  ;;  %v1062_v35 = vadd.f32 %v10460_v0, %v10863_v24 }
 0x215   : > { %2872 = vrot.lane.b32.xlu1 %v10714_v1, %s15270_s22  ;;  %v1067_v60 = vpop.f32.mrf.mxu0  ;;  %v1059_v1 = vadd.f32 %v10460_v0, %v10838_v30 }
 0x216   : > { %1848 = vrot.lane.b32.xlu2 %v10904_v13, %s15272_s15  ;;  %v1068_v63 = vadd.f32 %v10460_v0, %v1067_v60 }
 0x217   : > { %2234 = vrot.lane.b32.xlu0 %v10711_v10, %s15270_s22  ;;  %v2036_v19 = vpop.permute.xlu1 %2035 }
 0x218   : > { %v1337_v21 = vmax.f32 %v1056_v50, %v1068_v63  ;;  %2124 = vst.msk [vmem:[#allocation4 + $0x1c0] sm:$0xff] %vm2115_vm5, %v2036_v19  ;;  %v2675_v53 = vpop.permute.xlu2 %2674  ;;  %9103 = vmatmul.msk.f32.gmra.mxu0 %vm526_vm1, %v445_v58  ;;  %v448_v63 = vld [vmem:[%s9639_s13 + $0x200] sm:$0xff] }
 0x219   : > { %v4394_v20 = vpop.permute.xlu0 %4393 }
 0x21a   : > { %4488 = vst.msk [vmem:[#allocation4 + $0x58] sm:$0xff] %vm1922_vm4, %v4394_v20 }
 0x21b   : > { %1402 = vst.msk [vmem:[#allocation2 + $0xa8] sm:$0xff] %vm1380_vm2, %v1337_v21 }
 0x21c   : > { %4680 = vst.msk [vmem:[#allocation4 + $0x58] sm:$0xff] %vm2115_vm5, %v4586_v17 }
 0x21d   : > { %4872 = vst.msk [vmem:[#allocation4 + $0x58] sm:$0xff] %vm2308_vm6, %v4778_v4  ;;  %3954 = vrot.lane.b32.xlu1 %v10660_v48, %s15283_s16  ;;  %v1070_v55 = vpop.f32.mrf.mxu0 }
 0x21e   : > { %2232 = vrot.lane.b32.xlu2 %v10668_v52, %s15270_s22  ;;  %v1071_v56 = vadd.f32 %v10460_v0, %v1070_v55 }
 0x21f   : > { %2488 = vrot.lane.b32.xlu0 %v10662_v49, %s15272_s15  ;;  %v2867_v6 = vpop.permute.xlu1 %2866 }
 0x220   : > { %v1338_v42 = vmax.f32 %v1059_v1, %v1071_v56  ;;  %v3503_v30 = vpop.permute.xlu2 %3502  ;;  %9104 = vmatmul.msk.f32.gmra.mxu0 %vm526_vm1, %v446_v29 }
 0x221   : > { %v2483_v39 = vpop.permute.xlu0 %2482 }
 0x222   : > { %v1465_v4 = vld [vmem:[#allocation2 + $0xa0] ss:$2 sm:$0xff]  ;;  %v1529_v15 = vld [vmem:[#allocation2 + $0xa1] ss:$2 sm:$0xff]  ;;  %2572 = vst.msk [vmem:[#allocation4 + $0x158] sm:$0xff] %vm1922_vm4, %v2483_v39 }
 0x223   : > { %v1582_v17 = vmax.f32 %v1465_v4, %v1529_v15  ;;  %1403 = vst.msk [vmem:[#allocation2 + $0xb0] sm:$0xff] %vm1380_vm2, %v1338_v42 }
 0x224   : > { %2764 = vst.msk [vmem:[#allocation4 + $0x158] sm:$0xff] %vm2115_vm5, %v2675_v53 }
 0x225   : > { %1676 = vst.msk [vmem:[#allocation3 + $0xaa] sm:$0xff] %vm1380_vm2, %v1582_v17  ;;  %3956 = vrot.lane.b32.xlu1 %v10718_v11, %s15283_s16  ;;  %v1073_v54 = vpop.f32.mrf.mxu0 }
 0x226   : > { %2956 = vst.msk [vmem:[#allocation4 + $0x158] sm:$0xff] %vm2308_vm6, %v2867_v6  ;;  %2680 = vrot.lane.b32.xlu2 %v10904_v13, %s15283_s16  ;;  %v1074_v47 = vadd.f32 %v10460_v0, %v1073_v54 }
 0x227   : > { %3128 = vrot.lane.b32.xlu0 %v10718_v11, %s15272_s15  ;;  %v5033_v50 = vpop.permute.xlu1 %5032 }
 0x228   : > { %v1339_v24 = vmax.f32 %v1062_v35, %v1074_v47  ;;  %5128 = vst.msk [vmem:[#allocation4 + $0x28] sm:$0xff] %vm1922_vm4, %v5033_v50  ;;  %v4140_v58 = vpop.permute.xlu2 %4139  ;;  %9105 = vmatmul.msk.f32.gmra.mxu0 %vm526_vm1, %v447_v18  ;;  %v450_v35 = vld [vmem:[%s9639_s13 + $0x210] sm:$0xff] }
 0x229   : > { %v3311_v60 = vpop.permute.xlu0 %3310  ;;  %4233 = vst.msk [vmem:[#allocation4 + $0x88] sm:$0xff] %vm2308_vm6, %v4140_v58  ;;  %v1774_v58 = vld [vmem:[#allocation3 + $0x91] sm:$0xff] }
 0x22a   : > { %3402 = vst.msk [vmem:[#allocation4 + $0xf0] sm:$0xff] %vm2115_vm5, %v3311_v60 }
 0x22b   : > { %1404 = vst.msk [vmem:[#allocation2 + $0xb8] sm:$0xff] %vm1380_vm2, %v1339_v24 }
 0x22c   : > { %3594 = vst.msk [vmem:[#allocation4 + $0xf0] sm:$0xff] %vm2308_vm6, %v3503_v30  ;;  %v10977_v30 = vld [vmem:[#allocation3 + $0xa8] sm:$0xff] }
 0x22d   : > { %v5651_v11 = vld [vmem:[#allocation4 + $0x158] sm:$0xff]  ;;  %2490 = vrot.lane.b32.xlu1 %v10819_v12, %s15272_s15  ;;  %v10955_v0 = vpop.f32.mrf.mxu0  ;;  %1744 = vst.msk [vmem:[#allocation4 + $0x310] sm:$0xff] %vm1380_vm2, %v10977_v30  ;;  %v11008_v50 = vld [vmem:[#allocation3 + $0xaa] sm:$0xff] }
 0x22e   : > { %6179 = vmatmul.f32.gmra.mxu2 %v5651_v11  ;;  %3126 = vrot.lane.b32.xlu2 %v10660_v48, %s15272_s15  ;;  %v449_v48 = vld [vmem:[%s9639_s13 + $0x208] sm:$0xff]  ;;  %3664 = vst.msk [vmem:[#allocation4 + $0x248] sm:$0xff] %vm1380_vm2, %v11008_v50 }
 0x22f   : > { %3316 = vrot.lane.b32.xlu0 %v10662_v49, %s15283_s16  ;;  %v2231_v19 = vpop.permute.xlu1 %2230 }
 0x230   : > { %v2038_v20 = vpop.permute.xlu2 %2037  ;;  %9106 = vmatmul.msk.f32.gmra.mxu0 %vm526_vm1, %v448_v63  ;;  %v451_v63 = vld [vmem:[%s9639_s13 + $0x218] sm:$0xff] }
 0x231   : > { %v5225_v21 = vpop.permute.xlu0 %5224 }
 0x232   : > { %v1467_v53 = vld [vmem:[#allocation2 + $0xb0] ss:$2 sm:$0xff]  ;;  %v1531_v1 = vld [vmem:[#allocation2 + $0xb1] ss:$2 sm:$0xff]  ;;  %5320 = vst.msk [vmem:[#allocation4 + $0x28] sm:$0xff] %vm2115_vm5, %v5225_v21 }
 0x233   : > { %v1583_v55 = vmax.f32 %v1467_v53, %v1531_v1  ;;  %v5638_v29 = vld [vmem:[#allocation4 + $0xf0] sm:$0xff] }
 0x234   : > { %6286 = vmatmul.f32.gmra.mxu3 %v5638_v29 }
 0x235   : > { %1677 = vst.msk [vmem:[#allocation3 + $0xb2] sm:$0xff] %vm1380_vm2, %v1583_v55  ;;  %3318 = vrot.lane.b32.xlu1 %v10819_v12, %s15283_s16  ;;  %v10967_v56 = vpop.f32.mrf.mxu0 }
 0x236   : > { %3508 = vrot.lane.b32.xlu2 %v10904_v13, %s15270_s22  ;;  %v10985_v13 = vld [vmem:[#allocation3 + $0x99] sm:$0xff] }
 0x237   : > { %3762 = vrot.lane.b32.xlu0 %v10668_v52, %s15272_s15  ;;  %v2485_v6 = vpop.permute.xlu1 %2484 }
 0x238   : > { %2573 = vst.msk [vmem:[#allocation4 + $0x190] sm:$0xff] %vm1922_vm4, %v2485_v6  ;;  %v2869_v39 = vpop.permute.xlu2 %2868  ;;  %9107 = vmatmul.msk.f32.gmra.mxu0 %vm526_vm1, %v449_v48  ;;  %v11044_v48 = vld [vmem:[%s15251_s2] ss:$0 sm:$0xff] }
 0x239   : > { %v1845_v42 = vpop.permute.xlu0 %1844  ;;  %v1077_v6 = vadd.f32 %v11044_v48, %v10955_v0 }
 0x23a   : > { %1932 = vst.msk [vmem:[#allocation4 + $0x1f8] sm:$0xff] %vm1922_vm4, %v1845_v42 }
 0x23b   : > { %2125 = vst.msk [vmem:[#allocation4 + $0x1f8] sm:$0xff] %vm2115_vm5, %v2038_v20 }
 0x23c   : > { %2318 = vst.msk [vmem:[#allocation4 + $0x1f8] sm:$0xff] %vm2308_vm6, %v2231_v19  ;;  %v10981_v52 = vld [vmem:[#allocation3 + $0xb0] sm:$0xff] }
 0x23d   : > { %v10983_v4 = vld [vmem:[#allocation3 + $0xab] sm:$0xff]  ;;  %1852 = vrot.lane.b32.xlu1 %v10985_v13, %s15272_s15  ;;  %v10993_v17 = vpop.f32.mrf.mxu0  ;;  %1745 = vst.msk [vmem:[#allocation4 + $0x348] sm:$0xff] %vm1380_vm2, %v10981_v52  ;;  %v11035_v1 = vld [vmem:[#allocation3 + $0xb3] sm:$0xff] }
 0x23e   : > { %v10987_v15 = vld [vmem:[#allocation3 + $0xac] sm:$0xff]  ;;  %4145 = vrot.lane.b32.xlu2 %v10662_v49, %s15270_s22  ;;  %3026 = vst.msk [vmem:[#allocation4 + $0x2b0] sm:$0xff] %vm1380_vm2, %v10983_v4  ;;  %v2356_v29 = vld [vmem:[#allocation3 + $0xb4] sm:$0xff] }
 0x23f   : > { %3764 = vrot.lane.b32.xlu0 %v10711_v10, %s15272_s15  ;;  %v3125_v54 = vpop.permute.xlu1 %3124  ;;  %2387 = vst.msk [vmem:[#allocation4 + $0x318] sm:$0xff] %vm1380_vm2, %v10987_v15  ;;  %v11014_v49 = vld [vmem:[#allocation3 + $0xa9] sm:$0xff]  ;;  %v11016_v60 = vld [vmem:[#allocation3 + $0xb1] sm:$0xff] }
 0x240   : > { %3213 = vst.msk [vmem:[#allocation4 + $0x198] sm:$0xff] %vm1922_vm4, %v3125_v54  ;;  %v4142_v47 = vpop.permute.xlu2 %4141  ;;  %9108 = vmatmul.msk.f32.gmra.mxu0 %vm526_vm1, %v450_v35  ;;  %v4910_v10 = vld [vmem:[#allocation3 + $0xa8] sm:$0xff]  ;;  %v4911_v24 = vld [vmem:[#allocation3 + $0xb0] sm:$0xff]  ;;  %v452_v35 = vld [vmem:[%s9639_s13 + $0x220] sm:$0xff] }
 0x241   : > { %v2229_v18 = vpop.permute.xlu0 %2228  ;;  %4234 = vst.msk [vmem:[#allocation4 + $0xc0] sm:$0xff] %vm2308_vm6, %v4142_v47  ;;  %v11038_v55 = vld [vmem:[#allocation3 + $0xb2] sm:$0xff] }
 0x242   : > { %2317 = vst.msk [vmem:[#allocation4 + $0x1c0] sm:$0xff] %vm2308_vm6, %v2229_v18  ;;  %v5550_v42 = vld [vmem:[#allocation3 + $0xac] sm:$0xff] }
 0x243   : > { %4942 = vst.msk [vmem:[#allocation4 + $0x178] sm:$0xff] %vm1380_vm2, %v4910_v10 }
 0x244   : > { %4943 = vst.msk [vmem:[#allocation4 + $0x1b0] sm:$0xff] %vm1380_vm2, %v4911_v24  ;;  %v5671_v24 = vld [vmem:[#allocation4 + $0x1f8] sm:$0xff] }
 0x245   : > { %2236 = vrot.lane.b32.xlu1 %v10823_v62, %s15270_s22  ;;  %v11021_v11 = vpop.f32.mrf.mxu0  ;;  %4303 = vst.msk [vmem:[#allocation4 + $0x1e0] sm:$0xff] %vm1380_vm2, %v11014_v49 }
 0x246   : > { %2043 = vrot.lane.b32.xlu2 %v10825_v31, %s15283_s16  ;;  %4304 = vst.msk [vmem:[#allocation4 + $0x218] sm:$0xff] %vm1380_vm2, %v11016_v60 }
 0x247   : > { %1850 = vrot.lane.b32.xlu0 %v1774_v58, %s15272_s15  ;;  %v3313_v19 = vpop.permute.xlu1 %3312  ;;  %3027 = vst.msk [vmem:[#allocation4 + $0x2e8] sm:$0xff] %vm1380_vm2, %v11035_v1 }
 0x248   : > { %3403 = vst.msk [vmem:[#allocation4 + $0x128] sm:$0xff] %vm2115_vm5, %v3313_v19  ;;  %v5417_v20 = vpop.permute.xlu2 %5416  ;;  %9109 = vmatmul.msk.f32.gmra.mxu0 %vm526_vm1, %v451_v63  ;;  %v1080_v19 = vadd.f32 %v11044_v48, %v10967_v56  ;;  %v1083_v56 = vadd.f32 %v11044_v48, %v10993_v17 }
 0x249   : > { %v2677_v21 = vpop.permute.xlu0 %2676  ;;  %v5664_v53 = vld [vmem:[#allocation4 + $0x1c0] sm:$0xff]  ;;  %5512 = vst.msk [vmem:[#allocation4 + $0x28] sm:$0xff] %vm2308_vm6, %v5417_v20  ;;  %v453_v20 = vld [vmem:[%s9639_s13 + $0x228] sm:$0xff] }
 0x24a   : > { %2765 = vst.msk [vmem:[#allocation4 + $0x190] sm:$0xff] %vm2115_vm5, %v2677_v21  ;;  %6072 = vmatmul.f32.gmra.mxu1 %v5664_v53 }
 0x24b   : > { %2957 = vst.msk [vmem:[#allocation4 + $0x190] sm:$0xff] %vm2308_vm6, %v2869_v39 }
 0x24c   : > { %3665 = vst.msk [vmem:[#allocation4 + $0x280] sm:$0xff] %vm1380_vm2, %v11038_v55 }
 0x24d   : > { %2684 = vrot.lane.b32.xlu1 %v10985_v13, %s15283_s16  ;;  %v1088_v39 = vpop.f32.mrf.mxu0  ;;  %2388 = vst.msk [vmem:[#allocation4 + $0x350] sm:$0xff] %vm1380_vm2, %v2356_v29 }
 0x24e   : > { %2874 = vrot.lane.b32.xlu2 %v10825_v31, %s15270_s22  ;;  %v1089_v54 = vadd.f32 %v11044_v48, %v1088_v39  ;;  %5582 = vst.msk [vmem:[#allocation4 + $0x180] sm:$0xff] %vm1380_vm2, %v5550_v42  ;;  %v5551_v31 = vld [vmem:[#allocation3 + $0xb4] sm:$0xff] }
 0x24f   : > { %2682 = vrot.lane.b32.xlu0 %v1774_v58, %s15283_s16  ;;  %v3951_v0 = vpop.permute.xlu1 %3950  ;;  %5583 = vst.msk [vmem:[#allocation4 + $0x1b8] sm:$0xff] %vm1380_vm2, %v5551_v31 }
 0x250   : > { %v1340_v18 = vmax.f32 %v1077_v6, %v1089_v54  ;;  %v11061_v10 = vpop.permute.xlu2 %5418  ;;  %9110 = vmatmul.msk.f32.gmra.mxu0 %vm526_vm1, %v452_v35 }
 0x251   : > { %v3123_v47 = vpop.permute.xlu0 %3122 }
 0x252   : > { %3212 = vst.msk [vmem:[#allocation4 + $0x160] sm:$0xff] %vm1922_vm4, %v3123_v47  ;;  %6075 = vmatmul.f32.gmra.mxu1 %v5671_v24  ;;  %v5658_v63 = vld [vmem:[#allocation4 + $0x190] sm:$0xff] }
 0x253   : > { %1405 = vst.msk [vmem:[#allocation2 + $0xc0] sm:$0xff] %vm1380_vm2, %v1340_v18  ;;  %6182 = vmatmul.f32.gmra.mxu2 %v5658_v63 }
 0x255   : > { %3130 = vrot.lane.b32.xlu1 %v10829_v7, %s15272_s15  ;;  %v1091_v21 = vpop.f32.mrf.mxu0 }
 0x256   : > { %4147 = vrot.lane.b32.xlu2 %v10819_v12, %s15270_s22  ;;  %v1092_v53 = vadd.f32 %v11044_v48, %v1091_v21 }
 0x257   : > { %3510 = vrot.lane.b32.xlu0 %v1774_v58, %s15270_s22  ;;  %v3953_v29 = vpop.permute.xlu1 %3952  ;;  %v454_v58 = vld [vmem:[%s9639_s13 + $0x230] sm:$0xff] }
 0x258   : > { %v1341_v6 = vmax.f32 %v1080_v19, %v1092_v53  ;;  %v2487_v39 = vpop.permute.xlu2 %2486  ;;  %9111 = vmatmul.msk.f32.gmra.mxu0 %vm526_vm1, %v453_v20  ;;  %v1086_v19 = vadd.f32 %v11044_v48, %v11021_v11  ;;  %v455_v20 = vld [vmem:[%s9639_s13 + $0x238] sm:$0xff] }
 0x259   : > { %v3505_v42 = vpop.permute.xlu0 %3504  ;;  %2574 = vst.msk [vmem:[#allocation4 + $0x1c8] sm:$0xff] %vm1922_vm4, %v2487_v39 }
 0x25a   : > { %3595 = vst.msk [vmem:[#allocation4 + $0x128] sm:$0xff] %vm2308_vm6, %v3505_v42 }
 0x25b   : > { %1406 = vst.msk [vmem:[#allocation2 + $0xc8] sm:$0xff] %vm1380_vm2, %v1341_v6 }
 0x25d   : > { %3512 = vrot.lane.b32.xlu1 %v10985_v13, %s15270_s22  ;;  %v1094_v12 = vpop.f32.mrf.mxu0 }
 0x25e   : > { %2238 = vrot.lane.b32.xlu2 %v10874_v46, %s15270_s22  ;;  %v1095_v35 = vadd.f32 %v11044_v48, %v1094_v12 }
 0x25f   : > { %2045 = vrot.lane.b32.xlu0 %v10877_v28, %s15283_s16  ;;  %v5227_v54 = vpop.permute.xlu1 %5226 }
 0x260   : > { %v1342_v18 = vmax.f32 %v1083_v56, %v1095_v35  ;;  %v3315_v24 = vpop.permute.xlu2 %3314  ;;  %9112 = vmatmul.msk.f32.gmra.mxu0 %vm526_vm1, %v454_v58 }
 0x261   : > { %v3759_v47 = vpop.permute.xlu0 %3758  ;;  %v5645_v63 = vld [vmem:[#allocation4 + $0x128] sm:$0xff]  ;;  %3404 = vst.msk [vmem:[#allocation4 + $0x160] sm:$0xff] %vm2115_vm5, %v3315_v24 }
 0x262   : > { %v1469_v17 = vld [vmem:[#allocation2 + $0xc0] ss:$2 sm:$0xff]  ;;  %v1533_v13 = vld [vmem:[#allocation2 + $0xc1] ss:$2 sm:$0xff]  ;;  %3850 = vst.msk [vmem:[#allocation4 + $0xf8] sm:$0xff] %vm1922_vm4, %v3759_v47  ;;  %6289 = vmatmul.f32.gmra.mxu3 %v5645_v63 }
 0x263   : > { %v1584_v31 = vmax.f32 %v1469_v17, %v1533_v13  ;;  %1407 = vst.msk [vmem:[#allocation2 + $0xd0] sm:$0xff] %vm1380_vm2, %v1342_v18 }
 0x264   : > { %4042 = vst.msk [vmem:[#allocation4 + $0xf8] sm:$0xff] %vm2115_vm5, %v3951_v0 }
 0x265   : > { %1678 = vst.msk [vmem:[#allocation3 + $0xc2] sm:$0xff] %vm1380_vm2, %v1584_v31  ;;  %3958 = vrot.lane.b32.xlu1 %v10829_v7, %s15283_s16  ;;  %v1097_v21 = vpop.f32.mrf.mxu0  ;;  %v458_v31 = vld [vmem:[%s9639_s13 + $0x250] sm:$0xff] }
 0x266   : > { %2492 = vrot.lane.b32.xlu2 %v10831_v44, %s15272_s15  ;;  %v1098_v0 = vadd.f32 %v11044_v48, %v1097_v21 }
 0x267   : > { %2876 = vrot.lane.b32.xlu0 %v10877_v28, %s15270_s22  ;;  %v1847_v53 = vpop.permute.xlu1 %1846  ;;  %v456_v28 = vld [vmem:[%s9639_s13 + $0x240] sm:$0xff] }
 0x268   : > { %v1343_v11 = vmax.f32 %v1086_v19, %v1098_v0  ;;  %1933 = vst.msk [vmem:[#allocation4 + $0x230] sm:$0xff] %vm1922_vm4, %v1847_v53  ;;  %v4144_v42 = vpop.permute.xlu2 %4143  ;;  %9113 = vmatmul.msk.f32.gmra.mxu0 %vm526_vm1, %v455_v20 }
 0x269   : > { %v3761_v6 = vpop.permute.xlu0 %3760  ;;  %4235 = vst.msk [vmem:[#allocation4 + $0xf8] sm:$0xff] %vm2308_vm6, %v4144_v42 }
 0x26a   : > { %3851 = vst.msk [vmem:[#allocation4 + $0x130] sm:$0xff] %vm1922_vm4, %v3761_v6 }
 0x26b   : > { %1408 = vst.msk [vmem:[#allocation2 + $0xd8] sm:$0xff] %vm1380_vm2, %v1343_v11  ;;  %v1776_v11 = vld [vmem:[#allocation3 + $0xa9] sm:$0xff] }
 0x26c   : > { %4043 = vst.msk [vmem:[#allocation4 + $0x130] sm:$0xff] %vm2115_vm5, %v3953_v29  ;;  %v11140_v47 = vld [vmem:[#allocation3 + $0xc0] sm:$0xff] }
 0x26d   : > { %3960 = vrot.lane.b32.xlu1 %v10880_v32, %s15283_s16  ;;  %v11114_v7 = vpop.f32.mrf.mxu0  ;;  %1746 = vst.msk [vmem:[#allocation4 + $0x380] sm:$0xff] %vm1380_vm2, %v11140_v47  ;;  %v11150_v63 = vld [vmem:[#allocation3 + $0xc2] sm:$0xff] }
 0x26e   : > { %3132 = vrot.lane.b32.xlu2 %v10880_v32, %s15272_s15  ;;  %v457_v32 = vld [vmem:[%s9639_s13 + $0x248] sm:$0xff]  ;;  %3666 = vst.msk [vmem:[#allocation4 + $0x2b8] sm:$0xff] %vm1380_vm2, %v11150_v63  ;;  %v4912_v6 = vld [vmem:[#allocation3 + $0xc0] sm:$0xff] }
 0x26f   : > { %3766 = vrot.lane.b32.xlu0 %v10823_v62, %s15272_s15  ;;  %v2679_v39 = vpop.permute.xlu1 %2678  ;;  %4944 = vst.msk [vmem:[#allocation4 + $0x1e8] sm:$0xff] %vm1380_vm2, %v4912_v6 }
 0x270   : > { %2766 = vst.msk [vmem:[#allocation4 + $0x1c8] sm:$0xff] %vm2115_vm5, %v2679_v39  ;;  %v1849_v29 = vpop.permute.xlu2 %1848  ;;  %9114 = vmatmul.msk.f32.gmra.mxu0 %vm526_vm1, %v456_v28  ;;  %v459_v28 = vld [vmem:[%s9639_s13 + $0x258] sm:$0xff] }
 0x271   : > { %v5035_v56 = vpop.permute.xlu0 %5034  ;;  %1934 = vst.msk [vmem:[#allocation4 + $0x268] sm:$0xff] %vm1922_vm4, %v1849_v29 }
 0x272   : > { %v1471_v12 = vld [vmem:[#allocation2 + $0xd0] ss:$2 sm:$0xff]  ;;  %v1535_v58 = vld [vmem:[#allocation2 + $0xd1] ss:$2 sm:$0xff]  ;;  %5129 = vst.msk [vmem:[#allocation4 + $0x60] sm:$0xff] %vm1922_vm4, %v5035_v56 }
 0x273   : > { %v1585_v35 = vmax.f32 %v1471_v12, %v1535_v58  ;;  %5321 = vst.msk [vmem:[#allocation4 + $0x60] sm:$0xff] %vm2115_vm5, %v5227_v54 }
 0x274   : > { %5513 = vst.msk [vmem:[#allocation4 + $0x60] sm:$0xff] %vm2308_vm6, %v11061_v10 }
 0x275   : > { %1679 = vst.msk [vmem:[#allocation3 + $0xca] sm:$0xff] %vm1380_vm2, %v1585_v35  ;;  %2047 = vrot.lane.b32.xlu1 %v11008_v50, %s15283_s16  ;;  %v11131_v62 = vpop.f32.mrf.mxu0 }
 0x276   : > { %3320 = vrot.lane.b32.xlu2 %v10831_v44, %s15283_s16 }
 0x277   : > { %3768 = vrot.lane.b32.xlu0 %v10874_v46, %s15272_s15  ;;  %v3507_v54 = vpop.permute.xlu1 %3506 }
 0x278   : > { %3596 = vst.msk [vmem:[#allocation4 + $0x160] sm:$0xff] %vm2308_vm6, %v3507_v54  ;;  %v2233_v18 = vpop.permute.xlu2 %2232  ;;  %9115 = vmatmul.msk.f32.gmra.mxu0 %vm526_vm1, %v457_v32 }
 0x279   : > { %v2040_v10 = vpop.permute.xlu0 %2039 }
 0x27a   : > { %2126 = vst.msk [vmem:[#allocation4 + $0x230] sm:$0xff] %vm2115_vm5, %v2040_v10 }
 0x27b   : > { %2319 = vst.msk [vmem:[#allocation4 + $0x230] sm:$0xff] %vm2308_vm6, %v2233_v18  ;;  %v1101_v18 = vadd.f32 %v11044_v48, %v11114_v7 }
 0x27c   : > { %v11144_v24 = vld [vmem:[#allocation3 + $0xc4] sm:$0xff]  ;;  %v11200_v10 = vld [vmem:[#allocation3 + $0xcc] sm:$0xff] }
 0x27d   : > { %v11146_v46 = vld [vmem:[#allocation3 + $0xc8] sm:$0xff]  ;;  %2878 = vrot.lane.b32.xlu1 %v11008_v50, %s15270_s22  ;;  %v11158_v13 = vpop.f32.mrf.mxu0  ;;  %2389 = vst.msk [vmem:[#allocation4 + $0x388] sm:$0xff] %vm1380_vm2, %v11144_v24 }
 0x27e   : > { %v11152_v17 = vld [vmem:[#allocation3 + $0xc3] sm:$0xff]  ;;  %1747 = vst.msk [vmem:[#allocation4 + $0x3b8] sm:$0xff] %vm1380_vm2, %v11146_v46  ;;  %4149 = vrot.lane.b32.xlu2 %v10831_v44, %s15270_s22  ;;  %v11194_v32 = vld [vmem:[#allocation3 + $0xcb] sm:$0xff] }
 0x27f   : > { %3028 = vst.msk [vmem:[#allocation4 + $0x320] sm:$0xff] %vm1380_vm2, %v11152_v17  ;;  %2494 = vrot.lane.b32.xlu0 %v10977_v30, %s15272_s15  ;;  %v2042_v19 = vpop.permute.xlu1 %2041  ;;  %v5652_v21 = vld [vmem:[#allocation4 + $0x160] sm:$0xff]  ;;  %v11178_v53 = vld [vmem:[#allocation3 + $0xc9] sm:$0xff] }
 0x280   : > { %v11171_v50 = vld [vmem:[#allocation3 + $0xc1] sm:$0xff]  ;;  %2127 = vst.msk [vmem:[#allocation4 + $0x268] sm:$0xff] %vm2115_vm5, %v2042_v19  ;;  %v2681_v0 = vpop.permute.xlu2 %2680  ;;  %6292 = vmatmul.f32.gmra.mxu3 %v5652_v21  ;;  %9116 = vmatmul.msk.f32.gmra.mxu0 %vm526_vm1, %v458_v31  ;;  %v11197_v54 = vld [vmem:[#allocation3 + $0xca] sm:$0xff] }
 0x281   : > { %v2871_v20 = vpop.permute.xlu0 %2870  ;;  %4305 = vst.msk [vmem:[#allocation4 + $0x250] sm:$0xff] %vm1380_vm2, %v11171_v50  ;;  %v4913_v39 = vld [vmem:[#allocation3 + $0xc8] sm:$0xff]  ;;  %v11210_v31 = vld [vmem:[#allocation3 + $0xb1] sm:$0xff]  ;;  %v460_v21 = vld [vmem:[%s9639_s13 + $0x260] sm:$0xff] }
 0x282   : > { %2958 = vst.msk [vmem:[#allocation4 + $0x1c8] sm:$0xff] %vm2308_vm6, %v2871_v20  ;;  %v5678_v44 = vld [vmem:[#allocation4 + $0x230] sm:$0xff]  ;;  %v5552_v56 = vld [vmem:[#allocation3 + $0xc4] sm:$0xff] }
 0x283   : > { %6078 = vmatmul.f32.gmra.mxu1 %v5678_v44  ;;  %4306 = vst.msk [vmem:[#allocation4 + $0x288] sm:$0xff] %vm1380_vm2, %v11178_v53 }
 0x284   : > { %4945 = vst.msk [vmem:[#allocation4 + $0x220] sm:$0xff] %vm1380_vm2, %v4913_v39 }
 0x285   : > { %2242 = vrot.lane.b32.xlu1 %v11035_v1, %s15270_s22  ;;  %v11184_v42 = vpop.f32.mrf.mxu0  ;;  %5584 = vst.msk [vmem:[#allocation4 + $0x1f0] sm:$0xff] %vm1380_vm2, %v5552_v56  ;;  %v1104_v56 = vadd.f32 %v11044_v48, %v11131_v62 }
 0x286   : > { %1854 = vrot.lane.b32.xlu2 %v1776_v11, %s15272_s15  ;;  %3029 = vst.msk [vmem:[#allocation4 + $0x358] sm:$0xff] %vm1380_vm2, %v11194_v32 }
 0x287   : > { %3322 = vrot.lane.b32.xlu0 %v10977_v30, %s15283_s16  ;;  %v2873_v29 = vpop.permute.xlu1 %2872  ;;  %3667 = vst.msk [vmem:[#allocation4 + $0x2f0] sm:$0xff] %vm1380_vm2, %v11197_v54 }
 0x288   : > { %v3127_v58 = vpop.permute.xlu2 %3126  ;;  %9117 = vmatmul.msk.f32.gmra.mxu0 %vm526_vm1, %v459_v28  ;;  %2390 = vst.msk [vmem:[#allocation4 + $0x3c0] sm:$0xff] %vm1380_vm2, %v11200_v10 }
 0x289   : > { %v2235_v12 = vpop.permute.xlu0 %2234  ;;  %v5665_v35 = vld [vmem:[#allocation4 + $0x1c8] sm:$0xff]  ;;  %3214 = vst.msk [vmem:[#allocation4 + $0x1d0] sm:$0xff] %vm1922_vm4, %v3127_v58 }
 0x28a   : > { %2320 = vst.msk [vmem:[#allocation4 + $0x268] sm:$0xff] %vm2308_vm6, %v2235_v12  ;;  %6185 = vmatmul.f32.gmra.mxu2 %v5665_v35  ;;  %v3059_v12 = vld [vmem:[#allocation3 + $0xb4] sm:$0xff]  ;;  %v5553_v58 = vld [vmem:[#allocation3 + $0xcc] sm:$0xff] }
 0x28b   : > { %5585 = vst.msk [vmem:[#allocation4 + $0x228] sm:$0xff] %vm1380_vm2, %v5553_v58 }
 0x28d   : > { %2496 = vrot.lane.b32.xlu1 %v10981_v52, %s15272_s15  ;;  %v1112_v19 = vpop.f32.mrf.mxu0 }
 0x28e   : > { %2686 = vrot.lane.b32.xlu2 %v1776_v11, %s15283_s16  ;;  %v1113_v7 = vadd.f32 %v11044_v48, %v1112_v19 }
 0x28f   : > { %1856 = vrot.lane.b32.xlu0 %v11210_v31, %s15272_s15  ;;  %v11219_v20 = vpop.permute.xlu1 %3954 }
 0x290   : > { %v1344_v44 = vmax.f32 %v1101_v18, %v1113_v7  ;;  %v3509_v28 = vpop.permute.xlu2 %3508  ;;  %9118 = vmatmul.msk.f32.gmra.mxu0 %vm526_vm1, %v460_v21  ;;  %v461_v18 = vld [vmem:[%s9639_s13 + $0x268] sm:$0xff] }
 0x291   : > { %v2489_v6 = vpop.permute.xlu0 %2488  ;;  %v5685_v39 = vld [vmem:[#allocation4 + $0x268] sm:$0xff] }
 0x292   : > { %2575 = vst.msk [vmem:[#allocation4 + $0x200] sm:$0xff] %vm1922_vm4, %v2489_v6  ;;  %6081 = vmatmul.f32.gmra.mxu1 %v5685_v39  ;;  %v462_v6 = vld [vmem:[%s9639_s13 + $0x270] sm:$0xff] }
 0x293   : > { %1409 = vst.msk [vmem:[#allocation2 + $0xe0] sm:$0xff] %vm1380_vm2, %v1344_v44  ;;  %v1107_v44 = vadd.f32 %v11044_v48, %v11158_v13 }
 0x294   : > { %2767 = vst.msk [vmem:[#allocation4 + $0x200] sm:$0xff] %vm2115_vm5, %v2681_v0 }
 0x295   : > { %2959 = vst.msk [vmem:[#allocation4 + $0x200] sm:$0xff] %vm2308_vm6, %v2873_v29  ;;  %3136 = vrot.lane.b32.xlu1 %v3059_v12, %s15272_s15  ;;  %v1115_v35 = vpop.f32.mrf.mxu0 }
 0x296   : > { %3514 = vrot.lane.b32.xlu2 %v1776_v11, %s15270_s22  ;;  %v1116_v0 = vadd.f32 %v11044_v48, %v1115_v35 }
 0x297   : > { %2240 = vrot.lane.b32.xlu0 %v10983_v4, %s15270_s22  ;;  %v3957_v19 = vpop.permute.xlu1 %3956 }
 0x298   : > { %v1345_v62 = vmax.f32 %v1104_v56, %v1116_v0  ;;  %v4146_v29 = vpop.permute.xlu2 %4145  ;;  %9119 = vmatmul.msk.f32.gmra.mxu0 %vm526_vm1, %v461_v18 }
 0x299   : > { %v3129_v21 = vpop.permute.xlu0 %3128  ;;  %4236 = vst.msk [vmem:[#allocation4 + $0x130] sm:$0xff] %vm2308_vm6, %v4146_v29  ;;  %v463_v29 = vld [vmem:[%s9639_s13 + $0x278] sm:$0xff] }
 0x29a   : > { %3215 = vst.msk [vmem:[#allocation4 + $0x208] sm:$0xff] %vm1922_vm4, %v3129_v21 }
 0x29b   : > { %1410 = vst.msk [vmem:[#allocation2 + $0xe8] sm:$0xff] %vm1380_vm2, %v1345_v62 }
 0x29c   : > { %v5672_v7 = vld [vmem:[#allocation4 + $0x200] sm:$0xff] }
 0x29d   : > { %6188 = vmatmul.f32.gmra.mxu2 %v5672_v7  ;;  %3324 = vrot.lane.b32.xlu1 %v10981_v52, %s15283_s16  ;;  %v1118_v11 = vpop.f32.mrf.mxu0 }
 0x29e   : > { %4151 = vrot.lane.b32.xlu2 %v10977_v30, %s15270_s22  ;;  %v1119_v39 = vadd.f32 %v11044_v48, %v1118_v11  ;;  %v1110_v30 = vadd.f32 %v11044_v48, %v11184_v42 }
 0x29f   : > { %2688 = vrot.lane.b32.xlu0 %v11210_v31, %s15283_s16  ;;  %v2491_v56 = vpop.permute.xlu1 %2490 }
 0x2a0   : > { %v1346_v58 = vmax.f32 %v1107_v44, %v1119_v39  ;;  %2576 = vst.msk [vmem:[#allocation4 + $0x238] sm:$0xff] %vm1922_vm4, %v2491_v56  ;;  %v2044_v35 = vpop.permute.xlu2 %2043  ;;  %9120 = vmatmul.msk.f32.gmra.mxu0 %vm526_vm1, %v462_v6  ;;  %v464_v39 = vld [vmem:[%s9639_s13 + $0x280] sm:$0xff] }
 0x2a1   : > { %v3317_v13 = vpop.permute.xlu0 %3316 }
 0x2a2   : > { %v1473_v18 = vld [vmem:[#allocation2 + $0xe0] ss:$2 sm:$0xff]  ;;  %v1537_v0 = vld [vmem:[#allocation2 + $0xe1] ss:$2 sm:$0xff]  ;;  %3405 = vst.msk [vmem:[#allocation4 + $0x198] sm:$0xff] %vm2115_vm5, %v3317_v13 }
 0x2a3   : > { %v1586_v62 = vmax.f32 %v1473_v18, %v1537_v0  ;;  %1411 = vst.msk [vmem:[#allocation2 + $0xf0] sm:$0xff] %vm1380_vm2, %v1346_v58  ;;  %v465_v0 = vld [vmem:[%s9639_s13 + $0x288] sm:$0xff] }
 0x2a4   : > { %3597 = vst.msk [vmem:[#allocation4 + $0x198] sm:$0xff] %vm2308_vm6, %v3509_v28 }
 0x2a5   : > { %1680 = vst.msk [vmem:[#allocation3 + $0xda] sm:$0xff] %vm1380_vm2, %v1586_v62  ;;  %3962 = vrot.lane.b32.xlu1 %v10987_v15, %s15283_s16  ;;  %v1121_v21 = vpop.f32.mrf.mxu0 }
 0x2a6   : > { %2049 = vrot.lane.b32.xlu2 %v11038_v55, %s15283_s16  ;;  %v1122_v7 = vadd.f32 %v11044_v48, %v1121_v21 }
 0x2a7   : > { %3134 = vrot.lane.b32.xlu0 %v10987_v15, %s15272_s15  ;;  %v3319_v28 = vpop.permute.xlu1 %3318 }
 0x2a8   : > { %v1347_v44 = vmax.f32 %v1110_v30, %v1122_v7  ;;  %3406 = vst.msk [vmem:[#allocation4 + $0x1d0] sm:$0xff] %vm2115_vm5, %v3319_v28  ;;  %v2875_v11 = vpop.permute.xlu2 %2874  ;;  %9121 = vmatmul.msk.f32.gmra.mxu0 %vm526_vm1, %v463_v29  ;;  %v466_v28 = vld [vmem:[%s9639_s13 + $0x290] sm:$0xff] }
 0x2a9   : > { %v3763_v42 = vpop.permute.xlu0 %3762 }
 0x2aa   : > { %3852 = vst.msk [vmem:[#allocation4 + $0x168] sm:$0xff] %vm1922_vm4, %v3763_v42 }
 0x2ab   : > { %1412 = vst.msk [vmem:[#allocation2 + $0xf8] sm:$0xff] %vm1380_vm2, %v1347_v44  ;;  %v5659_v6 = vld [vmem:[#allocation4 + $0x198] sm:$0xff] }
 0x2ac   : > { %4044 = vst.msk [vmem:[#allocation4 + $0x168] sm:$0xff] %vm2115_vm5, %v11219_v20  ;;  %6295 = vmatmul.f32.gmra.mxu3 %v5659_v6  ;;  %v11297_v21 = vld [vmem:[#allocation3 + $0xd8] sm:$0xff] }
 0x2ad   : > { %3964 = vrot.lane.b32.xlu1 %v3059_v12, %s15283_s16  ;;  %v11272_v15 = vpop.f32.mrf.mxu0  ;;  %1748 = vst.msk [vmem:[#allocation4 + $0x3f0] sm:$0xff] %vm1380_vm2, %v11297_v21 }
 0x2ae   : > { %2880 = vrot.lane.b32.xlu2 %v11038_v55, %s15270_s22  ;;  %v1778_v55 = vld [vmem:[#allocation3 + $0xc1] sm:$0xff] }
 0x2af   : > { %3516 = vrot.lane.b32.xlu0 %v11210_v31, %s15270_s22  ;;  %v1853_v56 = vpop.permute.xlu1 %1852 }
 0x2b0   : > { %1936 = vst.msk [vmem:[#allocation4 + $0x2d8] sm:$0xff] %vm1922_vm4, %v1853_v56  ;;  %9122 = vmatmul.msk.f32.gmra.mxu0 %vm526_vm1, %v464_v39  ;;  %v4148_v12 = vpop.permute.xlu2 %4147  ;;  %v11331_v39 = vld [vmem:[#allocation3 + $0xd9] sm:$0xff] }
 0x2b1   : > { %v3765_v58 = vpop.permute.xlu0 %3764  ;;  %4237 = vst.msk [vmem:[#allocation4 + $0x168] sm:$0xff] %vm2308_vm6, %v4148_v12 }
 0x2b2   : > { %v1475_v20 = vld [vmem:[#allocation2 + $0xf0] ss:$2 sm:$0xff]  ;;  %v1539_v13 = vld [vmem:[#allocation2 + $0xf1] ss:$2 sm:$0xff]  ;;  %3853 = vst.msk [vmem:[#allocation4 + $0x1a0] sm:$0xff] %vm1922_vm4, %v3765_v58 }
 0x2b3   : > { %v1587_v18 = vmax.f32 %v1475_v20, %v1539_v13  ;;  %4045 = vst.msk [vmem:[#allocation4 + $0x1a0] sm:$0xff] %vm2115_vm5, %v3957_v19  ;;  %v467_v58 = vld [vmem:[%s9639_s13 + $0x298] sm:$0xff] }
 0x2b4   : > { %v4914_v20 = vld [vmem:[#allocation3 + $0xd8] sm:$0xff]  ;;  %4307 = vst.msk [vmem:[#allocation4 + $0x2c0] sm:$0xff] %vm1380_vm2, %v11331_v39 }
 0x2b5   : > { %1681 = vst.msk [vmem:[#allocation3 + $0xe2] sm:$0xff] %vm1380_vm2, %v1587_v18  ;;  %1858 = vrot.lane.b32.xlu1 %v1778_v55, %s15272_s15  ;;  %v11286_v31 = vpop.f32.mrf.mxu0 }
 0x2b6   : > { %4153 = vrot.lane.b32.xlu2 %v10981_v52, %s15270_s22  ;;  %4946 = vst.msk [vmem:[#allocation4 + $0x258] sm:$0xff] %vm1380_vm2, %v4914_v20 }
 0x2b7   : > { %3770 = vrot.lane.b32.xlu0 %v10983_v4, %s15272_s15  ;;  %v2237_v62 = vpop.permute.xlu1 %2236  ;;  %v11303_v4 = vld [vmem:[#allocation3 + $0xda] sm:$0xff] }
 0x2b8   : > { %9123 = vmatmul.msk.f32.gmra.mxu0 %vm526_vm1, %v465_v0  ;;  %v11295_v19 = vpop.permute.xlu2 %2238  ;;  %3668 = vst.msk [vmem:[#allocation4 + $0x328] sm:$0xff] %vm1380_vm2, %v11303_v4 }
 0x2b9   : > { %v1851_v30 = vpop.permute.xlu0 %1850 }
 0x2ba   : > { %1935 = vst.msk [vmem:[#allocation4 + $0x2a0] sm:$0xff] %vm1922_vm4, %v1851_v30 }
 0x2bb   : > { %2128 = vst.msk [vmem:[#allocation4 + $0x2a0] sm:$0xff] %vm2115_vm5, %v2044_v35 }
 0x2bc   : > { %2321 = vst.msk [vmem:[#allocation4 + $0x2a0] sm:$0xff] %vm2308_vm6, %v2237_v62  ;;  %v11301_v29 = vld [vmem:[#allocation3 + $0xdb] sm:$0xff]  ;;  %v11348_v18 = vld [vmem:[#allocation3 + $0xe3] sm:$0xff] }
 0x2bd   : > { %v11305_v7 = vld [vmem:[#allocation3 + $0xe0] sm:$0xff]  ;;  %2690 = vrot.lane.b32.xlu1 %v1778_v55, %s15283_s16  ;;  %v11310_v52 = vpop.f32.mrf.mxu0  ;;  %3030 = vst.msk [vmem:[#allocation4 + $0x390] sm:$0xff] %vm1380_vm2, %v11301_v29 }
 0x2be   : > { %v11313_v44 = vld [vmem:[#allocation3 + $0xdc] sm:$0xff]  ;;  %1749 = vst.msk [vmem:[#allocation4 + $0x428] sm:$0xff] %vm1380_vm2, %v11305_v7  ;;  %2498 = vrot.lane.b32.xlu2 %v11140_v47, %s15272_s15  ;;  %v11354_v30 = vld [vmem:[#allocation3 + $0xe4] sm:$0xff] }
 0x2bf   : > { %3772 = vrot.lane.b32.xlu0 %v11035_v1, %s15272_s15  ;;  %v2685_v35 = vpop.permute.xlu1 %2684  ;;  %2391 = vst.msk [vmem:[#allocation4 + $0x3f8] sm:$0xff] %vm1380_vm2, %v11313_v44  ;;  %v4915_v13 = vld [vmem:[#allocation3 + $0xe0] sm:$0xff] }
 0x2c0   : > { %9124 = vmatmul.msk.f32.gmra.mxu0 %vm526_vm1, %v466_v28  ;;  %v2493_v1 = vpop.permute.xlu2 %2492  ;;  %4947 = vst.msk [vmem:[#allocation4 + $0x290] sm:$0xff] %vm1380_vm2, %v4915_v13  ;;  %v11351_v62 = vld [vmem:[#allocation3 + $0xe2] sm:$0xff] }
 0x2c1   : > { %v2683_v42 = vpop.permute.xlu0 %2682  ;;  %2577 = vst.msk [vmem:[#allocation4 + $0x270] sm:$0xff] %vm1922_vm4, %v2493_v1  ;;  %v11358_v28 = vld [vmem:[#allocation3 + $0xe1] sm:$0xff] }
 0x2c2   : > { %2768 = vst.msk [vmem:[#allocation4 + $0x238] sm:$0xff] %vm2115_vm5, %v2683_v42  ;;  %v5554_v42 = vld [vmem:[#allocation3 + $0xdc] sm:$0xff] }
 0x2c3   : > { %2960 = vst.msk [vmem:[#allocation4 + $0x238] sm:$0xff] %vm2308_vm6, %v2875_v11  ;;  %v5692_v6 = vld [vmem:[#allocation4 + $0x2a0] sm:$0xff] }
 0x2c4   : > { %6084 = vmatmul.f32.gmra.mxu1 %v5692_v6  ;;  %2769 = vst.msk [vmem:[#allocation4 + $0x270] sm:$0xff] %vm2115_vm5, %v2685_v35  ;;  %v1125_v35 = vadd.f32 %v11044_v48, %v11272_v15  ;;  %v468_v6 = vld [vmem:[%s9639_s13 + $0x2a0] sm:$0xff] }
 0x2c5   : > { %3518 = vrot.lane.b32.xlu1 %v1778_v55, %s15270_s22  ;;  %v11335_v56 = vpop.f32.mrf.mxu0  ;;  %3031 = vst.msk [vmem:[#allocation4 + $0x3c8] sm:$0xff] %vm1380_vm2, %v11348_v18 }
 0x2c6   : > { %3326 = vrot.lane.b32.xlu2 %v11140_v47, %s15283_s16  ;;  %3669 = vst.msk [vmem:[#allocation4 + $0x360] sm:$0xff] %vm1380_vm2, %v11351_v62 }
 0x2c7   : > { %2051 = vrot.lane.b32.xlu0 %v11150_v63, %s15283_s16  ;;  %v3131_v11 = vpop.permute.xlu1 %3130  ;;  %2392 = vst.msk [vmem:[#allocation4 + $0x430] sm:$0xff] %vm1380_vm2, %v11354_v30 }
 0x2c8   : > { %3216 = vst.msk [vmem:[#allocation4 + $0x240] sm:$0xff] %vm1922_vm4, %v3131_v11  ;;  %9125 = vmatmul.msk.f32.gmra.mxu0 %vm526_vm1, %v467_v58  ;;  %v3133_v55 = vpop.permute.xlu2 %3132 }
 0x2c9   : > { %v3511_v12 = vpop.permute.xlu0 %3510  ;;  %3217 = vst.msk [vmem:[#allocation4 + $0x278] sm:$0xff] %vm1922_vm4, %v3133_v55  ;;  %v11388_v55 = vld [vmem:[#allocation3 + $0xc9] sm:$0xff] }
 0x2ca   : > { %3598 = vst.msk [vmem:[#allocation4 + $0x1d0] sm:$0xff] %vm2308_vm6, %v3511_v12  ;;  %v5679_v0 = vld [vmem:[#allocation4 + $0x238] sm:$0xff]  ;;  %v5555_v12 = vld [vmem:[#allocation3 + $0xe4] sm:$0xff] }
 0x2cb   : > { %6191 = vmatmul.f32.gmra.mxu2 %v5679_v0  ;;  %4308 = vst.msk [vmem:[#allocation4 + $0x2f8] sm:$0xff] %vm1380_vm2, %v11358_v28 }
 0x2cc   : > { %5586 = vst.msk [vmem:[#allocation4 + $0x260] sm:$0xff] %vm1380_vm2, %v5554_v42 }
 0x2cd   : > { %2053 = vrot.lane.b32.xlu1 %v11197_v54, %s15283_s16  ;;  %v1136_v1 = vpop.f32.mrf.mxu0  ;;  %5587 = vst.msk [vmem:[#allocation4 + $0x298] sm:$0xff] %vm1380_vm2, %v5555_v12 }
 0x2ce   : > { %4155 = vrot.lane.b32.xlu2 %v11140_v47, %s15270_s22  ;;  %v1137_v15 = vadd.f32 %v11044_v48, %v1136_v1  ;;  %v1128_v47 = vadd.f32 %v11044_v48, %v11286_v31 }
 0x2cf   : > { %2882 = vrot.lane.b32.xlu0 %v11150_v63, %s15270_s22  ;;  %v3513_v58 = vpop.permute.xlu1 %3512 }
 0x2d0   : > { %v1348_v20 = vmax.f32 %v1125_v35, %v1137_v15  ;;  %9126 = vmatmul.msk.f32.gmra.mxu0 %vm526_vm1, %v468_v6  ;;  %v3321_v63 = vpop.permute.xlu2 %3320  ;;  %v469_v35 = vld [vmem:[%s9639_s13 + $0x2a8] sm:$0xff]  ;;  %v1131_v15 = vadd.f32 %v11044_v48, %v11310_v52 }
 0x2d1   : > { %v2046_v13 = vpop.permute.xlu0 %2045  ;;  %v5666_v11 = vld [vmem:[#allocation4 + $0x1d0] sm:$0xff]  ;;  %3407 = vst.msk [vmem:[#allocation4 + $0x208] sm:$0xff] %vm2115_vm5, %v3321_v63 }
 0x2d2   : > { %2129 = vst.msk [vmem:[#allocation4 + $0x2d8] sm:$0xff] %vm2115_vm5, %v2046_v13  ;;  %6298 = vmatmul.f32.gmra.mxu3 %v5666_v11  ;;  %v470_v13 = vld [vmem:[%s9639_s13 + $0x2b0] sm:$0xff] }
 0x2d3   : > { %1413 = vst.msk [vmem:[#allocation2 + $0x100] sm:$0xff] %vm1380_vm2, %v1348_v20 }
 0x2d4   : > { %2322 = vst.msk [vmem:[#allocation4 + $0x2d8] sm:$0xff] %vm2308_vm6, %v11295_v19 }
 0x2d5   : > { %3599 = vst.msk [vmem:[#allocation4 + $0x208] sm:$0xff] %vm2308_vm6, %v3513_v58  ;;  %2884 = vrot.lane.b32.xlu1 %v11197_v54, %s15270_s22  ;;  %v1139_v0 = vpop.f32.mrf.mxu0 }
 0x2d6   : > { %1860 = vrot.lane.b32.xlu2 %v11388_v55, %s15272_s15  ;;  %v1140_v31 = vadd.f32 %v11044_v48, %v1139_v0 }
 0x2d7   : > { %2246 = vrot.lane.b32.xlu0 %v11194_v32, %s15270_s22  ;;  %v3959_v19 = vpop.permute.xlu1 %3958 }
 0x2d8   : > { %v1349_v42 = vmax.f32 %v1128_v47, %v1140_v31  ;;  %9127 = vmatmul.msk.f32.gmra.mxu0 %vm526_vm1, %v469_v35  ;;  %v4150_v54 = vpop.permute.xlu2 %4149 }
 0x2d9   : > { %v2877_v1 = vpop.permute.xlu0 %2876  ;;  %4238 = vst.msk [vmem:[#allocation4 + $0x1a0] sm:$0xff] %vm2308_vm6, %v4150_v54 }
 0x2da   : > { %2961 = vst.msk [vmem:[#allocation4 + $0x270] sm:$0xff] %vm2308_vm6, %v2877_v1  ;;  %v1134_v1 = vadd.f32 %v11044_v48, %v11335_v56 }
 0x2db   : > { %1414 = vst.msk [vmem:[#allocation2 + $0x108] sm:$0xff] %vm1380_vm2, %v1349_v42  ;;  %v5699_v6 = vld [vmem:[#allocation4 + $0x2d8] sm:$0xff] }
 0x2dc   : > { %6087 = vmatmul.f32.gmra.mxu1 %v5699_v6  ;;  %v5673_v58 = vld [vmem:[#allocation4 + $0x208] sm:$0xff]  ;;  %v471_v6 = vld [vmem:[%s9639_s13 + $0x2b8] sm:$0xff] }
 0x2dd   : > { %6301 = vmatmul.f32.gmra.mxu3 %v5673_v58  ;;  %3966 = vrot.lane.b32.xlu1 %v11144_v24, %s15283_s16  ;;  %v1142_v20 = vpop.f32.mrf.mxu0 }
 0x2de   : > { %2244 = vrot.lane.b32.xlu2 %v11152_v17, %s15270_s22  ;;  %v1143_v11 = vadd.f32 %v11044_v48, %v1142_v20 }
 0x2df   : > { %2500 = vrot.lane.b32.xlu0 %v11146_v46, %s15272_s15  ;;  %v3961_v63 = vpop.permute.xlu1 %3960 }
 0x2e0   : > { %v1350_v47 = vmax.f32 %v1131_v15, %v1143_v11  ;;  %9128 = vmatmul.msk.f32.gmra.mxu0 %vm526_vm1, %v470_v13  ;;  %v1855_v31 = vpop.permute.xlu2 %1854  ;;  %v472_v13 = vld [vmem:[%s9639_s13 + $0x2c0] sm:$0xff] }
 0x2e1   : > { %v3767_v12 = vpop.permute.xlu0 %3766  ;;  %v5686_v52 = vld [vmem:[#allocation4 + $0x270] sm:$0xff]  ;;  %1937 = vst.msk [vmem:[#allocation4 + $0x310] sm:$0xff] %vm1922_vm4, %v1855_v31 }
 0x2e2   : > { %v1477_v0 = vld [vmem:[#allocation2 + $0x100] ss:$2 sm:$0xff]  ;;  %v1541_v35 = vld [vmem:[#allocation2 + $0x101] ss:$2 sm:$0xff]  ;;  %3854 = vst.msk [vmem:[#allocation4 + $0x1d8] sm:$0xff] %vm1922_vm4, %v3767_v12  ;;  %6194 = vmatmul.f32.gmra.mxu2 %v5686_v52 }
 0x2e3   : > { %v1588_v42 = vmax.f32 %v1477_v0, %v1541_v35  ;;  %1415 = vst.msk [vmem:[#allocation2 + $0x110] sm:$0xff] %vm1380_vm2, %v1350_v47  ;;  %v473_v35 = vld [vmem:[%s9639_s13 + $0x2c8] sm:$0xff] }
 0x2e4   : > { %4046 = vst.msk [vmem:[#allocation4 + $0x1d8] sm:$0xff] %vm2115_vm5, %v3959_v19 }
 0x2e5   : > { %1682 = vst.msk [vmem:[#allocation3 + $0xf2] sm:$0xff] %vm1380_vm2, %v1588_v42  ;;  %3968 = vrot.lane.b32.xlu1 %v11200_v10, %s15283_s16  ;;  %v1145_v54 = vpop.f32.mrf.mxu0 }
 0x2e6   : > { %2692 = vrot.lane.b32.xlu2 %v11388_v55, %s15283_s16  ;;  %v1146_v19 = vadd.f32 %v11044_v48, %v1145_v54 }
 0x2e7   : > { %3140 = vrot.lane.b32.xlu0 %v11200_v10, %s15272_s15  ;;  %v2048_v15 = vpop.permute.xlu1 %2047 }
 0x2e8   : > { %v1351_v56 = vmax.f32 %v1134_v1, %v1146_v19  ;;  %2130 = vst.msk [vmem:[#allocation4 + $0x310] sm:$0xff] %vm2115_vm5, %v2048_v15  ;;  %9129 = vmatmul.msk.f32.gmra.mxu0 %vm526_vm1, %v471_v6  ;;  %v2687_v20 = vpop.permute.xlu2 %2686 }
 0x2e9   : > { %v3769_v58 = vpop.permute.xlu0 %3768 }
 0x2ea   : > { %3855 = vst.msk [vmem:[#allocation4 + $0x210] sm:$0xff] %vm1922_vm4, %v3769_v58  ;;  %v474_v58 = vld [vmem:[%s9639_s13 + $0x2d0] sm:$0xff] }
 0x2eb   : > { %1416 = vst.msk [vmem:[#allocation2 + $0x118] sm:$0xff] %vm1380_vm2, %v1351_v56 }
 0x2ec   : > { %4047 = vst.msk [vmem:[#allocation4 + $0x210] sm:$0xff] %vm2115_vm5, %v3961_v63  ;;  %v11457_v54 = vld [vmem:[#allocation3 + $0xf0] sm:$0xff] }
 0x2ed   : > { %2502 = vrot.lane.b32.xlu1 %v11297_v21, %s15272_s15  ;;  %v11434_v10 = vpop.f32.mrf.mxu0  ;;  %1750 = vst.msk [vmem:[#allocation4 + $0x460] sm:$0xff] %vm1380_vm2, %v11457_v54 }
 0x2ee   : > { %3138 = vrot.lane.b32.xlu2 %v11144_v24, %s15272_s15 }
 0x2ef   : > { %3328 = vrot.lane.b32.xlu0 %v11146_v46, %s15283_s16  ;;  %v2879_v11 = vpop.permute.xlu1 %2878 }
 0x2f0   : > { %9130 = vmatmul.msk.f32.gmra.mxu0 %vm526_vm1, %v472_v13  ;;  %v3515_v63 = vpop.permute.xlu2 %3514 }
 0x2f1   : > { %v2495_v47 = vpop.permute.xlu0 %2494 }
 0x2f2   : > { %v1479_v12 = vld [vmem:[#allocation2 + $0x110] ss:$2 sm:$0xff]  ;;  %v1543_v52 = vld [vmem:[#allocation2 + $0x111] ss:$2 sm:$0xff]  ;;  %2578 = vst.msk [vmem:[#allocation4 + $0x2a8] sm:$0xff] %vm1922_vm4, %v2495_v47 }
 0x2f3   : > { %v1589_v0 = vmax.f32 %v1479_v12, %v1543_v52  ;;  %2770 = vst.msk [vmem:[#allocation4 + $0x2a8] sm:$0xff] %vm2115_vm5, %v2687_v20  ;;  %v11489_v47 = vld [vmem:[#allocation3 + $0xf2] sm:$0xff] }
 0x2f4   : > { %2962 = vst.msk [vmem:[#allocation4 + $0x2a8] sm:$0xff] %vm2308_vm6, %v2879_v11  ;;  %v1780_v12 = vld [vmem:[#allocation3 + $0xd9] sm:$0xff] }
 0x2f5   : > { %1683 = vst.msk [vmem:[#allocation3 + $0xfa] sm:$0xff] %vm1380_vm2, %v1589_v0  ;;  %3330 = vrot.lane.b32.xlu1 %v11297_v21, %s15283_s16  ;;  %v11448_v24 = vpop.f32.mrf.mxu0  ;;  %v4916_v0 = vld [vmem:[#allocation3 + $0xf0] sm:$0xff] }
 0x2f6   : > { %3520 = vrot.lane.b32.xlu2 %v11388_v55, %s15270_s22  ;;  %v11465_v55 = vld [vmem:[#allocation3 + $0xe1] sm:$0xff]  ;;  %3670 = vst.msk [vmem:[#allocation4 + $0x398] sm:$0xff] %vm1380_vm2, %v11489_v47 }
 0x2f7   : > { %3774 = vrot.lane.b32.xlu0 %v11152_v17, %s15272_s15  ;;  %v2243_v31 = vpop.permute.xlu1 %2242  ;;  %4948 = vst.msk [vmem:[#allocation4 + $0x2c8] sm:$0xff] %vm1380_vm2, %v4916_v0  ;;  %v476_v0 = vld [vmem:[%s9639_s13 + $0x2e0] sm:$0xff] }
 0x2f8   : > { %9131 = vmatmul.msk.f32.gmra.mxu0 %vm526_vm1, %v473_v35  ;;  %v4152_v1 = vpop.permute.xlu2 %4151 }
 0x2f9   : > { %v3323_v42 = vpop.permute.xlu0 %3322  ;;  %4239 = vst.msk [vmem:[#allocation4 + $0x1d8] sm:$0xff] %vm2308_vm6, %v4152_v1 }
 0x2fa   : > { %3408 = vst.msk [vmem:[#allocation4 + $0x240] sm:$0xff] %vm2115_vm5, %v3323_v42 }
 0x2fb   : > { %3600 = vst.msk [vmem:[#allocation4 + $0x240] sm:$0xff] %vm2308_vm6, %v3515_v63  ;;  %v5693_v6 = vld [vmem:[#allocation4 + $0x2a8] sm:$0xff]  ;;  %v475_v63 = vld [vmem:[%s9639_s13 + $0x2d8] sm:$0xff] }
 0x2fc   : > { %6197 = vmatmul.f32.gmra.mxu2 %v5693_v6  ;;  %v11461_v17 = vld [vmem:[#allocation3 + $0xf8] sm:$0xff] }
 0x2fd   : > { %v11463_v19 = vld [vmem:[#allocation3 + $0xf3] sm:$0xff]  ;;  %1864 = vrot.lane.b32.xlu1 %v11465_v55, %s15272_s15  ;;  %v11473_v56 = vpop.f32.mrf.mxu0  ;;  %1751 = vst.msk [vmem:[#allocation4 + $0x498] sm:$0xff] %vm1380_vm2, %v11461_v17  ;;  %v11511_v1 = vld [vmem:[#allocation3 + $0xfb] sm:$0xff] }
 0x2fe   : > { %v11467_v15 = vld [vmem:[#allocation3 + $0xf4] sm:$0xff]  ;;  %4157 = vrot.lane.b32.xlu2 %v11146_v46, %s15270_s22  ;;  %3032 = vst.msk [vmem:[#allocation4 + $0x400] sm:$0xff] %vm1380_vm2, %v11463_v19 }
 0x2ff   : > { %3776 = vrot.lane.b32.xlu0 %v11194_v32, %s15272_s15  ;;  %v2497_v20 = vpop.permute.xlu1 %2496  ;;  %2393 = vst.msk [vmem:[#allocation4 + $0x468] sm:$0xff] %vm1380_vm2, %v11467_v15  ;;  %v11493_v46 = vld [vmem:[#allocation3 + $0xf1] sm:$0xff]  ;;  %v11513_v6 = vld [vmem:[#allocation3 + $0xfa] sm:$0xff] }
 0x300   : > { %2579 = vst.msk [vmem:[#allocation4 + $0x2e0] sm:$0xff] %vm1922_vm4, %v2497_v20  ;;  %9132 = vmatmul.msk.f32.gmra.mxu0 %vm526_vm1, %v474_v58  ;;  %v2050_v11 = vpop.permute.xlu2 %2049  ;;  %v4917_v35 = vld [vmem:[#allocation3 + $0xf8] sm:$0xff] }
 0x301   : > { %v1857_v13 = vpop.permute.xlu0 %1856  ;;  %4309 = vst.msk [vmem:[#allocation4 + $0x330] sm:$0xff] %vm1380_vm2, %v11493_v46  ;;  %v2362_v20 = vld [vmem:[#allocation3 + $0xfc] sm:$0xff] }
 0x302   : > { %1938 = vst.msk [vmem:[#allocation4 + $0x348] sm:$0xff] %vm1922_vm4, %v1857_v13  ;;  %v5680_v32 = vld [vmem:[#allocation4 + $0x240] sm:$0xff] }
 0x303   : > { %2131 = vst.msk [vmem:[#allocation4 + $0x348] sm:$0xff] %vm2115_vm5, %v2050_v11  ;;  %6304 = vmatmul.f32.gmra.mxu3 %v5680_v32  ;;  %v11518_v13 = vld [vmem:[#allocation3 + $0xf9] sm:$0xff]  ;;  %v1149_v32 = vadd.f32 %v11044_v48, %v11434_v10 }
 0x304   : > { %2324 = vst.msk [vmem:[#allocation4 + $0x348] sm:$0xff] %vm2308_vm6, %v2243_v31  ;;  %v5556_v11 = vld [vmem:[#allocation3 + $0xf4] sm:$0xff] }
 0x305   : > { %2248 = vrot.lane.b32.xlu1 %v11301_v29, %s15270_s22  ;;  %v11499_v52 = vpop.f32.mrf.mxu0  ;;  %4949 = vst.msk [vmem:[#allocation4 + $0x300] sm:$0xff] %vm1380_vm2, %v4917_v35 }
 0x306   : > { %2055 = vrot.lane.b32.xlu2 %v11303_v4, %s15283_s16  ;;  %3033 = vst.msk [vmem:[#allocation4 + $0x438] sm:$0xff] %vm1380_vm2, %v11511_v1 }
 0x307   : > { %1862 = vrot.lane.b32.xlu0 %v1780_v12, %s15272_s15  ;;  %v3137_v31 = vpop.permute.xlu1 %3136  ;;  %3671 = vst.msk [vmem:[#allocation4 + $0x3d0] sm:$0xff] %vm1380_vm2, %v11513_v6 }
 0x308   : > { %3219 = vst.msk [vmem:[#allocation4 + $0x2e8] sm:$0xff] %vm1922_vm4, %v3137_v31  ;;  %9133 = vmatmul.msk.f32.gmra.mxu0 %vm526_vm1, %v475_v63  ;;  %v2881_v58 = vpop.permute.xlu2 %2880 }
 0x309   : > { %v2241_v42 = vpop.permute.xlu0 %2240  ;;  %2394 = vst.msk [vmem:[#allocation4 + $0x4a0] sm:$0xff] %vm1380_vm2, %v2362_v20 }
 0x30a   : > { %2323 = vst.msk [vmem:[#allocation4 + $0x310] sm:$0xff] %vm2308_vm6, %v2241_v42 }
 0x30b   : > { %4310 = vst.msk [vmem:[#allocation4 + $0x368] sm:$0xff] %vm1380_vm2, %v11518_v13 }
 0x30c   : > { %5588 = vst.msk [vmem:[#allocation4 + $0x2d0] sm:$0xff] %vm1380_vm2, %v5556_v11 }
 0x30d   : > { %2696 = vrot.lane.b32.xlu1 %v11465_v55, %s15283_s16  ;;  %v1160_v63 = vpop.f32.mrf.mxu0 }
 0x30e   : > { %2886 = vrot.lane.b32.xlu2 %v11303_v4, %s15270_s22  ;;  %v1161_v35 = vadd.f32 %v11044_v48, %v1160_v63  ;;  %v1152_v4 = vadd.f32 %v11044_v48, %v11448_v24  ;;  %v5557_v63 = vld [vmem:[#allocation3 + $0xfc] sm:$0xff] }
 0x30f   : > { %2694 = vrot.lane.b32.xlu0 %v1780_v12, %s15283_s16  ;;  %v3325_v10 = vpop.permute.xlu1 %3324  ;;  %5589 = vst.msk [vmem:[#allocation4 + $0x308] sm:$0xff] %vm1380_vm2, %v5557_v63 }
 0x310   : > { %v1352_v31 = vmax.f32 %v1149_v32, %v1161_v35  ;;  %3409 = vst.msk [vmem:[#allocation4 + $0x278] sm:$0xff] %vm2115_vm5, %v3325_v10  ;;  %9134 = vmatmul.msk.f32.gmra.mxu0 %vm526_vm1, %v476_v0  ;;  %v4154_v36 = vpop.permute.xlu2 %4153  ;;  %v477_v32 = vld [vmem:[%s9639_s13 + $0x2e8] sm:$0xff] }
 0x311   : > { %v2689_v42 = vpop.permute.xlu0 %2688  ;;  %v5706_v20 = vld [vmem:[#allocation4 + $0x310] sm:$0xff]  ;;  %4240 = vst.msk [vmem:[#allocation4 + $0x210] sm:$0xff] %vm2308_vm6, %v4154_v36  ;;  %v5713_v35 = vld [vmem:[#allocation4 + $0x348] sm:$0xff] }
 0x312   : > { %2771 = vst.msk [vmem:[#allocation4 + $0x2e0] sm:$0xff] %vm2115_vm5, %v2689_v42  ;;  %6090 = vmatmul.f32.gmra.mxu1 %v5706_v20  ;;  %v478_v42 = vld [vmem:[%s9639_s13 + $0x2f0] sm:$0xff] }
 0x313   : > { %1417 = vst.msk [vmem:[#allocation2 + $0x120] sm:$0xff] %vm1380_vm2, %v1352_v31 }
 0x314   : > { %2963 = vst.msk [vmem:[#allocation4 + $0x2e0] sm:$0xff] %vm2308_vm6, %v2881_v58  ;;  %v11552_v58 = vld [vmem:[%s15251_s2] ss:$0 sm:$0xff] }
 0x315   : > { %3142 = vrot.lane.b32.xlu1 %v11313_v44, %s15272_s15  ;;  %v1163_v11 = vpop.f32.mrf.mxu0  ;;  %v1155_v10 = vadd.f32 %v11552_v58, %v11473_v56 }
 0x316   : > { %4159 = vrot.lane.b32.xlu2 %v11297_v21, %s15270_s22  ;;  %v1164_v48 = vadd.f32 %v11552_v58, %v1163_v11 }
 0x317   : > { %3522 = vrot.lane.b32.xlu0 %v1780_v12, %s15270_s22  ;;  %v3963_v36 = vpop.permute.xlu1 %3962 }
 0x318   : > { %v1353_v24 = vmax.f32 %v1152_v4, %v1164_v48  ;;  %9135 = vmatmul.msk.f32.gmra.mxu0 %vm526_vm1, %v477_v32  ;;  %v2499_v12 = vpop.permute.xlu2 %2498 }
 0x319   : > { %v3135_v0 = vpop.permute.xlu0 %3134  ;;  %2580 = vst.msk [vmem:[#allocation4 + $0x318] sm:$0xff] %vm1922_vm4, %v2499_v12 }
 0x31a   : > { %3218 = vst.msk [vmem:[#allocation4 + $0x2b0] sm:$0xff] %vm1922_vm4, %v3135_v0  ;;  %6093 = vmatmul.f32.gmra.mxu1 %v5713_v35  ;;  %v479_v35 = vld [vmem:[%s9639_s13 + $0x2f8] sm:$0xff] }
 0x31b   : > { %1418 = vst.msk [vmem:[#allocation2 + $0x128] sm:$0xff] %vm1380_vm2, %v1353_v24  ;;  %v5700_v21 = vld [vmem:[#allocation4 + $0x2e0] sm:$0xff]  ;;  %v1158_v24 = vadd.f32 %v11552_v58, %v11499_v52 }
 0x31c   : > { %6200 = vmatmul.f32.gmra.mxu2 %v5700_v21 }
 0x31d   : > { %3524 = vrot.lane.b32.xlu1 %v11465_v55, %s15270_s22  ;;  %v1166_v31 = vpop.f32.mrf.mxu0 }
 0x31e   : > { %2250 = vrot.lane.b32.xlu2 %v11348_v18, %s15270_s22  ;;  %v1167_v20 = vadd.f32 %v11552_v58, %v1166_v31 }
 0x31f   : > { %2057 = vrot.lane.b32.xlu0 %v11351_v62, %s15283_s16  ;;  %v3965_v4 = vpop.permute.xlu1 %3964 }
 0x320   : > { %v1354_v11 = vmax.f32 %v1155_v10, %v1167_v20  ;;  %9136 = vmatmul.msk.f32.gmra.mxu0 %vm526_vm1, %v478_v42  ;;  %v3327_v55 = vpop.permute.xlu2 %3326  ;;  %v480_v42 = vld [vmem:[%s9639_s13 + $0x300] sm:$0xff] }
 0x321   : > { %v3517_v32 = vpop.permute.xlu0 %3516  ;;  %3410 = vst.msk [vmem:[#allocation4 + $0x2b0] sm:$0xff] %vm2115_vm5, %v3327_v55 }
 0x322   : > { %v1481_v56 = vld [vmem:[#allocation2 + $0x120] ss:$2 sm:$0xff]  ;;  %v1545_v63 = vld [vmem:[#allocation2 + $0x121] ss:$2 sm:$0xff]  ;;  %3601 = vst.msk [vmem:[#allocation4 + $0x278] sm:$0xff] %vm2308_vm6, %v3517_v32 }
 0x323   : > { %v1590_v48 = vmax.f32 %v1481_v56, %v1545_v63  ;;  %1419 = vst.msk [vmem:[#allocation2 + $0x130] sm:$0xff] %vm1380_vm2, %v1354_v11 }
 0x325   : > { %1684 = vst.msk [vmem:[#allocation3 + $0x10a] sm:$0xff] %vm1380_vm2, %v1590_v48  ;;  %3970 = vrot.lane.b32.xlu1 %v11313_v44, %s15283_s16  ;;  %v1169_v0 = vpop.f32.mrf.mxu0 }
 0x326   : > { %2504 = vrot.lane.b32.xlu2 %v11305_v7, %s15272_s15  ;;  %v1170_v12 = vadd.f32 %v11552_v58, %v1169_v0 }
 0x327   : > { %2888 = vrot.lane.b32.xlu0 %v11351_v62, %s15270_s22  ;;  %v1859_v21 = vpop.permute.xlu1 %1858 }
 0x328   : > { %v1355_v10 = vmax.f32 %v1158_v24, %v1170_v12  ;;  %1939 = vst.msk [vmem:[#allocation4 + $0x380] sm:$0xff] %vm1922_vm4, %v1859_v21  ;;  %9137 = vmatmul.msk.f32.gmra.mxu0 %vm526_vm1, %v479_v35  ;;  %v4156_v44 = vpop.permute.xlu2 %4155 }
 0x329   : > { %v3771_v52 = vpop.permute.xlu0 %3770  ;;  %v5687_v31 = vld [vmem:[#allocation4 + $0x278] sm:$0xff] }
 0x32a   : > { %3856 = vst.msk [vmem:[#allocation4 + $0x248] sm:$0xff] %vm1922_vm4, %v3771_v52  ;;  %6307 = vmatmul.f32.gmra.mxu3 %v5687_v31 }
 0x32b   : > { %1420 = vst.msk [vmem:[#allocation2 + $0x138] sm:$0xff] %vm1380_vm2, %v1355_v10  ;;  %v482_v10 = vld [vmem:[%s9639_s13 + $0x310] sm:$0xff] }
 0x32c   : > { %4048 = vst.msk [vmem:[#allocation4 + $0x248] sm:$0xff] %vm2115_vm5, %v3963_v36  ;;  %v11617_v48 = vld [vmem:[#allocation3 + $0x108] sm:$0xff] }
 0x32d   : > { %4241 = vst.msk [vmem:[#allocation4 + $0x248] sm:$0xff] %vm2308_vm6, %v4156_v44  ;;  %3972 = vrot.lane.b32.xlu1 %v11354_v30, %s15283_s16  ;;  %v11593_v62 = vpop.f32.mrf.mxu0  ;;  %v11627_v35 = vld [vmem:[#allocation3 + $0x10a] sm:$0xff] }
 0x32e   : > { %3144 = vrot.lane.b32.xlu2 %v11354_v30, %s15272_s15  ;;  %v481_v30 = vld [vmem:[%s9639_s13 + $0x308] sm:$0xff]  ;;  %1752 = vst.msk [vmem:[#allocation4 + $0x4d0] sm:$0xff] %vm1380_vm2, %v11617_v48 }
 0x32f   : > { %3778 = vrot.lane.b32.xlu0 %v11301_v29, %s15272_s15  ;;  %v2691_v20 = vpop.permute.xlu1 %2690  ;;  %3672 = vst.msk [vmem:[#allocation4 + $0x408] sm:$0xff] %vm1380_vm2, %v11627_v35 }
 0x330   : > { %2772 = vst.msk [vmem:[#allocation4 + $0x318] sm:$0xff] %vm2115_vm5, %v2691_v20  ;;  %9138 = vmatmul.msk.f32.gmra.mxu0 %vm526_vm1, %v480_v42  ;;  %v1861_v56 = vpop.permute.xlu2 %1860  ;;  %v1782_v20 = vld [vmem:[#allocation3 + $0xf1] sm:$0xff] }
 0x331   : > { %v3773_v11 = vpop.permute.xlu0 %3772  ;;  %1940 = vst.msk [vmem:[#allocation4 + $0x3b8] sm:$0xff] %vm1922_vm4, %v1861_v56  ;;  %v4918_v56 = vld [vmem:[#allocation3 + $0x108] sm:$0xff] }
 0x332   : > { %v1483_v36 = vld [vmem:[#allocation2 + $0x130] ss:$2 sm:$0xff]  ;;  %v1547_v32 = vld [vmem:[#allocation2 + $0x131] ss:$2 sm:$0xff]  ;;  %3857 = vst.msk [vmem:[#allocation4 + $0x280] sm:$0xff] %vm1922_vm4, %v3773_v11 }
 0x333   : > { %v1591_v63 = vmax.f32 %v1483_v36, %v1547_v32  ;;  %4049 = vst.msk [vmem:[#allocation4 + $0x280] sm:$0xff] %vm2115_vm5, %v3965_v4  ;;  %v483_v32 = vld [vmem:[%s9639_s13 + $0x318] sm:$0xff] }
 0x334   : > { %4950 = vst.msk [vmem:[#allocation4 + $0x338] sm:$0xff] %vm1380_vm2, %v4918_v56 }
 0x335   : > { %1685 = vst.msk [vmem:[#allocation3 + $0x112] sm:$0xff] %vm1380_vm2, %v1591_v63  ;;  %2059 = vrot.lane.b32.xlu1 %v11489_v47, %s15283_s16  ;;  %v11608_v29 = vpop.f32.mrf.mxu0 }
 0x336   : > { %3332 = vrot.lane.b32.xlu2 %v11305_v7, %s15283_s16  ;;  %v1176_v45 = vadd.f32 %v11552_v58, %v11608_v29 }
 0x337   : > { %3780 = vrot.lane.b32.xlu0 %v11348_v18, %s15272_s15  ;;  %v3519_v55 = vpop.permute.xlu1 %3518 }
 0x338   : > { %3602 = vst.msk [vmem:[#allocation4 + $0x2b0] sm:$0xff] %vm2308_vm6, %v3519_v55  ;;  %9139 = vmatmul.msk.f32.gmra.mxu0 %vm526_vm1, %v481_v30  ;;  %v2245_v24 = vpop.permute.xlu2 %2244 }
 0x339   : > { %v2052_v4 = vpop.permute.xlu0 %2051 }
 0x33a   : > { %2132 = vst.msk [vmem:[#allocation4 + $0x380] sm:$0xff] %vm2115_vm5, %v2052_v4 }
 0x33b   : > { %2325 = vst.msk [vmem:[#allocation4 + $0x380] sm:$0xff] %vm2308_vm6, %v2245_v24 }
 0x33c   : > { %v11621_v0 = vld [vmem:[#allocation3 + $0x10c] sm:$0xff]  ;;  %v5559_v2 = vld [vmem:[#allocation3 + $0x114] sm:$0xff] }
 0x33d   : > { %v11623_v18 = vld [vmem:[#allocation3 + $0x110] sm:$0xff]  ;;  %2890 = vrot.lane.b32.xlu1 %v11489_v47, %s15270_s22  ;;  %v11635_v21 = vpop.f32.mrf.mxu0  ;;  %2395 = vst.msk [vmem:[#allocation4 + $0x4d8] sm:$0xff] %vm1380_vm2, %v11621_v0 }
 0x33e   : > { %v11629_v12 = vld [vmem:[#allocation3 + $0x10b] sm:$0xff]  ;;  %1753 = vst.msk [vmem:[#allocation4 + $0x508] sm:$0xff] %vm1380_vm2, %v11623_v18  ;;  %4161 = vrot.lane.b32.xlu2 %v11305_v7, %s15270_s22 }
 0x33f   : > { %3034 = vst.msk [vmem:[#allocation4 + $0x470] sm:$0xff] %vm1380_vm2, %v11629_v12  ;;  %2506 = vrot.lane.b32.xlu0 %v11457_v54, %s15272_s15  ;;  %v2054_v52 = vpop.permute.xlu1 %2053  ;;  %v5694_v31 = vld [vmem:[#allocation4 + $0x2b0] sm:$0xff] }
 0x340   : > { %2133 = vst.msk [vmem:[#allocation4 + $0x3b8] sm:$0xff] %vm2115_vm5, %v2054_v52  ;;  %6310 = vmatmul.f32.gmra.mxu3 %v5694_v31  ;;  %9140 = vmatmul.msk.f32.gmra.mxu0 %vm526_vm1, %v482_v10  ;;  %v2693_v44 = vpop.permute.xlu2 %2692  ;;  %v11651_v7 = vld [vmem:[#allocation3 + $0x109] sm:$0xff]  ;;  %v11653_v11 = vld [vmem:[#allocation3 + $0x111] sm:$0xff] }
 0x341   : > { %v2883_v47 = vpop.permute.xlu0 %2882  ;;  %4311 = vst.msk [vmem:[#allocation4 + $0x3a0] sm:$0xff] %vm1380_vm2, %v11651_v7  ;;  %v4919_v63 = vld [vmem:[#allocation3 + $0x110] sm:$0xff] }
 0x342   : > { %2964 = vst.msk [vmem:[#allocation4 + $0x318] sm:$0xff] %vm2308_vm6, %v2883_v47  ;;  %v5720_v42 = vld [vmem:[#allocation4 + $0x380] sm:$0xff]  ;;  %v5558_v30 = vld [vmem:[#allocation3 + $0x10c] sm:$0xff]  ;;  %v11677_v47 = vld [vmem:[#allocation3 + $0x114] sm:$0xff] }
 0x343   : > { %6096 = vmatmul.f32.gmra.mxu1 %v5720_v42  ;;  %4312 = vst.msk [vmem:[#allocation4 + $0x3d8] sm:$0xff] %vm1380_vm2, %v11653_v11  ;;  %v11670_v10 = vld [vmem:[#allocation3 + $0x113] sm:$0xff]  ;;  %v1173_v42 = vadd.f32 %v11552_v58, %v11593_v62 }
 0x344   : > { %4951 = vst.msk [vmem:[#allocation4 + $0x370] sm:$0xff] %vm1380_vm2, %v4919_v63  ;;  %v11674_v31 = vld [vmem:[#allocation3 + $0x112] sm:$0xff]  ;;  %v484_v63 = vld [vmem:[%s9639_s13 + $0x320] sm:$0xff] }
 0x345   : > { %2254 = vrot.lane.b32.xlu1 %v11511_v1, %s15270_s22  ;;  %v11659_v36 = vpop.f32.mrf.mxu0  ;;  %5590 = vst.msk [vmem:[#allocation4 + $0x340] sm:$0xff] %vm1380_vm2, %v5558_v30 }
 0x346   : > { %1866 = vrot.lane.b32.xlu2 %v1782_v20, %s15272_s15  ;;  %3035 = vst.msk [vmem:[#allocation4 + $0x4a8] sm:$0xff] %vm1380_vm2, %v11670_v10 }
 0x347   : > { %3334 = vrot.lane.b32.xlu0 %v11457_v54, %s15283_s16  ;;  %v2885_v55 = vpop.permute.xlu1 %2884  ;;  %3673 = vst.msk [vmem:[#allocation4 + $0x440] sm:$0xff] %vm1380_vm2, %v11674_v31 }
 0x348   : > { %9141 = vmatmul.msk.f32.gmra.mxu0 %vm526_vm1, %v483_v32  ;;  %v3139_v52 = vpop.permute.xlu2 %3138  ;;  %v11687_v32 = vld [vmem:[#allocation3 + $0xf9] sm:$0xff]  ;;  %2396 = vst.msk [vmem:[#allocation4 + $0x510] sm:$0xff] %vm1380_vm2, %v11677_v47 }
 0x349   : > { %v2247_v4 = vpop.permute.xlu0 %2246  ;;  %v5707_v24 = vld [vmem:[#allocation4 + $0x318] sm:$0xff]  ;;  %3220 = vst.msk [vmem:[#allocation4 + $0x320] sm:$0xff] %vm1922_vm4, %v3139_v52 }
 0x34a   : > { %2326 = vst.msk [vmem:[#allocation4 + $0x3b8] sm:$0xff] %vm2308_vm6, %v2247_v4  ;;  %6203 = vmatmul.f32.gmra.mxu2 %v5707_v24 }
 0x34b   : > { %5591 = vst.msk [vmem:[#allocation4 + $0x378] sm:$0xff] %vm1380_vm2, %v5559_v2 }
 0x34d   : > { %2508 = vrot.lane.b32.xlu1 %v11461_v17, %s15272_s15  ;;  %v1184_v56 = vpop.f32.mrf.mxu0 }
 0x34e   : > { %2698 = vrot.lane.b32.xlu2 %v1782_v20, %s15283_s16  ;;  %v1185_v62 = vadd.f32 %v11552_v58, %v1184_v56  ;;  %v3065_v56 = vld [vmem:[#allocation3 + $0xfc] sm:$0xff] }
 0x34f   : > { %1868 = vrot.lane.b32.xlu0 %v11687_v32, %s15272_s15  ;;  %v11696_v30 = vpop.permute.xlu1 %3966 }
 0x350   : > { %v1356_v4 = vmax.f32 %v1173_v42, %v1185_v62  ;;  %9142 = vmatmul.msk.f32.gmra.mxu0 %vm526_vm1, %v484_v63  ;;  %v3521_v3 = vpop.permute.xlu2 %3520  ;;  %v485_v62 = vld [vmem:[%s9639_s13 + $0x328] sm:$0xff] }
 0x351   : > { %v2501_v24 = vpop.permute.xlu0 %2500  ;;  %v5727_v52 = vld [vmem:[#allocation4 + $0x3b8] sm:$0xff] }
 0x352   : > { %2581 = vst.msk [vmem:[#allocation4 + $0x350] sm:$0xff] %vm1922_vm4, %v2501_v24  ;;  %6099 = vmatmul.f32.gmra.mxu1 %v5727_v52 }
 0x353   : > { %1421 = vst.msk [vmem:[#allocation2 + $0x140] sm:$0xff] %vm1380_vm2, %v1356_v4 }
 0x354   : > { %2773 = vst.msk [vmem:[#allocation4 + $0x350] sm:$0xff] %vm2115_vm5, %v2693_v44 }
 0x355   : > { %2965 = vst.msk [vmem:[#allocation4 + $0x350] sm:$0xff] %vm2308_vm6, %v2885_v55  ;;  %3148 = vrot.lane.b32.xlu1 %v3065_v56, %s15272_s15  ;;  %v1187_v42 = vpop.f32.mrf.mxu0 }
 0x356   : > { %3526 = vrot.lane.b32.xlu2 %v1782_v20, %s15270_s22  ;;  %v1188_v63 = vadd.f32 %v11552_v58, %v1187_v42  ;;  %v1179_v20 = vadd.f32 %v11552_v58, %v11635_v21 }
 0x357   : > { %2252 = vrot.lane.b32.xlu0 %v11463_v19, %s15270_s22  ;;  %v3969_v44 = vpop.permute.xlu1 %3968 }
 0x358   : > { %v1357_v29 = vmax.f32 %v1176_v45, %v1188_v63  ;;  %9143 = vmatmul.msk.f32.gmra.mxu0 %vm526_vm1, %v485_v62  ;;  %v4158_v55 = vpop.permute.xlu2 %4157  ;;  %v486_v45 = vld [vmem:[%s9639_s13 + $0x330] sm:$0xff] }
 0x359   : > { %v3141_v4 = vpop.permute.xlu0 %3140  ;;  %4242 = vst.msk [vmem:[#allocation4 + $0x280] sm:$0xff] %vm2308_vm6, %v4158_v55 }
 0x35a   : > { %3221 = vst.msk [vmem:[#allocation4 + $0x358] sm:$0xff] %vm1922_vm4, %v3141_v4 }
 0x35b   : > { %1422 = vst.msk [vmem:[#allocation2 + $0x148] sm:$0xff] %vm1380_vm2, %v1357_v29 }
 0x35c   : > { %v5714_v24 = vld [vmem:[#allocation4 + $0x350] sm:$0xff] }
 0x35d   : > { %6206 = vmatmul.f32.gmra.mxu2 %v5714_v24  ;;  %3336 = vrot.lane.b32.xlu1 %v11461_v17, %s15283_s16  ;;  %v1190_v2 = vpop.f32.mrf.mxu0 }
 0x35e   : > { %4163 = vrot.lane.b32.xlu2 %v11457_v54, %s15270_s22  ;;  %v1191_v52 = vadd.f32 %v11552_v58, %v1190_v2  ;;  %v1182_v54 = vadd.f32 %v11552_v58, %v11659_v36 }
 0x35f   : > { %2700 = vrot.lane.b32.xlu0 %v11687_v32, %s15283_s16  ;;  %v2503_v42 = vpop.permute.xlu1 %2502 }
 0x360   : > { %v1358_v62 = vmax.f32 %v1179_v20, %v1191_v52  ;;  %2582 = vst.msk [vmem:[#allocation4 + $0x388] sm:$0xff] %vm1922_vm4, %v2503_v42  ;;  %9144 = vmatmul.msk.f32.gmra.mxu0 %vm526_vm1, %v486_v45  ;;  %v2056_v4 = vpop.permute.xlu2 %2055  ;;  %v487_v20 = vld [vmem:[%s9639_s13 + $0x338] sm:$0xff] }
 0x361   : > { %v3329_v21 = vpop.permute.xlu0 %3328 }
 0x362   : > { %v1485_v63 = vld [vmem:[#allocation2 + $0x140] ss:$2 sm:$0xff]  ;;  %v1549_v29 = vld [vmem:[#allocation2 + $0x141] ss:$2 sm:$0xff]  ;;  %3411 = vst.msk [vmem:[#allocation4 + $0x2e8] sm:$0xff] %vm2115_vm5, %v3329_v21 }
 0x363   : > { %v1592_v55 = vmax.f32 %v1485_v63, %v1549_v29  ;;  %1423 = vst.msk [vmem:[#allocation2 + $0x150] sm:$0xff] %vm1380_vm2, %v1358_v62  ;;  %v488_v62 = vld [vmem:[%s9639_s13 + $0x340] sm:$0xff] }
 0x364   : > { %3603 = vst.msk [vmem:[#allocation4 + $0x2e8] sm:$0xff] %vm2308_vm6, %v3521_v3 }
 0x365   : > { %1686 = vst.msk [vmem:[#allocation3 + $0x122] sm:$0xff] %vm1380_vm2, %v1592_v55  ;;  %3974 = vrot.lane.b32.xlu1 %v11467_v15, %s15283_s16  ;;  %v1193_v24 = vpop.f32.mrf.mxu0 }
 0x366   : > { %2061 = vrot.lane.b32.xlu2 %v11513_v6, %s15283_s16  ;;  %v1194_v2 = vadd.f32 %v11552_v58, %v1193_v24 }
 0x367   : > { %3146 = vrot.lane.b32.xlu0 %v11467_v15, %s15272_s15  ;;  %v3331_v3 = vpop.permute.xlu1 %3330 }
 0x368   : > { %v1359_v45 = vmax.f32 %v1182_v54, %v1194_v2  ;;  %3412 = vst.msk [vmem:[#allocation4 + $0x320] sm:$0xff] %vm2115_vm5, %v3331_v3  ;;  %9145 = vmatmul.msk.f32.gmra.mxu0 %vm526_vm1, %v487_v20  ;;  %v2887_v52 = vpop.permute.xlu2 %2886  ;;  %v489_v54 = vld [vmem:[%s9639_s13 + $0x348] sm:$0xff] }
 0x369   : > { %v3775_v36 = vpop.permute.xlu0 %3774 }
 0x36a   : > { %3858 = vst.msk [vmem:[#allocation4 + $0x2b8] sm:$0xff] %vm1922_vm4, %v3775_v36  ;;  %v490_v36 = vld [vmem:[%s9639_s13 + $0x350] sm:$0xff] }
 0x36b   : > { %1424 = vst.msk [vmem:[#allocation2 + $0x158] sm:$0xff] %vm1380_vm2, %v1359_v45  ;;  %v5701_v42 = vld [vmem:[#allocation4 + $0x2e8] sm:$0xff] }
 0x36c   : > { %4050 = vst.msk [vmem:[#allocation4 + $0x2b8] sm:$0xff] %vm2115_vm5, %v11696_v30  ;;  %6313 = vmatmul.f32.gmra.mxu3 %v5701_v42  ;;  %v11774_v2 = vld [vmem:[#allocation3 + $0x120] sm:$0xff] }
 0x36d   : > { %3976 = vrot.lane.b32.xlu1 %v3065_v56, %s15283_s16  ;;  %v11749_v15 = vpop.f32.mrf.mxu0  ;;  %1754 = vst.msk [vmem:[#allocation4 + $0x540] sm:$0xff] %vm1380_vm2, %v11774_v2 }
 0x36e   : > { %2892 = vrot.lane.b32.xlu2 %v11513_v6, %s15270_s22  ;;  %v1784_v6 = vld [vmem:[#allocation3 + $0x109] sm:$0xff] }
 0x36f   : > { %3528 = vrot.lane.b32.xlu0 %v11687_v32, %s15270_s22  ;;  %v1865_v21 = vpop.permute.xlu1 %1864 }
 0x370   : > { %1942 = vst.msk [vmem:[#allocation4 + $0x428] sm:$0xff] %vm1922_vm4, %v1865_v21  ;;  %9146 = vmatmul.msk.f32.gmra.mxu0 %vm526_vm1, %v488_v62  ;;  %v4160_v56 = vpop.permute.xlu2 %4159 }
 0x371   : > { %v3777_v63 = vpop.permute.xlu0 %3776  ;;  %4243 = vst.msk [vmem:[#allocation4 + $0x2b8] sm:$0xff] %vm2308_vm6, %v4160_v56  ;;  %v4920_v56 = vld [vmem:[#allocation3 + $0x120] sm:$0xff] }
 0x372   : > { %v1487_v30 = vld [vmem:[#allocation2 + $0x150] ss:$2 sm:$0xff]  ;;  %v1551_v29 = vld [vmem:[#allocation2 + $0x151] ss:$2 sm:$0xff]  ;;  %3859 = vst.msk [vmem:[#allocation4 + $0x2f0] sm:$0xff] %vm1922_vm4, %v3777_v63  ;;  %v11808_v63 = vld [vmem:[#allocation3 + $0x121] sm:$0xff] }
 0x373   : > { %v1593_v55 = vmax.f32 %v1487_v30, %v1551_v29  ;;  %4051 = vst.msk [vmem:[#allocation4 + $0x2f0] sm:$0xff] %vm2115_vm5, %v3969_v44  ;;  %v491_v29 = vld [vmem:[%s9639_s13 + $0x358] sm:$0xff] }
 0x374   : > { %4313 = vst.msk [vmem:[#allocation4 + $0x410] sm:$0xff] %vm1380_vm2, %v11808_v63 }
 0x375   : > { %1687 = vst.msk [vmem:[#allocation3 + $0x12a] sm:$0xff] %vm1380_vm2, %v1593_v55  ;;  %1870 = vrot.lane.b32.xlu1 %v1784_v6, %s15272_s15  ;;  %v11763_v32 = vpop.f32.mrf.mxu0 }
 0x376   : > { %4165 = vrot.lane.b32.xlu2 %v11461_v17, %s15270_s22  ;;  %4952 = vst.msk [vmem:[#allocation4 + $0x3a8] sm:$0xff] %vm1380_vm2, %v4920_v56  ;;  %v492_v56 = vld [vmem:[%s9639_s13 + $0x360] sm:$0xff] }
 0x377   : > { %3782 = vrot.lane.b32.xlu0 %v11463_v19, %s15272_s15  ;;  %v2249_v24 = vpop.permute.xlu1 %2248  ;;  %v11780_v19 = vld [vmem:[#allocation3 + $0x122] sm:$0xff] }
 0x378   : > { %9147 = vmatmul.msk.f32.gmra.mxu0 %vm526_vm1, %v489_v54  ;;  %v11772_v44 = vpop.permute.xlu2 %2250  ;;  %3674 = vst.msk [vmem:[#allocation4 + $0x478] sm:$0xff] %vm1380_vm2, %v11780_v19 }
 0x379   : > { %v1863_v20 = vpop.permute.xlu0 %1862 }
 0x37a   : > { %1941 = vst.msk [vmem:[#allocation4 + $0x3f0] sm:$0xff] %vm1922_vm4, %v1863_v20 }
 0x37b   : > { %2134 = vst.msk [vmem:[#allocation4 + $0x3f0] sm:$0xff] %vm2115_vm5, %v2056_v4 }
 0x37c   : > { %2327 = vst.msk [vmem:[#allocation4 + $0x3f0] sm:$0xff] %vm2308_vm6, %v2249_v24  ;;  %v11778_v3 = vld [vmem:[#allocation3 + $0x123] sm:$0xff]  ;;  %v11825_v54 = vld [vmem:[#allocation3 + $0x12b] sm:$0xff] }
 0x37d   : > { %v11782_v45 = vld [vmem:[#allocation3 + $0x128] sm:$0xff]  ;;  %2702 = vrot.lane.b32.xlu1 %v1784_v6, %s15283_s16  ;;  %v11787_v17 = vpop.f32.mrf.mxu0  ;;  %3036 = vst.msk [vmem:[#allocation4 + $0x4e0] sm:$0xff] %vm1380_vm2, %v11778_v3 }
 0x37e   : > { %v11790_v42 = vld [vmem:[#allocation3 + $0x124] sm:$0xff]  ;;  %1755 = vst.msk [vmem:[#allocation4 + $0x578] sm:$0xff] %vm1380_vm2, %v11782_v45  ;;  %2510 = vrot.lane.b32.xlu2 %v11617_v48, %s15272_s15 }
 0x37f   : > { %3784 = vrot.lane.b32.xlu0 %v11511_v1, %s15272_s15  ;;  %v2697_v4 = vpop.permute.xlu1 %2696  ;;  %2397 = vst.msk [vmem:[#allocation4 + $0x548] sm:$0xff] %vm1380_vm2, %v11790_v42  ;;  %v4921_v55 = vld [vmem:[#allocation3 + $0x128] sm:$0xff] }
 0x380   : > { %9148 = vmatmul.msk.f32.gmra.mxu0 %vm526_vm1, %v490_v36  ;;  %v2505_v1 = vpop.permute.xlu2 %2504  ;;  %4953 = vst.msk [vmem:[#allocation4 + $0x3e0] sm:$0xff] %vm1380_vm2, %v4921_v55  ;;  %v11828_v36 = vld [vmem:[#allocation3 + $0x12a] sm:$0xff] }
 0x381   : > { %v2695_v62 = vpop.permute.xlu0 %2694  ;;  %2583 = vst.msk [vmem:[#allocation4 + $0x3c0] sm:$0xff] %vm1922_vm4, %v2505_v1  ;;  %v1197_v1 = vadd.f32 %v11552_v58, %v11749_v15 }
 0x382   : > { %2774 = vst.msk [vmem:[#allocation4 + $0x388] sm:$0xff] %vm2115_vm5, %v2695_v62  ;;  %v11835_v62 = vld [vmem:[#allocation3 + $0x129] sm:$0xff] }
 0x383   : > { %2966 = vst.msk [vmem:[#allocation4 + $0x388] sm:$0xff] %vm2308_vm6, %v2887_v52  ;;  %v5734_v21 = vld [vmem:[#allocation4 + $0x3f0] sm:$0xff] }
 0x384   : > { %6102 = vmatmul.f32.gmra.mxu1 %v5734_v21  ;;  %2775 = vst.msk [vmem:[#allocation4 + $0x3c0] sm:$0xff] %vm2115_vm5, %v2697_v4  ;;  %v11831_v4 = vld [vmem:[#allocation3 + $0x12c] sm:$0xff]  ;;  %v5560_v21 = vld [vmem:[#allocation3 + $0x124] sm:$0xff] }
 0x385   : > { %3530 = vrot.lane.b32.xlu1 %v1784_v6, %s15270_s22  ;;  %v11812_v30 = vpop.f32.mrf.mxu0  ;;  %3037 = vst.msk [vmem:[#allocation4 + $0x518] sm:$0xff] %vm1380_vm2, %v11825_v54 }
 0x386   : > { %3338 = vrot.lane.b32.xlu2 %v11617_v48, %s15283_s16  ;;  %3675 = vst.msk [vmem:[#allocation4 + $0x4b0] sm:$0xff] %vm1380_vm2, %v11828_v36 }
 0x387   : > { %2063 = vrot.lane.b32.xlu0 %v11627_v35, %s15283_s16  ;;  %v3143_v52 = vpop.permute.xlu1 %3142  ;;  %2398 = vst.msk [vmem:[#allocation4 + $0x580] sm:$0xff] %vm1380_vm2, %v11831_v4 }
 0x388   : > { %3222 = vst.msk [vmem:[#allocation4 + $0x390] sm:$0xff] %vm1922_vm4, %v3143_v52  ;;  %9149 = vmatmul.msk.f32.gmra.mxu0 %vm526_vm1, %v491_v29  ;;  %v3145_v24 = vpop.permute.xlu2 %3144 }
 0x389   : > { %v3523_v6 = vpop.permute.xlu0 %3522  ;;  %3223 = vst.msk [vmem:[#allocation4 + $0x3c8] sm:$0xff] %vm1922_vm4, %v3145_v24 }
 0x38a   : > { %3604 = vst.msk [vmem:[#allocation4 + $0x320] sm:$0xff] %vm2308_vm6, %v3523_v6  ;;  %v5721_v20 = vld [vmem:[#allocation4 + $0x388] sm:$0xff] }
 0x38b   : > { %6209 = vmatmul.f32.gmra.mxu2 %v5721_v20  ;;  %4314 = vst.msk [vmem:[#allocation4 + $0x448] sm:$0xff] %vm1380_vm2, %v11835_v62  ;;  %v11865_v20 = vld [vmem:[#allocation3 + $0x111] sm:$0xff] }
 0x38c   : > { %5592 = vst.msk [vmem:[#allocation4 + $0x3b0] sm:$0xff] %vm1380_vm2, %v5560_v21  ;;  %v493_v21 = vld [vmem:[%s9639_s13 + $0x368] sm:$0xff] }
 0x38d   : > { %2065 = vrot.lane.b32.xlu1 %v11674_v31, %s15283_s16  ;;  %v1208_v29 = vpop.f32.mrf.mxu0 }
 0x38e   : > { %4167 = vrot.lane.b32.xlu2 %v11617_v48, %s15270_s22  ;;  %v1209_v15 = vadd.f32 %v11552_v58, %v1208_v29  ;;  %v1200_v48 = vadd.f32 %v11552_v58, %v11763_v32  ;;  %v5561_v29 = vld [vmem:[#allocation3 + $0x12c] sm:$0xff] }
 0x38f   : > { %2894 = vrot.lane.b32.xlu0 %v11627_v35, %s15270_s22  ;;  %v3525_v55 = vpop.permute.xlu1 %3524  ;;  %5593 = vst.msk [vmem:[#allocation4 + $0x3e8] sm:$0xff] %vm1380_vm2, %v5561_v29 }
 0x390   : > { %v1360_v52 = vmax.f32 %v1197_v1, %v1209_v15  ;;  %9150 = vmatmul.msk.f32.gmra.mxu0 %vm526_vm1, %v492_v56  ;;  %v3333_v35 = vpop.permute.xlu2 %3332 }
 0x391   : > { %v2058_v6 = vpop.permute.xlu0 %2057  ;;  %v5708_v24 = vld [vmem:[#allocation4 + $0x320] sm:$0xff]  ;;  %3413 = vst.msk [vmem:[#allocation4 + $0x358] sm:$0xff] %vm2115_vm5, %v3333_v35  ;;  %v494_v35 = vld [vmem:[%s9639_s13 + $0x370] sm:$0xff] }
 0x392   : > { %2135 = vst.msk [vmem:[#allocation4 + $0x428] sm:$0xff] %vm2115_vm5, %v2058_v6  ;;  %6316 = vmatmul.f32.gmra.mxu3 %v5708_v24 }
 0x393   : > { %1425 = vst.msk [vmem:[#allocation2 + $0x160] sm:$0xff] %vm1380_vm2, %v1360_v52  ;;  %v1203_v52 = vadd.f32 %v11552_v58, %v11787_v17 }
 0x394   : > { %2328 = vst.msk [vmem:[#allocation4 + $0x428] sm:$0xff] %vm2308_vm6, %v11772_v44 }
 0x395   : > { %3605 = vst.msk [vmem:[#allocation4 + $0x358] sm:$0xff] %vm2308_vm6, %v3525_v55  ;;  %2896 = vrot.lane.b32.xlu1 %v11674_v31, %s15270_s22  ;;  %v1211_v1 = vpop.f32.mrf.mxu0 }
 0x396   : > { %1872 = vrot.lane.b32.xlu2 %v11865_v20, %s15272_s15  ;;  %v1212_v44 = vadd.f32 %v11552_v58, %v1211_v1 }
 0x397   : > { %2258 = vrot.lane.b32.xlu0 %v11670_v10, %s15270_s22  ;;  %v3971_v32 = vpop.permute.xlu1 %3970 }
 0x398   : > { %v1361_v56 = vmax.f32 %v1200_v48, %v1212_v44  ;;  %9151 = vmatmul.msk.f32.gmra.mxu0 %vm526_vm1, %v493_v21  ;;  %v4162_v31 = vpop.permute.xlu2 %4161 }
 0x399   : > { %v2889_v15 = vpop.permute.xlu0 %2888  ;;  %4244 = vst.msk [vmem:[#allocation4 + $0x2f0] sm:$0xff] %vm2308_vm6, %v4162_v31 }
 0x39a   : > { %2967 = vst.msk [vmem:[#allocation4 + $0x3c0] sm:$0xff] %vm2308_vm6, %v2889_v15 }
 0x39b   : > { %1426 = vst.msk [vmem:[#allocation2 + $0x168] sm:$0xff] %vm1380_vm2, %v1361_v56  ;;  %v5741_v55 = vld [vmem:[#allocation4 + $0x428] sm:$0xff] }
 0x39c   : > { %6105 = vmatmul.f32.gmra.mxu1 %v5741_v55  ;;  %v5715_v6 = vld [vmem:[#allocation4 + $0x358] sm:$0xff]  ;;  %v1206_v55 = vadd.f32 %v11552_v58, %v11812_v30 }
 0x39d   : > { %6319 = vmatmul.f32.gmra.mxu3 %v5715_v6  ;;  %3978 = vrot.lane.b32.xlu1 %v11621_v0, %s15283_s16  ;;  %v1214_v24 = vpop.f32.mrf.mxu0 }
 0x39e   : > { %2256 = vrot.lane.b32.xlu2 %v11629_v12, %s15270_s22  ;;  %v1215_v48 = vadd.f32 %v11552_v58, %v1214_v24 }
 0x39f   : > { %2512 = vrot.lane.b32.xlu0 %v11623_v18, %s15272_s15  ;;  %v3973_v1 = vpop.permute.xlu1 %3972 }
 0x3a0   : > { %v1362_v21 = vmax.f32 %v1203_v52, %v1215_v48  ;;  %9152 = vmatmul.msk.f32.gmra.mxu0 %vm526_vm1, %v494_v35  ;;  %v1867_v15 = vpop.permute.xlu2 %1866 }
 0x3a1   : > { %v3779_v44 = vpop.permute.xlu0 %3778  ;;  %v5728_v29 = vld [vmem:[#allocation4 + $0x3c0] sm:$0xff]  ;;  %1943 = vst.msk [vmem:[#allocation4 + $0x460] sm:$0xff] %vm1922_vm4, %v1867_v15 }
 0x3a2   : > { %v1489_v17 = vld [vmem:[#allocation2 + $0x160] ss:$2 sm:$0xff]  ;;  %v1553_v56 = vld [vmem:[#allocation2 + $0x161] ss:$2 sm:$0xff]  ;;  %3860 = vst.msk [vmem:[#allocation4 + $0x328] sm:$0xff] %vm1922_vm4, %v3779_v44  ;;  %6212 = vmatmul.f32.gmra.mxu2 %v5728_v29 }
 0x3a3   : > { %v1594_v31 = vmax.f32 %v1489_v17, %v1553_v56  ;;  %1427 = vst.msk [vmem:[#allocation2 + $0x170] sm:$0xff] %vm1380_vm2, %v1362_v21 }
 0x3a4   : > { %4052 = vst.msk [vmem:[#allocation4 + $0x328] sm:$0xff] %vm2115_vm5, %v3971_v32 }
 0x3a5   : > { %1688 = vst.msk [vmem:[#allocation3 + $0x13a] sm:$0xff] %vm1380_vm2, %v1594_v31  ;;  %3980 = vrot.lane.b32.xlu1 %v11677_v47, %s15283_s16  ;;  %v1217_v52 = vpop.f32.mrf.mxu0 }
 0x3a6   : > { %2704 = vrot.lane.b32.xlu2 %v11865_v20, %s15283_s16  ;;  %v1218_v6 = vadd.f32 %v11552_v58, %v1217_v52 }
 0x3a7   : > { %3152 = vrot.lane.b32.xlu0 %v11677_v47, %s15272_s15  ;;  %v2060_v32 = vpop.permute.xlu1 %2059 }
 0x3a8   : > { %v1363_v24 = vmax.f32 %v1206_v55, %v1218_v6  ;;  %2136 = vst.msk [vmem:[#allocation4 + $0x460] sm:$0xff] %vm2115_vm5, %v2060_v32  ;;  %v2699_v35 = vpop.permute.xlu2 %2698 }
 0x3a9   : > { %v3781_v30 = vpop.permute.xlu0 %3780 }
 0x3aa   : > { %3861 = vst.msk [vmem:[#allocation4 + $0x360] sm:$0xff] %vm1922_vm4, %v3781_v30 }
 0x3ab   : > { %1428 = vst.msk [vmem:[#allocation2 + $0x178] sm:$0xff] %vm1380_vm2, %v1363_v24 }
 0x3ac   : > { %4053 = vst.msk [vmem:[#allocation4 + $0x360] sm:$0xff] %vm2115_vm5, %v3973_v1  ;;  %v11928_v55 = vld [vmem:[#allocation3 + $0x138] sm:$0xff] }
 0x3ad   : > { %2514 = vrot.lane.b32.xlu1 %v11774_v2, %s15272_s15  ;;  %v11909_v47 = vpop.f32.mrf.mxu0  ;;  %1756 = vst.msk [vmem:[#allocation4 + $0x5b0] sm:$0xff] %vm1380_vm2, %v11928_v55 }
 0x3ae   : > { %3150 = vrot.lane.b32.xlu2 %v11621_v0, %s15272_s15 }
 0x3af   : > { %3340 = vrot.lane.b32.xlu0 %v11623_v18, %s15283_s16  ;;  %v2891_v48 = vpop.permute.xlu1 %2890 }
 0x3b0   : > { %v3527_v17 = vpop.permute.xlu2 %3526 }
 0x3b1   : > { %v2507_v21 = vpop.permute.xlu0 %2506 }
 0x3b2   : > { %v1491_v44 = vld [vmem:[#allocation2 + $0x170] ss:$2 sm:$0xff]  ;;  %v1555_v29 = vld [vmem:[#allocation2 + $0x171] ss:$2 sm:$0xff]  ;;  %2584 = vst.msk [vmem:[#allocation4 + $0x3f8] sm:$0xff] %vm1922_vm4, %v2507_v21 }
 0x3b3   : > { %v1595_v56 = vmax.f32 %v1491_v44, %v1555_v29  ;;  %2776 = vst.msk [vmem:[#allocation4 + $0x3f8] sm:$0xff] %vm2115_vm5, %v2699_v35  ;;  %v11958_v44 = vld [vmem:[#allocation3 + $0x13a] sm:$0xff] }
 0x3b4   : > { %2968 = vst.msk [vmem:[#allocation4 + $0x3f8] sm:$0xff] %vm2308_vm6, %v2891_v48  ;;  %v1786_v29 = vld [vmem:[#allocation3 + $0x121] sm:$0xff] }
 0x3b5   : > { %1689 = vst.msk [vmem:[#allocation3 + $0x142] sm:$0xff] %vm1380_vm2, %v1595_v56  ;;  %3342 = vrot.lane.b32.xlu1 %v11774_v2, %s15283_s16  ;;  %v11921_v1 = vpop.f32.mrf.mxu0 }
 0x3b6   : > { %3532 = vrot.lane.b32.xlu2 %v11865_v20, %s15270_s22  ;;  %3676 = vst.msk [vmem:[#allocation4 + $0x4e8] sm:$0xff] %vm1380_vm2, %v11958_v44 }
 0x3b7   : > { %3786 = vrot.lane.b32.xlu0 %v11629_v12, %s15272_s15  ;;  %v2255_v0 = vpop.permute.xlu1 %2254  ;;  %v11936_v12 = vld [vmem:[#allocation3 + $0x129] sm:$0xff] }
 0x3b8   : > { %v4164_v31 = vpop.permute.xlu2 %4163 }
 0x3b9   : > { %v3335_v15 = vpop.permute.xlu0 %3334  ;;  %4245 = vst.msk [vmem:[#allocation4 + $0x328] sm:$0xff] %vm2308_vm6, %v4164_v31 }
 0x3ba   : > { %3414 = vst.msk [vmem:[#allocation4 + $0x390] sm:$0xff] %vm2115_vm5, %v3335_v15 }
 0x3bb   : > { %3606 = vst.msk [vmem:[#allocation4 + $0x390] sm:$0xff] %vm2308_vm6, %v3527_v17  ;;  %v5735_v52 = vld [vmem:[#allocation4 + $0x3f8] sm:$0xff] }
 0x3bc   : > { %6215 = vmatmul.f32.gmra.mxu2 %v5735_v52  ;;  %v11932_v6 = vld [vmem:[#allocation3 + $0x140] sm:$0xff] }
 0x3bd   : > { %v11934_v32 = vld [vmem:[#allocation3 + $0x13b] sm:$0xff]  ;;  %1876 = vrot.lane.b32.xlu1 %v11936_v12, %s15272_s15  ;;  %v11944_v24 = vpop.f32.mrf.mxu0  ;;  %1757 = vst.msk [vmem:[#allocation4 + $0x5e8] sm:$0xff] %vm1380_vm2, %v11932_v6  ;;  %v11978_v31 = vld [vmem:[#allocation3 + $0x143] sm:$0xff] }
 0x3be   : > { %v11938_v20 = vld [vmem:[#allocation3 + $0x13c] sm:$0xff]  ;;  %4169 = vrot.lane.b32.xlu2 %v11623_v18, %s15270_s22  ;;  %3038 = vst.msk [vmem:[#allocation4 + $0x550] sm:$0xff] %vm1380_vm2, %v11934_v32 }
 0x3bf   : > { %3788 = vrot.lane.b32.xlu0 %v11670_v10, %s15272_s15  ;;  %v2509_v30 = vpop.permute.xlu1 %2508  ;;  %2399 = vst.msk [vmem:[#allocation4 + $0x5b8] sm:$0xff] %vm1380_vm2, %v11938_v20  ;;  %v11964_v18 = vld [vmem:[#allocation3 + $0x139] sm:$0xff]  ;;  %v11980_v52 = vld [vmem:[#allocation3 + $0x142] sm:$0xff] }
 0x3c0   : > { %2585 = vst.msk [vmem:[#allocation4 + $0x430] sm:$0xff] %vm1922_vm4, %v2509_v30  ;;  %v2062_v48 = vpop.permute.xlu2 %2061  ;;  %v4922_v10 = vld [vmem:[#allocation3 + $0x138] sm:$0xff]  ;;  %v4923_v56 = vld [vmem:[#allocation3 + $0x140] sm:$0xff] }
 0x3c1   : > { %v1869_v35 = vpop.permute.xlu0 %1868  ;;  %4954 = vst.msk [vmem:[#allocation4 + $0x418] sm:$0xff] %vm1380_vm2, %v4922_v10  ;;  %v1221_v10 = vadd.f32 %v11552_v58, %v11909_v47 }
 0x3c2   : > { %1944 = vst.msk [vmem:[#allocation4 + $0x498] sm:$0xff] %vm1922_vm4, %v1869_v35  ;;  %v5722_v21 = vld [vmem:[#allocation4 + $0x390] sm:$0xff]  ;;  %v11983_v35 = vld [vmem:[#allocation3 + $0x144] sm:$0xff] }
 0x3c3   : > { %2137 = vst.msk [vmem:[#allocation4 + $0x498] sm:$0xff] %vm2115_vm5, %v2062_v48  ;;  %6322 = vmatmul.f32.gmra.mxu3 %v5722_v21  ;;  %v11987_v48 = vld [vmem:[#allocation3 + $0x141] sm:$0xff] }
 0x3c4   : > { %2330 = vst.msk [vmem:[#allocation4 + $0x498] sm:$0xff] %vm2308_vm6, %v2255_v0  ;;  %v5562_v21 = vld [vmem:[#allocation3 + $0x13c] sm:$0xff] }
 0x3c5   : > { %2260 = vrot.lane.b32.xlu1 %v11778_v3, %s15270_s22  ;;  %v11968_v17 = vpop.f32.mrf.mxu0  ;;  %4955 = vst.msk [vmem:[#allocation4 + $0x450] sm:$0xff] %vm1380_vm2, %v4923_v56 }
 0x3c6   : > { %2067 = vrot.lane.b32.xlu2 %v11780_v19, %s15283_s16  ;;  %4315 = vst.msk [vmem:[#allocation4 + $0x480] sm:$0xff] %vm1380_vm2, %v11964_v18 }
 0x3c7   : > { %1874 = vrot.lane.b32.xlu0 %v1786_v29, %s15272_s15  ;;  %v3149_v0 = vpop.permute.xlu1 %3148  ;;  %3039 = vst.msk [vmem:[#allocation4 + $0x588] sm:$0xff] %vm1380_vm2, %v11978_v31 }
 0x3c8   : > { %3225 = vst.msk [vmem:[#allocation4 + $0x438] sm:$0xff] %vm1922_vm4, %v3149_v0  ;;  %v2893_v30 = vpop.permute.xlu2 %2892 }
 0x3c9   : > { %v2253_v15 = vpop.permute.xlu0 %2252  ;;  %3677 = vst.msk [vmem:[#allocation4 + $0x520] sm:$0xff] %vm1380_vm2, %v11980_v52 }
 0x3ca   : > { %2329 = vst.msk [vmem:[#allocation4 + $0x460] sm:$0xff] %vm2308_vm6, %v2253_v15 }
 0x3cb   : > { %2400 = vst.msk [vmem:[#allocation4 + $0x5f0] sm:$0xff] %vm1380_vm2, %v11983_v35 }
 0x3cc   : > { %4316 = vst.msk [vmem:[#allocation4 + $0x4b8] sm:$0xff] %vm1380_vm2, %v11987_v48 }
 0x3cd   : > { %2708 = vrot.lane.b32.xlu1 %v11936_v12, %s15283_s16  ;;  %v1232_v56 = vpop.f32.mrf.mxu0  ;;  %5594 = vst.msk [vmem:[#allocation4 + $0x420] sm:$0xff] %vm1380_vm2, %v5562_v21 }
 0x3ce   : > { %2898 = vrot.lane.b32.xlu2 %v11780_v19, %s15270_s22  ;;  %v1233_v0 = vadd.f32 %v11552_v58, %v1232_v56  ;;  %v1224_v19 = vadd.f32 %v11552_v58, %v11921_v1 }
 0x3cf   : > { %2706 = vrot.lane.b32.xlu0 %v1786_v29, %s15283_s16  ;;  %v3337_v47 = vpop.permute.xlu1 %3336 }
 0x3d0   : > { %v1364_v15 = vmax.f32 %v1221_v10, %v1233_v0  ;;  %3415 = vst.msk [vmem:[#allocation4 + $0x3c8] sm:$0xff] %vm2115_vm5, %v3337_v47  ;;  %v4166_v27 = vpop.permute.xlu2 %4165  ;;  %v5563_v10 = vld [vmem:[#allocation3 + $0x144] sm:$0xff]  ;;  %v5755_v0 = vld [vmem:[#allocation4 + $0x498] sm:$0xff] }
 0x3d1   : > { %v2701_v41 = vpop.permute.xlu0 %2700  ;;  %v5748_v61 = vld [vmem:[#allocation4 + $0x460] sm:$0xff]  ;;  %4246 = vst.msk [vmem:[#allocation4 + $0x360] sm:$0xff] %vm2308_vm6, %v4166_v27 }
 0x3d2   : > { %2777 = vst.msk [vmem:[#allocation4 + $0x430] sm:$0xff] %vm2115_vm5, %v2701_v41  ;;  %6108 = vmatmul.f32.gmra.mxu1 %v5748_v61 }
 0x3d3   : > { %1429 = vst.msk [vmem:[#allocation2 + $0x180] sm:$0xff] %vm1380_vm2, %v1364_v15 }
 0x3d4   : > { %2969 = vst.msk [vmem:[#allocation4 + $0x430] sm:$0xff] %vm2308_vm6, %v2893_v30 }
 0x3d5   : > { %3154 = vrot.lane.b32.xlu1 %v11790_v42, %s15272_s15  ;;  %v1235_v21 = vpop.f32.mrf.mxu0  ;;  %5595 = vst.msk [vmem:[#allocation4 + $0x458] sm:$0xff] %vm1380_vm2, %v5563_v10 }
 0x3d6   : > { %4171 = vrot.lane.b32.xlu2 %v11774_v2, %s15270_s22  ;;  %v1236_v41 = vadd.f32 %v11552_v58, %v1235_v21  ;;  %v1227_v2 = vadd.f32 %v11552_v58, %v11944_v24 }
 0x3d7   : > { %3534 = vrot.lane.b32.xlu0 %v1786_v29, %s15270_s22  ;;  %v3975_v61 = vpop.permute.xlu1 %3974 }
 0x3d8   : > { %v1365_v56 = vmax.f32 %v1224_v19, %v1236_v41  ;;  %v2511_v27 = vpop.permute.xlu2 %2510 }
 0x3d9   : > { %v3147_v30 = vpop.permute.xlu0 %3146  ;;  %2586 = vst.msk [vmem:[#allocation4 + $0x468] sm:$0xff] %vm1922_vm4, %v2511_v27 }
 0x3da   : > { %3224 = vst.msk [vmem:[#allocation4 + $0x400] sm:$0xff] %vm1922_vm4, %v3147_v30  ;;  %6111 = vmatmul.f32.gmra.mxu1 %v5755_v0 }
 0x3db   : > { %1430 = vst.msk [vmem:[#allocation2 + $0x188] sm:$0xff] %vm1380_vm2, %v1365_v56  ;;  %v5742_v1 = vld [vmem:[#allocation4 + $0x430] sm:$0xff] }
 0x3dc   : > { %6218 = vmatmul.f32.gmra.mxu2 %v5742_v1 }
 0x3dd   : > { %3536 = vrot.lane.b32.xlu1 %v11936_v12, %s15270_s22  ;;  %v1238_v29 = vpop.f32.mrf.mxu0  ;;  %v1230_v12 = vadd.f32 %v11552_v58, %v11968_v17 }
 0x3de   : > { %2262 = vrot.lane.b32.xlu2 %v11825_v54, %s15270_s22  ;;  %v1239_v47 = vadd.f32 %v11552_v58, %v1238_v29 }
 0x3df   : > { %2069 = vrot.lane.b32.xlu0 %v11828_v36, %s15283_s16  ;;  %v3977_v15 = vpop.permute.xlu1 %3976 }
 0x3e0   : > { %v1366_v19 = vmax.f32 %v1227_v2, %v1239_v47  ;;  %v3339_v24 = vpop.permute.xlu2 %3338 }
 0x3e1   : > { %v3529_v21 = vpop.permute.xlu0 %3528  ;;  %3416 = vst.msk [vmem:[#allocation4 + $0x400] sm:$0xff] %vm2115_vm5, %v3339_v24 }
 0x3e2   : > { %v1493_v41 = vld [vmem:[#allocation2 + $0x180] ss:$2 sm:$0xff]  ;;  %v1557_v10 = vld [vmem:[#allocation2 + $0x181] ss:$2 sm:$0xff]  ;;  %3607 = vst.msk [vmem:[#allocation4 + $0x3c8] sm:$0xff] %vm2308_vm6, %v3529_v21 }
 0x3e3   : > { %v1596_v56 = vmax.f32 %v1493_v41, %v1557_v10  ;;  %1431 = vst.msk [vmem:[#allocation2 + $0x190] sm:$0xff] %vm1380_vm2, %v1366_v19 }
 0x3e5   : > { %1690 = vst.msk [vmem:[#allocation3 + $0x152] sm:$0xff] %vm1380_vm2, %v1596_v56  ;;  %3982 = vrot.lane.b32.xlu1 %v11790_v42, %s15283_s16  ;;  %v1241_v30 = vpop.f32.mrf.mxu0 }
 0x3e6   : > { %2516 = vrot.lane.b32.xlu2 %v11782_v45, %s15272_s15  ;;  %v1242_v0 = vadd.f32 %v11552_v58, %v1241_v30 }
 0x3e7   : > { %2900 = vrot.lane.b32.xlu0 %v11828_v36, %s15270_s22  ;;  %v1871_v27 = vpop.permute.xlu1 %1870 }
 0x3e8   : > { %v1367_v1 = vmax.f32 %v1230_v12, %v1242_v0  ;;  %1945 = vst.msk [vmem:[#allocation4 + $0x4d0] sm:$0xff] %vm1922_vm4, %v1871_v27  ;;  %v4168_v29 = vpop.permute.xlu2 %4167 }
 0x3e9   : > { %v3783_v2 = vpop.permute.xlu0 %3782  ;;  %v5729_v17 = vld [vmem:[#allocation4 + $0x3c8] sm:$0xff] }
 0x3ea   : > { %3862 = vst.msk [vmem:[#allocation4 + $0x398] sm:$0xff] %vm1922_vm4, %v3783_v2  ;;  %6325 = vmatmul.f32.gmra.mxu3 %v5729_v17 }
 0x3eb   : > { %1432 = vst.msk [vmem:[#allocation2 + $0x198] sm:$0xff] %vm1380_vm2, %v1367_v1 }
 0x3ec   : > { %4054 = vst.msk [vmem:[#allocation4 + $0x398] sm:$0xff] %vm2115_vm5, %v3975_v61  ;;  %v12102_v17 = vld [vmem:[#allocation3 + $0x151] sm:$0xff] }
 0x3ed   : > { %4247 = vst.msk [vmem:[#allocation4 + $0x398] sm:$0xff] %vm2308_vm6, %v4168_v29  ;;  %3984 = vrot.lane.b32.xlu1 %v11831_v4, %s15283_s16  ;;  %v12050_v58 = vpop.f32.mrf.mxu0  ;;  %v4924_v29 = vld [vmem:[#allocation3 + $0x150] sm:$0xff] }
 0x3ee   : > { %3156 = vrot.lane.b32.xlu2 %v11831_v4, %s15272_s15  ;;  %4317 = vst.msk [vmem:[#allocation4 + $0x4f0] sm:$0xff] %vm1380_vm2, %v12102_v17 }
 0x3ef   : > { %3790 = vrot.lane.b32.xlu0 %v11778_v3, %s15272_s15  ;;  %v2703_v42 = vpop.permute.xlu1 %2702  ;;  %4956 = vst.msk [vmem:[#allocation4 + $0x488] sm:$0xff] %vm1380_vm2, %v4924_v29 }
 0x3f0   : > { %2778 = vst.msk [vmem:[#allocation4 + $0x468] sm:$0xff] %vm2115_vm5, %v2703_v42  ;;  %v1873_v61 = vpop.permute.xlu2 %1872  ;;  %v1788_v42 = vld [vmem:[#allocation3 + $0x139] sm:$0xff] }
 0x3f1   : > { %v3785_v36 = vpop.permute.xlu0 %3784  ;;  %1946 = vst.msk [vmem:[#allocation4 + $0x508] sm:$0xff] %vm1922_vm4, %v1873_v61 }
 0x3f2   : > { %v1495_v47 = vld [vmem:[#allocation2 + $0x190] ss:$2 sm:$0xff]  ;;  %v1559_v19 = vld [vmem:[#allocation2 + $0x191] ss:$2 sm:$0xff]  ;;  %3863 = vst.msk [vmem:[#allocation4 + $0x3d0] sm:$0xff] %vm1922_vm4, %v3785_v36 }
 0x3f3   : > { %v1597_v21 = vmax.f32 %v1495_v47, %v1559_v19  ;;  %4055 = vst.msk [vmem:[#allocation4 + $0x3d0] sm:$0xff] %vm2115_vm5, %v3977_v15  ;;  %v12070_v15 = vld [vmem:[#allocation3 + $0x150] sm:$0xff]  ;;  %v12114_v19 = vld [vmem:[%s15251_s2] ss:$0 sm:$0xff] }
 0x3f4   : > { %1758 = vst.msk [vmem:[#allocation4 + $0x620] sm:$0xff] %vm1380_vm2, %v12070_v15  ;;  %v1266_v61 = vadd.f32 %v12114_v19, %v9907_v59 }
 0x3f5   : > { %1691 = vst.msk [vmem:[#allocation3 + $0x15a] sm:$0xff] %vm1380_vm2, %v1597_v21  ;;  %2071 = vrot.lane.b32.xlu1 %v11958_v44, %s15283_s16  ;;  %v12063_v3 = vpop.f32.mrf.mxu0 }
 0x3f6   : > { %3344 = vrot.lane.b32.xlu2 %v11782_v45, %s15283_s16 }
 0x3f7   : > { %3792 = vrot.lane.b32.xlu0 %v11825_v54, %s15272_s15  ;;  %v3531_v4 = vpop.permute.xlu1 %3530  ;;  %v12080_v54 = vld [vmem:[#allocation3 + $0x152] sm:$0xff] }
 0x3f8   : > { %3608 = vst.msk [vmem:[#allocation4 + $0x400] sm:$0xff] %vm2308_vm6, %v3531_v4  ;;  %v2257_v10 = vpop.permute.xlu2 %2256 }
 0x3f9   : > { %v2064_v41 = vpop.permute.xlu0 %2063  ;;  %3678 = vst.msk [vmem:[#allocation4 + $0x558] sm:$0xff] %vm1380_vm2, %v12080_v54 }
 0x3fa   : > { %2138 = vst.msk [vmem:[#allocation4 + $0x4d0] sm:$0xff] %vm2115_vm5, %v2064_v41 }
 0x3fb   : > { %2331 = vst.msk [vmem:[#allocation4 + $0x4d0] sm:$0xff] %vm2308_vm6, %v2257_v10 }
 0x3fc   : > { %v12074_v24 = vld [vmem:[#allocation3 + $0x154] sm:$0xff]  ;;  %v12133_v29 = vld [vmem:[#allocation3 + $0x15c] sm:$0xff] }
 0x3fd   : > { %v12076_v56 = vld [vmem:[#allocation3 + $0x158] sm:$0xff]  ;;  %2902 = vrot.lane.b32.xlu1 %v11958_v44, %s15270_s22  ;;  %v12088_v30 = vpop.f32.mrf.mxu0  ;;  %2401 = vst.msk [vmem:[#allocation4 + $0x628] sm:$0xff] %vm1380_vm2, %v12074_v24 }
 0x3fe   : > { %v12082_v12 = vld [vmem:[#allocation3 + $0x153] sm:$0xff]  ;;  %1759 = vst.msk [vmem:[#allocation4 + $0x658] sm:$0xff] %vm1380_vm2, %v12076_v56  ;;  %4173 = vrot.lane.b32.xlu2 %v11782_v45, %s15270_s22 }
 0x3ff   : > { %3040 = vst.msk [vmem:[#allocation4 + $0x5c0] sm:$0xff] %vm1380_vm2, %v12082_v12  ;;  %2518 = vrot.lane.b32.xlu0 %v11928_v55, %s15272_s15  ;;  %v2066_v0 = vpop.permute.xlu1 %2065  ;;  %v5736_v27 = vld [vmem:[#allocation4 + $0x400] sm:$0xff]  ;;  %v4925_v47 = vld [vmem:[#allocation3 + $0x158] sm:$0xff] }
 0x400   : > { %2139 = vst.msk [vmem:[#allocation4 + $0x508] sm:$0xff] %vm2115_vm5, %v2066_v0  ;;  %6328 = vmatmul.f32.gmra.mxu3 %v5736_v27  ;;  %v2705_v1 = vpop.permute.xlu2 %2704  ;;  %v12104_v45 = vld [vmem:[#allocation3 + $0x159] sm:$0xff] }
 0x401   : > { %v2895_v44 = vpop.permute.xlu0 %2894  ;;  %4957 = vst.msk [vmem:[#allocation4 + $0x4c0] sm:$0xff] %vm1380_vm2, %v4925_v47  ;;  %v5564_v41 = vld [vmem:[#allocation3 + $0x154] sm:$0xff]  ;;  %v12141_v47 = vld [vmem:[#allocation3 + $0x141] sm:$0xff] }
 0x402   : > { %2970 = vst.msk [vmem:[#allocation4 + $0x468] sm:$0xff] %vm2308_vm6, %v2895_v44  ;;  %v5762_v2 = vld [vmem:[#allocation4 + $0x4d0] sm:$0xff]  ;;  %v12127_v44 = vld [vmem:[#allocation3 + $0x15b] sm:$0xff] }
 0x403   : > { %6114 = vmatmul.f32.gmra.mxu1 %v5762_v2  ;;  %4318 = vst.msk [vmem:[#allocation4 + $0x528] sm:$0xff] %vm1380_vm2, %v12104_v45  ;;  %v12130_v2 = vld [vmem:[#allocation3 + $0x15a] sm:$0xff] }
 0x404   : > { %5596 = vst.msk [vmem:[#allocation4 + $0x490] sm:$0xff] %vm1380_vm2, %v5564_v41 }
 0x405   : > { %2266 = vrot.lane.b32.xlu1 %v11978_v31, %s15270_s22  ;;  %v1253_v36 = vpop.f32.mrf.mxu0  ;;  %3041 = vst.msk [vmem:[#allocation4 + $0x5f8] sm:$0xff] %vm1380_vm2, %v12127_v44 }
 0x406   : > { %1878 = vrot.lane.b32.xlu2 %v1788_v42, %s15272_s15  ;;  %v1254_v21 = vadd.f32 %v12114_v19, %v1253_v36  ;;  %v1245_v36 = vadd.f32 %v12114_v19, %v12050_v58  ;;  %3679 = vst.msk [vmem:[#allocation4 + $0x590] sm:$0xff] %vm1380_vm2, %v12130_v2 }
 0x407   : > { %3346 = vrot.lane.b32.xlu0 %v11928_v55, %s15283_s16  ;;  %v2897_v4 = vpop.permute.xlu1 %2896  ;;  %2402 = vst.msk [vmem:[#allocation4 + $0x660] sm:$0xff] %vm1380_vm2, %v12133_v29 }
 0x408   : > { %v1371_v10 = vmax.f32 %v1254_v21, %v1266_v61  ;;  %v3151_v59 = vpop.permute.xlu2 %3150 }
 0x409   : > { %v2259_v0 = vpop.permute.xlu0 %2258  ;;  %v5749_v27 = vld [vmem:[#allocation4 + $0x468] sm:$0xff]  ;;  %3226 = vst.msk [vmem:[#allocation4 + $0x470] sm:$0xff] %vm1922_vm4, %v3151_v59  ;;  %v1248_v59 = vadd.f32 %v12114_v19, %v12063_v3 }
 0x40a   : > { %2332 = vst.msk [vmem:[#allocation4 + $0x508] sm:$0xff] %vm2308_vm6, %v2259_v0  ;;  %6221 = vmatmul.f32.gmra.mxu2 %v5749_v27 }
 0x40b   : > { %1436 = vst.msk [vmem:[#allocation2 + $0x1b8] sm:$0xff] %vm1380_vm2, %v1371_v10 }
 0x40d   : > { %2520 = vrot.lane.b32.xlu1 %v11932_v6, %s15272_s15  ;;  %v1256_v61 = vpop.f32.mrf.mxu0 }
 0x40e   : > { %2710 = vrot.lane.b32.xlu2 %v1788_v42, %s15283_s16  ;;  %v1257_v21 = vadd.f32 %v12114_v19, %v1256_v61 }
 0x40f   : > { %1880 = vrot.lane.b32.xlu0 %v12141_v47, %s15272_s15  ;;  %v3979_v58 = vpop.permute.xlu1 %3978 }
 0x410   : > { %v1368_v41 = vmax.f32 %v1245_v36, %v1257_v21  ;;  %v3533_v27 = vpop.permute.xlu2 %3532 }
 0x411   : > { %v2513_v10 = vpop.permute.xlu0 %2512  ;;  %v5769_v0 = vld [vmem:[#allocation4 + $0x508] sm:$0xff] }
 0x412   : > { %2587 = vst.msk [vmem:[#allocation4 + $0x4a0] sm:$0xff] %vm1922_vm4, %v2513_v10  ;;  %6117 = vmatmul.f32.gmra.mxu1 %v5769_v0  ;;  %v1251_v0 = vadd.f32 %v12114_v19, %v12088_v30 }
 0x413   : > { %1433 = vst.msk [vmem:[#allocation2 + $0x1a0] sm:$0xff] %vm1380_vm2, %v1368_v41  ;;  %v5565_v41 = vld [vmem:[#allocation3 + $0x15c] sm:$0xff] }
 0x414   : > { %2779 = vst.msk [vmem:[#allocation4 + $0x4a0] sm:$0xff] %vm2115_vm5, %v2705_v1 }
 0x415   : > { %2971 = vst.msk [vmem:[#allocation4 + $0x4a0] sm:$0xff] %vm2308_vm6, %v2897_v4  ;;  %3160 = vrot.lane.b32.xlu1 %v11983_v35, %s15272_s15  ;;  %v1259_v61 = vpop.f32.mrf.mxu0 }
 0x416   : > { %3538 = vrot.lane.b32.xlu2 %v1788_v42, %s15270_s22  ;;  %v1260_v36 = vadd.f32 %v12114_v19, %v1259_v61  ;;  %5597 = vst.msk [vmem:[#allocation4 + $0x4c8] sm:$0xff] %vm1380_vm2, %v5565_v41 }
 0x417   : > { %2264 = vrot.lane.b32.xlu0 %v11934_v32, %s15270_s22  ;;  %v3981_v21 = vpop.permute.xlu1 %3980 }
 0x418   : > { %v1369_v10 = vmax.f32 %v1248_v59, %v1260_v36  ;;  %v4170_v3 = vpop.permute.xlu2 %4169 }
 0x419   : > { %v3153_v1 = vpop.permute.xlu0 %3152  ;;  %4248 = vst.msk [vmem:[#allocation4 + $0x3d0] sm:$0xff] %vm2308_vm6, %v4170_v3 }
 0x41a   : > { %3227 = vst.msk [vmem:[#allocation4 + $0x4a8] sm:$0xff] %vm1922_vm4, %v3153_v1 }
 0x41b   : > { %1434 = vst.msk [vmem:[#allocation2 + $0x1a8] sm:$0xff] %vm1380_vm2, %v1369_v10 }
 0x41c   : > { %v5756_v4 = vld [vmem:[#allocation4 + $0x4a0] sm:$0xff] }
 0x41d   : > { %6224 = vmatmul.f32.gmra.mxu2 %v5756_v4  ;;  %3348 = vrot.lane.b32.xlu1 %v11932_v6, %s15283_s16  ;;  %v1262_v42 = vpop.f32.mrf.mxu0 }
 0x41e   : > { %4175 = vrot.lane.b32.xlu2 %v11928_v55, %s15270_s22  ;;  %v1263_v59 = vadd.f32 %v12114_v19, %v1262_v42  ;;  %v5895_v55 = vld [vmem:[%s15252_s3 + $0x1f8] sm:$0xff] }
 0x41f   : > { %2712 = vrot.lane.b32.xlu0 %v12141_v47, %s15283_s16  ;;  %v2515_v61 = vpop.permute.xlu1 %2514  ;;  %6371 = vmatpush.msra.mxu1 %v5895_v55 }
 0x420   : > { %v1370_v36 = vmax.f32 %v1251_v0, %v1263_v59  ;;  %2588 = vst.msk [vmem:[#allocation4 + $0x4d8] sm:$0xff] %vm1922_vm4, %v2515_v61  ;;  %v2068_v1 = vpop.permute.xlu2 %2067 }
 0x421   : > { %v3341_v41 = vpop.permute.xlu0 %3340 }
 0x422   : > { %v1497_v10 = vld [vmem:[#allocation2 + $0x1a0] ss:$2 sm:$0xff]  ;;  %v1561_v30 = vld [vmem:[#allocation2 + $0x1a1] ss:$2 sm:$0xff]  ;;  %3417 = vst.msk [vmem:[#allocation4 + $0x438] sm:$0xff] %vm2115_vm5, %v3341_v41 }
 0x423   : > { %v1598_v3 = vmax.f32 %v1497_v10, %v1561_v30  ;;  %1435 = vst.msk [vmem:[#allocation2 + $0x1b0] sm:$0xff] %vm1380_vm2, %v1370_v36 }
 0x424   : > { %3609 = vst.msk [vmem:[#allocation4 + $0x438] sm:$0xff] %vm2308_vm6, %v3533_v27 }
 0x425   : > { %1692 = vst.msk [vmem:[#allocation3 + $0x16a] sm:$0xff] %vm1380_vm2, %v1598_v3  ;;  %3986 = vrot.lane.b32.xlu1 %v11938_v20, %s15283_s16  ;;  %v12266_v3 = vpop.f32.mrf.mxu1 }
 0x426   : > { %2073 = vrot.lane.b32.xlu2 %v11980_v52, %s15283_s16 }
 0x427   : > { %3158 = vrot.lane.b32.xlu0 %v11938_v20, %s15272_s15  ;;  %v3343_v19 = vpop.permute.xlu1 %3342 }
 0x428   : > { %3418 = vst.msk [vmem:[#allocation4 + $0x470] sm:$0xff] %vm2115_vm5, %v3343_v19  ;;  %v2899_v42 = vpop.permute.xlu2 %2898 }
 0x429   : > { %v3787_v27 = vpop.permute.xlu0 %3786 }
 0x42a   : > { %v1499_v4 = vld [vmem:[#allocation2 + $0x1b0] ss:$2 sm:$0xff]  ;;  %v1563_v0 = vld [vmem:[#allocation2 + $0x1b1] ss:$2 sm:$0xff]  ;;  %3864 = vst.msk [vmem:[#allocation4 + $0x408] sm:$0xff] %vm1922_vm4, %v3787_v27 }
 0x42b   : > { %v1599_v59 = vmax.f32 %v1499_v4, %v1563_v0  ;;  %4056 = vst.msk [vmem:[#allocation4 + $0x408] sm:$0xff] %vm2115_vm5, %v3979_v58  ;;  %v5743_v20 = vld [vmem:[#allocation4 + $0x438] sm:$0xff] }
 0x42c   : > { %6331 = vmatmul.f32.gmra.mxu3 %v5743_v20  ;;  %v12283_v20 = vld [vmem:[#allocation3 + $0x169] sm:$0xff] }
 0x42d   : > { %1693 = vst.msk [vmem:[#allocation3 + $0x172] sm:$0xff] %vm1380_vm2, %v1599_v59  ;;  %3988 = vrot.lane.b32.xlu1 %v11983_v35, %s15283_s16  ;;  %v1790_v35 = vld [vmem:[#allocation3 + $0x151] sm:$0xff] }
 0x42e   : > { %2904 = vrot.lane.b32.xlu2 %v11980_v52, %s15270_s22  ;;  %v5894_v52 = vld [vmem:[%s15252_s3 + $0x1f0] sm:$0xff]  ;;  %4319 = vst.msk [vmem:[#allocation4 + $0x560] sm:$0xff] %vm1380_vm2, %v12283_v20 }
 0x42f   : > { %3540 = vrot.lane.b32.xlu0 %v12141_v47, %s15270_s22  ;;  %v1877_v61 = vpop.permute.xlu1 %1876  ;;  %6372 = vmatpush.msra.mxu1 %v5894_v52 }
 0x430   : > { %1948 = vst.msk [vmem:[#allocation4 + $0x578] sm:$0xff] %vm1922_vm4, %v1877_v61  ;;  %v4172_v58 = vpop.permute.xlu2 %4171 }
 0x431   : > { %v3789_v36 = vpop.permute.xlu0 %3788  ;;  %4249 = vst.msk [vmem:[#allocation4 + $0x408] sm:$0xff] %vm2308_vm6, %v4172_v58 }
 0x432   : > { %3865 = vst.msk [vmem:[#allocation4 + $0x440] sm:$0xff] %vm1922_vm4, %v3789_v36 }
 0x433   : > { %4057 = vst.msk [vmem:[#allocation4 + $0x440] sm:$0xff] %vm2115_vm5, %v3981_v21 }
 0x434   : > { %v12203_v41 = vld [vmem:[#allocation3 + $0x16c] sm:$0xff]  ;;  %v12205_v10 = vld [vmem:[#allocation3 + $0x174] sm:$0xff] }
 0x435   : > { %2403 = vst.msk [vmem:[#allocation4 + $0x698] sm:$0xff] %vm1380_vm2, %v12203_v41  ;;  %1882 = vrot.lane.b32.xlu1 %v1790_v35, %s15272_s15  ;;  %v12277_v27 = vld [vmem:[#allocation3 + $0x172] sm:$0xff] }
 0x436   : > { %2404 = vst.msk [vmem:[#allocation4 + $0x6d0] sm:$0xff] %vm1380_vm2, %v12205_v10  ;;  %4177 = vrot.lane.b32.xlu2 %v11932_v6, %s15270_s22  ;;  %v5893_v6 = vld [vmem:[%s15252_s3 + $0x1e8] sm:$0xff]  ;;  %v4927_v59 = vld [vmem:[#allocation3 + $0x170] sm:$0xff] }
 0x437   : > { %2596 = vst.msk [vmem:[#allocation4 + $0x698] sm:$0xff] %vm1922_vm4, %v10370_v9  ;;  %3794 = vrot.lane.b32.xlu0 %v11934_v32, %s15272_s15  ;;  %v2261_v47 = vpop.permute.xlu1 %2260  ;;  %v12235_v9 = vld [vmem:[#allocation3 + $0x170] sm:$0xff]  ;;  %6373 = vmatpush.msra.mxu1 %v5893_v6  ;;  %v12321_v6 = vpop.f32.mrf.mxu1 }
 0x438   : > { %2597 = vst.msk [vmem:[#allocation4 + $0x6d0] sm:$0xff] %vm1922_vm4, %v10401_v38  ;;  %v12228_v30 = vpop.permute.xlu2 %2262  ;;  %v12258_v32 = vld [vmem:[#allocation3 + $0x173] sm:$0xff] }
 0x439   : > { %2788 = vst.msk [vmem:[#allocation4 + $0x698] sm:$0xff] %vm2115_vm5, %v10303_v51  ;;  %v1875_v21 = vpop.permute.xlu0 %1874  ;;  %v12239_v51 = vld [vmem:[#allocation3 + $0x168] sm:$0xff]  ;;  %v12285_v61 = vld [vmem:[#allocation3 + $0x171] sm:$0xff] }
 0x43a   : > { %2789 = vst.msk [vmem:[#allocation4 + $0x6d0] sm:$0xff] %vm2115_vm5, %v10406_v33  ;;  %v12252_v33 = vld [vmem:[#allocation3 + $0x16b] sm:$0xff] }
 0x43b   : > { %2980 = vst.msk [vmem:[#allocation4 + $0x698] sm:$0xff] %vm2308_vm6, %v10380_v22  ;;  %v12290_v36 = vld [vmem:[#allocation3 + $0x16c] sm:$0xff] }
 0x43c   : > { %2981 = vst.msk [vmem:[#allocation4 + $0x6d0] sm:$0xff] %vm2308_vm6, %v10368_v8 }
 0x43d   : > { %1947 = vst.msk [vmem:[#allocation4 + $0x540] sm:$0xff] %vm1922_vm4, %v1875_v21  ;;  %2714 = vrot.lane.b32.xlu1 %v1790_v35, %s15283_s16  ;;  %v1791_v21 = vld [vmem:[#allocation3 + $0x159] sm:$0xff] }
 0x43e   : > { %2140 = vst.msk [vmem:[#allocation4 + $0x540] sm:$0xff] %vm2115_vm5, %v2068_v1  ;;  %2522 = vrot.lane.b32.xlu2 %v12070_v15, %s15272_s15 }
 0x43f   : > { %2333 = vst.msk [vmem:[#allocation4 + $0x540] sm:$0xff] %vm2308_vm6, %v2261_v47  ;;  %3796 = vrot.lane.b32.xlu0 %v11978_v31, %s15272_s15  ;;  %v2709_v22 = vpop.permute.xlu1 %2708  ;;  %v12261_v31 = vld [vmem:[#allocation3 + $0x16a] sm:$0xff] }
 0x440   : > { %1761 = vst.msk [vmem:[#allocation4 + $0x6c8] sm:$0xff] %vm1380_vm2, %v12235_v9  ;;  %v2517_v38 = vpop.permute.xlu2 %2516 }
 0x441   : > { %v2707_v8 = vpop.permute.xlu0 %2706  ;;  %1760 = vst.msk [vmem:[#allocation4 + $0x690] sm:$0xff] %vm1380_vm2, %v12239_v51 }
 0x442   : > { %2780 = vst.msk [vmem:[#allocation4 + $0x4d8] sm:$0xff] %vm2115_vm5, %v2707_v8 }
 0x443   : > { %2972 = vst.msk [vmem:[#allocation4 + $0x4d8] sm:$0xff] %vm2308_vm6, %v2899_v42  ;;  %v4926_v42 = vld [vmem:[#allocation3 + $0x168] sm:$0xff] }
 0x444   : > { %2589 = vst.msk [vmem:[#allocation4 + $0x510] sm:$0xff] %vm1922_vm4, %v2517_v38 }
 0x445   : > { %2781 = vst.msk [vmem:[#allocation4 + $0x510] sm:$0xff] %vm2115_vm5, %v2709_v22  ;;  %3542 = vrot.lane.b32.xlu1 %v1790_v35, %s15270_s22 }
 0x446   : > { %v5776_v1 = vld [vmem:[#allocation4 + $0x540] sm:$0xff]  ;;  %3042 = vst.msk [vmem:[#allocation4 + $0x630] sm:$0xff] %vm1380_vm2, %v12252_v33  ;;  %3350 = vrot.lane.b32.xlu2 %v12070_v15, %s15283_s16 }
 0x447   : > { %6120 = vmatmul.f32.gmra.mxu1 %v5776_v1  ;;  %2075 = vrot.lane.b32.xlu0 %v12080_v54, %s15283_s16  ;;  %3043 = vst.msk [vmem:[#allocation4 + $0x668] sm:$0xff] %vm1380_vm2, %v12258_v32  ;;  %v3155_v55 = vpop.permute.xlu1 %3154 }
 0x448   : > { %3680 = vst.msk [vmem:[#allocation4 + $0x5c8] sm:$0xff] %vm1380_vm2, %v12261_v31  ;;  %v3157_v4 = vpop.permute.xlu2 %3156 }
 0x449   : > { %3228 = vst.msk [vmem:[#allocation4 + $0x4e0] sm:$0xff] %vm1922_vm4, %v3155_v55  ;;  %v3535_v19 = vpop.permute.xlu0 %3534 }
 0x44a   : > { %3610 = vst.msk [vmem:[#allocation4 + $0x470] sm:$0xff] %vm2308_vm6, %v3535_v19  ;;  %v5763_v0 = vld [vmem:[#allocation4 + $0x4d8] sm:$0xff] }
 0x44b   : > { %3229 = vst.msk [vmem:[#allocation4 + $0x518] sm:$0xff] %vm1922_vm4, %v3157_v4  ;;  %6227 = vmatmul.f32.gmra.mxu2 %v5763_v0  ;;  %v5891_v0 = vld [vmem:[%s15252_s3 + $0x1d8] sm:$0xff] }
 0x44c   : > { %3681 = vst.msk [vmem:[#allocation4 + $0x600] sm:$0xff] %vm1380_vm2, %v12277_v27 }
 0x44d   : > { %4958 = vst.msk [vmem:[#allocation4 + $0x4f8] sm:$0xff] %vm1380_vm2, %v4926_v42  ;;  %2077 = vrot.lane.b32.xlu1 %v12130_v2, %s15283_s16 }
 0x44e   : > { %4959 = vst.msk [vmem:[#allocation4 + $0x530] sm:$0xff] %vm1380_vm2, %v4927_v59  ;;  %4179 = vrot.lane.b32.xlu2 %v12070_v15, %s15270_s22  ;;  %v5892_v15 = vld [vmem:[%s15252_s3 + $0x1e0] sm:$0xff] }
 0x44f   : > { %2906 = vrot.lane.b32.xlu0 %v12080_v54, %s15270_s22  ;;  %v3537_v58 = vpop.permute.xlu1 %3536  ;;  %4320 = vst.msk [vmem:[#allocation4 + $0x598] sm:$0xff] %vm1380_vm2, %v12285_v61  ;;  %v12306_v54 = vld [vmem:[#allocation3 + $0x174] sm:$0xff]  ;;  %6374 = vmatpush.msra.mxu1 %v5892_v15 }
 0x450   : > { %5598 = vst.msk [vmem:[#allocation4 + $0x500] sm:$0xff] %vm1380_vm2, %v12290_v36  ;;  %v3345_v47 = vpop.permute.xlu2 %3344 }
 0x451   : > { %v2070_v35 = vpop.permute.xlu0 %2069  ;;  %v5750_v52 = vld [vmem:[#allocation4 + $0x470] sm:$0xff]  ;;  %3419 = vst.msk [vmem:[#allocation4 + $0x4a8] sm:$0xff] %vm2115_vm5, %v3345_v47  ;;  %6375 = vmatpush.msra.mxu1 %v5891_v0  ;;  %v12387_v0 = vpop.f32.mrf.mxu1 }
 0x452   : > { %2141 = vst.msk [vmem:[#allocation4 + $0x578] sm:$0xff] %vm2115_vm5, %v2070_v35  ;;  %6334 = vmatmul.f32.gmra.mxu3 %v5750_v52  ;;  %v5890_v47 = vld [vmem:[%s15252_s3 + $0x1d0] sm:$0xff] }
 0x453   : > { %2334 = vst.msk [vmem:[#allocation4 + $0x578] sm:$0xff] %vm2308_vm6, %v12228_v30  ;;  %6376 = vmatpush.msra.mxu1 %v5890_v47 }
 0x454   : > { %3611 = vst.msk [vmem:[#allocation4 + $0x4a8] sm:$0xff] %vm2308_vm6, %v3537_v58 }
 0x455   : > { %2908 = vrot.lane.b32.xlu1 %v12130_v2, %s15270_s22  ;;  %5599 = vst.msk [vmem:[#allocation4 + $0x538] sm:$0xff] %vm1380_vm2, %v12306_v54 }
 0x456   : > { %1884 = vrot.lane.b32.xlu2 %v1791_v21, %s15272_s15 }
 0x457   : > { %2270 = vrot.lane.b32.xlu0 %v12127_v44, %s15270_s22  ;;  %v3983_v30 = vpop.permute.xlu1 %3982 }
 0x458   : > { %v4174_v8 = vpop.permute.xlu2 %4173 }
 0x459   : > { %v2901_v22 = vpop.permute.xlu0 %2900  ;;  %4250 = vst.msk [vmem:[#allocation4 + $0x440] sm:$0xff] %vm2308_vm6, %v4174_v8  ;;  %v12363_v8 = vpop.f32.mrf.mxu2 }
 0x45a   : > { %2973 = vst.msk [vmem:[#allocation4 + $0x510] sm:$0xff] %vm2308_vm6, %v2901_v22  ;;  %v5783_v38 = vld [vmem:[#allocation4 + $0x578] sm:$0xff] }
 0x45b   : > { %6123 = vmatmul.f32.gmra.mxu1 %v5783_v38  ;;  %v5757_v2 = vld [vmem:[#allocation4 + $0x4a8] sm:$0xff]  ;;  %v1793_v38 = vld [vmem:[#allocation3 + $0x171] sm:$0xff] }
 0x45c   : > { %6337 = vmatmul.f32.gmra.mxu3 %v5757_v2 }
 0x45d   : > { %3990 = vrot.lane.b32.xlu1 %v12074_v24, %s15283_s16 }
 0x45e   : > { %2268 = vrot.lane.b32.xlu2 %v12082_v12, %s15270_s22 }
 0x45f   : > { %2524 = vrot.lane.b32.xlu0 %v12076_v56, %s15272_s15  ;;  %v3985_v1 = vpop.permute.xlu1 %3984 }
 0x460   : > { %v1879_v4 = vpop.permute.xlu2 %1878 }
 0x461   : > { %v3791_v55 = vpop.permute.xlu0 %3790  ;;  %v5770_v19 = vld [vmem:[#allocation4 + $0x510] sm:$0xff]  ;;  %1949 = vst.msk [vmem:[#allocation4 + $0x5b0] sm:$0xff] %vm1922_vm4, %v1879_v4 }
 0x462   : > { %3866 = vst.msk [vmem:[#allocation4 + $0x478] sm:$0xff] %vm1922_vm4, %v3791_v55  ;;  %6230 = vmatmul.f32.gmra.mxu2 %v5770_v19  ;;  %v5889_v55 = vld [vmem:[%s15252_s3 + $0x1c8] sm:$0xff] }
 0x463   : > { %4058 = vst.msk [vmem:[#allocation4 + $0x478] sm:$0xff] %vm2115_vm5, %v3983_v30  ;;  %6377 = vmatpush.msra.mxu1 %v5889_v55 }
 0x465   : > { %3992 = vrot.lane.b32.xlu1 %v12133_v29, %s15283_s16 }
 0x466   : > { %2716 = vrot.lane.b32.xlu2 %v1791_v21, %s15283_s16 }
 0x467   : > { %3164 = vrot.lane.b32.xlu0 %v12133_v29, %s15272_s15  ;;  %v2072_v42 = vpop.permute.xlu1 %2071 }
 0x468   : > { %2142 = vst.msk [vmem:[#allocation4 + $0x5b0] sm:$0xff] %vm2115_vm5, %v2072_v42  ;;  %v2711_v58 = vpop.permute.xlu2 %2710 }
 0x469   : > { %v3793_v59 = vpop.permute.xlu0 %3792 }
 0x46a   : > { %3867 = vst.msk [vmem:[#allocation4 + $0x4b0] sm:$0xff] %vm1922_vm4, %v3793_v59 }
 0x46b   : > { %4059 = vst.msk [vmem:[#allocation4 + $0x4b0] sm:$0xff] %vm2115_vm5, %v3985_v1 }
 0x46d   : > { %2526 = vrot.lane.b32.xlu1 %v12239_v51, %s15272_s15 }
 0x46e   : > { %3162 = vrot.lane.b32.xlu2 %v12074_v24, %s15272_s15 }
 0x46f   : > { %3352 = vrot.lane.b32.xlu0 %v12076_v56, %s15283_s16  ;;  %v2903_v29 = vpop.permute.xlu1 %2902 }
 0x470   : > { %v3539_v52 = vpop.permute.xlu2 %3538 }
 0x471   : > { %v2519_v35 = vpop.permute.xlu0 %2518 }
 0x472   : > { %2590 = vst.msk [vmem:[#allocation4 + $0x548] sm:$0xff] %vm1922_vm4, %v2519_v35  ;;  %v5888_v35 = vld [vmem:[%s15252_s3 + $0x1c0] sm:$0xff] }
 0x473   : > { %2782 = vst.msk [vmem:[#allocation4 + $0x548] sm:$0xff] %vm2115_vm5, %v2711_v58  ;;  %6378 = vmatpush.msra.mxu1 %v5888_v35 }
 0x474   : > { %2974 = vst.msk [vmem:[#allocation4 + $0x548] sm:$0xff] %vm2308_vm6, %v2903_v29 }
 0x475   : > { %3354 = vrot.lane.b32.xlu1 %v12239_v51, %s15283_s16 }
 0x476   : > { %3544 = vrot.lane.b32.xlu2 %v1791_v21, %s15270_s22 }
 0x477   : > { %3798 = vrot.lane.b32.xlu0 %v12082_v12, %s15272_s15  ;;  %v2267_v24 = vpop.permute.xlu1 %2266 }
 0x478   : > { %v4176_v30 = vpop.permute.xlu2 %4175 }
 0x479   : > { %v3347_v15 = vpop.permute.xlu0 %3346  ;;  %4251 = vst.msk [vmem:[#allocation4 + $0x478] sm:$0xff] %vm2308_vm6, %v4176_v30 }
 0x47a   : > { %3420 = vst.msk [vmem:[#allocation4 + $0x4e0] sm:$0xff] %vm2115_vm5, %v3347_v15 }
 0x47b   : > { %3612 = vst.msk [vmem:[#allocation4 + $0x4e0] sm:$0xff] %vm2308_vm6, %v3539_v52  ;;  %v5777_v22 = vld [vmem:[#allocation4 + $0x548] sm:$0xff] }
 0x47c   : > { %6233 = vmatmul.f32.gmra.mxu2 %v5777_v22  ;;  %v12406_v22 = vpop.f32.mrf.mxu2 }
 0x47d   : > { %1888 = vrot.lane.b32.xlu1 %v1793_v38, %s15272_s15 }
 0x47e   : > { %4181 = vrot.lane.b32.xlu2 %v12076_v56, %s15270_s22  ;;  %v1792_v56 = vld [vmem:[#allocation3 + $0x169] sm:$0xff] }
 0x47f   : > { %3800 = vrot.lane.b32.xlu0 %v12127_v44, %s15272_s15  ;;  %v2521_v12 = vpop.permute.xlu1 %2520 }
 0x480   : > { %2591 = vst.msk [vmem:[#allocation4 + $0x580] sm:$0xff] %vm1922_vm4, %v2521_v12  ;;  %v2074_v2 = vpop.permute.xlu2 %2073 }
 0x481   : > { %v1881_v21 = vpop.permute.xlu0 %1880 }
 0x482   : > { %1950 = vst.msk [vmem:[#allocation4 + $0x5e8] sm:$0xff] %vm1922_vm4, %v1881_v21  ;;  %v5764_v1 = vld [vmem:[#allocation4 + $0x4e0] sm:$0xff] }
 0x483   : > { %2143 = vst.msk [vmem:[#allocation4 + $0x5e8] sm:$0xff] %vm2115_vm5, %v2074_v2  ;;  %6340 = vmatmul.f32.gmra.mxu3 %v5764_v1  ;;  %v5887_v2 = vld [vmem:[%s15252_s3 + $0x1b8] sm:$0xff] }
 0x484   : > { %2336 = vst.msk [vmem:[#allocation4 + $0x5e8] sm:$0xff] %vm2308_vm6, %v2267_v24  ;;  %v12403_v24 = vpop.f32.mrf.mxu1  ;;  %6379 = vmatpush.msra.mxu1 %v5887_v2 }
 0x485   : > { %2272 = vrot.lane.b32.xlu1 %v12252_v33, %s15270_s22 }
 0x486   : > { %2079 = vrot.lane.b32.xlu2 %v12261_v31, %s15283_s16 }
 0x487   : > { %1886 = vrot.lane.b32.xlu0 %v1792_v56, %s15272_s15  ;;  %v3161_v44 = vpop.permute.xlu1 %3160 }
 0x488   : > { %3231 = vst.msk [vmem:[#allocation4 + $0x588] sm:$0xff] %vm1922_vm4, %v3161_v44  ;;  %v2905_v4 = vpop.permute.xlu2 %2904 }
 0x489   : > { %v2265_v19 = vpop.permute.xlu0 %2264 }
 0x48a   : > { %2335 = vst.msk [vmem:[#allocation4 + $0x5b0] sm:$0xff] %vm2308_vm6, %v2265_v19  ;;  %v4521_v19 = vld [vmem:[#allocation3 + $0x63] sm:$0xff] }
 0x48b   : > { %v5797_v47 = vld [vmem:[#allocation4 + $0x5e8] sm:$0xff] }
 0x48d   : > { %2720 = vrot.lane.b32.xlu1 %v1793_v38, %s15283_s16 }
 0x48e   : > { %2910 = vrot.lane.b32.xlu2 %v12261_v31, %s15270_s22 }
 0x48f   : > { %2718 = vrot.lane.b32.xlu0 %v1792_v56, %s15283_s16  ;;  %v3349_v42 = vpop.permute.xlu1 %3348 }
 0x490   : > { %3421 = vst.msk [vmem:[#allocation4 + $0x518] sm:$0xff] %vm2115_vm5, %v3349_v42  ;;  %v4178_v29 = vpop.permute.xlu2 %4177 }
 0x491   : > { %v2713_v59 = vpop.permute.xlu0 %2712  ;;  %v5790_v58 = vld [vmem:[#allocation4 + $0x5b0] sm:$0xff]  ;;  %4252 = vst.msk [vmem:[#allocation4 + $0x4b0] sm:$0xff] %vm2308_vm6, %v4178_v29 }
 0x492   : > { %2783 = vst.msk [vmem:[#allocation4 + $0x580] sm:$0xff] %vm2115_vm5, %v2713_v59  ;;  %6126 = vmatmul.f32.gmra.mxu1 %v5790_v58  ;;  %v12452_v58 = vld [vmem:[#allocation3 + $0x7a] sm:$0xff] }
 0x493   : > { %2975 = vst.msk [vmem:[#allocation4 + $0x580] sm:$0xff] %vm2308_vm6, %v2905_v4 }
 0x495   : > { %3166 = vrot.lane.b32.xlu1 %v12203_v41, %s15272_s15 }
 0x496   : > { %4183 = vrot.lane.b32.xlu2 %v12239_v51, %s15270_s22 }
 0x497   : > { %3546 = vrot.lane.b32.xlu0 %v1792_v56, %s15270_s22  ;;  %v3987_v31 = vpop.permute.xlu1 %3986 }
 0x498   : > { %v2523_v15 = vpop.permute.xlu2 %2522 }
 0x499   : > { %v3159_v52 = vpop.permute.xlu0 %3158  ;;  %2592 = vst.msk [vmem:[#allocation4 + $0x5b8] sm:$0xff] %vm1922_vm4, %v2523_v15 }
 0x49a   : > { %3230 = vst.msk [vmem:[#allocation4 + $0x550] sm:$0xff] %vm1922_vm4, %v3159_v52  ;;  %6129 = vmatmul.f32.gmra.mxu1 %v5797_v47  ;;  %v5784_v30 = vld [vmem:[#allocation4 + $0x580] sm:$0xff]  ;;  %v12461_v52 = vpop.f32.mrf.mxu3 }
 0x49b   : > { %6236 = vmatmul.f32.gmra.mxu2 %v5784_v30 }
 0x49d   : > { %3548 = vrot.lane.b32.xlu1 %v1793_v38, %s15270_s22 }
 0x49e   : > { %2274 = vrot.lane.b32.xlu2 %v12258_v32, %s15270_s22 }
 0x49f   : > { %2081 = vrot.lane.b32.xlu0 %v12277_v27, %s15283_s16  ;;  %v3989_v51 = vpop.permute.xlu1 %3988 }
 0x4a0   : > { %v3351_v21 = vpop.permute.xlu2 %3350 }
 0x4a1   : > { %v3541_v12 = vpop.permute.xlu0 %3540  ;;  %3422 = vst.msk [vmem:[#allocation4 + $0x550] sm:$0xff] %vm2115_vm5, %v3351_v21 }
 0x4a2   : > { %3613 = vst.msk [vmem:[#allocation4 + $0x518] sm:$0xff] %vm2308_vm6, %v3541_v12  ;;  %v4713_v12 = vld [vmem:[#allocation3 + $0x64] sm:$0xff] }
 0x4a5   : > { %3994 = vrot.lane.b32.xlu1 %v12203_v41, %s15283_s16 }
 0x4a6   : > { %2528 = vrot.lane.b32.xlu2 %v12235_v9, %s15272_s15 }
 0x4a7   : > { %2912 = vrot.lane.b32.xlu0 %v12277_v27, %s15270_s22  ;;  %v1883_v38 = vpop.permute.xlu1 %1882 }
 0x4a8   : > { %1951 = vst.msk [vmem:[#allocation4 + $0x620] sm:$0xff] %vm1922_vm4, %v1883_v38  ;;  %v4180_v56 = vpop.permute.xlu2 %4179 }
 0x4a9   : > { %v3795_v1 = vpop.permute.xlu0 %3794  ;;  %v5771_v55 = vld [vmem:[#allocation4 + $0x518] sm:$0xff] }
 0x4aa   : > { %3868 = vst.msk [vmem:[#allocation4 + $0x4e8] sm:$0xff] %vm1922_vm4, %v3795_v1  ;;  %6343 = vmatmul.f32.gmra.mxu3 %v5771_v55  ;;  %v12474_v55 = vpop.f32.mrf.mxu2 }
 0x4ab   : > { %4060 = vst.msk [vmem:[#allocation4 + $0x4e8] sm:$0xff] %vm2115_vm5, %v3987_v31 }
 0x4ac   : > { %4253 = vst.msk [vmem:[#allocation4 + $0x4e8] sm:$0xff] %vm2308_vm6, %v4180_v56 }
 0x4ad   : > { %3996 = vrot.lane.b32.xlu1 %v12205_v10, %s15283_s16 }
 0x4ae   : > { %3168 = vrot.lane.b32.xlu2 %v12205_v10, %s15272_s15  ;;  %v12445_v10 = vpop.f32.mrf.mxu1 }
 0x4af   : > { %3802 = vrot.lane.b32.xlu0 %v12252_v33, %s15272_s15  ;;  %v2715_v41 = vpop.permute.xlu1 %2714  ;;  %v5886_v33 = vld [vmem:[%s15252_s3 + $0x1b0] sm:$0xff] }
 0x4b0   : > { %2784 = vst.msk [vmem:[#allocation4 + $0x5b8] sm:$0xff] %vm2115_vm5, %v2715_v41  ;;  %v1885_v44 = vpop.permute.xlu2 %1884  ;;  %6380 = vmatpush.msra.mxu1 %v5886_v33  ;;  %v5163_v41 = vld [vmem:[#allocation3 + $0x82] sm:$0xff] }
 0x4b1   : > { %v3797_v27 = vpop.permute.xlu0 %3796  ;;  %1952 = vst.msk [vmem:[#allocation4 + $0x658] sm:$0xff] %vm1922_vm4, %v1885_v44 }
 0x4b2   : > { %3869 = vst.msk [vmem:[#allocation4 + $0x520] sm:$0xff] %vm1922_vm4, %v3797_v27  ;;  %v5354_v27 = vld [vmem:[#allocation3 + $0x7b] sm:$0xff] }
 0x4b3   : > { %4061 = vst.msk [vmem:[#allocation4 + $0x520] sm:$0xff] %vm2115_vm5, %v3989_v51  ;;  %v4522_v51 = vld [vmem:[#allocation3 + $0x6b] sm:$0xff] }
 0x4b5   : > { %4587 = vrot.lane.b32.xlu1 %v4521_v19, %s15283_s16 }
 0x4b6   : > { %3356 = vrot.lane.b32.xlu2 %v12235_v9, %s15283_s16  ;;  %v12457_v29 = vpop.f32.mrf.mxu1 }
 0x4b7   : > { %3804 = vrot.lane.b32.xlu0 %v12258_v32, %s15272_s15  ;;  %v3543_v4 = vpop.permute.xlu1 %3542  ;;  %v4329_v32 = vld [vmem:[#allocation3 + $0x62] sm:$0xff] }
 0x4b8   : > { %3614 = vst.msk [vmem:[#allocation4 + $0x550] sm:$0xff] %vm2308_vm6, %v3543_v4  ;;  %v2269_v59 = vpop.permute.xlu2 %2268 }
 0x4b9   : > { %v2076_v42 = vpop.permute.xlu0 %2075 }
 0x4ba   : > { %2144 = vst.msk [vmem:[#allocation4 + $0x620] sm:$0xff] %vm2115_vm5, %v2076_v42 }
 0x4bb   : > { %2337 = vst.msk [vmem:[#allocation4 + $0x620] sm:$0xff] %vm2308_vm6, %v2269_v59  ;;  %v5884_v59 = vld [vmem:[%s15252_s3 + $0x1a0] sm:$0xff] }
 0x4bd   : > { %5228 = vrot.lane.b32.xlu1 %v12452_v58, %s15283_s16 }
 0x4be   : > { %4185 = vrot.lane.b32.xlu2 %v12235_v9, %s15270_s22  ;;  %v5885_v9 = vld [vmem:[%s15252_s3 + $0x1a8] sm:$0xff]  ;;  %v12471_v21 = vpop.f32.mrf.mxu1 }
 0x4bf   : > { %4395 = vrot.lane.b32.xlu0 %v4329_v32, %s15272_s15  ;;  %v2078_v35 = vpop.permute.xlu1 %2077  ;;  %v5778_v31 = vld [vmem:[#allocation4 + $0x550] sm:$0xff]  ;;  %6381 = vmatpush.msra.mxu1 %v5885_v9 }
 0x4c0   : > { %2145 = vst.msk [vmem:[#allocation4 + $0x658] sm:$0xff] %vm2115_vm5, %v2078_v35  ;;  %6346 = vmatmul.f32.gmra.mxu3 %v5778_v31  ;;  %v2717_v15 = vpop.permute.xlu2 %2716  ;;  %v4714_v32 = vld [vmem:[#allocation3 + $0x6c] sm:$0xff] }
 0x4c1   : > { %v2907_v47 = vpop.permute.xlu0 %2906  ;;  %6382 = vmatpush.msra.mxu1 %v5884_v59  ;;  %v5164_v9 = vld [vmem:[#allocation3 + $0x92] sm:$0xff]  ;;  %v12519_v59 = vpop.f32.mrf.mxu3 }
 0x4c2   : > { %2976 = vst.msk [vmem:[#allocation4 + $0x5b8] sm:$0xff] %vm2308_vm6, %v2907_v47  ;;  %v5804_v30 = vld [vmem:[#allocation4 + $0x620] sm:$0xff] }
 0x4c3   : > { %6132 = vmatmul.f32.gmra.mxu1 %v5804_v30 }
 0x4c5   : > { %4589 = vrot.lane.b32.xlu1 %v4522_v51, %s15283_s16  ;;  %v12497_v51 = vpop.f32.mrf.mxu2 }
 0x4c6   : > { %4779 = vrot.lane.b32.xlu2 %v4713_v12, %s15270_s22  ;;  %v12480_v44 = vpop.f32.mrf.mxu1 }
 0x4c7   : > { %5036 = vrot.lane.b32.xlu0 %v10692_v14, %s15272_s15  ;;  %v2909_v2 = vpop.permute.xlu1 %2908  ;;  %v4330_v14 = vld [vmem:[#allocation3 + $0x6a] sm:$0xff] }
 0x4c8   : > { %v3163_v56 = vpop.permute.xlu2 %3162 }
 0x4c9   : > { %v2271_v38 = vpop.permute.xlu0 %2270  ;;  %v5791_v1 = vld [vmem:[#allocation4 + $0x5b8] sm:$0xff]  ;;  %3232 = vst.msk [vmem:[#allocation4 + $0x5c0] sm:$0xff] %vm1922_vm4, %v3163_v56 }
 0x4ca   : > { %2338 = vst.msk [vmem:[#allocation4 + $0x658] sm:$0xff] %vm2308_vm6, %v2271_v38  ;;  %6239 = vmatmul.f32.gmra.mxu2 %v5791_v1  ;;  %v5883_v56 = vld [vmem:[%s15252_s3 + $0x198] sm:$0xff] }
 0x4cb   : > { %6383 = vmatpush.msra.mxu1 %v5883_v56 }
 0x4cd   : > { %5230 = vrot.lane.b32.xlu1 %v5163_v41, %s15283_s16 }
 0x4ce   : > { %5420 = vrot.lane.b32.xlu2 %v5354_v27, %s15270_s22  ;;  %v12492_v35 = vpop.f32.mrf.mxu1 }
 0x4cf   : > { %4397 = vrot.lane.b32.xlu0 %v4330_v14, %s15272_s15  ;;  %v3991_v19 = vpop.permute.xlu1 %3990 }
 0x4d0   : > { %v3545_v42 = vpop.permute.xlu2 %3544 }
 0x4d1   : > { %v2525_v33 = vpop.permute.xlu0 %2524  ;;  %v5811_v4 = vld [vmem:[#allocation4 + $0x658] sm:$0xff] }
 0x4d2   : > { %2593 = vst.msk [vmem:[#allocation4 + $0x5f0] sm:$0xff] %vm1922_vm4, %v2525_v33  ;;  %6135 = vmatmul.f32.gmra.mxu1 %v5811_v4 }
 0x4d3   : > { %2785 = vst.msk [vmem:[#allocation4 + $0x5f0] sm:$0xff] %vm2115_vm5, %v2717_v15 }
 0x4d4   : > { %2977 = vst.msk [vmem:[#allocation4 + $0x5f0] sm:$0xff] %vm2308_vm6, %v2909_v2 }
 0x4d5   : > { %4591 = vrot.lane.b32.xlu1 %v5354_v27, %s15283_s16 }
 0x4d6   : > { %4781 = vrot.lane.b32.xlu2 %v4714_v32, %s15270_s22  ;;  %v12504_v38 = vpop.f32.mrf.mxu1  ;;  %v12522_v32 = vld [vmem:[#allocation3 + $0x9a] sm:$0xff] }
 0x4d7   : > { %5038 = vrot.lane.b32.xlu0 %v10726_v25, %s15272_s15  ;;  %v3993_v31 = vpop.permute.xlu1 %3992  ;;  %v5355_v25 = vld [vmem:[#allocation3 + $0x83] sm:$0xff] }
 0x4d8   : > { %v4182_v15 = vpop.permute.xlu2 %4181 }
 0x4d9   : > { %v3165_v47 = vpop.permute.xlu0 %3164  ;;  %4254 = vst.msk [vmem:[#allocation4 + $0x520] sm:$0xff] %vm2308_vm6, %v4182_v15 }
 0x4da   : > { %3233 = vst.msk [vmem:[#allocation4 + $0x5f8] sm:$0xff] %vm1922_vm4, %v3165_v47 }
 0x4db   : > { %v5798_v30 = vld [vmem:[#allocation4 + $0x5f0] sm:$0xff] }
 0x4dc   : > { %6242 = vmatmul.f32.gmra.mxu2 %v5798_v30 }
 0x4dd   : > { %5232 = vrot.lane.b32.xlu1 %v5164_v9, %s15283_s16 }
 0x4de   : > { %5422 = vrot.lane.b32.xlu2 %v5355_v25, %s15270_s22  ;;  %v12516_v33 = vpop.f32.mrf.mxu1 }
 0x4df   : > { %4399 = vrot.lane.b32.xlu0 %v12452_v58, %s15272_s15  ;;  %v2527_v12 = vpop.permute.xlu1 %2526  ;;  %v4715_v58 = vld [vmem:[#allocation3 + $0x7c] sm:$0xff] }
 0x4e0   : > { %2594 = vst.msk [vmem:[#allocation4 + $0x628] sm:$0xff] %vm1922_vm4, %v2527_v12  ;;  %v2080_v1 = vpop.permute.xlu2 %2079 }
 0x4e1   : > { %v3353_v2 = vpop.permute.xlu0 %3352 }
 0x4e2   : > { %3423 = vst.msk [vmem:[#allocation4 + $0x588] sm:$0xff] %vm2115_vm5, %v3353_v2 }
 0x4e3   : > { %3615 = vst.msk [vmem:[#allocation4 + $0x588] sm:$0xff] %vm2308_vm6, %v3545_v42 }
 0x4e5   : > { %4593 = vrot.lane.b32.xlu1 %v5355_v25, %s15283_s16  ;;  %v4716_v25 = vld [vmem:[#allocation3 + $0x84] sm:$0xff] }
 0x4e6   : > { %4783 = vrot.lane.b32.xlu2 %v4715_v58, %s15270_s22  ;;  %v12529_v30 = vpop.f32.mrf.mxu1  ;;  %v12548_v58 = vld [vmem:[#allocation3 + $0xaa] sm:$0xff] }
 0x4e7   : > { %5040 = vrot.lane.b32.xlu0 %v10851_v34, %s15272_s15  ;;  %v3355_v14 = vpop.permute.xlu1 %3354  ;;  %v5356_v34 = vld [vmem:[#allocation3 + $0x93] sm:$0xff]  ;;  %15288 = vst [vmem:[#allocation19_spill] sm:$0xff] %v12529_v30 }
 0x4e8   : > { %3424 = vst.msk [vmem:[#allocation4 + $0x5c0] sm:$0xff] %vm2115_vm5, %v3355_v14  ;;  %v2911_v4 = vpop.permute.xlu2 %2910  ;;  %v5910_v14 = vld [vmem:[%s15252_s3 + $0x270] sm:$0xff] }
 0x4e9   : > { %v3799_v27 = vpop.permute.xlu0 %3798 }
 0x4ea   : > { %3870 = vst.msk [vmem:[#allocation4 + $0x558] sm:$0xff] %vm1922_vm4, %v3799_v27  ;;  %v5785_v42 = vld [vmem:[#allocation4 + $0x588] sm:$0xff]  ;;  %v5357_v27 = vld [vmem:[#allocation3 + $0x9b] sm:$0xff] }
 0x4eb   : > { %4062 = vst.msk [vmem:[#allocation4 + $0x558] sm:$0xff] %vm2115_vm5, %v3991_v19  ;;  %6349 = vmatmul.f32.gmra.mxu3 %v5785_v42 }
 0x4ed   : > { %5234 = vrot.lane.b32.xlu1 %v12522_v32, %s15283_s16 }
 0x4ee   : > { %5424 = vrot.lane.b32.xlu2 %v5356_v34, %s15270_s22  ;;  %v12541_v56 = vpop.f32.mrf.mxu1 }
 0x4ef   : > { %4401 = vrot.lane.b32.xlu0 %v5163_v41, %s15272_s15  ;;  %v1889_v47 = vpop.permute.xlu1 %1888  ;;  %v5882_v41 = vld [vmem:[%s15252_s3 + $0x190] sm:$0xff]  ;;  %15289 = vst [vmem:[#allocation20_spill] sm:$0xff] %v12541_v56 }
 0x4f0   : > { %1954 = vst.msk [vmem:[#allocation4 + $0x6c8] sm:$0xff] %vm1922_vm4, %v1889_v47  ;;  %v4184_v19 = vpop.permute.xlu2 %4183  ;;  %6384 = vmatpush.msra.mxu1 %v5882_v41 }
 0x4f1   : > { %v3801_v15 = vpop.permute.xlu0 %3800  ;;  %4255 = vst.msk [vmem:[#allocation4 + $0x558] sm:$0xff] %vm2308_vm6, %v4184_v19 }
 0x4f2   : > { %3871 = vst.msk [vmem:[#allocation4 + $0x590] sm:$0xff] %vm1922_vm4, %v3801_v15  ;;  %v5908_v15 = vld [vmem:[%s15252_s3 + $0x260] sm:$0xff] }
 0x4f3   : > { %4063 = vst.msk [vmem:[#allocation4 + $0x590] sm:$0xff] %vm2115_vm5, %v3993_v31 }
 0x4f5   : > { %4595 = vrot.lane.b32.xlu1 %v5356_v34, %s15283_s16  ;;  %v5881_v34 = vld [vmem:[%s15252_s3 + $0x188] sm:$0xff] }
 0x4f6   : > { %4785 = vrot.lane.b32.xlu2 %v4716_v25, %s15270_s22  ;;  %6385 = vmatpush.msra.mxu1 %v5881_v34  ;;  %v5880_v25 = vld [vmem:[%s15252_s3 + $0x180] sm:$0xff] }
 0x4f7   : > { %5042 = vrot.lane.b32.xlu0 %v10855_v40, %s15272_s15  ;;  %v2273_v12 = vpop.permute.xlu1 %2272  ;;  %v5911_v40 = vld [vmem:[%s15252_s3 + $0x278] sm:$0xff] }
 0x4f8   : > { %v12544_v31 = vpop.permute.xlu2 %2274  ;;  %6484 = vmatpush.msra.mxu2 %v5911_v40  ;;  %6386 = vmatpush.msra.mxu1 %v5880_v25  ;;  %v5926_v40 = vld [vmem:[%s15252_s3 + $0x2f0] sm:$0xff]  ;;  %v5924_v25 = vld [vmem:[%s15252_s3 + $0x2e0] sm:$0xff] }
 0x4f9   : > { %v1887_v2 = vpop.permute.xlu0 %1886 }
 0x4fa   : > { %1953 = vst.msk [vmem:[#allocation4 + $0x690] sm:$0xff] %vm1922_vm4, %v1887_v2  ;;  %6485 = vmatpush.msra.mxu2 %v5910_v14  ;;  %v5906_v2 = vld [vmem:[%s15252_s3 + $0x250] sm:$0xff] }
 0x4fb   : > { %2146 = vst.msk [vmem:[#allocation4 + $0x690] sm:$0xff] %vm2115_vm5, %v2080_v1  ;;  %v5909_v1 = vld [vmem:[%s15252_s3 + $0x268] sm:$0xff]  ;;  %v4717_v14 = vld [vmem:[#allocation3 + $0x94] sm:$0xff] }
 0x4fc   : > { %2339 = vst.msk [vmem:[#allocation4 + $0x690] sm:$0xff] %vm2308_vm6, %v2273_v12  ;;  %6486 = vmatpush.msra.mxu2 %v5909_v1  ;;  %v5907_v12 = vld [vmem:[%s15252_s3 + $0x258] sm:$0xff]  ;;  %v5905_v1 = vld [vmem:[%s15252_s3 + $0x248] sm:$0xff] }
 0x4fd   : > { %5236 = vrot.lane.b32.xlu1 %v12548_v58, %s15283_s16 }
 0x4fe   : > { %5426 = vrot.lane.b32.xlu2 %v5357_v27, %s15270_s22  ;;  %6487 = vmatpush.msra.mxu2 %v5908_v15 }
 0x4ff   : > { %4403 = vrot.lane.b32.xlu0 %v5164_v9, %s15272_s15  ;;  %v2721_v42 = vpop.permute.xlu1 %2720  ;;  %v12569_v9 = vpop.f32.mrf.mxu1 }
 0x500   : > { %15290 = vst [vmem:[#allocation21_spill] sm:$0xff] %v12569_v9  ;;  %v2529_v19 = vpop.permute.xlu2 %2528  ;;  %6488 = vmatpush.msra.mxu2 %v5907_v12  ;;  %v5903_v12 = vld [vmem:[%s15252_s3 + $0x238] sm:$0xff] }
 0x501   : > { %v2719_v47 = vpop.permute.xlu0 %2718  ;;  %2595 = vst.msk [vmem:[#allocation4 + $0x660] sm:$0xff] %vm1922_vm4, %v2529_v19 }
 0x502   : > { %2786 = vst.msk [vmem:[#allocation4 + $0x628] sm:$0xff] %vm2115_vm5, %v2719_v47  ;;  %6489 = vmatpush.msra.mxu2 %v5906_v2  ;;  %v5922_v2 = vld [vmem:[%s15252_s3 + $0x2d0] sm:$0xff] }
 0x503   : > { %2978 = vst.msk [vmem:[#allocation4 + $0x628] sm:$0xff] %vm2308_vm6, %v2911_v4  ;;  %v5818_v41 = vld [vmem:[#allocation4 + $0x690] sm:$0xff]  ;;  %v5927_v4 = vld [vmem:[%s15252_s3 + $0x2f8] sm:$0xff] }
 0x504   : > { %6138 = vmatmul.f32.gmra.mxu1 %v5818_v41  ;;  %2787 = vst.msk [vmem:[#allocation4 + $0x660] sm:$0xff] %vm2115_vm5, %v2721_v42  ;;  %6597 = vmatpush.msra.mxu3 %v5927_v4  ;;  %v12608_v41 = vpop.f32.mrf.mxu2  ;;  %v5902_v4 = vld [vmem:[%s15252_s3 + $0x230] sm:$0xff] }
 0x505   : > { %4597 = vrot.lane.b32.xlu1 %v5357_v27, %s15283_s16  ;;  %v5925_v27 = vld [vmem:[%s15252_s3 + $0x2e8] sm:$0xff]  ;;  %6490 = vmatpush.msra.mxu2 %v5905_v1 }
 0x506   : > { %4787 = vrot.lane.b32.xlu2 %v4717_v14, %s15291_s24  ;;  %6598 = vmatpush.msra.mxu3 %v5926_v40  ;;  %v5358_v40 = vld [vmem:[#allocation3 + $0xab] sm:$0xff] }
 0x507   : > { %5044 = vrot.lane.b32.xlu0 %v11014_v49, %s15272_s15  ;;  %v3167_v42 = vpop.permute.xlu1 %3166  ;;  %v5904_v49 = vld [vmem:[%s15252_s3 + $0x240] sm:$0xff]  ;;  %v12604_v47 = vpop.f32.mrf.mxu1  ;;  %v5921_v1 = vld [vmem:[%s15252_s3 + $0x2c8] sm:$0xff]  ;;  %s8976_s15 = scalar_lea.hbm %s15260_s11, %s9580_s21 }
 0x508   : > { %3234 = vst.msk [vmem:[#allocation4 + $0x630] sm:$0xff] %vm1922_vm4, %v3167_v42  ;;  %v3169_v15 = vpop.permute.xlu2 %3168  ;;  %6599 = vmatpush.msra.mxu3 %v5925_v27  ;;  %6491 = vmatpush.msra.mxu2 %v5904_v49  ;;  %v12650_v27 = vpop.f32.mrf.mxu3  ;;  %s8980_s22 = sshll.u32 %s8976_s15, 4  ;;  %s8981_s22 = int_to_ptr.hbm [resolvable:$true] %s8980_s22 }
 0x509   : > { %v3547_v34 = vpop.permute.xlu0 %3546  ;;  %15292 = vst [vmem:[#allocation22_spill] sm:$0xff] %v12604_v47  ;;  %s9445_s30 = sshra.s32 %s8981_s22, 4  ;;  %s9446_s30 = int_to_ptr.hbm [resolvable:$true] %s9445_s30 }
 0x50a   : > { %3426 = vst.msk [vmem:[#allocation4 + $0x630] sm:$0xff] %vm2115_vm5, %v10384_v16  ;;  %v5805_v19 = vld [vmem:[#allocation4 + $0x628] sm:$0xff]  ;;  %v12617_v16 = vld [vmem:[#allocation3 + $0xb2] sm:$0xff]  ;;  %6600 = vmatpush.msra.mxu3 %v5924_v25  ;;  %6492 = vmatpush.msra.mxu2 %v5903_v12  ;;  %s9447_s1 = scalar_lea.hbm %s9446_s30, 1  ;;  %p9452_p0 = scmp.lt.s32.totalorder %s9446_s30, %s15260_s11 }
 0x50b   : > { %3618 = vst.msk [vmem:[#allocation4 + $0x630] sm:$0xff] %vm2308_vm6, %v10315_v57  ;;  %6245 = vmatmul.f32.gmra.mxu2 %v5805_v19  ;;  %v5923_v57 = vld [vmem:[%s15252_s3 + $0x2d8] sm:$0xff]  ;;  %v5898_v25 = vld [vmem:[%s15252_s3 + $0x210] sm:$0xff]  ;;  %p9448_p11 = scmp.ne.s32.totalorder %s9446_s30, %s9447_s1 }
 0x50c   : > { %3616 = vst.msk [vmem:[#allocation4 + $0x5c0] sm:$0xff] %vm2308_vm6, %v3547_v34  ;;  %6601 = vmatpush.msra.mxu3 %v5923_v57  ;;  %6493 = vmatpush.msra.mxu2 %v5902_v4  ;;  %v5899_v19 = vld [vmem:[%s15252_s3 + $0x218] sm:$0xff]  ;;  %v5918_v12 = vld [vmem:[%s15252_s3 + $0x2b0] sm:$0xff]  ;;  %v5897_v4 = vld [vmem:[%s15252_s3 + $0x208] sm:$0xff] }
 0x50d   : > { %3235 = vst.msk [vmem:[#allocation4 + $0x668] sm:$0xff] %vm1922_vm4, %v3169_v15  ;;  %5238 = vrot.lane.b32.xlu1 %v12617_v16, %s15283_s16  ;;  %v5920_v15 = vld [vmem:[%s15252_s3 + $0x2c0] sm:$0xff]  ;;  %p9449_p12 = pnand %p9448_p11, %p9597_p5 }
 0x50e   : > { %3427 = vst.msk [vmem:[#allocation4 + $0x668] sm:$0xff] %vm2115_vm5, %v10463_v26  ;;  %v5901_v26 = vld [vmem:[%s15252_s3 + $0x228] sm:$0xff]  ;;  %5428 = vrot.lane.b32.xlu2 %v5358_v40, %s15291_s24  ;;  %6602 = vmatpush.msra.mxu3 %v5922_v2  ;;  %v4718_v57 = vld [vmem:[#allocation3 + $0x9c] sm:$0xff] }
 0x50f   : > { %3619 = vst.msk [vmem:[#allocation4 + $0x668] sm:$0xff] %vm2308_vm6, %v10468_v37  ;;  %4405 = vrot.lane.b32.xlu0 %v12522_v32, %s15293_s14  ;;  %v3549_v14 = vpop.permute.xlu1 %3548  ;;  %v5900_v37 = vld [vmem:[%s15252_s3 + $0x220] sm:$0xff]  ;;  %6494 = vmatpush.msra.mxu2 %v5901_v26  ;;  %v12654_v49 = vpop.f32.mrf.mxu1  ;;  %p9450_p13 = pneg %p9449_p12 }
 0x510   : > { %v3357_v32 = vpop.permute.xlu2 %3356  ;;  %6603 = vmatpush.msra.mxu3 %v5921_v1  ;;  %15294 = vst [vmem:[#allocation23_spill] sm:$0xff] %v12654_v49 }
 0x511   : > { %v2082_v42 = vpop.permute.xlu0 %2081  ;;  %3425 = vst.msk [vmem:[#allocation4 + $0x5f8] sm:$0xff] %vm2115_vm5, %v3357_v32  ;;  %6495 = vmatpush.msra.mxu2 %v5900_v37 }
 0x512   : > { %2147 = vst.msk [vmem:[#allocation4 + $0x6c8] sm:$0xff] %vm2115_vm5, %v2082_v42  ;;  %6604 = vmatpush.msra.mxu3 %v5920_v15  ;;  %v12687_v42 = vpop.f32.mrf.mxu3  ;;  %v12695_v15 = vld [vmem:[#allocation3 + $0xc2] sm:$0xff] }
 0x513   : > { %2340 = vst.msk [vmem:[#allocation4 + $0x6c8] sm:$0xff] %vm2308_vm6, %v12544_v31  ;;  %v5792_v34 = vld [vmem:[#allocation4 + $0x5c0] sm:$0xff]  ;;  %v5919_v31 = vld [vmem:[%s15252_s3 + $0x2b8] sm:$0xff]  ;;  %6496 = vmatpush.msra.mxu2 %v5899_v19 }
 0x514   : > { %6352 = vmatmul.f32.gmra.mxu3 %v5792_v34  ;;  %3617 = vst.msk [vmem:[#allocation4 + $0x5f8] sm:$0xff] %vm2308_vm6, %v3549_v14  ;;  %v5916_v34 = vld [vmem:[%s15252_s3 + $0x2a0] sm:$0xff]  ;;  %v5915_v19 = vld [vmem:[%s15252_s3 + $0x298] sm:$0xff] }
 0x515   : > { %4599 = vrot.lane.b32.xlu1 %v5358_v40, %s15283_s16  ;;  %6605 = vmatpush.msra.mxu3 %v5919_v31  ;;  %v5917_v40 = vld [vmem:[%s15252_s3 + $0x2a8] sm:$0xff]  ;;  %v5359_v31 = vld [vmem:[#allocation3 + $0xb3] sm:$0xff] }
 0x516   : > { %4789 = vrot.lane.b32.xlu2 %v4718_v57, %s15291_s24  ;;  %6497 = vmatpush.msra.mxu2 %v5898_v25  ;;  %v5914_v25 = vld [vmem:[%s15252_s3 + $0x290] sm:$0xff] }
 0x517   : > { %5046 = vrot.lane.b32.xlu0 %v11016_v60, %s15293_s14  ;;  %v3995_v2 = vpop.permute.xlu1 %3994  ;;  %6606 = vmatpush.msra.mxu3 %v5918_v12  ;;  %v5896_v60 = vld [vmem:[%s15252_s3 + $0x200] sm:$0xff]  ;;  %v12690_v37 = vpop.f32.mrf.mxu1 }
 0x518   : > { %v4186_v14 = vpop.permute.xlu2 %4185  ;;  %6498 = vmatpush.msra.mxu2 %v5897_v4  ;;  %15295 = vst [vmem:[#allocation24_spill] sm:$0xff] %v12690_v37  ;;  %v5612_v37 = vld [vmem:[#allocation4 + $0x20] sm:$0xff] }
 0x519   : > { %v2913_v26 = vpop.permute.xlu0 %2912  ;;  %4256 = vst.msk [vmem:[#allocation4 + $0x590] sm:$0xff] %vm2308_vm6, %v4186_v14  ;;  %6607 = vmatpush.msra.mxu3 %v5917_v40  ;;  %v5913_v40 = vld [vmem:[%s15252_s3 + $0x288] sm:$0xff] }
 0x51a   : > { %2979 = vst.msk [vmem:[#allocation4 + $0x660] sm:$0xff] %vm2308_vm6, %v2913_v26  ;;  %v5825_v1 = vld [vmem:[#allocation4 + $0x6c8] sm:$0xff]  ;;  %6499 = vmatpush.msra.mxu2 %v5896_v60  ;;  %v12711_v26 = vpop.f32.mrf.mxu2  ;;  %v5611_v60 = vld [vmem:[#allocation4 + $0x18] sm:$0xff]  ;;  %v12714_v14 = vpop.f32.mrf.mxu3 }
 0x51b   : > { %6141 = vmatmul.f32.gmra.mxu1 %v5825_v1  ;;  %v5799_v32 = vld [vmem:[#allocation4 + $0x5f8] sm:$0xff]  ;;  %6608 = vmatpush.msra.mxu3 %v5916_v34  ;;  %v5912_v34 = vld [vmem:[%s15252_s3 + $0x280] sm:$0xff] }
 0x51c   : > { %6355 = vmatmul.f32.gmra.mxu3 %v5799_v32  ;;  %v5806_v32 = vld [vmem:[#allocation4 + $0x630] sm:$0xff] }
 0x51d   : > { %5240 = vrot.lane.b32.xlu1 %v12695_v15, %s15283_s16  ;;  %6609 = vmatpush.msra.mxu3 %v5915_v19  ;;  %v5931_v19 = vld [vmem:[%s15252_s3 + $0x318] sm:$0xff] }
 0x51e   : > { %5430 = vrot.lane.b32.xlu2 %v5359_v31, %s15291_s24  ;;  %6722 = vmatpush.msrb.mxu1 %v5931_v19  ;;  %v5360_v19 = vld [vmem:[#allocation3 + $0xc3] sm:$0xff] }
 0x51f   : > { %4407 = vrot.lane.b32.xlu0 %v12548_v58, %s15293_s14  ;;  %v3997_v12 = vpop.permute.xlu1 %3996  ;;  %6610 = vmatpush.msra.mxu3 %v5914_v25  ;;  %v12717_v1 = vpop.f32.mrf.mxu1 }
 0x520   : > { %v4780_v58 = vpop.permute.xlu2 %4779  ;;  %15296 = vst [vmem:[#allocation25_spill] sm:$0xff] %v12717_v1 }
 0x521   : > { %v3803_v57 = vpop.permute.xlu0 %3802  ;;  %v5812_v4 = vld [vmem:[#allocation4 + $0x660] sm:$0xff]  ;;  %6611 = vmatpush.msra.mxu3 %v5913_v40 }
 0x522   : > { %3872 = vst.msk [vmem:[#allocation4 + $0x5c8] sm:$0xff] %vm1922_vm4, %v3803_v57  ;;  %6248 = vmatmul.f32.gmra.mxu2 %v5812_v4  ;;  %v5819_v57 = vld [vmem:[#allocation4 + $0x698] sm:$0xff]  ;;  %v12731_v4 = vpop.f32.mrf.mxu2 }
 0x523   : > { %4064 = vst.msk [vmem:[#allocation4 + $0x5c8] sm:$0xff] %vm2115_vm5, %v3995_v2  ;;  %6387 = vmatmul.f32.vlgmr.msra.gmra.mxu1 %v5611_v60  ;;  %6612 = vmatpush.msra.mxu3 %v5912_v34  ;;  %v4719_v2 = vld [vmem:[#allocation3 + $0xac] sm:$0xff] }
 0x524   : > { %4257 = vst.msk [vmem:[#allocation4 + $0x5c8] sm:$0xff] %vm2308_vm6, %v10346_v5  ;;  %6358 = vmatmul.f32.gmra.mxu3 %v5806_v32  ;;  %v5618_v60 = vld [vmem:[#allocation4 + $0x50] sm:$0xff]  ;;  %v12734_v32 = vpop.f32.mrf.mxu3 }
 0x525   : > { %4601 = vrot.lane.b32.xlu1 %v5359_v31, %s15283_s16  ;;  %v5813_v31 = vld [vmem:[#allocation4 + $0x668] sm:$0xff] }
 0x526   : > { %4791 = vrot.lane.b32.xlu2 %v4719_v2, %s15291_s24  ;;  %v12741_v34 = vld [vmem:[#allocation3 + $0xca] sm:$0xff] }
 0x527   : > { %5048 = vrot.lane.b32.xlu0 %v11171_v50, %s15293_s14  ;;  %v4588_v5 = vpop.permute.xlu1 %4587  ;;  %v12737_v50 = vpop.f32.mrf.mxu1 }
 0x528   : > { %v5421_v40 = vpop.permute.xlu2 %5420  ;;  %15297 = vst [vmem:[#allocation26_spill] sm:$0xff] %v12737_v50 }
 0x529   : > { %v3805_v25 = vpop.permute.xlu0 %3804 }
 0x52a   : > { %3873 = vst.msk [vmem:[#allocation4 + $0x600] sm:$0xff] %vm1922_vm4, %v3805_v25  ;;  %6251 = vmatmul.f32.gmra.mxu2 %v5819_v57  ;;  %v5826_v25 = vld [vmem:[#allocation4 + $0x6d0] sm:$0xff]  ;;  %v12748_v57 = vpop.f32.mrf.mxu2 }
 0x52b   : > { %4065 = vst.msk [vmem:[#allocation4 + $0x600] sm:$0xff] %vm2115_vm5, %v3997_v12  ;;  %6390 = vmatmul.f32.gmra.mxu1 %v5618_v60  ;;  %v5625_v60 = vld [vmem:[#allocation4 + $0x88] sm:$0xff] }
 0x52c   : > { %4258 = vst.msk [vmem:[#allocation4 + $0x600] sm:$0xff] %vm2308_vm6, %v10382_v23  ;;  %6361 = vmatmul.f32.gmra.mxu3 %v5813_v31  ;;  %v12751_v31 = vpop.f32.mrf.mxu3 }
 0x52d   : > { %5242 = vrot.lane.b32.xlu1 %v12741_v34, %s15283_s16 }
 0x52e   : > { %5432 = vrot.lane.b32.xlu2 %v5360_v19, %s15291_s24 }
 0x52f   : > { %4409 = vrot.lane.b32.xlu0 %v12617_v16, %s15293_s14  ;;  %v5229_v12 = vpop.permute.xlu1 %5228  ;;  %v12754_v1 = vpop.f32.mrf.mxu1  ;;  %v5820_v16 = vld [vmem:[#allocation4 + $0x6a0] sm:$0xff] }
 0x530   : > { %v4782_v23 = vpop.permute.xlu2 %4781  ;;  %15298 = vst [vmem:[#allocation27_spill] sm:$0xff] %v12754_v1 }
 0x531   : > { %v4396_v2 = vpop.permute.xlu0 %4395 }
 0x532   : > { %4489 = vst.msk [vmem:[#allocation4 + $0x90] sm:$0xff] %vm1922_vm4, %v4396_v2  ;;  %6254 = vmatmul.f32.gmra.mxu2 %v5826_v25  ;;  %v4720_v2 = vld [vmem:[#allocation3 + $0xb4] sm:$0xff]  ;;  %v12761_v49 = vpop.f32.mrf.mxu2 }
 0x533   : > { %4681 = vst.msk [vmem:[#allocation4 + $0x90] sm:$0xff] %vm2115_vm5, %v4588_v5  ;;  %6393 = vmatmul.f32.gmra.mxu1 %v5625_v60 }
 0x534   : > { %4873 = vst.msk [vmem:[#allocation4 + $0x90] sm:$0xff] %vm2308_vm6, %v4780_v58  ;;  %6364 = vmatmul.f32.gmra.mxu3 %v5820_v16  ;;  %v5632_v58 = vld [vmem:[#allocation4 + $0xc0] sm:$0xff]  ;;  %v12764_v60 = vpop.f32.mrf.mxu3 }
 0x535   : > { %4603 = vrot.lane.b32.xlu1 %v5360_v19, %s15283_s16  ;;  %v12770_v16 = vld [vmem:[#allocation3 + $0xda] sm:$0xff] }
 0x536   : > { %4793 = vrot.lane.b32.xlu2 %v4720_v2, %s15291_s24  ;;  %v5619_v2 = vld [vmem:[#allocation4 + $0x58] sm:$0xff] }
 0x537   : > { %5050 = vrot.lane.b32.xlu0 %v11178_v53, %s15293_s14  ;;  %v4590_v25 = vpop.permute.xlu1 %4589  ;;  %v12767_v19 = vpop.f32.mrf.mxu1  ;;  %v5827_v53 = vld [vmem:[#allocation4 + $0x6d8] sm:$0xff] }
 0x538   : > { %v5423_v5 = vpop.permute.xlu2 %5422  ;;  %15299 = vst [vmem:[#allocation28_spill] sm:$0xff] %v12767_v19 }
 0x539   : > { %v5037_v50 = vpop.permute.xlu0 %5036 }
 0x53a   : > { %5130 = vst.msk [vmem:[#allocation4 + $0x98] sm:$0xff] %vm1922_vm4, %v5037_v50  ;;  %6500 = vmatmul.f32.vlgmr.msra.gmra.mxu2 %v5612_v37  ;;  %v5361_v37 = vld [vmem:[#allocation3 + $0xcb] sm:$0xff] }
 0x53b   : > { %5322 = vst.msk [vmem:[#allocation4 + $0x98] sm:$0xff] %vm2115_vm5, %v5229_v12  ;;  %6396 = vmatmul.f32.gmra.mxu1 %v5632_v58  ;;  %v12777_v58 = vpop.f32.mrf.mxu2  ;;  %v5626_v47 = vld [vmem:[#allocation4 + $0x90] sm:$0xff] }
 0x53c   : > { %5514 = vst.msk [vmem:[#allocation4 + $0x98] sm:$0xff] %vm2308_vm6, %v5421_v40  ;;  %6367 = vmatmul.f32.gmra.mxu3 %v5827_v53  ;;  %v5639_v53 = vld [vmem:[#allocation4 + $0xf8] sm:$0xff]  ;;  %v12780_v19 = vpop.f32.mrf.mxu3 }
 0x53d   : > { %5244 = vrot.lane.b32.xlu1 %v12770_v16, %s15283_s16  ;;  %15300 = vst [vmem:[#allocation29_spill] sm:$0xff] %v12777_v58 }
 0x53e   : > { %5434 = vrot.lane.b32.xlu2 %v5361_v37, %s15291_s24 }
 0x53f   : > { %4411 = vrot.lane.b32.xlu0 %v12695_v15, %s15293_s14  ;;  %v5231_v50 = vpop.permute.xlu1 %5230  ;;  %v5613_v15 = vld [vmem:[#allocation4 + $0x28] sm:$0xff]  ;;  %v12784_v1 = vpop.f32.mrf.mxu1 }
 0x540   : > { %v4784_v40 = vpop.permute.xlu2 %4783  ;;  %15301 = vst [vmem:[#allocation30_spill] sm:$0xff] %v12784_v1 }
 0x541   : > { %v4398_v12 = vpop.permute.xlu0 %4397 }
 0x542   : > { %4490 = vst.msk [vmem:[#allocation4 + $0xc8] sm:$0xff] %vm1922_vm4, %v4398_v12  ;;  %6503 = vmatmul.f32.gmra.mxu2 %v5619_v2  ;;  %v4721_v12 = vld [vmem:[#allocation3 + $0xc4] sm:$0xff] }
 0x543   : > { %4682 = vst.msk [vmem:[#allocation4 + $0xc8] sm:$0xff] %vm2115_vm5, %v4590_v25  ;;  %6399 = vmatmul.f32.gmra.mxu1 %v5639_v53  ;;  %v12790_v56 = vpop.f32.mrf.mxu2  ;;  %v5646_v25 = vld [vmem:[#allocation4 + $0x130] sm:$0xff]  ;;  %v12797_v53 = vld [vmem:[#allocation3 + $0xe2] sm:$0xff]  ;;  %v5627_v1 = vld [vmem:[#allocation4 + $0x98] sm:$0xff] }
 0x544   : > { %4874 = vst.msk [vmem:[#allocation4 + $0xc8] sm:$0xff] %vm2308_vm6, %v4782_v23  ;;  %6613 = vmatmul.f32.vlgmr.msra.gmra.mxu3 %v5613_v15 }
 0x545   : > { %4605 = vrot.lane.b32.xlu1 %v5361_v37, %s15283_s16  ;;  %v5620_v37 = vld [vmem:[#allocation4 + $0x60] sm:$0xff] }
 0x546   : > { %4795 = vrot.lane.b32.xlu2 %v4721_v12, %s15291_s24 }
 0x547   : > { %5052 = vrot.lane.b32.xlu0 %v11331_v39, %s15293_s14  ;;  %v4592_v2 = vpop.permute.xlu1 %4591  ;;  %v12795_v39 = vpop.f32.mrf.mxu3 }
 0x548   : > { %v5425_v23 = vpop.permute.xlu2 %5424  ;;  %15302 = vst [vmem:[#allocation31_spill] sm:$0xff] %v12795_v39  ;;  %v12799_v15 = vpop.f32.mrf.mxu1 }
 0x549   : > { %v5039_v9 = vpop.permute.xlu0 %5038  ;;  %15303 = vst [vmem:[#allocation32_spill] sm:$0xff] %v12799_v15 }
 0x54a   : > { %5131 = vst.msk [vmem:[#allocation4 + $0xd0] sm:$0xff] %vm1922_vm4, %v5039_v9  ;;  %6506 = vmatmul.f32.gmra.mxu2 %v5626_v47  ;;  %v5362_v9 = vld [vmem:[#allocation3 + $0xdb] sm:$0xff] }
 0x54b   : > { %5323 = vst.msk [vmem:[#allocation4 + $0xd0] sm:$0xff] %vm2115_vm5, %v5231_v50  ;;  %6402 = vmatmul.f32.gmra.mxu1 %v5646_v25  ;;  %v12806_v12 = vpop.f32.mrf.mxu2 }
 0x54c   : > { %5515 = vst.msk [vmem:[#allocation4 + $0xd0] sm:$0xff] %vm2308_vm6, %v5423_v5  ;;  %6616 = vmatmul.f32.gmra.mxu3 %v5620_v37  ;;  %v5633_v5 = vld [vmem:[#allocation4 + $0xc8] sm:$0xff] }
 0x54d   : > { %5246 = vrot.lane.b32.xlu1 %v12797_v53, %s15283_s16  ;;  %15304 = vst [vmem:[#allocation33_spill] sm:$0xff] %v12806_v12  ;;  %v5653_v37 = vld [vmem:[#allocation4 + $0x168] sm:$0xff] }
 0x54e   : > { %5436 = vrot.lane.b32.xlu2 %v5362_v9, %s15291_s24 }
 0x54f   : > { %4413 = vrot.lane.b32.xlu0 %v12741_v34, %s15293_s14  ;;  %v5233_v47 = vpop.permute.xlu1 %5232  ;;  %v12811_v34 = vpop.f32.mrf.mxu3 }
 0x550   : > { %v4786_v25 = vpop.permute.xlu2 %4785  ;;  %v12813_v15 = vpop.f32.mrf.mxu1 }
 0x551   : > { %v4400_v50 = vpop.permute.xlu0 %4399  ;;  %15305 = vst [vmem:[#allocation34_spill] sm:$0xff] %v12813_v15 }
 0x552   : > { %4491 = vst.msk [vmem:[#allocation4 + $0x100] sm:$0xff] %vm1922_vm4, %v4400_v50  ;;  %6509 = vmatmul.f32.gmra.mxu2 %v5633_v5  ;;  %v4722_v50 = vld [vmem:[#allocation3 + $0xcc] sm:$0xff] }
 0x553   : > { %4683 = vst.msk [vmem:[#allocation4 + $0x100] sm:$0xff] %vm2115_vm5, %v4592_v2  ;;  %6405 = vmatmul.f32.gmra.mxu1 %v5653_v37  ;;  %v12821_v37 = vpop.f32.mrf.mxu2 }
 0x554   : > { %4875 = vst.msk [vmem:[#allocation4 + $0x100] sm:$0xff] %vm2308_vm6, %v4784_v40  ;;  %6619 = vmatmul.f32.gmra.mxu3 %v5627_v1  ;;  %v5660_v40 = vld [vmem:[#allocation4 + $0x1a0] sm:$0xff] }
 0x555   : > { %4607 = vrot.lane.b32.xlu1 %v5362_v9, %s15283_s16  ;;  %15306 = vst [vmem:[#allocation35_spill] sm:$0xff] %v12821_v37  ;;  %v5634_v9 = vld [vmem:[#allocation4 + $0xd0] sm:$0xff] }
 0x556   : > { %4797 = vrot.lane.b32.xlu2 %v4722_v50, %s15291_s24  ;;  %v12826_v50 = vld [vmem:[#allocation3 + $0xf2] sm:$0xff] }
 0x557   : > { %5054 = vrot.lane.b32.xlu0 %v11358_v28, %s15293_s14  ;;  %v4594_v5 = vpop.permute.xlu1 %4593  ;;  %v12824_v28 = vpop.f32.mrf.mxu3 }
 0x558   : > { %v5427_v2 = vpop.permute.xlu2 %5426  ;;  %15307 = vst [vmem:[#allocation36_spill] sm:$0xff] %v12824_v28  ;;  %v12828_v15 = vpop.f32.mrf.mxu1  ;;  %v5674_v28 = vld [vmem:[#allocation4 + $0x210] sm:$0xff] }
 0x559   : > { %v5041_v39 = vpop.permute.xlu0 %5040  ;;  %15308 = vst [vmem:[#allocation37_spill] sm:$0xff] %v12828_v15  ;;  %v5930_v15 = vld [vmem:[%s15252_s3 + $0x310] sm:$0xff] }
 0x55a   : > { %5132 = vst.msk [vmem:[#allocation4 + $0x108] sm:$0xff] %vm1922_vm4, %v5041_v39  ;;  %v5363_v39 = vld [vmem:[#allocation3 + $0xe3] sm:$0xff]  ;;  %6723 = vmatpush.msrb.mxu1 %v5930_v15 }
 0x55b   : > { %5324 = vst.msk [vmem:[#allocation4 + $0x108] sm:$0xff] %vm2115_vm5, %v5233_v47  ;;  %6408 = vmatmul.f32.gmra.mxu1 %v5660_v40  ;;  %v5640_v1 = vld [vmem:[#allocation4 + $0x100] sm:$0xff] }
 0x55c   : > { %5516 = vst.msk [vmem:[#allocation4 + $0x108] sm:$0xff] %vm2308_vm6, %v5425_v23  ;;  %6512 = vmatmul.f32.gmra.mxu2 %v5640_v1  ;;  %6622 = vmatmul.f32.gmra.mxu3 %v5634_v9  ;;  %v5667_v1 = vld [vmem:[#allocation4 + $0x1d8] sm:$0xff] }
 0x55d   : > { %5248 = vrot.lane.b32.xlu1 %v12826_v50, %s15283_s16 }
 0x55e   : > { %5438 = vrot.lane.b32.xlu2 %v5363_v39, %s15291_s24 }
 0x55f   : > { %4415 = vrot.lane.b32.xlu0 %v12770_v16, %s15293_s14  ;;  %v5235_v47 = vpop.permute.xlu1 %5234  ;;  %v12841_v16 = vpop.f32.mrf.mxu3 }
 0x560   : > { %v4788_v40 = vpop.permute.xlu2 %4787  ;;  %15309 = vst [vmem:[#allocation38_spill] sm:$0xff] %v12841_v16  ;;  %v12843_v37 = vpop.f32.mrf.mxu1 }
 0x561   : > { %v4402_v23 = vpop.permute.xlu0 %4401  ;;  %15310 = vst [vmem:[#allocation39_spill] sm:$0xff] %v12843_v37 }
 0x562   : > { %4492 = vst.msk [vmem:[#allocation4 + $0x138] sm:$0xff] %vm1922_vm4, %v4402_v23 }
 0x563   : > { %4684 = vst.msk [vmem:[#allocation4 + $0x138] sm:$0xff] %vm2115_vm5, %v4594_v5  ;;  %6411 = vmatmul.f32.gmra.mxu1 %v5667_v1  ;;  %v5641_v9 = vld [vmem:[#allocation4 + $0x108] sm:$0xff]  ;;  %v4723_v5 = vld [vmem:[#allocation3 + $0xdc] sm:$0xff] }
 0x564   : > { %4876 = vst.msk [vmem:[#allocation4 + $0x138] sm:$0xff] %vm2308_vm6, %v4786_v25  ;;  %6625 = vmatmul.f32.gmra.mxu3 %v5641_v9  ;;  %v12851_v9 = vpop.f32.mrf.mxu2 }
 0x565   : > { %4609 = vrot.lane.b32.xlu1 %v5363_v39, %s15283_s16  ;;  %15311 = vst [vmem:[#allocation40_spill] sm:$0xff] %v12851_v9  ;;  %v12854_v39 = vld [vmem:[#allocation3 + $0xfa] sm:$0xff] }
 0x566   : > { %4799 = vrot.lane.b32.xlu2 %v4723_v5, %s15291_s24  ;;  %v5364_v5 = vld [vmem:[#allocation3 + $0xf3] sm:$0xff] }
 0x567   : > { %5056 = vrot.lane.b32.xlu0 %v11493_v46, %s15293_s14  ;;  %v4596_v23 = vpop.permute.xlu1 %4595  ;;  %v12865_v37 = vpop.f32.mrf.mxu3 }
 0x568   : > { %v5429_v1 = vpop.permute.xlu2 %5428  ;;  %v12856_v46 = vpop.f32.mrf.mxu1  ;;  %15313 = vst [vmem:[#allocation42_spill] sm:$0xff] %v12865_v37 }
 0x569   : > { %v5043_v25 = vpop.permute.xlu0 %5042  ;;  %15312 = vst [vmem:[#allocation41_spill] sm:$0xff] %v12856_v46 }
 0x56a   : > { %5133 = vst.msk [vmem:[#allocation4 + $0x140] sm:$0xff] %vm1922_vm4, %v5043_v25 }
 0x56b   : > { %5325 = vst.msk [vmem:[#allocation4 + $0x140] sm:$0xff] %vm2115_vm5, %v5235_v47  ;;  %6414 = vmatmul.f32.gmra.mxu1 %v5674_v28  ;;  %v5647_v15 = vld [vmem:[#allocation4 + $0x138] sm:$0xff] }
 0x56c   : > { %5517 = vst.msk [vmem:[#allocation4 + $0x140] sm:$0xff] %vm2308_vm6, %v5427_v2  ;;  %6515 = vmatmul.f32.gmra.mxu2 %v5647_v15  ;;  %v5681_v2 = vld [vmem:[#allocation4 + $0x248] sm:$0xff] }
 0x56d   : > { %5250 = vrot.lane.b32.xlu1 %v12854_v39, %s15283_s16 }
 0x56e   : > { %5440 = vrot.lane.b32.xlu2 %v5364_v5, %s15291_s24 }
 0x56f   : > { %4417 = vrot.lane.b32.xlu0 %v12797_v53, %s15293_s14  ;;  %v5237_v28 = vpop.permute.xlu1 %5236  ;;  %v4724_v53 = vld [vmem:[#allocation3 + $0xe4] sm:$0xff] }
 0x570   : > { %v4790_v25 = vpop.permute.xlu2 %4789  ;;  %v12871_v46 = vpop.f32.mrf.mxu1 }
 0x571   : > { %v4404_v47 = vpop.permute.xlu0 %4403  ;;  %15314 = vst [vmem:[#allocation43_spill] sm:$0xff] %v12871_v46  ;;  %v12890_v46 = vpop.f32.mrf.mxu3 }
 0x572   : > { %4493 = vst.msk [vmem:[#allocation4 + $0x170] sm:$0xff] %vm1922_vm4, %v4404_v47 }
 0x573   : > { %4685 = vst.msk [vmem:[#allocation4 + $0x170] sm:$0xff] %vm2115_vm5, %v4596_v23  ;;  %6417 = vmatmul.f32.gmra.mxu1 %v5681_v2  ;;  %v5648_v15 = vld [vmem:[#allocation4 + $0x140] sm:$0xff] }
 0x574   : > { %4877 = vst.msk [vmem:[#allocation4 + $0x170] sm:$0xff] %vm2308_vm6, %v4788_v40  ;;  %6628 = vmatmul.f32.gmra.mxu3 %v5648_v15  ;;  %v5688_v2 = vld [vmem:[#allocation4 + $0x280] sm:$0xff]  ;;  %v12876_v15 = vpop.f32.mrf.mxu2 }
 0x575   : > { %4611 = vrot.lane.b32.xlu1 %v5364_v5, %s15283_s16  ;;  %15315 = vst [vmem:[#allocation44_spill] sm:$0xff] %v12876_v15 }
 0x576   : > { %4801 = vrot.lane.b32.xlu2 %v4724_v53, %s15291_s24  ;;  %15317 = vst [vmem:[#allocation46_spill] sm:$0xff] %v12890_v46 }
 0x577   : > { %5058 = vrot.lane.b32.xlu0 %v11518_v13, %s15293_s14  ;;  %v4598_v47 = vpop.permute.xlu1 %4597  ;;  %v12879_v13 = vld [vmem:[#allocation3 + $0x10a] sm:$0xff] }
 0x578   : > { %v5431_v23 = vpop.permute.xlu2 %5430  ;;  %v12885_v5 = vpop.f32.mrf.mxu1 }
 0x579   : > { %v5045_v9 = vpop.permute.xlu0 %5044  ;;  %15316 = vst [vmem:[#allocation45_spill] sm:$0xff] %v12885_v5 }
 0x57a   : > { %5134 = vst.msk [vmem:[#allocation4 + $0x178] sm:$0xff] %vm1922_vm4, %v5045_v9  ;;  %v5365_v9 = vld [vmem:[#allocation3 + $0xfb] sm:$0xff] }
 0x57b   : > { %5326 = vst.msk [vmem:[#allocation4 + $0x178] sm:$0xff] %vm2115_vm5, %v5237_v28  ;;  %6420 = vmatmul.f32.gmra.mxu1 %v5688_v2  ;;  %v5654_v40 = vld [vmem:[#allocation4 + $0x170] sm:$0xff] }
 0x57c   : > { %5518 = vst.msk [vmem:[#allocation4 + $0x178] sm:$0xff] %vm2308_vm6, %v5429_v1  ;;  %6518 = vmatmul.f32.gmra.mxu2 %v5654_v40  ;;  %v5695_v1 = vld [vmem:[#allocation4 + $0x2b8] sm:$0xff] }
 0x57d   : > { %5252 = vrot.lane.b32.xlu1 %v12879_v13, %s15283_s16 }
 0x57e   : > { %5442 = vrot.lane.b32.xlu2 %v5365_v9, %s15291_s24 }
 0x57f   : > { %4419 = vrot.lane.b32.xlu0 %v12826_v50, %s15293_s14  ;;  %v5239_v28 = vpop.permute.xlu1 %5238  ;;  %v4725_v50 = vld [vmem:[#allocation3 + $0xf4] sm:$0xff] }
 0x580   : > { %v4792_v2 = vpop.permute.xlu2 %4791  ;;  %v12896_v5 = vpop.f32.mrf.mxu1 }
 0x581   : > { %v4406_v53 = vpop.permute.xlu0 %4405  ;;  %15318 = vst [vmem:[#allocation47_spill] sm:$0xff] %v12896_v5  ;;  %v12915_v5 = vpop.f32.mrf.mxu3 }
 0x582   : > { %4494 = vst.msk [vmem:[#allocation4 + $0x1a8] sm:$0xff] %vm1922_vm4, %v4406_v53 }
 0x583   : > { %4686 = vst.msk [vmem:[#allocation4 + $0x1a8] sm:$0xff] %vm2115_vm5, %v4598_v47  ;;  %6423 = vmatmul.f32.gmra.mxu1 %v5695_v1  ;;  %v5655_v40 = vld [vmem:[#allocation4 + $0x178] sm:$0xff]  ;;  %v5702_v1 = vld [vmem:[#allocation4 + $0x2f0] sm:$0xff] }
 0x584   : > { %4878 = vst.msk [vmem:[#allocation4 + $0x1a8] sm:$0xff] %vm2308_vm6, %v4790_v25  ;;  %6631 = vmatmul.f32.gmra.mxu3 %v5655_v40  ;;  %v12901_v40 = vpop.f32.mrf.mxu2 }
 0x585   : > { %4613 = vrot.lane.b32.xlu1 %v5365_v9, %s15283_s16  ;;  %15319 = vst [vmem:[#allocation48_spill] sm:$0xff] %v12901_v40 }
 0x586   : > { %4803 = vrot.lane.b32.xlu2 %v4725_v50, %s15291_s24  ;;  %15321 = vst [vmem:[#allocation50_spill] sm:$0xff] %v12915_v5 }
 0x587   : > { %5060 = vrot.lane.b32.xlu0 %v11651_v7, %s15293_s14  ;;  %v4600_v53 = vpop.permute.xlu1 %4599  ;;  %v12904_v7 = vld [vmem:[#allocation3 + $0x112] sm:$0xff] }
 0x588   : > { %v5433_v47 = vpop.permute.xlu2 %5432  ;;  %v12910_v9 = vpop.f32.mrf.mxu1 }
 0x589   : > { %v5047_v37 = vpop.permute.xlu0 %5046  ;;  %15320 = vst [vmem:[#allocation49_spill] sm:$0xff] %v12910_v9 }
 0x58a   : > { %5135 = vst.msk [vmem:[#allocation4 + $0x1b0] sm:$0xff] %vm1922_vm4, %v5047_v37  ;;  %v5366_v37 = vld [vmem:[#allocation3 + $0x10b] sm:$0xff] }
 0x58b   : > { %5327 = vst.msk [vmem:[#allocation4 + $0x1b0] sm:$0xff] %vm2115_vm5, %v5239_v28  ;;  %6426 = vmatmul.f32.gmra.mxu1 %v5702_v1  ;;  %v5661_v25 = vld [vmem:[#allocation4 + $0x1a8] sm:$0xff] }
 0x58c   : > { %5519 = vst.msk [vmem:[#allocation4 + $0x1b0] sm:$0xff] %vm2308_vm6, %v5431_v23  ;;  %6521 = vmatmul.f32.gmra.mxu2 %v5661_v25  ;;  %v5709_v23 = vld [vmem:[#allocation4 + $0x328] sm:$0xff] }
 0x58d   : > { %5254 = vrot.lane.b32.xlu1 %v12904_v7, %s15283_s16 }
 0x58e   : > { %5444 = vrot.lane.b32.xlu2 %v5366_v37, %s15291_s24 }
 0x58f   : > { %4421 = vrot.lane.b32.xlu0 %v12854_v39, %s15293_s14  ;;  %v5241_v28 = vpop.permute.xlu1 %5240  ;;  %v4726_v39 = vld [vmem:[#allocation3 + $0xfc] sm:$0xff] }
 0x590   : > { %v4794_v1 = vpop.permute.xlu2 %4793 }
 0x591   : > { %v4408_v50 = vpop.permute.xlu0 %4407 }
 0x592   : > { %4495 = vst.msk [vmem:[#allocation4 + $0x1e0] sm:$0xff] %vm1922_vm4, %v4408_v50 }
 0x593   : > { %4687 = vst.msk [vmem:[#allocation4 + $0x1e0] sm:$0xff] %vm2115_vm5, %v4600_v53  ;;  %6429 = vmatmul.f32.gmra.mxu1 %v5709_v23  ;;  %v5662_v25 = vld [vmem:[#allocation4 + $0x1b0] sm:$0xff]  ;;  %v5716_v23 = vld [vmem:[#allocation4 + $0x360] sm:$0xff] }
 0x594   : > { %4879 = vst.msk [vmem:[#allocation4 + $0x1e0] sm:$0xff] %vm2308_vm6, %v4792_v2  ;;  %6634 = vmatmul.f32.gmra.mxu3 %v5662_v25  ;;  %v12926_v25 = vpop.f32.mrf.mxu2 }
 0x595   : > { %4615 = vrot.lane.b32.xlu1 %v5366_v37, %s15283_s16  ;;  %15323 = vst [vmem:[#allocation52_spill] sm:$0xff] %v12926_v25 }
 0x596   : > { %4805 = vrot.lane.b32.xlu2 %v4726_v39, %s15291_s24 }
 0x597   : > { %5062 = vrot.lane.b32.xlu0 %v11653_v11, %s15293_s14  ;;  %v4602_v9 = vpop.permute.xlu1 %4601  ;;  %v12929_v11 = vld [vmem:[#allocation3 + $0x122] sm:$0xff] }
 0x598   : > { %v12922_v50 = vpop.f32.mrf.mxu1  ;;  %v5435_v53 = vpop.permute.xlu2 %5434 }
 0x599   : > { %15322 = vst [vmem:[#allocation51_spill] sm:$0xff] %v12922_v50  ;;  %v5049_v40 = vpop.permute.xlu0 %5048  ;;  %v12940_v50 = vpop.f32.mrf.mxu3 }
 0x59a   : > { %5136 = vst.msk [vmem:[#allocation4 + $0x1e8] sm:$0xff] %vm1922_vm4, %v5049_v40  ;;  %v5367_v40 = vld [vmem:[#allocation3 + $0x113] sm:$0xff] }
 0x59b   : > { %5328 = vst.msk [vmem:[#allocation4 + $0x1e8] sm:$0xff] %vm2115_vm5, %v5241_v28  ;;  %6432 = vmatmul.f32.gmra.mxu1 %v5716_v23  ;;  %v5668_v2 = vld [vmem:[#allocation4 + $0x1e0] sm:$0xff] }
 0x59c   : > { %5520 = vst.msk [vmem:[#allocation4 + $0x1e8] sm:$0xff] %vm2308_vm6, %v5433_v47  ;;  %6524 = vmatmul.f32.gmra.mxu2 %v5668_v2  ;;  %v5723_v47 = vld [vmem:[#allocation4 + $0x398] sm:$0xff]  ;;  %v12954_v25 = vpop.f32.mrf.mxu2 }
 0x59d   : > { %5256 = vrot.lane.b32.xlu1 %v12929_v11, %s15283_s16  ;;  %15324 = vst [vmem:[#allocation53_spill] sm:$0xff] %v12940_v50 }
 0x59e   : > { %5446 = vrot.lane.b32.xlu2 %v5367_v40, %s15291_s24  ;;  %15325 = vst [vmem:[#allocation54_spill] sm:$0xff] %v12954_v25 }
 0x59f   : > { %4423 = vrot.lane.b32.xlu0 %v12879_v13, %s15293_s14  ;;  %v5243_v28 = vpop.permute.xlu1 %5242  ;;  %v5929_v13 = vld [vmem:[%s15252_s3 + $0x308] sm:$0xff] }
 0x5a0   : > { %v12936_v37 = vpop.f32.mrf.mxu1  ;;  %v4796_v23 = vpop.permute.xlu2 %4795  ;;  %6724 = vmatpush.msrb.mxu1 %v5929_v13 }
 0x5a1   : > { %v4410_v39 = vpop.permute.xlu0 %4409  ;;  %v12968_v25 = vpop.f32.mrf.mxu3 }
 0x5a2   : > { %4496 = vst.msk [vmem:[#allocation4 + $0x218] sm:$0xff] %vm1922_vm4, %v4410_v39  ;;  %v4727_v39 = vld [vmem:[#allocation3 + $0x10c] sm:$0xff] }
 0x5a3   : > { %4688 = vst.msk [vmem:[#allocation4 + $0x218] sm:$0xff] %vm2115_vm5, %v4602_v9  ;;  %6435 = vmatmul.f32.gmra.mxu1 %v5723_v47  ;;  %v5669_v2 = vld [vmem:[#allocation4 + $0x1e8] sm:$0xff] }
 0x5a4   : > { %4880 = vst.msk [vmem:[#allocation4 + $0x218] sm:$0xff] %vm2308_vm6, %v4794_v1  ;;  %6637 = vmatmul.f32.gmra.mxu3 %v5669_v2  ;;  %v5730_v2 = vld [vmem:[#allocation4 + $0x3d0] sm:$0xff] }
 0x5a5   : > { %4617 = vrot.lane.b32.xlu1 %v5367_v40, %s15283_s16  ;;  %15326 = vst [vmem:[#allocation55_spill] sm:$0xff] %v12968_v25 }
 0x5a6   : > { %4807 = vrot.lane.b32.xlu2 %v4727_v39, %s15291_s24 }
 0x5a7   : > { %5064 = vrot.lane.b32.xlu0 %v11808_v63, %s15293_s14  ;;  %v4604_v47 = vpop.permute.xlu1 %4603  ;;  %v12957_v63 = vld [vmem:[#allocation3 + $0x12a] sm:$0xff] }
 0x5a8   : > { %v12950_v9 = vpop.f32.mrf.mxu1  ;;  %v5437_v1 = vpop.permute.xlu2 %5436 }
 0x5a9   : > { %v5051_v50 = vpop.permute.xlu0 %5050  ;;  %v12993_v25 = vpop.f32.mrf.mxu3 }
 0x5aa   : > { %5137 = vst.msk [vmem:[#allocation4 + $0x220] sm:$0xff] %vm1922_vm4, %v5051_v50  ;;  %v5368_v50 = vld [vmem:[#allocation3 + $0x123] sm:$0xff] }
 0x5ab   : > { %5329 = vst.msk [vmem:[#allocation4 + $0x220] sm:$0xff] %vm2115_vm5, %v5243_v28  ;;  %6438 = vmatmul.f32.gmra.mxu1 %v5730_v2  ;;  %v5675_v40 = vld [vmem:[#allocation4 + $0x218] sm:$0xff] }
 0x5ac   : > { %5521 = vst.msk [vmem:[#allocation4 + $0x220] sm:$0xff] %vm2308_vm6, %v5435_v53  ;;  %6527 = vmatmul.f32.gmra.mxu2 %v5675_v40  ;;  %v5737_v53 = vld [vmem:[#allocation4 + $0x408] sm:$0xff] }
 0x5ad   : > { %5258 = vrot.lane.b32.xlu1 %v12957_v63, %s15283_s16  ;;  %15328 = vst [vmem:[#allocation57_spill] sm:$0xff] %v12993_v25 }
 0x5ae   : > { %5448 = vrot.lane.b32.xlu2 %v5368_v50, %s15291_s24 }
 0x5af   : > { %4425 = vrot.lane.b32.xlu0 %v12904_v7, %s15293_s14  ;;  %v5245_v28 = vpop.permute.xlu1 %5244  ;;  %v4728_v7 = vld [vmem:[#allocation3 + $0x114] sm:$0xff] }
 0x5b0   : > { %v12964_v13 = vpop.f32.mrf.mxu1  ;;  %v4798_v2 = vpop.permute.xlu2 %4797 }
 0x5b1   : > { %v4412_v39 = vpop.permute.xlu0 %4411 }
 0x5b2   : > { %4497 = vst.msk [vmem:[#allocation4 + $0x250] sm:$0xff] %vm1922_vm4, %v4412_v39 }
 0x5b3   : > { %4689 = vst.msk [vmem:[#allocation4 + $0x250] sm:$0xff] %vm2115_vm5, %v4604_v47  ;;  %6441 = vmatmul.f32.gmra.mxu1 %v5737_v53  ;;  %v5676_v40 = vld [vmem:[#allocation4 + $0x220] sm:$0xff] }
 0x5b4   : > { %4881 = vst.msk [vmem:[#allocation4 + $0x250] sm:$0xff] %vm2308_vm6, %v4796_v23  ;;  %6640 = vmatmul.f32.gmra.mxu3 %v5676_v40  ;;  %v5744_v53 = vld [vmem:[#allocation4 + $0x440] sm:$0xff]  ;;  %v12979_v40 = vpop.f32.mrf.mxu2 }
 0x5b5   : > { %4619 = vrot.lane.b32.xlu1 %v5368_v50, %s15283_s16  ;;  %15327 = vst [vmem:[#allocation56_spill] sm:$0xff] %v12979_v40 }
 0x5b6   : > { %4809 = vrot.lane.b32.xlu2 %v4728_v7, %s15291_s24 }
 0x5b7   : > { %5066 = vrot.lane.b32.xlu0 %v11835_v62, %s15293_s14  ;;  %v4606_v5 = vpop.permute.xlu1 %4605  ;;  %v12982_v62 = vld [vmem:[#allocation3 + $0x13a] sm:$0xff] }
 0x5b8   : > { %v12975_v39 = vpop.f32.mrf.mxu1  ;;  %v5439_v47 = vpop.permute.xlu2 %5438 }
 0x5b9   : > { %v5053_v46 = vpop.permute.xlu0 %5052 }
 0x5ba   : > { %5138 = vst.msk [vmem:[#allocation4 + $0x258] sm:$0xff] %vm1922_vm4, %v5053_v46  ;;  %v5369_v46 = vld [vmem:[#allocation3 + $0x12b] sm:$0xff] }
 0x5bb   : > { %5330 = vst.msk [vmem:[#allocation4 + $0x258] sm:$0xff] %vm2115_vm5, %v5245_v28  ;;  %6444 = vmatmul.f32.gmra.mxu1 %v5744_v53  ;;  %v5682_v23 = vld [vmem:[#allocation4 + $0x250] sm:$0xff] }
 0x5bc   : > { %5522 = vst.msk [vmem:[#allocation4 + $0x258] sm:$0xff] %vm2308_vm6, %v5437_v1  ;;  %6530 = vmatmul.f32.gmra.mxu2 %v5682_v23  ;;  %v5751_v1 = vld [vmem:[#allocation4 + $0x478] sm:$0xff] }
 0x5bd   : > { %5260 = vrot.lane.b32.xlu1 %v12982_v62, %s15283_s16 }
 0x5be   : > { %5450 = vrot.lane.b32.xlu2 %v5369_v46, %s15291_s24 }
 0x5bf   : > { %4427 = vrot.lane.b32.xlu0 %v12929_v11, %s15293_s14  ;;  %v5247_v28 = vpop.permute.xlu1 %5246  ;;  %v4729_v11 = vld [vmem:[#allocation3 + $0x124] sm:$0xff] }
 0x5c0   : > { %v12989_v50 = vpop.f32.mrf.mxu1  ;;  %v4800_v53 = vpop.permute.xlu2 %4799 }
 0x5c1   : > { %v4414_v7 = vpop.permute.xlu0 %4413 }
 0x5c2   : > { %4498 = vst.msk [vmem:[#allocation4 + $0x288] sm:$0xff] %vm1922_vm4, %v4414_v7 }
 0x5c3   : > { %4690 = vst.msk [vmem:[#allocation4 + $0x288] sm:$0xff] %vm2115_vm5, %v4606_v5  ;;  %6447 = vmatmul.f32.gmra.mxu1 %v5751_v1  ;;  %v5683_v23 = vld [vmem:[#allocation4 + $0x258] sm:$0xff]  ;;  %v5758_v1 = vld [vmem:[#allocation4 + $0x4b0] sm:$0xff] }
 0x5c4   : > { %4882 = vst.msk [vmem:[#allocation4 + $0x288] sm:$0xff] %vm2308_vm6, %v4798_v2  ;;  %6643 = vmatmul.f32.gmra.mxu3 %v5683_v23  ;;  %v13004_v23 = vpop.f32.mrf.mxu2 }
 0x5c5   : > { %4621 = vrot.lane.b32.xlu1 %v5369_v46, %s15283_s16  ;;  %15329 = vst [vmem:[#allocation58_spill] sm:$0xff] %v13004_v23  ;;  %v13018_v23 = vpop.f32.mrf.mxu3 }
 0x5c6   : > { %4811 = vrot.lane.b32.xlu2 %v4729_v11, %s15291_s24  ;;  %15330 = vst [vmem:[#allocation59_spill] sm:$0xff] %v13018_v23 }
 0x5c7   : > { %5068 = vrot.lane.b32.xlu0 %v11964_v18, %s15293_s14  ;;  %v4608_v40 = vpop.permute.xlu1 %4607  ;;  %v13007_v18 = vld [vmem:[#allocation3 + $0x142] sm:$0xff] }
 0x5c8   : > { %v13000_v7 = vpop.f32.mrf.mxu1  ;;  %v5441_v5 = vpop.permute.xlu2 %5440 }
 0x5c9   : > { %v5055_v16 = vpop.permute.xlu0 %5054 }
 0x5ca   : > { %5139 = vst.msk [vmem:[#allocation4 + $0x290] sm:$0xff] %vm1922_vm4, %v5055_v16  ;;  %v5370_v16 = vld [vmem:[#allocation3 + $0x13b] sm:$0xff] }
 0x5cb   : > { %5331 = vst.msk [vmem:[#allocation4 + $0x290] sm:$0xff] %vm2115_vm5, %v5247_v28  ;;  %6450 = vmatmul.f32.gmra.mxu1 %v5758_v1  ;;  %v5689_v2 = vld [vmem:[#allocation4 + $0x288] sm:$0xff] }
 0x5cc   : > { %5523 = vst.msk [vmem:[#allocation4 + $0x290] sm:$0xff] %vm2308_vm6, %v5439_v47  ;;  %6533 = vmatmul.f32.gmra.mxu2 %v5689_v2  ;;  %v5765_v47 = vld [vmem:[#allocation4 + $0x4e8] sm:$0xff] }
 0x5cd   : > { %5262 = vrot.lane.b32.xlu1 %v13007_v18, %s15283_s16 }
 0x5ce   : > { %5452 = vrot.lane.b32.xlu2 %v5370_v16, %s15291_s24 }
 0x5cf   : > { %4429 = vrot.lane.b32.xlu0 %v12957_v63, %s15293_s14  ;;  %v5249_v28 = vpop.permute.xlu1 %5248  ;;  %v4730_v63 = vld [vmem:[#allocation3 + $0x12c] sm:$0xff] }
 0x5d0   : > { %v13014_v46 = vpop.f32.mrf.mxu1  ;;  %v4802_v1 = vpop.permute.xlu2 %4801 }
 0x5d1   : > { %v4416_v11 = vpop.permute.xlu0 %4415 }
 0x5d2   : > { %4499 = vst.msk [vmem:[#allocation4 + $0x2c0] sm:$0xff] %vm1922_vm4, %v4416_v11 }
 0x5d3   : > { %4691 = vst.msk [vmem:[#allocation4 + $0x2c0] sm:$0xff] %vm2115_vm5, %v4608_v40  ;;  %6453 = vmatmul.f32.gmra.mxu1 %v5765_v47  ;;  %v5690_v2 = vld [vmem:[#allocation4 + $0x290] sm:$0xff]  ;;  %v5772_v47 = vld [vmem:[#allocation4 + $0x520] sm:$0xff] }
 0x5d4   : > { %4883 = vst.msk [vmem:[#allocation4 + $0x2c0] sm:$0xff] %vm2308_vm6, %v4800_v53  ;;  %6646 = vmatmul.f32.gmra.mxu3 %v5690_v2  ;;  %v13029_v2 = vpop.f32.mrf.mxu2 }
 0x5d5   : > { %4623 = vrot.lane.b32.xlu1 %v5370_v16, %s15283_s16  ;;  %15331 = vst [vmem:[#allocation60_spill] sm:$0xff] %v13029_v2  ;;  %v13043_v2 = vpop.f32.mrf.mxu3 }
 0x5d6   : > { %4813 = vrot.lane.b32.xlu2 %v4730_v63, %s15291_s24  ;;  %15332 = vst [vmem:[#allocation61_spill] sm:$0xff] %v13043_v2 }
 0x5d7   : > { %5070 = vrot.lane.b32.xlu0 %v11987_v48, %s15293_s14  ;;  %v4610_v25 = vpop.permute.xlu1 %4609  ;;  %v13032_v48 = vld [vmem:[#allocation3 + $0x152] sm:$0xff] }
 0x5d8   : > { %v13025_v11 = vpop.f32.mrf.mxu1  ;;  %v5443_v40 = vpop.permute.xlu2 %5442 }
 0x5d9   : > { %v5057_v15 = vpop.permute.xlu0 %5056 }
 0x5da   : > { %5140 = vst.msk [vmem:[#allocation4 + $0x2c8] sm:$0xff] %vm1922_vm4, %v5057_v15  ;;  %v5371_v15 = vld [vmem:[#allocation3 + $0x143] sm:$0xff] }
 0x5db   : > { %5332 = vst.msk [vmem:[#allocation4 + $0x2c8] sm:$0xff] %vm2115_vm5, %v5249_v28  ;;  %6456 = vmatmul.f32.gmra.mxu1 %v5772_v47  ;;  %v5696_v53 = vld [vmem:[#allocation4 + $0x2c0] sm:$0xff] }
 0x5dc   : > { %5524 = vst.msk [vmem:[#allocation4 + $0x2c8] sm:$0xff] %vm2308_vm6, %v5441_v5  ;;  %6536 = vmatmul.f32.gmra.mxu2 %v5696_v53  ;;  %v5779_v5 = vld [vmem:[#allocation4 + $0x558] sm:$0xff]  ;;  %v13057_v23 = vpop.f32.mrf.mxu2 }
 0x5dd   : > { %5264 = vrot.lane.b32.xlu1 %v13032_v48, %s15283_s16  ;;  %15334 = vst [vmem:[#allocation63_spill] sm:$0xff] %v13057_v23  ;;  %v13071_v23 = vpop.f32.mrf.mxu3 }
 0x5de   : > { %5454 = vrot.lane.b32.xlu2 %v5371_v15, %s15291_s24  ;;  %15335 = vst [vmem:[#allocation64_spill] sm:$0xff] %v13071_v23 }
 0x5df   : > { %4431 = vrot.lane.b32.xlu0 %v12982_v62, %s15293_s14  ;;  %v5251_v28 = vpop.permute.xlu1 %5250  ;;  %v5928_v62 = vld [vmem:[%s15252_s3 + $0x300] sm:$0xff] }
 0x5e0   : > { %v13039_v16 = vpop.f32.mrf.mxu1  ;;  %v4804_v47 = vpop.permute.xlu2 %4803  ;;  %6725 = vmatpush.msrb.mxu1 %v5928_v62 }
 0x5e1   : > { %v4418_v63 = vpop.permute.xlu0 %4417 }
 0x5e2   : > { %4500 = vst.msk [vmem:[#allocation4 + $0x2f8] sm:$0xff] %vm1922_vm4, %v4418_v63  ;;  %v4731_v63 = vld [vmem:[#allocation3 + $0x13c] sm:$0xff] }
 0x5e3   : > { %4692 = vst.msk [vmem:[#allocation4 + $0x2f8] sm:$0xff] %vm2115_vm5, %v4610_v25  ;;  %6459 = vmatmul.f32.gmra.mxu1 %v5779_v5  ;;  %v5697_v53 = vld [vmem:[#allocation4 + $0x2c8] sm:$0xff] }
 0x5e4   : > { %4884 = vst.msk [vmem:[#allocation4 + $0x2f8] sm:$0xff] %vm2308_vm6, %v4802_v1  ;;  %6649 = vmatmul.f32.gmra.mxu3 %v5697_v53  ;;  %v5786_v53 = vld [vmem:[#allocation4 + $0x590] sm:$0xff] }
 0x5e5   : > { %4625 = vrot.lane.b32.xlu1 %v5371_v15, %s15283_s16  ;;  %v13096_v23 = vpop.f32.mrf.mxu3 }
 0x5e6   : > { %4815 = vrot.lane.b32.xlu2 %v4731_v63, %s15291_s24  ;;  %15339 = vst [vmem:[#allocation68_spill] sm:$0xff] %v13096_v23 }
 0x5e7   : > { %5072 = vrot.lane.b32.xlu0 %v12102_v17, %s15293_s14  ;;  %v4612_v5 = vpop.permute.xlu1 %4611  ;;  %v13060_v17 = vld [vmem:[#allocation3 + $0x15a] sm:$0xff] }
 0x5e8   : > { %v13053_v25 = vpop.f32.mrf.mxu1  ;;  %v5445_v1 = vpop.permute.xlu2 %5444 }
 0x5e9   : > { %15333 = vst [vmem:[#allocation62_spill] sm:$0xff] %v13053_v25  ;;  %v5059_v2 = vpop.permute.xlu0 %5058 }
 0x5ea   : > { %5141 = vst.msk [vmem:[#allocation4 + $0x300] sm:$0xff] %vm1922_vm4, %v5059_v2  ;;  %v5372_v2 = vld [vmem:[#allocation3 + $0x153] sm:$0xff] }
 0x5eb   : > { %5333 = vst.msk [vmem:[#allocation4 + $0x300] sm:$0xff] %vm2115_vm5, %v5251_v28  ;;  %6462 = vmatmul.f32.gmra.mxu1 %v5786_v53  ;;  %v5703_v62 = vld [vmem:[#allocation4 + $0x2f8] sm:$0xff] }
 0x5ec   : > { %5525 = vst.msk [vmem:[#allocation4 + $0x300] sm:$0xff] %vm2308_vm6, %v5443_v40  ;;  %6539 = vmatmul.f32.gmra.mxu2 %v5703_v62  ;;  %v5793_v40 = vld [vmem:[#allocation4 + $0x5c8] sm:$0xff] }
 0x5ed   : > { %5266 = vrot.lane.b32.xlu1 %v13060_v17, %s15283_s16 }
 0x5ee   : > { %5456 = vrot.lane.b32.xlu2 %v5372_v2, %s15291_s24 }
 0x5ef   : > { %4433 = vrot.lane.b32.xlu0 %v13007_v18, %s15293_s14  ;;  %v5253_v28 = vpop.permute.xlu1 %5252  ;;  %v4732_v18 = vld [vmem:[#allocation3 + $0x144] sm:$0xff] }
 0x5f0   : > { %v13067_v15 = vpop.f32.mrf.mxu1  ;;  %v4806_v53 = vpop.permute.xlu2 %4805 }
 0x5f1   : > { %v4420_v63 = vpop.permute.xlu0 %4419 }
 0x5f2   : > { %4501 = vst.msk [vmem:[#allocation4 + $0x330] sm:$0xff] %vm1922_vm4, %v4420_v63 }
 0x5f3   : > { %4693 = vst.msk [vmem:[#allocation4 + $0x330] sm:$0xff] %vm2115_vm5, %v4612_v5  ;;  %6465 = vmatmul.f32.gmra.mxu1 %v5793_v40  ;;  %v5704_v62 = vld [vmem:[#allocation4 + $0x300] sm:$0xff] }
 0x5f4   : > { %4885 = vst.msk [vmem:[#allocation4 + $0x330] sm:$0xff] %vm2308_vm6, %v4804_v47  ;;  %6652 = vmatmul.f32.gmra.mxu3 %v5704_v62  ;;  %v5800_v40 = vld [vmem:[#allocation4 + $0x600] sm:$0xff]  ;;  %v13082_v62 = vpop.f32.mrf.mxu2 }
 0x5f5   : > { %4627 = vrot.lane.b32.xlu1 %v5372_v2, %s15283_s16  ;;  %15337 = vst [vmem:[#allocation66_spill] sm:$0xff] %v13082_v62 }
 0x5f6   : > { %4817 = vrot.lane.b32.xlu2 %v4732_v18, %s15291_s24 }
 0x5f7   : > { %5074 = vrot.lane.b32.xlu0 %v12104_v45, %s15293_s14  ;;  %v4614_v25 = vpop.permute.xlu1 %4613  ;;  %v13085_v45 = vld [vmem:[#allocation3 + $0x16a] sm:$0xff] }
 0x5f8   : > { %v13078_v63 = vpop.f32.mrf.mxu1  ;;  %v5447_v5 = vpop.permute.xlu2 %5446 }
 0x5f9   : > { %15336 = vst [vmem:[#allocation65_spill] sm:$0xff] %v13078_v63  ;;  %v5061_v12 = vpop.permute.xlu0 %5060 }
 0x5fa   : > { %5142 = vst.msk [vmem:[#allocation4 + $0x338] sm:$0xff] %vm1922_vm4, %v5061_v12  ;;  %v5373_v12 = vld [vmem:[#allocation3 + $0x15b] sm:$0xff] }
 0x5fb   : > { %5334 = vst.msk [vmem:[#allocation4 + $0x338] sm:$0xff] %vm2115_vm5, %v5253_v28  ;;  %6468 = vmatmul.f32.gmra.mxu1 %v5800_v40  ;;  %v5710_v47 = vld [vmem:[#allocation4 + $0x330] sm:$0xff] }
 0x5fc   : > { %5526 = vst.msk [vmem:[#allocation4 + $0x338] sm:$0xff] %vm2308_vm6, %v5445_v1  ;;  %6542 = vmatmul.f32.gmra.mxu2 %v5710_v47  ;;  %v5807_v1 = vld [vmem:[#allocation4 + $0x638] sm:$0xff] }
 0x5fd   : > { %5268 = vrot.lane.b32.xlu1 %v13085_v45, %s15283_s16 }
 0x5fe   : > { %5458 = vrot.lane.b32.xlu2 %v5373_v12, %s15291_s24 }
 0x5ff   : > { %4435 = vrot.lane.b32.xlu0 %v13032_v48, %s15293_s14  ;;  %v5255_v28 = vpop.permute.xlu1 %5254  ;;  %v4733_v48 = vld [vmem:[#allocation3 + $0x154] sm:$0xff] }
 0x600   : > { %v13092_v2 = vpop.f32.mrf.mxu1  ;;  %v4808_v40 = vpop.permute.xlu2 %4807 }
 0x601   : > { %15338 = vst [vmem:[#allocation67_spill] sm:$0xff] %v13092_v2  ;;  %v4422_v18 = vpop.permute.xlu0 %4421 }
 0x602   : > { %4502 = vst.msk [vmem:[#allocation4 + $0x368] sm:$0xff] %vm1922_vm4, %v4422_v18 }
 0x603   : > { %4694 = vst.msk [vmem:[#allocation4 + $0x368] sm:$0xff] %vm2115_vm5, %v4614_v25  ;;  %6471 = vmatmul.f32.gmra.mxu1 %v5807_v1  ;;  %v5711_v47 = vld [vmem:[#allocation4 + $0x338] sm:$0xff]  ;;  %v5814_v1 = vld [vmem:[#allocation4 + $0x670] sm:$0xff] }
 0x604   : > { %4886 = vst.msk [vmem:[#allocation4 + $0x368] sm:$0xff] %vm2308_vm6, %v4806_v53  ;;  %6655 = vmatmul.f32.gmra.mxu3 %v5711_v47  ;;  %v13107_v47 = vpop.f32.mrf.mxu2 }
 0x605   : > { %4629 = vrot.lane.b32.xlu1 %v5373_v12, %s15283_s16  ;;  %15341 = vst [vmem:[#allocation70_spill] sm:$0xff] %v13107_v47  ;;  %v5374_v12 = vld [vmem:[#allocation3 + $0x16b] sm:$0xff]  ;;  %v13121_v47 = vpop.f32.mrf.mxu3 }
 0x606   : > { %4819 = vrot.lane.b32.xlu2 %v4733_v48, %s15291_s24  ;;  %15343 = vst [vmem:[#allocation72_spill] sm:$0xff] %v13121_v47  ;;  %v5621_v47 = vld [vmem:[#allocation4 + $0x68] sm:$0xff] }
 0x607   : > { %5076 = vrot.lane.b32.xlu0 %v12283_v20, %s15293_s14  ;;  %v4616_v62 = vpop.permute.xlu1 %4615  ;;  %v13110_v20 = vld [vmem:[#allocation3 + $0x172] sm:$0xff] }
 0x608   : > { %v13103_v18 = vpop.f32.mrf.mxu1  ;;  %v5449_v25 = vpop.permute.xlu2 %5448 }
 0x609   : > { %15340 = vst [vmem:[#allocation69_spill] sm:$0xff] %v13103_v18  ;;  %v5063_v2 = vpop.permute.xlu0 %5062 }
 0x60a   : > { %5143 = vst.msk [vmem:[#allocation4 + $0x370] sm:$0xff] %vm1922_vm4, %v5063_v2 }
 0x60b   : > { %5335 = vst.msk [vmem:[#allocation4 + $0x370] sm:$0xff] %vm2115_vm5, %v5255_v28  ;;  %6474 = vmatmul.f32.gmra.mxu1 %v5814_v1  ;;  %v5717_v53 = vld [vmem:[#allocation4 + $0x368] sm:$0xff] }
 0x60c   : > { %5527 = vst.msk [vmem:[#allocation4 + $0x370] sm:$0xff] %vm2308_vm6, %v5447_v5  ;;  %6545 = vmatmul.f32.gmra.mxu2 %v5717_v53  ;;  %v5821_v5 = vld [vmem:[#allocation4 + $0x6a8] sm:$0xff] }
 0x60d   : > { %5270 = vrot.lane.b32.xlu1 %v13110_v20, %s15283_s16 }
 0x60e   : > { %5460 = vrot.lane.b32.xlu2 %v5374_v12, %s15291_s24 }
 0x60f   : > { %4437 = vrot.lane.b32.xlu0 %v13060_v17, %s15293_s14  ;;  %v5257_v28 = vpop.permute.xlu1 %5256  ;;  %v4734_v17 = vld [vmem:[#allocation3 + $0x15c] sm:$0xff] }
 0x610   : > { %v13117_v2 = vpop.f32.mrf.mxu1  ;;  %v4810_v1 = vpop.permute.xlu2 %4809 }
 0x611   : > { %15342 = vst [vmem:[#allocation71_spill] sm:$0xff] %v13117_v2  ;;  %v4424_v48 = vpop.permute.xlu0 %4423 }
 0x612   : > { %4503 = vst.msk [vmem:[#allocation4 + $0x3a0] sm:$0xff] %vm1922_vm4, %v4424_v48 }
 0x613   : > { %4695 = vst.msk [vmem:[#allocation4 + $0x3a0] sm:$0xff] %vm2115_vm5, %v4616_v62  ;;  %6477 = vmatmul.f32.gmra.mxu1 %v5821_v5  ;;  %v5718_v53 = vld [vmem:[#allocation4 + $0x370] sm:$0xff]  ;;  %v5828_v5 = vld [vmem:[#allocation4 + $0x6e0] sm:$0xff] }
 0x614   : > { %4887 = vst.msk [vmem:[#allocation4 + $0x3a0] sm:$0xff] %vm2308_vm6, %v4808_v40  ;;  %6658 = vmatmul.f32.gmra.mxu3 %v5718_v53  ;;  %v13132_v53 = vpop.f32.mrf.mxu2 }
 0x615   : > { %4631 = vrot.lane.b32.xlu1 %v5374_v12, %s15283_s16  ;;  %15345 = vst [vmem:[#allocation74_spill] sm:$0xff] %v13132_v53  ;;  %v13147_v53 = vpop.f32.mrf.mxu3 }
 0x616   : > { %4821 = vrot.lane.b32.xlu2 %v4734_v17, %s15291_s24  ;;  %15347 = vst [vmem:[#allocation76_spill] sm:$0xff] %v13147_v53 }
 0x617   : > { %5078 = vrot.lane.b32.xlu0 %v12285_v61, %s15293_s14  ;;  %v4618_v23 = vpop.permute.xlu1 %4617  ;;  %v13135_v61 = vld [vmem:[#allocation3 + $0x182] sm:$0xff] }
 0x618   : > { %v13128_v48 = vpop.f32.mrf.mxu1  ;;  %v5451_v62 = vpop.permute.xlu2 %5450 }
 0x619   : > { %15344 = vst [vmem:[#allocation73_spill] sm:$0xff] %v13128_v48  ;;  %v5065_v18 = vpop.permute.xlu0 %5064  ;;  %v7039_v48 = vld [vmem:[#allocation6 + $0x3] sm:$0xff] }
 0x61a   : > { %5144 = vst.msk [vmem:[#allocation4 + $0x3a8] sm:$0xff] %vm1922_vm4, %v5065_v18  ;;  %v5375_v18 = vld [vmem:[#allocation3 + $0x173] sm:$0xff] }
 0x61b   : > { %5336 = vst.msk [vmem:[#allocation4 + $0x3a8] sm:$0xff] %vm2115_vm5, %v5257_v28  ;;  %6480 = vmatmul.f32.gmra.mxu1 %v5828_v5  ;;  %v5724_v40 = vld [vmem:[#allocation4 + $0x3a0] sm:$0xff] }
 0x61c   : > { %5528 = vst.msk [vmem:[#allocation4 + $0x3a8] sm:$0xff] %vm2308_vm6, %v5449_v25  ;;  %6548 = vmatmul.f32.gmra.mxu2 %v5724_v40  ;;  %v5614_v25 = vld [vmem:[#allocation4 + $0x30] sm:$0xff] }
 0x61d   : > { %5272 = vrot.lane.b32.xlu1 %v13135_v61, %s15283_s16 }
 0x61e   : > { %5462 = vrot.lane.b32.xlu2 %v5375_v18, %s15291_s24 }
 0x61f   : > { %4439 = vrot.lane.b32.xlu0 %v13085_v45, %s15293_s14  ;;  %v5259_v28 = vpop.permute.xlu1 %5258 }
 0x620   : > { %v13142_v12 = vpop.f32.mrf.mxu1  ;;  %v4812_v5 = vpop.permute.xlu2 %4811 }
 0x621   : > { %15346 = vst [vmem:[#allocation75_spill] sm:$0xff] %v13142_v12  ;;  %v4426_v17 = vpop.permute.xlu0 %4425 }
 0x622   : > { %4504 = vst.msk [vmem:[#allocation4 + $0x3d8] sm:$0xff] %vm1922_vm4, %v4426_v17 }
 0x623   : > { %4696 = vst.msk [vmem:[#allocation4 + $0x3d8] sm:$0xff] %vm2115_vm5, %v4618_v23  ;;  %9170 = vmatmul.msk.f32.vlgmr.msrb.gmra.mxu1 %vm1380_vm2, %v5614_v25  ;;  %v5725_v40 = vld [vmem:[#allocation4 + $0x3a8] sm:$0xff] }
 0x624   : > { %4888 = vst.msk [vmem:[#allocation4 + $0x3d8] sm:$0xff] %vm2308_vm6, %v4810_v1  ;;  %6661 = vmatmul.f32.gmra.mxu3 %v5725_v40 }
 0x625   : > { %4633 = vrot.lane.b32.xlu1 %v5375_v18, %s15283_s16  ;;  %v13160_v18 = vpop.f32.mrf.mxu2 }
 0x626   : > { %4823 = vrot.lane.b32.xlu2 %v12290_v36, %s15291_s24  ;;  %15349 = vst [vmem:[#allocation78_spill] sm:$0xff] %v13160_v18  ;;  %v5376_v36 = vld [vmem:[#allocation3 + $0x183] sm:$0xff]  ;;  %v13175_v18 = vpop.f32.mrf.mxu3 }
 0x627   : > { %5080 = vrot.lane.b32.xlu0 %v9956_v43, %s15293_s14  ;;  %v4620_v17 = vpop.permute.xlu1 %4619  ;;  %v13163_v43 = vld [vmem:[#allocation3 + $0x18a] sm:$0xff]  ;;  %15351 = vst [vmem:[#allocation80_spill] sm:$0xff] %v13175_v18 }
 0x628   : > { %v13155_v45 = vpop.f32.mrf.mxu1  ;;  %v5453_v25 = vpop.permute.xlu2 %5452 }
 0x629   : > { %15348 = vst [vmem:[#allocation77_spill] sm:$0xff] %v13155_v45  ;;  %v5067_v23 = vpop.permute.xlu0 %5066  ;;  %v5635_v45 = vld [vmem:[#allocation4 + $0xd8] sm:$0xff] }
 0x62a   : > { %5145 = vst.msk [vmem:[#allocation4 + $0x3e0] sm:$0xff] %vm1922_vm4, %v5067_v23 }
 0x62b   : > { %5337 = vst.msk [vmem:[#allocation4 + $0x3e0] sm:$0xff] %vm2115_vm5, %v5259_v28  ;;  %9171 = vmatmul.msk.f32.gmra.mxu1 %vm1380_vm2, %v5621_v47  ;;  %v5731_v1 = vld [vmem:[#allocation4 + $0x3d8] sm:$0xff] }
 0x62c   : > { %5529 = vst.msk [vmem:[#allocation4 + $0x3e0] sm:$0xff] %vm2308_vm6, %v5451_v62  ;;  %6551 = vmatmul.f32.gmra.mxu2 %v5731_v1  ;;  %v5628_v62 = vld [vmem:[#allocation4 + $0xa0] sm:$0xff] }
 0x62d   : > { %5274 = vrot.lane.b32.xlu1 %v13163_v43, %s15283_s16 }
 0x62e   : > { %5464 = vrot.lane.b32.xlu2 %v5376_v36, %s15291_s24  ;;  %v13203_v18 = vpop.f32.mrf.mxu3 }
 0x62f   : > { %4441 = vrot.lane.b32.xlu0 %v13110_v20, %s15293_s14  ;;  %v5261_v47 = vpop.permute.xlu1 %5260  ;;  %v15352_v20 = vld [vmem:[#allocation12_spill] sm:$0xff]  ;;  %15356 = vst [vmem:[#allocation83_spill] sm:$0xff] %v13203_v18 }
 0x630   : > { %v13170_v28 = vpop.f32.mrf.mxu1  ;;  %v4814_v23 = vpop.permute.xlu2 %4813 }
 0x631   : > { %15350 = vst [vmem:[#allocation79_spill] sm:$0xff] %v13170_v28  ;;  %v4428_v40 = vpop.permute.xlu0 %4427 }
 0x632   : > { %4505 = vst.msk [vmem:[#allocation4 + $0x410] sm:$0xff] %vm1922_vm4, %v4428_v40 }
 0x633   : > { %4697 = vst.msk [vmem:[#allocation4 + $0x410] sm:$0xff] %vm2115_vm5, %v4620_v17  ;;  %9172 = vmatmul.msk.f32.gmra.mxu1 %vm1380_vm2, %v5628_v62  ;;  %v5732_v1 = vld [vmem:[#allocation4 + $0x3e0] sm:$0xff] }
 0x634   : > { %4889 = vst.msk [vmem:[#allocation4 + $0x410] sm:$0xff] %vm2308_vm6, %v4812_v5  ;;  %6664 = vmatmul.f32.gmra.mxu3 %v5732_v1  ;;  %v13191_v1 = vld [vmem:[#allocation3 + $0x19a] sm:$0xff] }
 0x635   : > { %4635 = vrot.lane.b32.xlu1 %v5376_v36, %s15283_s16  ;;  %v13188_v36 = vpop.f32.mrf.mxu2 }
 0x636   : > { %4825 = vrot.lane.b32.xlu2 %v12306_v54, %s15291_s24  ;;  %15354 = vst [vmem:[#allocation81_spill] sm:$0xff] %v13188_v36  ;;  %v5377_v54 = vld [vmem:[#allocation3 + $0x18b] sm:$0xff]  ;;  %v15357_v36 = vld [vmem:[#allocation15_spill] sm:$0xff] }
 0x637   : > { %5082 = vrot.lane.b32.xlu0 %v15352_v20, %s15293_s14  ;;  %v4622_v53 = vpop.permute.xlu1 %4621 }
 0x638   : > { %v13183_v40 = vpop.f32.mrf.mxu1  ;;  %v5455_v62 = vpop.permute.xlu2 %5454 }
 0x639   : > { %15353 = vst [vmem:[#allocation12_spill] sm:$0xff] %v13183_v40  ;;  %v5069_v17 = vpop.permute.xlu0 %5068 }
 0x63a   : > { %5146 = vst.msk [vmem:[#allocation4 + $0x418] sm:$0xff] %vm1922_vm4, %v5069_v17 }
 0x63b   : > { %5338 = vst.msk [vmem:[#allocation4 + $0x418] sm:$0xff] %vm2115_vm5, %v5261_v47  ;;  %9173 = vmatmul.msk.f32.gmra.mxu1 %vm1380_vm2, %v5635_v45  ;;  %v5738_v5 = vld [vmem:[#allocation4 + $0x410] sm:$0xff] }
 0x63c   : > { %5530 = vst.msk [vmem:[#allocation4 + $0x418] sm:$0xff] %vm2308_vm6, %v5453_v25  ;;  %6554 = vmatmul.f32.gmra.mxu2 %v5738_v5  ;;  %v5642_v25 = vld [vmem:[#allocation4 + $0x110] sm:$0xff] }
 0x63d   : > { %5276 = vrot.lane.b32.xlu1 %v13191_v1, %s15283_s16 }
 0x63e   : > { %5466 = vrot.lane.b32.xlu2 %v5377_v54, %s15291_s24 }
 0x63f   : > { %4443 = vrot.lane.b32.xlu0 %v13135_v61, %s15293_s14  ;;  %v5263_v45 = vpop.permute.xlu1 %5262  ;;  %v13207_v61 = vld [vmem:[#allocation3 + $0x1b1] sm:$0xff] }
 0x640   : > { %v13198_v47 = vpop.f32.mrf.mxu1  ;;  %v4816_v17 = vpop.permute.xlu2 %4815  ;;  %4325 = vst.msk [vmem:[#allocation4 + $0x6b0] sm:$0xff] %vm1380_vm2, %v13207_v61 }
 0x641   : > { %15355 = vst [vmem:[#allocation82_spill] sm:$0xff] %v13198_v47  ;;  %v4430_v20 = vpop.permute.xlu0 %4429  ;;  %v13223_v47 = vld [vmem:[#allocation3 + $0x1a2] sm:$0xff] }
 0x642   : > { %4506 = vst.msk [vmem:[#allocation4 + $0x448] sm:$0xff] %vm1922_vm4, %v4430_v20 }
 0x643   : > { %4698 = vst.msk [vmem:[#allocation4 + $0x448] sm:$0xff] %vm2115_vm5, %v4622_v53  ;;  %9174 = vmatmul.msk.f32.gmra.mxu1 %vm1380_vm2, %v5642_v25  ;;  %v5739_v5 = vld [vmem:[#allocation4 + $0x418] sm:$0xff]  ;;  %v15358_v53 = vld [vmem:[#allocation13_spill] sm:$0xff] }
 0x644   : > { %4890 = vst.msk [vmem:[#allocation4 + $0x448] sm:$0xff] %vm2308_vm6, %v4814_v23  ;;  %6667 = vmatmul.f32.gmra.mxu3 %v5739_v5  ;;  %v5649_v5 = vld [vmem:[#allocation4 + $0x148] sm:$0xff] }
 0x645   : > { %4637 = vrot.lane.b32.xlu1 %v5377_v54, %s15283_s16 }
 0x646   : > { %4827 = vrot.lane.b32.xlu2 %v15358_v53, %s15291_s24 }
 0x647   : > { %5084 = vrot.lane.b32.xlu0 %v15357_v36, %s15293_s14  ;;  %v4624_v25 = vpop.permute.xlu1 %4623  ;;  %v13220_v36 = vpop.f32.mrf.mxu2 }
 0x648   : > { %v13215_v20 = vpop.f32.mrf.mxu1  ;;  %v5457_v23 = vpop.permute.xlu2 %5456  ;;  %15360 = vst [vmem:[#allocation13_spill] sm:$0xff] %v13220_v36 }
 0x649   : > { %15359 = vst [vmem:[#allocation15_spill] sm:$0xff] %v13215_v20  ;;  %v5071_v18 = vpop.permute.xlu0 %5070  ;;  %v13235_v20 = vpop.f32.mrf.mxu3 }
 0x64a   : > { %5147 = vst.msk [vmem:[#allocation4 + $0x450] sm:$0xff] %vm1922_vm4, %v5071_v18  ;;  %v5378_v18 = vld [vmem:[#allocation3 + $0x19b] sm:$0xff] }
 0x64b   : > { %5339 = vst.msk [vmem:[#allocation4 + $0x450] sm:$0xff] %vm2115_vm5, %v5263_v45  ;;  %9175 = vmatmul.msk.f32.gmra.mxu1 %vm1380_vm2, %v5649_v5  ;;  %v5745_v54 = vld [vmem:[#allocation4 + $0x448] sm:$0xff] }
 0x64c   : > { %5531 = vst.msk [vmem:[#allocation4 + $0x450] sm:$0xff] %vm2308_vm6, %v5455_v62  ;;  %6557 = vmatmul.f32.gmra.mxu2 %v5745_v54  ;;  %v5656_v62 = vld [vmem:[#allocation4 + $0x180] sm:$0xff] }
 0x64d   : > { %5278 = vrot.lane.b32.xlu1 %v13223_v47, %s15283_s16  ;;  %15362 = vst [vmem:[#allocation85_spill] sm:$0xff] %v13235_v20 }
 0x64e   : > { %5468 = vrot.lane.b32.xlu2 %v5378_v18, %s15291_s24 }
 0x64f   : > { %4445 = vrot.lane.b32.xlu0 %v13163_v43, %s15293_s14  ;;  %v5265_v53 = vpop.permute.xlu1 %5264  ;;  %v13238_v43 = vld [vmem:[#allocation3 + $0x1b9] sm:$0xff]  ;;  %v13254_v28 = vpop.f32.mrf.mxu2 }
 0x650   : > { %v13230_v45 = vpop.f32.mrf.mxu1  ;;  %v4818_v36 = vpop.permute.xlu2 %4817  ;;  %4326 = vst.msk [vmem:[#allocation4 + $0x6e8] sm:$0xff] %vm1380_vm2, %v13238_v43 }
 0x651   : > { %15361 = vst [vmem:[#allocation84_spill] sm:$0xff] %v13230_v45  ;;  %v4432_v5 = vpop.permute.xlu0 %4431 }
 0x652   : > { %4507 = vst.msk [vmem:[#allocation4 + $0x480] sm:$0xff] %vm1922_vm4, %v4432_v5  ;;  %v15363_v5 = vld [vmem:[#allocation16_spill] sm:$0xff] }
 0x653   : > { %4699 = vst.msk [vmem:[#allocation4 + $0x480] sm:$0xff] %vm2115_vm5, %v4624_v25  ;;  %9176 = vmatmul.msk.f32.gmra.mxu1 %vm1380_vm2, %v5656_v62  ;;  %v5746_v54 = vld [vmem:[#allocation4 + $0x450] sm:$0xff] }
 0x654   : > { %4891 = vst.msk [vmem:[#allocation4 + $0x480] sm:$0xff] %vm2308_vm6, %v4816_v17  ;;  %6670 = vmatmul.f32.gmra.mxu3 %v5746_v54  ;;  %v15364_v25 = vld [vmem:[#allocation14_spill] sm:$0xff] }
 0x655   : > { %4639 = vrot.lane.b32.xlu1 %v5378_v18, %s15283_s16  ;;  %v5663_v54 = vld [vmem:[#allocation4 + $0x1b8] sm:$0xff]  ;;  %15366 = vst [vmem:[#allocation14_spill] sm:$0xff] %v13254_v28  ;;  %v5670_v28 = vld [vmem:[#allocation4 + $0x1f0] sm:$0xff] }
 0x656   : > { %4829 = vrot.lane.b32.xlu2 %v15364_v25, %s15291_s24  ;;  %v13252_v18 = vld [vmem:[#allocation3 + $0x1b2] sm:$0xff] }
 0x657   : > { %5086 = vrot.lane.b32.xlu0 %v15363_v5, %s15293_s14  ;;  %v4626_v45 = vpop.permute.xlu1 %4625 }
 0x658   : > { %v13247_v62 = vpop.f32.mrf.mxu1  ;;  %v5459_v17 = vpop.permute.xlu2 %5458 }
 0x659   : > { %15365 = vst [vmem:[#allocation16_spill] sm:$0xff] %v13247_v62  ;;  %v5073_v20 = vpop.permute.xlu0 %5072  ;;  %v5677_v62 = vld [vmem:[#allocation4 + $0x228] sm:$0xff] }
 0x65a   : > { %5148 = vst.msk [vmem:[#allocation4 + $0x488] sm:$0xff] %vm1922_vm4, %v5073_v20  ;;  %v5379_v20 = vld [vmem:[#allocation3 + $0x1a3] sm:$0xff] }
 0x65b   : > { %5340 = vst.msk [vmem:[#allocation4 + $0x488] sm:$0xff] %vm2115_vm5, %v5265_v53  ;;  %9177 = vmatmul.msk.f32.gmra.mxu1 %vm1380_vm2, %v5663_v54  ;;  %v5752_v40 = vld [vmem:[#allocation4 + $0x480] sm:$0xff] }
 0x65c   : > { %5532 = vst.msk [vmem:[#allocation4 + $0x488] sm:$0xff] %vm2308_vm6, %v5457_v23  ;;  %6560 = vmatmul.f32.gmra.mxu2 %v5752_v40  ;;  %v13267_v23 = vpop.f32.mrf.mxu3 }
 0x65d   : > { %5280 = vrot.lane.b32.xlu1 %v13252_v18, %s15283_s16  ;;  %15368 = vst [vmem:[#allocation87_spill] sm:$0xff] %v13267_v23 }
 0x65e   : > { %5470 = vrot.lane.b32.xlu2 %v5379_v20, %s15291_s24 }
 0x65f   : > { %4447 = vrot.lane.b32.xlu0 %v13191_v1, %s15293_s14  ;;  %v5267_v5 = vpop.permute.xlu1 %5266  ;;  %v15369_v1 = vld [vmem:[#allocation17_spill] sm:$0xff] }
 0x660   : > { %v13262_v53 = vpop.f32.mrf.mxu1  ;;  %v4820_v54 = vpop.permute.xlu2 %4819 }
 0x661   : > { %15367 = vst [vmem:[#allocation86_spill] sm:$0xff] %v13262_v53  ;;  %v4434_v25 = vpop.permute.xlu0 %4433 }
 0x662   : > { %4508 = vst.msk [vmem:[#allocation4 + $0x4b8] sm:$0xff] %vm1922_vm4, %v4434_v25 }
 0x663   : > { %4700 = vst.msk [vmem:[#allocation4 + $0x4b8] sm:$0xff] %vm2115_vm5, %v4626_v45  ;;  %9178 = vmatmul.msk.f32.gmra.mxu1 %vm1380_vm2, %v5670_v28  ;;  %v5753_v40 = vld [vmem:[#allocation4 + $0x488] sm:$0xff] }
 0x664   : > { %4892 = vst.msk [vmem:[#allocation4 + $0x4b8] sm:$0xff] %vm2308_vm6, %v4818_v36  ;;  %6673 = vmatmul.f32.gmra.mxu3 %v5753_v40  ;;  %v13282_v40 = vpop.f32.mrf.mxu2 }
 0x665   : > { %4641 = vrot.lane.b32.xlu1 %v5379_v20, %s15283_s16  ;;  %v13280_v20 = vld [vmem:[#allocation3 + $0x1ba] sm:$0xff]  ;;  %15371 = vst [vmem:[#allocation88_spill] sm:$0xff] %v13282_v40 }
 0x666   : > { %4831 = vrot.lane.b32.xlu2 %v15369_v1, %s15291_s24  ;;  %v5684_v40 = vld [vmem:[#allocation4 + $0x260] sm:$0xff] }
 0x667   : > { %5088 = vrot.lane.b32.xlu0 %v13207_v61, %s15293_s14  ;;  %v4628_v53 = vpop.permute.xlu1 %4627  ;;  %v5380_v61 = vld [vmem:[#allocation3 + $0x1b3] sm:$0xff] }
 0x668   : > { %v13275_v25 = vpop.f32.mrf.mxu1  ;;  %v5461_v28 = vpop.permute.xlu2 %5460 }
 0x669   : > { %15370 = vst [vmem:[#allocation17_spill] sm:$0xff] %v13275_v25  ;;  %v5075_v45 = vpop.permute.xlu0 %5074  ;;  %v5698_v25 = vld [vmem:[#allocation4 + $0x2d0] sm:$0xff] }
 0x66a   : > { %5149 = vst.msk [vmem:[#allocation4 + $0x4c0] sm:$0xff] %vm1922_vm4, %v5075_v45 }
 0x66b   : > { %5341 = vst.msk [vmem:[#allocation4 + $0x4c0] sm:$0xff] %vm2115_vm5, %v5267_v5  ;;  %9179 = vmatmul.msk.f32.gmra.mxu1 %vm1380_vm2, %v5677_v62  ;;  %v5759_v36 = vld [vmem:[#allocation4 + $0x4b8] sm:$0xff] }
 0x66c   : > { %5533 = vst.msk [vmem:[#allocation4 + $0x4c0] sm:$0xff] %vm2308_vm6, %v5459_v17  ;;  %6563 = vmatmul.f32.gmra.mxu2 %v5759_v36  ;;  %v13295_v36 = vpop.f32.mrf.mxu3 }
 0x66d   : > { %5282 = vrot.lane.b32.xlu1 %v13280_v20, %s15283_s16  ;;  %15373 = vst [vmem:[#allocation90_spill] sm:$0xff] %v13295_v36 }
 0x66e   : > { %5472 = vrot.lane.b32.xlu2 %v5380_v61, %s15291_s24 }
 0x66f   : > { %4449 = vrot.lane.b32.xlu0 %v13223_v47, %s15293_s14  ;;  %v5269_v62 = vpop.permute.xlu1 %5268  ;;  %v4741_v47 = vld [vmem:[#allocation3 + $0x1b4] sm:$0xff] }
 0x670   : > { %v13290_v5 = vpop.f32.mrf.mxu1  ;;  %v4822_v45 = vpop.permute.xlu2 %4821  ;;  %5604 = vst.msk [vmem:[#allocation4 + $0x650] sm:$0xff] %vm1380_vm2, %v4741_v47 }
 0x671   : > { %15372 = vst [vmem:[#allocation89_spill] sm:$0xff] %v13290_v5  ;;  %v4436_v1 = vpop.permute.xlu0 %4435 }
 0x672   : > { %4509 = vst.msk [vmem:[#allocation4 + $0x4f0] sm:$0xff] %vm1922_vm4, %v4436_v1  ;;  %v15374_v1 = vld [vmem:[#allocation18_spill] sm:$0xff] }
 0x673   : > { %4701 = vst.msk [vmem:[#allocation4 + $0x4f0] sm:$0xff] %vm2115_vm5, %v4628_v53  ;;  %9180 = vmatmul.msk.f32.gmra.mxu1 %vm1380_vm2, %v5684_v40  ;;  %v5760_v17 = vld [vmem:[#allocation4 + $0x4c0] sm:$0xff] }
 0x674   : > { %4893 = vst.msk [vmem:[#allocation4 + $0x4f0] sm:$0xff] %vm2308_vm6, %v4820_v54  ;;  %6676 = vmatmul.f32.gmra.mxu3 %v5760_v17  ;;  %v5691_v54 = vld [vmem:[#allocation4 + $0x298] sm:$0xff]  ;;  %v13309_v17 = vpop.f32.mrf.mxu2 }
 0x675   : > { %4643 = vrot.lane.b32.xlu1 %v5380_v61, %s15283_s16  ;;  %15376 = vst [vmem:[#allocation91_spill] sm:$0xff] %v13309_v17 }
 0x676   : > { %4833 = vrot.lane.b32.xlu2 %v15374_v1, %s15291_s24  ;;  %v5381_v1 = vld [vmem:[#allocation3 + $0x1bb] sm:$0xff] }
 0x677   : > { %5090 = vrot.lane.b32.xlu0 %v13238_v43, %s15293_s14  ;;  %v4630_v53 = vpop.permute.xlu1 %4629  ;;  %v5190_v43 = vld [vmem:[#allocation3 + $0x1ca] sm:$0xff] }
 0x678   : > { %v13303_v23 = vpop.f32.mrf.mxu1  ;;  %v5463_v36 = vpop.permute.xlu2 %5462 }
 0x679   : > { %15375 = vst [vmem:[#allocation18_spill] sm:$0xff] %v13303_v23  ;;  %v5077_v40 = vpop.permute.xlu0 %5076 }
 0x67a   : > { %5150 = vst.msk [vmem:[#allocation4 + $0x4f8] sm:$0xff] %vm1922_vm4, %v5077_v40  ;;  %v13315_v40 = vpop.f32.mrf.mxu3 }
 0x67b   : > { %5342 = vst.msk [vmem:[#allocation4 + $0x4f8] sm:$0xff] %vm2115_vm5, %v5269_v62  ;;  %9181 = vmatmul.msk.f32.gmra.mxu1 %vm1380_vm2, %v5691_v54  ;;  %v5766_v61 = vld [vmem:[#allocation4 + $0x4f0] sm:$0xff] }
 0x67c   : > { %5534 = vst.msk [vmem:[#allocation4 + $0x4f8] sm:$0xff] %vm2308_vm6, %v5461_v28  ;;  %6566 = vmatmul.f32.gmra.mxu2 %v5766_v61  ;;  %v4742_v61 = vld [vmem:[#allocation3 + $0x1bc] sm:$0xff] }
 0x67d   : > { %5284 = vrot.lane.b32.xlu1 %v5190_v43, %s15283_s16  ;;  %15377 = vst [vmem:[#allocation92_spill] sm:$0xff] %v13315_v40  ;;  %v13327_v43 = vpop.f32.mrf.mxu2  ;;  %v5726_v40 = vld [vmem:[#allocation4 + $0x3b0] sm:$0xff] }
 0x67e   : > { %5474 = vrot.lane.b32.xlu2 %v5381_v1, %s15291_s24  ;;  %5605 = vst.msk [vmem:[#allocation4 + $0x688] sm:$0xff] %vm1380_vm2, %v4742_v61 }
 0x67f   : > { %4451 = vrot.lane.b32.xlu0 %v13252_v18, %s15293_s14  ;;  %v5271_v62 = vpop.permute.xlu1 %5270  ;;  %v4998_v18 = vld [vmem:[#allocation3 + $0x1c9] sm:$0xff]  ;;  %15379 = vst [vmem:[#allocation94_spill] sm:$0xff] %v13327_v43  ;;  %v5712_v43 = vld [vmem:[#allocation4 + $0x340] sm:$0xff] }
 0x680   : > { %v13317_v23 = vpop.f32.mrf.mxu1  ;;  %v4824_v17 = vpop.permute.xlu2 %4823 }
 0x681   : > { %15378 = vst [vmem:[#allocation93_spill] sm:$0xff] %v13317_v23  ;;  %v4438_v54 = vpop.permute.xlu0 %4437 }
 0x682   : > { %4510 = vst.msk [vmem:[#allocation4 + $0x528] sm:$0xff] %vm1922_vm4, %v4438_v54  ;;  %v13332_v23 = vpop.f32.mrf.mxu3 }
 0x683   : > { %4702 = vst.msk [vmem:[#allocation4 + $0x528] sm:$0xff] %vm2115_vm5, %v4630_v53  ;;  %9182 = vmatmul.msk.f32.gmra.mxu1 %vm1380_vm2, %v5698_v25  ;;  %v5767_v28 = vld [vmem:[#allocation4 + $0x4f8] sm:$0xff] }
 0x684   : > { %4894 = vst.msk [vmem:[#allocation4 + $0x528] sm:$0xff] %vm2308_vm6, %v4822_v45  ;;  %6679 = vmatmul.f32.gmra.mxu3 %v5767_v28  ;;  %v5705_v28 = vld [vmem:[#allocation4 + $0x308] sm:$0xff] }
 0x685   : > { %4645 = vrot.lane.b32.xlu1 %v5381_v1, %s15283_s16  ;;  %15381 = vst [vmem:[#allocation96_spill] sm:$0xff] %v13332_v23 }
 0x686   : > { %4835 = vrot.lane.b32.xlu2 %v4741_v47, %s15291_s24 }
 0x687   : > { %5092 = vrot.lane.b32.xlu0 %v4998_v18, %s15293_s14  ;;  %v4632_v53 = vpop.permute.xlu1 %4631  ;;  %v5191_v18 = vld [vmem:[#allocation3 + $0x1d2] sm:$0xff] }
 0x688   : > { %v13329_v54 = vpop.f32.mrf.mxu1  ;;  %v5465_v45 = vpop.permute.xlu2 %5464 }
 0x689   : > { %15380 = vst [vmem:[#allocation95_spill] sm:$0xff] %v13329_v54  ;;  %v5079_v25 = vpop.permute.xlu0 %5078  ;;  %v5382_v54 = vld [vmem:[#allocation3 + $0x1cb] sm:$0xff] }
 0x68a   : > { %5151 = vst.msk [vmem:[#allocation4 + $0x530] sm:$0xff] %vm1922_vm4, %v5079_v25 }
 0x68b   : > { %5343 = vst.msk [vmem:[#allocation4 + $0x530] sm:$0xff] %vm2115_vm5, %v5271_v62  ;;  %9183 = vmatmul.msk.f32.gmra.mxu1 %vm1380_vm2, %v5705_v28  ;;  %v5773_v1 = vld [vmem:[#allocation4 + $0x528] sm:$0xff]  ;;  %v13344_v62 = vpop.f32.mrf.mxu2 }
 0x68c   : > { %5535 = vst.msk [vmem:[#allocation4 + $0x530] sm:$0xff] %vm2308_vm6, %v5463_v36  ;;  %6569 = vmatmul.f32.gmra.mxu2 %v5773_v1  ;;  %v6991_v1 = vld [vmem:[#allocation6 + $0x2] sm:$0xff] }
 0x68d   : > { %5286 = vrot.lane.b32.xlu1 %v5191_v18, %s15283_s16  ;;  %v13349_v18 = vpop.f32.mrf.mxu3 }
 0x68e   : > { %5476 = vrot.lane.b32.xlu2 %v5382_v54, %s15291_s24 }
 0x68f   : > { %4453 = vrot.lane.b32.xlu0 %v13280_v20, %s15293_s14  ;;  %v5273_v25 = vpop.permute.xlu1 %5272  ;;  %v4999_v20 = vld [vmem:[#allocation3 + $0x1d1] sm:$0xff] }
 0x690   : > { %v13341_v47 = vpop.f32.mrf.mxu1  ;;  %v4826_v28 = vpop.permute.xlu2 %4825 }
 0x691   : > { %15382 = vst [vmem:[#allocation97_spill] sm:$0xff] %v13341_v47  ;;  %v4440_v23 = vpop.permute.xlu0 %4439  ;;  %v5719_v47 = vld [vmem:[#allocation4 + $0x378] sm:$0xff] }
 0x692   : > { %4511 = vst.msk [vmem:[#allocation4 + $0x560] sm:$0xff] %vm1922_vm4, %v4440_v23 }
 0x693   : > { %4703 = vst.msk [vmem:[#allocation4 + $0x560] sm:$0xff] %vm2115_vm5, %v4632_v53  ;;  %9184 = vmatmul.msk.f32.gmra.mxu1 %vm1380_vm2, %v5712_v43  ;;  %v5774_v36 = vld [vmem:[#allocation4 + $0x530] sm:$0xff] }
 0x694   : > { %4895 = vst.msk [vmem:[#allocation4 + $0x560] sm:$0xff] %vm2308_vm6, %v4824_v17  ;;  %6682 = vmatmul.f32.gmra.mxu3 %v5774_v36  ;;  %v13360_v36 = vld [vmem:[#allocation6 + $0x12] sm:$0xff] }
 0x695   : > { %7007 = vrot.lane.b32.xlu1 %v6991_v1, %s15283_s16  ;;  %v13362_v1 = vpop.f32.mrf.mxu2 }
 0x696   : > { %4837 = vrot.lane.b32.xlu2 %v4742_v61, %s15291_s24  ;;  %v5383_v61 = vld [vmem:[#allocation3 + $0x1d3] sm:$0xff] }
 0x697   : > { %5094 = vrot.lane.b32.xlu0 %v4999_v20, %s15293_s14  ;;  %v4634_v23 = vpop.permute.xlu1 %4633  ;;  %v6943_v20 = vld [vmem:[#allocation6 + $0x1] sm:$0xff] }
 0x698   : > { %v13354_v54 = vpop.f32.mrf.mxu1  ;;  %v5467_v43 = vpop.permute.xlu2 %5466 }
 0x699   : > { %15383 = vst [vmem:[#allocation98_spill] sm:$0xff] %v13354_v54  ;;  %v5081_v53 = vpop.permute.xlu0 %5080  ;;  %v13365_v54 = vpop.f32.mrf.mxu3 }
 0x69a   : > { %5152 = vst.msk [vmem:[#allocation4 + $0x568] sm:$0xff] %vm1922_vm4, %v5081_v53 }
 0x69b   : > { %5344 = vst.msk [vmem:[#allocation4 + $0x568] sm:$0xff] %vm2115_vm5, %v5273_v25  ;;  %9185 = vmatmul.msk.f32.gmra.mxu1 %vm1380_vm2, %v5719_v47  ;;  %v5780_v17 = vld [vmem:[#allocation4 + $0x560] sm:$0xff] }
 0x69c   : > { %5536 = vst.msk [vmem:[#allocation4 + $0x568] sm:$0xff] %vm2308_vm6, %v5465_v45  ;;  %6572 = vmatmul.f32.gmra.mxu2 %v5780_v17  ;;  %v13374_v47 = vld [vmem:[%s15253_s4] ss:$0 sm:$0xff] }
 0x69d   : > { %7009 = vrot.lane.b32.xlu1 %v13360_v36, %s15283_s16  ;;  %v6050_v5 = vadd.f32 %v13374_v47, %v12266_v3  ;;  %v6056_v12 = vadd.f32 %v13374_v47, %v12387_v0 }
 0x69e   : > { %5478 = vrot.lane.b32.xlu2 %v5383_v61, %s15291_s24  ;;  %v6944_v61 = vld [vmem:[#allocation6 + $0x11] sm:$0xff] }
 0x69f   : > { %6959 = vrot.lane.b32.xlu0 %v6943_v20, %s15293_s14  ;;  %v5275_v53 = vpop.permute.xlu1 %5274  ;;  %v6163_v2 = vadd.f32 %v12363_v8, %v6050_v5  ;;  %v6169_v3 = vadd.f32 %v12474_v55, %v6056_v12  ;;  %v5733_v55 = vld [vmem:[#allocation4 + $0x3e8] sm:$0xff]  ;;  %v6053_v12 = vadd.f32 %v13374_v47, %v12321_v6 }
 0x6a0   : > { %v6727_v25 = vpop.f32.mrf.mxu1  ;;  %v13377_v17 = vpop.permute.xlu2 %4827 }
 0x6a1   : > { %v4442_v45 = vpop.permute.xlu0 %4441  ;;  %v6276_v0 = vadd.f32 %v12461_v52, %v6163_v2  ;;  %v6166_v6 = vadd.f32 %v12406_v22, %v6053_v12 }
 0x6a2   : > { %4512 = vst.msk [vmem:[#allocation4 + $0x598] sm:$0xff] %vm1922_vm4, %v4442_v45  ;;  %v6507_v45 = vpop.f32.mrf.mxu2 }
 0x6a3   : > { %4704 = vst.msk [vmem:[#allocation4 + $0x598] sm:$0xff] %vm2115_vm5, %v4634_v23  ;;  %9186 = vmatmul.msk.f32.gmra.mxu1 %vm1380_vm2, %v5726_v40  ;;  %v5781_v20 = vld [vmem:[#allocation4 + $0x568] sm:$0xff]  ;;  %v7104_v23 = vld [vmem:[#allocation6 + $0x10] sm:$0xff]  ;;  %v6620_v40 = vpop.f32.mrf.mxu3 }
 0x6a4   : > { %4896 = vst.msk [vmem:[#allocation4 + $0x598] sm:$0xff] %vm2308_vm6, %v4826_v28  ;;  %6685 = vmatmul.f32.gmra.mxu3 %v5781_v20  ;;  %v7040_v28 = vld [vmem:[#allocation6 + $0x13] sm:$0xff]  ;;  %v6282_v20 = vadd.f32 %v12650_v27, %v6169_v3 }
 0x6a5   : > { %7168 = vrot.lane.b32.xlu1 %v6944_v61, %s15283_s16  ;;  %6936 = vst.msk [vmem:[#allocation7 + $0x38] sm:$0xff] %vm1380_vm2, %v7104_v23  ;;  %v7264_v27 = vld [vmem:[#allocation6 + $0x14] sm:$0xff] }
 0x6a6   : > { %7055 = vrot.lane.b32.xlu2 %v7039_v48, %s15291_s24  ;;  %7256 = vst.msk [vmem:[#allocation7 + $0x10] sm:$0xff] %vm1380_vm2, %v7040_v28  ;;  %v6389_v48 = vadd.f32 %v12936_v37, %v6276_v0  ;;  %v6395_v5 = vadd.f32 %v12964_v13, %v6282_v20 }
 0x6a7   : > { %6961 = vrot.lane.b32.xlu0 %v6944_v61, %s15293_s14  ;;  %v4636_v58 = vpop.permute.xlu1 %4635  ;;  %7096 = vst.msk [vmem:[#allocation7 + $0x40] sm:$0xff] %vm1380_vm2, %v7264_v27 }
 0x6a8   : > { %v6730_v63 = vpop.f32.mrf.mxu1  ;;  %v5469_v8 = vpop.permute.xlu2 %5468  ;;  %v6502_v2 = vadd.f32 %v13344_v62, %v6389_v48  ;;  %v6508_v61 = vadd.f32 %v6507_v45, %v6395_v5 }
 0x6a9   : > { %v5083_v30 = vpop.permute.xlu0 %5082 }
 0x6aa   : > { %5153 = vst.msk [vmem:[#allocation4 + $0x5a0] sm:$0xff] %vm1922_vm4, %v5083_v30  ;;  %v6059_v30 = vadd.f32 %v13374_v47, %v12403_v24  ;;  %v6615_v13 = vadd.f32 %v13349_v18, %v6502_v2  ;;  %v6279_v24 = vadd.f32 %v12519_v59, %v6166_v6  ;;  %v5740_v18 = vld [vmem:[#allocation4 + $0x420] sm:$0xff] }
 0x6ab   : > { %5345 = vst.msk [vmem:[#allocation4 + $0x5a0] sm:$0xff] %vm2115_vm5, %v5275_v53  ;;  %9187 = vmatmul.msk.f32.gmra.mxu1 %vm1380_vm2, %v5733_v55  ;;  %v5787_v52 = vld [vmem:[#allocation4 + $0x598] sm:$0xff]  ;;  %v6621_v53 = vadd.f32 %v6620_v40, %v6508_v61  ;;  %v6623_v22 = vpop.f32.mrf.mxu3 }
 0x6ac   : > { %5537 = vst.msk [vmem:[#allocation4 + $0x5a0] sm:$0xff] %vm2308_vm6, %v5467_v43  ;;  %6575 = vmatmul.f32.gmra.mxu2 %v5787_v52  ;;  %v6172_v37 = vadd.f32 %v12497_v51, %v6059_v30  ;;  %v6510_v43 = vpop.f32.mrf.mxu2  ;;  %v6728_v45 = vadd.f32 %v6727_v25, %v6615_v13  ;;  %v6392_v40 = vadd.f32 %v12950_v9, %v6279_v24  ;;  %v5747_v30 = vld [vmem:[#allocation4 + $0x458] sm:$0xff]  ;;  %v5754_v13 = vld [vmem:[#allocation4 + $0x490] sm:$0xff] }
 0x6ad   : > { %v6062_v24 = vadd.f32 %v13374_v47, %v12445_v10 }
 0x6ae   : > { %7057 = vrot.lane.b32.xlu2 %v7040_v28, %s15291_s24  ;;  %v6285_v62 = vadd.f32 %v12687_v42, %v6172_v37  ;;  %v6505_v42 = vadd.f32 %v13362_v1, %v6392_v40 }
 0x6af   : > { %7120 = vrot.lane.b32.xlu0 %v7104_v23, %s15293_s14  ;;  %v5277_v20 = vpop.permute.xlu1 %5276 }
 0x6b0   : > { %v6733_v3 = vpop.f32.mrf.mxu1  ;;  %v4830_v51 = vpop.permute.xlu2 %4829  ;;  %v6398_v23 = vadd.f32 %v12975_v39, %v6285_v62  ;;  %v6618_v28 = vadd.f32 %v13365_v54, %v6505_v42  ;;  %v6068_v62 = vadd.f32 %v13374_v47, %v12471_v21 }
 0x6b1   : > { %v6734_v0 = vadd.f32 %v6733_v3, %v6621_v53  ;;  %v4444_v55 = vpop.permute.xlu0 %4443 }
 0x6b2   : > { %4513 = vst.msk [vmem:[#allocation4 + $0x5d0] sm:$0xff] %vm1922_vm4, %v4444_v55  ;;  %v6511_v25 = vadd.f32 %v6510_v43, %v6398_v23  ;;  %v7977_v55 = vld [vmem:[%s15254_s5 + $0x78] sm:$0xff] }
 0x6b3   : > { %v6823_v12 = vmax.f32 %v6728_v45, %v6734_v0  ;;  %4705 = vst.msk [vmem:[#allocation4 + $0x5d0] sm:$0xff] %vm2115_vm5, %v4636_v58  ;;  %9188 = vmatmul.msk.f32.gmra.mxu1 %vm1380_vm2, %v5740_v18  ;;  %v5788_v59 = vld [vmem:[#allocation4 + $0x5a0] sm:$0xff]  ;;  %v6731_v58 = vadd.f32 %v6730_v63, %v6618_v28  ;;  %v6175_v0 = vadd.f32 %v12608_v41, %v6062_v24 }
 0x6b4   : > { %4897 = vst.msk [vmem:[#allocation4 + $0x5d0] sm:$0xff] %vm2308_vm6, %v13377_v17  ;;  %6688 = vmatmul.f32.gmra.mxu3 %v5788_v59  ;;  %v6624_v9 = vadd.f32 %v6623_v22, %v6511_v25  ;;  %v6513_v17 = vpop.f32.mrf.mxu2  ;;  %v4932_v22 = vld [vmem:[#allocation3 + $0x1b0] sm:$0xff]  ;;  %8090 = vmatpush.msrb.mxu2 %v7977_v55  ;;  %v4933_v59 = vld [vmem:[#allocation3 + $0x1b8] sm:$0xff]  ;;  %v6065_v25 = vadd.f32 %v13374_v47, %v12457_v29 }
 0x6b5   : > { %6839 = vst.msk [vmem:[#allocation5] sm:$0xff] %vm1380_vm2, %v6823_v12  ;;  %v6288_v10 = vadd.f32 %v12714_v14, %v6175_v0  ;;  %v5761_v12 = vld [vmem:[#allocation4 + $0x4c8] sm:$0xff] }
 0x6b6   : > { %7216 = vrot.lane.b32.xlu2 %v13360_v36, %s15291_s24  ;;  %4964 = vst.msk [vmem:[#allocation4 + $0x648] sm:$0xff] %vm1380_vm2, %v4932_v22  ;;  %v5775_v22 = vld [vmem:[#allocation4 + $0x538] sm:$0xff] }
 0x6b7   : > { %7280 = vrot.lane.b32.xlu0 %v7264_v27, %s15293_s14  ;;  %v4638_v5 = vpop.permute.xlu1 %4637  ;;  %v6626_v27 = vpop.f32.mrf.mxu3  ;;  %v6401_v42 = vadd.f32 %v12989_v50, %v6288_v10  ;;  %4965 = vst.msk [vmem:[#allocation4 + $0x680] sm:$0xff] %vm1380_vm2, %v4933_v59  ;;  %v6178_v50 = vadd.f32 %v12711_v26, %v6065_v25  ;;  %v6080_v25 = vadd.f32 %v13374_v47, %v12516_v33 }
 0x6b8   : > { %v6736_v39 = vpop.f32.mrf.mxu1  ;;  %v5471_v1 = vpop.permute.xlu2 %5470 }
 0x6b9   : > { %v6737_v48 = vadd.f32 %v6736_v39, %v6624_v9  ;;  %v5085_v52 = vpop.permute.xlu0 %5084  ;;  %v6071_v9 = vadd.f32 %v13374_v47, %v12480_v44  ;;  %v6514_v39 = vadd.f32 %v6513_v17, %v6401_v42  ;;  %v6291_v17 = vadd.f32 %v12734_v32, %v6178_v50  ;;  %v7975_v50 = vld [vmem:[%s15254_s5 + $0x68] sm:$0xff] }
 0x6ba   : > { %5154 = vst.msk [vmem:[#allocation4 + $0x5d8] sm:$0xff] %vm1922_vm4, %v5085_v52 }
 0x6bb   : > { %v6824_v2 = vmax.f32 %v6731_v58, %v6737_v48  ;;  %5346 = vst.msk [vmem:[#allocation4 + $0x5d8] sm:$0xff] %vm2115_vm5, %v5277_v20  ;;  %9189 = vmatmul.msk.f32.gmra.mxu1 %vm1380_vm2, %v5747_v30  ;;  %v5794_v54 = vld [vmem:[#allocation4 + $0x5d0] sm:$0xff]  ;;  %v6181_v20 = vadd.f32 %v12731_v4, %v6068_v62  ;;  %v6184_v52 = vadd.f32 %v12748_v57, %v6071_v9 }
 0x6bc   : > { %5538 = vst.msk [vmem:[#allocation4 + $0x5d8] sm:$0xff] %vm2308_vm6, %v5469_v8  ;;  %6578 = vmatmul.f32.gmra.mxu2 %v5794_v54  ;;  %v13434_v6 = vpop.f32.mrf.mxu2  ;;  %v7976_v4 = vld [vmem:[%s15254_s5 + $0x70] sm:$0xff]  ;;  %v6627_v29 = vadd.f32 %v6626_v27, %v6514_v39 }
 0x6bd   : > { %6840 = vst.msk [vmem:[#allocation5 + $0x8] sm:$0xff] %vm1380_vm2, %v6824_v2  ;;  %v6294_v21 = vadd.f32 %v12751_v31, %v6181_v20  ;;  %8091 = vmatpush.msrb.mxu2 %v7976_v4  ;;  %v6297_v57 = vadd.f32 %v12764_v60, %v6184_v52  ;;  %v7974_v52 = vld [vmem:[%s15254_s5 + $0x60] sm:$0xff] }
 0x6bf   : > { %v5279_v36 = vpop.permute.xlu1 %5278  ;;  %v13441_v8 = vpop.f32.mrf.mxu3  ;;  %v6407_v14 = vadd.f32 %v13014_v46, %v6294_v21  ;;  %8092 = vmatpush.msrb.mxu2 %v7975_v50 }
 0x6c0   : > { %v13432_v63 = vpop.f32.mrf.mxu1  ;;  %v13437_v37 = vpop.permute.xlu2 %4831 }
 0x6c1   : > { %v4446_v61 = vpop.permute.xlu0 %4445  ;;  %8093 = vmatpush.msrb.mxu2 %v7974_v52 }
 0x6c2   : > { %4514 = vst.msk [vmem:[#allocation4 + $0x608] sm:$0xff] %vm1922_vm4, %v4446_v61  ;;  %v5768_v61 = vld [vmem:[#allocation4 + $0x500] sm:$0xff] }
 0x6c3   : > { %4706 = vst.msk [vmem:[#allocation4 + $0x608] sm:$0xff] %vm2115_vm5, %v4638_v5  ;;  %9190 = vmatmul.msk.f32.gmra.mxu1 %vm1380_vm2, %v5754_v13  ;;  %v5795_v53 = vld [vmem:[#allocation4 + $0x5d8] sm:$0xff]  ;;  %v6404_v13 = vadd.f32 %v13000_v7, %v6291_v17 }
 0x6c4   : > { %v6855_v43 = vld [vmem:[#allocation5] ss:$2 sm:$0xff]  ;;  %v6871_v3 = vld [vmem:[#allocation5 + $0x1] ss:$2 sm:$0xff]  ;;  %4898 = vst.msk [vmem:[#allocation4 + $0x608] sm:$0xff] %vm2308_vm6, %v4830_v51  ;;  %6691 = vmatmul.f32.gmra.mxu3 %v5795_v53  ;;  %v6519_v40 = vpop.f32.mrf.mxu2  ;;  %v6410_v53 = vadd.f32 %v13025_v11, %v6297_v57 }
 0x6c5   : > { %v6886_v45 = vmax.f32 %v6855_v43, %v6871_v3  ;;  %v6520_v58 = vadd.f32 %v6519_v40, %v6407_v14  ;;  %v6517_v24 = vadd.f32 %v13434_v6, %v6404_v13  ;;  %v15384_v57 = vld [vmem:[#allocation19_spill] sm:$0xff] }
 0x6c7   : > { %6919 = vst.msk [vmem:[#allocation6 + $0x22] sm:$0xff] %vm1380_vm2, %v6886_v45  ;;  %v4640_v18 = vpop.permute.xlu1 %4639  ;;  %v6632_v28 = vpop.f32.mrf.mxu3  ;;  %v6630_v7 = vadd.f32 %v13441_v8, %v6517_v24 }
 0x6c8   : > { %v13454_v51 = vpop.f32.mrf.mxu1  ;;  %v13463_v23 = vpop.permute.xlu2 %5472  ;;  %v6633_v30 = vadd.f32 %v6632_v28, %v6520_v58  ;;  %v6193_v58 = vadd.f32 %v12790_v56, %v6080_v25 }
 0x6c9   : > { %v5087_v41 = vpop.permute.xlu0 %5086 }
 0x6ca   : > { %5155 = vst.msk [vmem:[#allocation4 + $0x610] sm:$0xff] %vm1922_vm4, %v5087_v41  ;;  %v6306_v56 = vadd.f32 %v12811_v34, %v6193_v58  ;;  %v6077_v34 = vadd.f32 %v13374_v47, %v12504_v38  ;;  %v15386_v38 = vld [vmem:[#allocation33_spill] sm:$0xff] }
 0x6cb   : > { %5347 = vst.msk [vmem:[#allocation4 + $0x610] sm:$0xff] %vm2115_vm5, %v5279_v36  ;;  %9191 = vmatmul.msk.f32.gmra.mxu1 %vm1380_vm2, %v5761_v12  ;;  %v5801_v31 = vld [vmem:[#allocation4 + $0x608] sm:$0xff]  ;;  %v5782_v12 = vld [vmem:[#allocation4 + $0x570] sm:$0xff] }
 0x6cc   : > { %5539 = vst.msk [vmem:[#allocation4 + $0x610] sm:$0xff] %vm2308_vm6, %v5471_v1  ;;  %6581 = vmatmul.f32.gmra.mxu2 %v5801_v31  ;;  %v6740_v1 = vadd.f32 %v13432_v63, %v6627_v29  ;;  %v6522_v36 = vpop.f32.mrf.mxu2  ;;  %v6074_v31 = vadd.f32 %v13374_v47, %v12492_v35 }
 0x6cd   : > { %v6523_v62 = vadd.f32 %v6522_v36, %v6410_v53 }
 0x6ce   : > { %v13476_v46 = vld [vmem:[#allocation6 + $0x23] sm:$0xff]  ;;  %v6187_v39 = vadd.f32 %v12761_v49, %v6074_v31 }
 0x6cf   : > { %v6993_v48 = vld [vmem:[#allocation6 + $0x22] sm:$0xff]  ;;  %7059 = vrot.lane.b32.xlu2 %v13476_v46, %s15291_s24  ;;  %7257 = vst.msk [vmem:[#allocation7 + $0x48] sm:$0xff] %vm1380_vm2, %v13476_v46  ;;  %v5281_v54 = vpop.permute.xlu1 %5280  ;;  %v6635_v63 = vpop.f32.mrf.mxu3 }
 0x6d0   : > { %v6945_v5 = vld [vmem:[#allocation6 + $0x21] sm:$0xff]  ;;  %7011 = vrot.lane.b32.xlu1 %v6993_v48, %s15283_s16  ;;  %v6745_v26 = vpop.f32.mrf.mxu1  ;;  %7416 = vst.msk [vmem:[#allocation7 + $0x18] sm:$0xff] %vm1380_vm2, %v6993_v48  ;;  %v4834_v3 = vpop.permute.xlu2 %4833  ;;  %v6636_v11 = vadd.f32 %v6635_v63, %v6523_v62  ;;  %v6300_v33 = vadd.f32 %v12780_v19, %v6187_v39  ;;  %v5803_v39 = vld [vmem:[#allocation4 + $0x618] sm:$0xff] }
 0x6d1   : > { %v7312_v44 = vld [vmem:[#allocation6 + $0x20] sm:$0xff]  ;;  %6963 = vrot.lane.b32.xlu0 %v6945_v5, %s15293_s14  ;;  %v6746_v2 = vadd.f32 %v6745_v26, %v6633_v30  ;;  %v4448_v27 = vpop.permute.xlu0 %4447  ;;  %v5789_v30 = vld [vmem:[#allocation4 + $0x5a8] sm:$0xff]  ;;  %v6419_v26 = vadd.f32 %v13067_v15, %v6306_v56 }
 0x6d2   : > { %6937 = vst.msk [vmem:[#allocation7 + $0x70] sm:$0xff] %vm1380_vm2, %v7312_v44  ;;  %v7265_v60 = vld [vmem:[#allocation6 + $0x24] sm:$0xff] }
 0x6d3   : > { %4515 = vst.msk [vmem:[#allocation4 + $0x640] sm:$0xff] %vm1922_vm4, %v4448_v27  ;;  %v6825_v43 = vmax.f32 %v6740_v1, %v6746_v2  ;;  %9192 = vmatmul.msk.f32.gmra.mxu1 %vm1380_vm2, %v5768_v61  ;;  %v5802_v32 = vld [vmem:[#allocation4 + $0x610] sm:$0xff]  ;;  %v6083_v1 = vadd.f32 %v13374_v47, %v15384_v57  ;;  %v15388_v62 = vld [vmem:[#allocation36_spill] sm:$0xff] }
 0x6d4   : > { %4707 = vst.msk [vmem:[#allocation4 + $0x640] sm:$0xff] %vm2115_vm5, %v4640_v18  ;;  %6694 = vmatmul.f32.gmra.mxu3 %v5802_v32  ;;  %v13505_v55 = vpop.f32.mrf.mxu2  ;;  %v15385_v15 = vld [vmem:[#allocation29_spill] sm:$0xff] }
 0x6d5   : > { %4899 = vst.msk [vmem:[#allocation4 + $0x640] sm:$0xff] %vm2308_vm6, %v13437_v37  ;;  %v6743_v37 = vadd.f32 %v13454_v51, %v6630_v7  ;;  %v6196_v13 = vadd.f32 %v15386_v38, %v6083_v1  ;;  %v7973_v38 = vld [vmem:[%s15254_s5 + $0x58] sm:$0xff] }
 0x6d6   : > { %6841 = vst.msk [vmem:[#allocation5 + $0x10] sm:$0xff] %vm1380_vm2, %v6825_v43  ;;  %8094 = vmatpush.msrb.mxu2 %v7973_v38 }
 0x6d7   : > { %7097 = vst.msk [vmem:[#allocation7 + $0x78] sm:$0xff] %vm1380_vm2, %v7265_v60  ;;  %7376 = vrot.lane.b32.xlu2 %v6945_v5, %s15291_s24  ;;  %v4642_v20 = vpop.permute.xlu1 %4641  ;;  %v13510_v21 = vpop.f32.mrf.mxu3  ;;  %v6309_v7 = vadd.f32 %v15388_v62, %v6196_v13  ;;  %v7992_v13 = vld [vmem:[%s15254_s5 + $0xf0] sm:$0xff] }
 0x6d8   : > { %7328 = vrot.lane.b32.xlu1 %v7312_v44, %s15283_s16  ;;  %v6748_v45 = vpop.f32.mrf.mxu1  ;;  %v5475_v51 = vpop.permute.xlu2 %5474  ;;  %v15396_v62 = vld [vmem:[#allocation46_spill] sm:$0xff] }
 0x6d9   : > { %7122 = vrot.lane.b32.xlu0 %v7312_v44, %s15293_s14  ;;  %v6749_v0 = vadd.f32 %v6748_v45, %v6636_v11  ;;  %v5089_v6 = vpop.permute.xlu0 %5088  ;;  %v6413_v44 = vadd.f32 %v13039_v16, %v6300_v33 }
 0x6da   : > { %5156 = vst.msk [vmem:[#allocation4 + $0x648] sm:$0xff] %vm1922_vm4, %v5089_v6  ;;  %v5796_v6 = vld [vmem:[#allocation4 + $0x5e0] sm:$0xff] }
 0x6db   : > { %v6826_v10 = vmax.f32 %v6743_v37, %v6749_v0  ;;  %5348 = vst.msk [vmem:[#allocation4 + $0x648] sm:$0xff] %vm2115_vm5, %v5281_v54  ;;  %9193 = vmatmul.msk.f32.gmra.mxu1 %vm1380_vm2, %v5775_v22  ;;  %v6526_v2 = vadd.f32 %v13505_v55, %v6413_v44  ;;  %v6190_v54 = vadd.f32 %v15385_v15, %v6077_v34  ;;  %v15389_v55 = vld [vmem:[#allocation62_spill] sm:$0xff] }
 0x6dc   : > { %v5808_v8 = vld [vmem:[#allocation4 + $0x640] sm:$0xff]  ;;  %5540 = vst.msk [vmem:[#allocation4 + $0x648] sm:$0xff] %vm2308_vm6, %v13463_v23  ;;  %v13520_v40 = vpop.f32.mrf.mxu2 }
 0x6dd   : > { %6584 = vmatmul.f32.gmra.mxu2 %v5808_v8  ;;  %6842 = vst.msk [vmem:[#allocation5 + $0x18] sm:$0xff] %vm1380_vm2, %v6826_v10  ;;  %v6639_v53 = vadd.f32 %v13510_v21, %v6526_v2  ;;  %v15390_v10 = vld [vmem:[#allocation65_spill] sm:$0xff] }
 0x6de   : > { %v6422_v8 = vadd.f32 %v15390_v10, %v6309_v7 }
 0x6df   : > { %7218 = vrot.lane.b32.xlu2 %v6993_v48, %s15291_s24  ;;  %v5283_v4 = vpop.permute.xlu1 %5282  ;;  %v13525_v59 = vpop.f32.mrf.mxu3  ;;  %v4934_v48 = vld [vmem:[#allocation3 + $0x1c8] sm:$0xff] }
 0x6e0   : > { %7170 = vrot.lane.b32.xlu1 %v6945_v5, %s15283_s16  ;;  %v13518_v18 = vpop.f32.mrf.mxu1  ;;  %v13532_v9 = vpop.permute.xlu2 %4835  ;;  %4966 = vst.msk [vmem:[#allocation4 + $0x6b8] sm:$0xff] %vm1380_vm2, %v4934_v48 }
 0x6e1   : > { %7282 = vrot.lane.b32.xlu0 %v7265_v60, %s15293_s14  ;;  %v4450_v41 = vpop.permute.xlu0 %4449  ;;  %v6752_v11 = vadd.f32 %v13518_v18, %v6639_v53  ;;  %v6927_v53 = vld [vmem:[#allocation6] sm:$0xff] }
 0x6e2   : > { %4516 = vst.msk [vmem:[#allocation4 + $0x678] sm:$0xff] %vm1922_vm4, %v4450_v41 }
 0x6e3   : > { %4708 = vst.msk [vmem:[#allocation4 + $0x678] sm:$0xff] %vm2115_vm5, %v4642_v20  ;;  %9194 = vmatmul.msk.f32.gmra.mxu1 %vm1380_vm2, %v5782_v12  ;;  %v5809_v23 = vld [vmem:[#allocation4 + $0x648] sm:$0xff] }
 0x6e4   : > { %v6857_v42 = vld [vmem:[#allocation5 + $0x10] ss:$2 sm:$0xff]  ;;  %v6873_v14 = vld [vmem:[#allocation5 + $0x11] ss:$2 sm:$0xff]  ;;  %4900 = vst.msk [vmem:[#allocation4 + $0x678] sm:$0xff] %vm2308_vm6, %v4834_v3  ;;  %6697 = vmatmul.f32.gmra.mxu3 %v5809_v23  ;;  %v6531_v29 = vpop.f32.mrf.mxu2 }
 0x6e5   : > { %v6887_v28 = vmax.f32 %v6857_v42, %v6873_v14  ;;  %v6532_v16 = vadd.f32 %v6531_v29, %v6419_v26  ;;  %v15387_v3 = vld [vmem:[#allocation31_spill] sm:$0xff]  ;;  %v5574_v23 = vld [vmem:[#allocation3 + $0x1cc] sm:$0xff]  ;;  %6935 = vst.msk [vmem:[#allocation7] sm:$0xff] %vm1380_vm2, %v6927_v53 }
 0x6e6   : > { %v6303_v24 = vadd.f32 %v15387_v3, %v6190_v54  ;;  %v7993_v42 = vld [vmem:[%s15254_s5 + $0xf8] sm:$0xff]  ;;  %5606 = vst.msk [vmem:[#allocation4 + $0x6c0] sm:$0xff] %vm1380_vm2, %v5574_v23  ;;  %v15394_v54 = vld [vmem:[#allocation44_spill] sm:$0xff] }
 0x6e7   : > { %6920 = vst.msk [vmem:[#allocation6 + $0x32] sm:$0xff] %vm1380_vm2, %v6887_v28  ;;  %v4644_v5 = vpop.permute.xlu1 %4643  ;;  %v6644_v17 = vpop.f32.mrf.mxu3  ;;  %8131 = vmatpush.msrb.mxu3 %v7993_v42  ;;  %v15395_v3 = vld [vmem:[#allocation38_spill] sm:$0xff] }
 0x6e8   : > { %7488 = vrot.lane.b32.xlu1 %v7265_v60, %s15283_s16  ;;  %v13543_v35 = vpop.f32.mrf.mxu1  ;;  %v6645_v43 = vadd.f32 %v6644_v17, %v6532_v16  ;;  %v5477_v63 = vpop.permute.xlu2 %5476  ;;  %v6416_v22 = vadd.f32 %v15389_v55, %v6303_v24  ;;  %v15392_v17 = vld [vmem:[#allocation22_spill] sm:$0xff]  ;;  %v15393_v16 = vld [vmem:[#allocation35_spill] sm:$0xff] }
 0x6e9   : > { %7440 = vrot.lane.b32.xlu0 %v13476_v46, %s15293_s14  ;;  %v5091_v49 = vpop.permute.xlu0 %5090  ;;  %v4935_v46 = vld [vmem:[#allocation3 + $0x1d0] sm:$0xff]  ;;  %v6092_v57 = vadd.f32 %v13374_v47, %v15392_v17  ;;  %8132 = vmatpush.msrb.mxu3 %v7992_v13  ;;  %v15398_v55 = vld [vmem:[#allocation71_spill] sm:$0xff] }
 0x6ea   : > { %5157 = vst.msk [vmem:[#allocation4 + $0x680] sm:$0xff] %vm1922_vm4, %v5091_v49  ;;  %v6529_v41 = vadd.f32 %v13520_v40, %v6416_v22  ;;  %v5810_v49 = vld [vmem:[#allocation4 + $0x650] sm:$0xff] }
 0x6eb   : > { %5349 = vst.msk [vmem:[#allocation4 + $0x680] sm:$0xff] %vm2115_vm5, %v5283_v4  ;;  %9195 = vmatmul.msk.f32.gmra.mxu1 %vm1380_vm2, %v5789_v30  ;;  %v5815_v19 = vld [vmem:[#allocation4 + $0x678] sm:$0xff] }
 0x6ec   : > { %5541 = vst.msk [vmem:[#allocation4 + $0x680] sm:$0xff] %vm2308_vm6, %v5475_v51  ;;  %6587 = vmatmul.f32.gmra.mxu2 %v5815_v19  ;;  %v6534_v20 = vpop.f32.mrf.mxu2  ;;  %v6642_v14 = vadd.f32 %v13525_v59, %v6529_v41  ;;  %v15391_v19 = vld [vmem:[#allocation20_spill] sm:$0xff]  ;;  %v15400_v41 = vld [vmem:[#allocation23_spill] sm:$0xff] }
 0x6ed   : > { %4967 = vst.msk [vmem:[#allocation4 + $0x6f0] sm:$0xff] %vm1380_vm2, %v4935_v46  ;;  %v6535_v4 = vadd.f32 %v6534_v20, %v6422_v8  ;;  %v6086_v34 = vadd.f32 %v13374_v47, %v15391_v19  ;;  %v15397_v20 = vld [vmem:[#allocation67_spill] sm:$0xff]  ;;  %v15399_v8 = vld [vmem:[#allocation21_spill] sm:$0xff] }
 0x6ee   : > { %v13564_v27 = vld [vmem:[#allocation6 + $0x33] sm:$0xff]  ;;  %v6755_v25 = vadd.f32 %v13543_v35, %v6642_v14 }
 0x6ef   : > { %v13566_v36 = vld [vmem:[#allocation6 + $0x32] sm:$0xff]  ;;  %7061 = vrot.lane.b32.xlu2 %v13564_v27, %s15291_s24  ;;  %7258 = vst.msk [vmem:[#allocation7 + $0x80] sm:$0xff] %vm1380_vm2, %v13564_v27  ;;  %v5285_v0 = vpop.permute.xlu1 %5284  ;;  %v6647_v18 = vpop.f32.mrf.mxu3  ;;  %v6199_v15 = vadd.f32 %v15393_v16, %v6086_v34  ;;  %v15405_v16 = vld [vmem:[#allocation69_spill] sm:$0xff] }
 0x6f0   : > { %v13568_v61 = vld [vmem:[#allocation6 + $0x31] sm:$0xff]  ;;  %7013 = vrot.lane.b32.xlu1 %v13566_v36, %s15283_s16  ;;  %v6757_v60 = vpop.f32.mrf.mxu1  ;;  %v6648_v31 = vadd.f32 %v6647_v18, %v6535_v4  ;;  %7417 = vst.msk [vmem:[#allocation7 + $0x50] sm:$0xff] %vm1380_vm2, %v13566_v36  ;;  %v4838_v33 = vpop.permute.xlu2 %4837  ;;  %v6095_v4 = vadd.f32 %v13374_v47, %v15400_v41 }
 0x6f1   : > { %v13576_v32 = vld [vmem:[#allocation6 + $0x30] sm:$0xff]  ;;  %6965 = vrot.lane.b32.xlu0 %v13568_v61, %s15293_s14  ;;  %v6758_v45 = vadd.f32 %v6757_v60, %v6645_v43  ;;  %v4452_v37 = vpop.permute.xlu0 %4451  ;;  %7577 = vst.msk [vmem:[#allocation7 + $0x20] sm:$0xff] %vm1380_vm2, %v13568_v61  ;;  %v5817_v60 = vld [vmem:[#allocation4 + $0x688] sm:$0xff]  ;;  %v6312_v24 = vadd.f32 %v15395_v3, %v6199_v15  ;;  %v7989_v14 = vld [vmem:[%s15254_s5 + $0xd8] sm:$0xff] }
 0x6f2   : > { %6938 = vst.msk [vmem:[#allocation7 + $0xa8] sm:$0xff] %vm1380_vm2, %v13576_v32  ;;  %v13598_v12 = vld [vmem:[#allocation6 + $0x34] sm:$0xff]  ;;  %v15406_v15 = vld [vmem:[#allocation73_spill] sm:$0xff]  ;;  %v7986_v3 = vld [vmem:[%s15254_s5 + $0xc0] sm:$0xff] }
 0x6f3   : > { %4517 = vst.msk [vmem:[#allocation4 + $0x6b0] sm:$0xff] %vm1922_vm4, %v4452_v37  ;;  %v6827_v21 = vmax.f32 %v6752_v11, %v6758_v45  ;;  %9196 = vmatmul.msk.f32.gmra.mxu1 %vm1380_vm2, %v5796_v6  ;;  %v5816_v51 = vld [vmem:[#allocation4 + $0x680] sm:$0xff]  ;;  %v6425_v6 = vadd.f32 %v15397_v20, %v6312_v24 }
 0x6f4   : > { %4709 = vst.msk [vmem:[#allocation4 + $0x6b0] sm:$0xff] %vm2115_vm5, %v4644_v5  ;;  %6700 = vmatmul.f32.gmra.mxu3 %v5816_v51  ;;  %v7990_v37 = vld [vmem:[%s15254_s5 + $0xe0] sm:$0xff] }
 0x6f5   : > { %4901 = vst.msk [vmem:[#allocation4 + $0x6b0] sm:$0xff] %vm2308_vm6, %v13532_v9  ;;  %v13616_v9 = vpop.f32.mrf.mxu2 }
 0x6f6   : > { %6843 = vst.msk [vmem:[#allocation5 + $0x20] sm:$0xff] %vm1380_vm2, %v6827_v21  ;;  %v6089_v21 = vadd.f32 %v13374_v47, %v15399_v8  ;;  %v6538_v23 = vadd.f32 %v13616_v9, %v6425_v6  ;;  %v15402_v9 = vld [vmem:[#allocation48_spill] sm:$0xff]  ;;  %v7984_v8 = vld [vmem:[%s15254_s5 + $0xb0] sm:$0xff] }
 0x6f7   : > { %7378 = vrot.lane.b32.xlu2 %v13568_v61, %s15291_s24  ;;  %7098 = vst.msk [vmem:[#allocation7 + $0xb0] sm:$0xff] %vm1380_vm2, %v13598_v12  ;;  %v4646_v58 = vpop.permute.xlu1 %4645  ;;  %v13621_v56 = vpop.f32.mrf.mxu3 }
 0x6f8   : > { %7330 = vrot.lane.b32.xlu1 %v13576_v32, %s15283_s16  ;;  %v6760_v40 = vpop.f32.mrf.mxu1  ;;  %v5479_v2 = vpop.permute.xlu2 %5478 }
 0x6f9   : > { %7124 = vrot.lane.b32.xlu0 %v13576_v32, %s15293_s14  ;;  %v6761_v59 = vadd.f32 %v6760_v40, %v6648_v31  ;;  %v5093_v28 = vpop.permute.xlu0 %5092  ;;  %v7087_v31 = vld [vmem:[#allocation6 + $0x4] sm:$0xff] }
 0x6fa   : > { %5158 = vst.msk [vmem:[#allocation4 + $0x6b8] sm:$0xff] %vm1922_vm4, %v5093_v28  ;;  %v15401_v40 = vld [vmem:[#allocation40_spill] sm:$0xff] }
 0x6fb   : > { %v6828_v50 = vmax.f32 %v6755_v25, %v6761_v59  ;;  %5350 = vst.msk [vmem:[#allocation4 + $0x6b8] sm:$0xff] %vm2115_vm5, %v5285_v0  ;;  %9197 = vmatmul.msk.f32.gmra.mxu1 %vm1380_vm2, %v5803_v39  ;;  %v7971_v0 = vld [vmem:[%s15254_s5 + $0x48] sm:$0xff]  ;;  %v6202_v25 = vadd.f32 %v15401_v40, %v6089_v21  ;;  %v7970_v39 = vld [vmem:[%s15254_s5 + $0x40] sm:$0xff] }
 0x6fc   : > { %v5822_v48 = vld [vmem:[#allocation4 + $0x6b0] sm:$0xff]  ;;  %5542 = vst.msk [vmem:[#allocation4 + $0x6b8] sm:$0xff] %vm2308_vm6, %v5477_v63  ;;  %v7963_v40 = vld [vmem:[%s15254_s5 + $0x8] sm:$0xff] }
 0x6fd   : > { %6590 = vmatmul.f32.gmra.mxu2 %v5822_v48  ;;  %6844 = vst.msk [vmem:[#allocation5 + $0x28] sm:$0xff] %vm1380_vm2, %v6828_v50  ;;  %v13633_v52 = vpop.f32.mrf.mxu2  ;;  %v5575_v63 = vld [vmem:[#allocation3 + $0x1d4] sm:$0xff]  ;;  %v6651_v50 = vadd.f32 %v13621_v56, %v6538_v23 }
 0x6fe   : > { %5607 = vst.msk [vmem:[#allocation4 + $0x6f8] sm:$0xff] %vm1380_vm2, %v5575_v63  ;;  %v7964_v23 = vld [vmem:[%s15254_s5 + $0x10] sm:$0xff] }
 0x6ff   : > { %7220 = vrot.lane.b32.xlu2 %v13566_v36, %s15291_s24  ;;  %v13638_v30 = vpop.f32.mrf.mxu3  ;;  %v5287_v26 = vpop.permute.xlu1 %5286  ;;  %7095 = vst.msk [vmem:[#allocation7 + $0x8] sm:$0xff] %vm1380_vm2, %v7087_v31 }
 0x700   : > { %7172 = vrot.lane.b32.xlu1 %v13568_v61, %s15283_s16  ;;  %v13631_v35 = vpop.f32.mrf.mxu1  ;;  %v6205_v61 = vadd.f32 %v15394_v54, %v6092_v57 }
 0x701   : > { %7284 = vrot.lane.b32.xlu0 %v13598_v12, %s15293_s14  ;;  %v4454_v5 = vpop.permute.xlu0 %4453  ;;  %v6764_v34 = vadd.f32 %v13631_v35, %v6651_v50 }
 0x702   : > { %4518 = vst.msk [vmem:[#allocation4 + $0x6e8] sm:$0xff] %vm1922_vm4, %v4454_v5  ;;  %v6318_v7 = vadd.f32 %v15396_v62, %v6205_v61  ;;  %v7988_v5 = vld [vmem:[%s15254_s5 + $0xd0] sm:$0xff] }
 0x703   : > { %4710 = vst.msk [vmem:[#allocation4 + $0x6e8] sm:$0xff] %vm2115_vm5, %v4646_v58  ;;  %9198 = vmatmul.msk.f32.gmra.mxu1 %vm1380_vm2, %v5810_v49  ;;  %v5823_v29 = vld [vmem:[#allocation4 + $0x6b8] sm:$0xff]  ;;  %v6208_v58 = vadd.f32 %v15402_v9, %v6095_v4  ;;  %v7982_v4 = vld [vmem:[%s15254_s5 + $0xa0] sm:$0xff] }
 0x704   : > { %v6859_v46 = vld [vmem:[#allocation5 + $0x20] ss:$2 sm:$0xff]  ;;  %v6875_v44 = vld [vmem:[#allocation5 + $0x21] ss:$2 sm:$0xff]  ;;  %4902 = vst.msk [vmem:[#allocation4 + $0x6e8] sm:$0xff] %vm2308_vm6, %v4838_v33  ;;  %6703 = vmatmul.f32.gmra.mxu3 %v5823_v29  ;;  %v6431_v22 = vadd.f32 %v15398_v55, %v6318_v7  ;;  %v7056_v33 = vpop.permute.xlu2 %7055  ;;  %v15403_v29 = vld [vmem:[#allocation42_spill] sm:$0xff] }
 0x705   : > { %v6888_v1 = vmax.f32 %v6859_v46, %v6875_v44  ;;  %v6543_v45 = vpop.f32.mrf.mxu2  ;;  %v6315_v46 = vadd.f32 %v15403_v29, %v6202_v25  ;;  %v5824_v44 = vld [vmem:[#allocation4 + $0x6c0] sm:$0xff]  ;;  %v5831_v20 = vld [vmem:[#allocation4 + $0x6f8] sm:$0xff] }
 0x706   : > { %v6544_v42 = vadd.f32 %v6543_v45, %v6431_v22 }
 0x707   : > { %6921 = vst.msk [vmem:[#allocation6 + $0x42] sm:$0xff] %vm1380_vm2, %v6888_v1  ;;  %7537 = vrot.lane.b32.xlu2 %v13576_v32, %s15291_s24  ;;  %v7991_v32 = vld [vmem:[%s15254_s5 + $0xe8] sm:$0xff]  ;;  %v6656_v51 = vpop.f32.mrf.mxu3  ;;  %v7008_v18 = vpop.permute.xlu1 %7007  ;;  %v6428_v35 = vadd.f32 %v15405_v16, %v6315_v46 }
 0x708   : > { %7649 = vrot.lane.b32.xlu1 %v13564_v27, %s15283_s16  ;;  %v13660_v43 = vpop.f32.mrf.mxu1  ;;  %8133 = vmatpush.msrb.mxu3 %v7991_v32  ;;  %v6657_v48 = vadd.f32 %v6656_v51, %v6544_v42  ;;  %v7987_v1 = vld [vmem:[%s15254_s5 + $0xc8] sm:$0xff]  ;;  %v7965_v51 = vld [vmem:[%s15254_s5 + $0x18] sm:$0xff] }
 0x709   : > { %7601 = vrot.lane.b32.xlu0 %v13566_v36, %s15293_s14  ;;  %v5095_v11 = vpop.permute.xlu0 %5094  ;;  %v7972_v36 = vld [vmem:[%s15254_s5 + $0x50] sm:$0xff]  ;;  %v6541_v32 = vadd.f32 %v13633_v52, %v6428_v35  ;;  %v7981_v42 = vld [vmem:[%s15254_s5 + $0x98] sm:$0xff] }
 0x70a   : > { %5159 = vst.msk [vmem:[#allocation4 + $0x6f0] sm:$0xff] %vm1922_vm4, %v5095_v11  ;;  %8095 = vmatpush.msrb.mxu2 %v7972_v36  ;;  %8134 = vmatpush.msrb.mxu3 %v7990_v37  ;;  %v7967_v11 = vld [vmem:[%s15254_s5 + $0x28] sm:$0xff]  ;;  %v7985_v37 = vld [vmem:[%s15254_s5 + $0xb8] sm:$0xff] }
 0x70b   : > { %5351 = vst.msk [vmem:[#allocation4 + $0x6f0] sm:$0xff] %vm2115_vm5, %v5287_v26  ;;  %9199 = vmatmul.msk.f32.gmra.mxu1 %vm1380_vm2, %v5817_v60  ;;  %v5829_v10 = vld [vmem:[#allocation4 + $0x6e8] sm:$0xff]  ;;  %v15404_v26 = vld [vmem:[#allocation50_spill] sm:$0xff]  ;;  %v6654_v36 = vadd.f32 %v13638_v30, %v6541_v32  ;;  %v7966_v30 = vld [vmem:[%s15254_s5 + $0x20] sm:$0xff] }
 0x70c   : > { %5543 = vst.msk [vmem:[#allocation4 + $0x6f0] sm:$0xff] %vm2308_vm6, %v5479_v2  ;;  %6593 = vmatmul.f32.gmra.mxu2 %v5829_v10  ;;  %8135 = vmatpush.msrb.mxu3 %v7989_v14  ;;  %v6321_v19 = vadd.f32 %v15404_v26, %v6208_v58  ;;  %v7968_v2 = vld [vmem:[%s15254_s5 + $0x30] sm:$0xff]  ;;  %v7058_v22 = vpop.permute.xlu2 %7057  ;;  %v7962_v58 = vld [vmem:[%s15254_s5] sm:$0xff] }
 0x70d   : > { %8096 = vmatpush.msrb.mxu2 %v7971_v0  ;;  %v6767_v6 = vadd.f32 %v13660_v43, %v6654_v36  ;;  %v15412_v35 = vld [vmem:[#allocation57_spill] sm:$0xff]  ;;  %v15414_v32 = vld [vmem:[#allocation79_spill] sm:$0xff] }
 0x70e   : > { %v13693_v59 = vld [vmem:[#allocation6 + $0x43] sm:$0xff]  ;;  %8136 = vmatpush.msrb.mxu3 %v7988_v5  ;;  %v6434_v54 = vadd.f32 %v15406_v15, %v6321_v19  ;;  %v15416_v36 = vld [vmem:[#allocation27_spill] sm:$0xff] }
 0x70f   : > { %v13695_v28 = vld [vmem:[#allocation6 + $0x41] sm:$0xff]  ;;  %7697 = vrot.lane.b32.xlu2 %v13598_v12, %s15291_s24  ;;  %7259 = vst.msk [vmem:[#allocation7 + $0xb8] sm:$0xff] %vm1380_vm2, %v13693_v59  ;;  %8097 = vmatpush.msrb.mxu2 %v7970_v39  ;;  %v6659_v53 = vpop.f32.mrf.mxu3  ;;  %v7010_v7 = vpop.permute.xlu1 %7009  ;;  %v7980_v39 = vld [vmem:[%s15254_s5 + $0x90] sm:$0xff] }
 0x710   : > { %7490 = vrot.lane.b32.xlu1 %v13598_v12, %s15283_s16  ;;  %v13707_v49 = vld [vmem:[#allocation6 + $0x40] sm:$0xff]  ;;  %v6769_v56 = vpop.f32.mrf.mxu1  ;;  %v7969_v12 = vld [vmem:[%s15254_s5 + $0x38] sm:$0xff]  ;;  %7578 = vst.msk [vmem:[#allocation7 + $0x58] sm:$0xff] %vm1380_vm2, %v13695_v28  ;;  %8137 = vmatpush.msrb.mxu3 %v7987_v1 }
 0x711   : > { %7442 = vrot.lane.b32.xlu0 %v13564_v27, %s15293_s14  ;;  %6939 = vst.msk [vmem:[#allocation7 + $0xe0] sm:$0xff] %vm1380_vm2, %v13707_v49  ;;  %v6770_v17 = vadd.f32 %v6769_v56, %v6657_v48  ;;  %v6960_v57 = vpop.permute.xlu0 %6959  ;;  %v6546_v27 = vpop.f32.mrf.mxu2  ;;  %8098 = vmatpush.msrb.mxu2 %v7969_v12  ;;  %v13737_v13 = vld [vmem:[#allocation6 + $0x44] sm:$0xff]  ;;  %v15408_v12 = vld [vmem:[#allocation26_spill] sm:$0xff] }
 0x712   : > { %6983 = vst.msk [vmem:[#allocation7] sm:$0xff] %vm1922_vm4, %v6960_v57  ;;  %v13740_v60 = vld [vmem:[#allocation6 + $0x42] sm:$0xff]  ;;  %v6547_v63 = vadd.f32 %v6546_v27, %v6434_v54  ;;  %8138 = vmatpush.msrb.mxu3 %v7986_v3  ;;  %v6104_v26 = vadd.f32 %v13374_v47, %v15408_v12 }
 0x713   : > { %v6829_v61 = vmax.f32 %v6764_v34, %v6770_v17  ;;  %9200 = vmatmul.msk.f32.gmra.mxu1 %vm1380_vm2, %v5824_v44  ;;  %v5830_v38 = vld [vmem:[#allocation4 + $0x6f0] sm:$0xff]  ;;  %7031 = vst.msk [vmem:[#allocation7] sm:$0xff] %vm2115_vm5, %v7008_v18  ;;  %8099 = vmatpush.msrb.mxu2 %v7968_v2  ;;  %v7730_v24 = vld [vmem:[#allocation6 + $0x40] sm:$0xff]  ;;  %v7983_v18 = vld [vmem:[%s15254_s5 + $0xa8] sm:$0xff] }
 0x714   : > { %6706 = vmatmul.f32.gmra.mxu3 %v5830_v38  ;;  %7079 = vst.msk [vmem:[#allocation7] sm:$0xff] %vm2308_vm6, %v7056_v33  ;;  %v13747_v62 = vld [vmem:[#allocation6 + $0x42] sm:$0xff]  ;;  %v6660_v45 = vadd.f32 %v6659_v53, %v6547_v63  ;;  %v7217_v50 = vpop.permute.xlu2 %7216  ;;  %v15411_v2 = vld [vmem:[#allocation53_spill] sm:$0xff]  ;;  %v15413_v38 = vld [vmem:[#allocation75_spill] sm:$0xff] }
 0x715   : > { %6845 = vst.msk [vmem:[#allocation5 + $0x30] sm:$0xff] %vm1380_vm2, %v6829_v61  ;;  %v7890_v52 = vld [vmem:[#allocation6 + $0x44] sm:$0xff]  ;;  %8100 = vmatpush.msrb.mxu2 %v7967_v11  ;;  %8139 = vmatpush.msrb.mxu3 %v7985_v37 }
 0x716   : > { %7099 = vst.msk [vmem:[#allocation7 + $0xe8] sm:$0xff] %vm1380_vm2, %v13737_v13  ;;  %v7979_v48 = vld [vmem:[%s15254_s5 + $0x88] sm:$0xff]  ;;  %v7978_v34 = vld [vmem:[%s15254_s5 + $0x80] sm:$0xff] }
 0x717   : > { %7063 = vrot.lane.b32.xlu2 %v13693_v59, %s15291_s24  ;;  %7418 = vst.msk [vmem:[#allocation7 + $0x88] sm:$0xff] %vm1380_vm2, %v13740_v60  ;;  %8101 = vmatpush.msrb.mxu2 %v7966_v30  ;;  %v13786_v41 = vpop.f32.mrf.mxu3  ;;  %v7169_v31 = vpop.permute.xlu1 %7168  ;;  %v15407_v56 = vld [vmem:[#allocation24_spill] sm:$0xff]  ;;  %v15417_v30 = vld [vmem:[#allocation54_spill] sm:$0xff] }
 0x718   : > { %7015 = vrot.lane.b32.xlu1 %v13747_v62, %s15283_s16  ;;  %v6772_v0 = vpop.f32.mrf.mxu1  ;;  %7738 = vst.msk [vmem:[#allocation7 + $0x28] sm:$0xff] %vm1380_vm2, %v7730_v24  ;;  %8140 = vmatpush.msrb.mxu3 %v7984_v8  ;;  %v6098_v44 = vadd.f32 %v13374_v47, %v15407_v56  ;;  %v15409_v17 = vld [vmem:[#allocation52_spill] sm:$0xff] }
 0x719   : > { %6967 = vrot.lane.b32.xlu0 %v13695_v28, %s15293_s14  ;;  %v6773_v55 = vadd.f32 %v6772_v0, %v6660_v45  ;;  %v6962_v10 = vpop.permute.xlu0 %6961  ;;  %7898 = vst.msk [vmem:[#allocation7 + $0x30] sm:$0xff] %vm1380_vm2, %v7890_v52  ;;  %v13775_v21 = vpop.f32.mrf.mxu2  ;;  %8102 = vmatpush.msrb.mxu2 %v7965_v51  ;;  %v15410_v27 = vld [vmem:[#allocation56_spill] sm:$0xff] }
 0x71a   : > { %6984 = vst.msk [vmem:[#allocation7 + $0x38] sm:$0xff] %vm1922_vm4, %v6962_v10  ;;  %8141 = vmatpush.msrb.mxu3 %v7983_v18  ;;  %v6211_v57 = vadd.f32 %v15409_v17, %v6098_v44  ;;  %v6217_v1 = vadd.f32 %v15410_v27, %v6104_v26 }
 0x71b   : > { %v6830_v43 = vmax.f32 %v6767_v6, %v6773_v55  ;;  %9201 = vmatmul.msk.f32.gmra.mxu1 %vm1380_vm2, %v5831_v20  ;;  %7032 = vst.msk [vmem:[#allocation7 + $0x38] sm:$0xff] %vm2115_vm5, %v7010_v7  ;;  %8103 = vmatpush.msrb.mxu2 %v7964_v23  ;;  %v7906_v33 = vld [vmem:[#allocation7] sm:$0xff]  ;;  %v15415_v7 = vld [vmem:[#allocation25_spill] sm:$0xff] }
 0x71c   : > { %7080 = vst.msk [vmem:[#allocation7 + $0x38] sm:$0xff] %vm2308_vm6, %v7058_v22  ;;  %8142 = vmatpush.msrb.mxu3 %v7982_v4  ;;  %v6324_v16 = vadd.f32 %v15411_v2, %v6211_v57  ;;  %v6330_v15 = vadd.f32 %v15412_v35, %v6217_v1  ;;  %v15418_v22 = vld [vmem:[#allocation58_spill] sm:$0xff] }
 0x71d   : > { %6846 = vst.msk [vmem:[#allocation5 + $0x38] sm:$0xff] %vm1380_vm2, %v6830_v43  ;;  %8104 = vmatpush.msrb.mxu2 %v7963_v40 }
 0x71e   : > { %8143 = vmatpush.msrb.mxu3 %v7981_v42  ;;  %v6437_v53 = vadd.f32 %v15413_v38, %v6324_v16  ;;  %v6443_v63 = vadd.f32 %v15414_v32, %v6330_v15  ;;  %v15420_v42 = vld [vmem:[#allocation59_spill] sm:$0xff]  ;;  %v15423_v38 = vld [vmem:[#allocation28_spill] sm:$0xff] }
 0x71f   : > { %7380 = vrot.lane.b32.xlu2 %v13695_v28, %s15291_s24  ;;  %v13823_v5 = vpop.f32.mrf.mxu3  ;;  %8105 = vmatpush.msrb.mxu2 %v7962_v58  ;;  %v15424_v32 = vld [vmem:[#allocation32_spill] sm:$0xff] }
 0x720   : > { %7332 = vrot.lane.b32.xlu1 %v13707_v49, %s15283_s16  ;;  %v13805_v14 = vpop.f32.mrf.mxu1  ;;  %8144 = vmatpush.msrb.mxu3 %v7980_v39  ;;  %v6550_v37 = vadd.f32 %v13775_v21, %v6437_v53 }
 0x721   : > { %7126 = vrot.lane.b32.xlu0 %v13707_v49, %s15293_s14  ;;  %v7121_v25 = vpop.permute.xlu0 %7120  ;;  %v13813_v9 = vpop.f32.mrf.mxu2  ;;  %8106 = vmatmul.f32.vlgmr.msrb.gmra.mxu2 %v7906_v33 }
 0x722   : > { %7144 = vst.msk [vmem:[#allocation7 + $0x8] sm:$0xff] %vm1922_vm4, %v7121_v25  ;;  %8145 = vmatpush.msrb.mxu3 %v7979_v48  ;;  %v6663_v8 = vadd.f32 %v13786_v41, %v6550_v37  ;;  %v15422_v48 = vld [vmem:[#allocation12_spill] sm:$0xff] }
 0x723   : > { %7192 = vst.msk [vmem:[#allocation7 + $0x8] sm:$0xff] %vm2115_vm5, %v7169_v31  ;;  %v7913_v24 = vld [vmem:[#allocation7 + $0x38] sm:$0xff] }
 0x724   : > { %v6861_v29 = vld [vmem:[#allocation5 + $0x30] ss:$2 sm:$0xff]  ;;  %v6877_v46 = vld [vmem:[#allocation5 + $0x31] ss:$2 sm:$0xff]  ;;  %7240 = vst.msk [vmem:[#allocation7 + $0x8] sm:$0xff] %vm2308_vm6, %v7217_v50  ;;  %8146 = vmatpush.msrb.mxu3 %v7978_v34  ;;  %v6776_v40 = vadd.f32 %v13805_v14, %v6663_v8 }
 0x725   : > { %v6889_v19 = vmax.f32 %v6861_v29, %v6877_v46  ;;  %v15429_v8 = vld [vmem:[#allocation82_spill] sm:$0xff] }
 0x727   : > { %6922 = vst.msk [vmem:[#allocation6 + $0x52] sm:$0xff] %vm1380_vm2, %v6889_v19  ;;  %7222 = vrot.lane.b32.xlu2 %v13747_v62, %s15291_s24  ;;  %v6668_v52 = vpop.f32.mrf.mxu3 }
 0x728   : > { %7174 = vrot.lane.b32.xlu1 %v13695_v28, %s15283_s16  ;;  %v6778_v47 = vpop.f32.mrf.mxu1  ;;  %v13850_v28 = vld [vmem:[%s15253_s4] ss:$0 sm:$0xff] }
 0x729   : > { %7286 = vrot.lane.b32.xlu0 %v13737_v13, %s15293_s14  ;;  %v7281_v54 = vpop.permute.xlu0 %7280  ;;  %v6555_v61 = vpop.f32.mrf.mxu2  ;;  %v6101_v11 = vadd.f32 %v13850_v28, %v15415_v7  ;;  %v6107_v45 = vadd.f32 %v13850_v28, %v15416_v36  ;;  %8109 = vmatmul.f32.gmra.mxu2 %v7913_v24  ;;  %v6110_v53 = vadd.f32 %v13850_v28, %v15423_v38  ;;  %v15425_v24 = vld [vmem:[#allocation60_spill] sm:$0xff]  ;;  %v15437_v38 = vld [vmem:[#allocation15_spill] sm:$0xff] }
 0x72a   : > { %7304 = vst.msk [vmem:[#allocation7 + $0x10] sm:$0xff] %vm1922_vm4, %v7281_v54  ;;  %v6556_v0 = vadd.f32 %v6555_v61, %v6443_v63  ;;  %v13857_v20 = vpop.permute.xlu2 %7059  ;;  %v6116_v63 = vadd.f32 %v13850_v28, %v15424_v32  ;;  %v15438_v32 = vld [vmem:[#allocation16_spill] sm:$0xff] }
 0x72b   : > { %v7907_v3 = vld [vmem:[#allocation7 + $0x8] sm:$0xff]  ;;  %v6214_v6 = vadd.f32 %v15417_v30, %v6101_v11  ;;  %v6220_v10 = vadd.f32 %v15418_v22, %v6107_v45  ;;  %v6223_v7 = vadd.f32 %v15425_v24, %v6110_v53  ;;  %v15426_v11 = vld [vmem:[#allocation66_spill] sm:$0xff] }
 0x72c   : > { %8147 = vmatmul.f32.vlgmr.msrb.gmra.mxu3 %v7907_v3  ;;  %v6669_v51 = vadd.f32 %v6668_v52, %v6556_v0  ;;  %v6229_v52 = vadd.f32 %v15426_v11, %v6116_v63  ;;  %v15427_v45 = vld [vmem:[#allocation61_spill] sm:$0xff]  ;;  %v15428_v0 = vld [vmem:[#allocation68_spill] sm:$0xff] }
 0x72d   : > { %v6333_v31 = vadd.f32 %v15420_v42, %v6220_v10  ;;  %v6336_v37 = vadd.f32 %v15427_v45, %v6223_v7 }
 0x72e   : > { %v13860_v55 = vld [vmem:[#allocation6 + $0x53] sm:$0xff] }
 0x72f   : > { %7539 = vrot.lane.b32.xlu2 %v13707_v49, %s15291_s24  ;;  %v13868_v21 = vld [vmem:[#allocation6 + $0x51] sm:$0xff]  ;;  %7260 = vst.msk [vmem:[#allocation7 + $0xf0] sm:$0xff] %vm1380_vm2, %v13860_v55  ;;  %v15419_v49 = vld [vmem:[#allocation55_spill] sm:$0xff]  ;;  %v6446_v33 = vadd.f32 %v15422_v48, %v6333_v31  ;;  %v6671_v56 = vpop.f32.mrf.mxu3 }
 0x730   : > { %7651 = vrot.lane.b32.xlu1 %v13693_v59, %s15283_s16  ;;  %v13870_v43 = vld [vmem:[#allocation6 + $0x50] sm:$0xff]  ;;  %v6781_v41 = vpop.f32.mrf.mxu1  ;;  %v6327_v23 = vadd.f32 %v15419_v49, %v6214_v6  ;;  %7579 = vst.msk [vmem:[#allocation7 + $0x90] sm:$0xff] %vm1380_vm2, %v13868_v21 }
 0x731   : > { %v13872_v18 = vld [vmem:[#allocation6 + $0x54] sm:$0xff]  ;;  %7603 = vrot.lane.b32.xlu0 %v13747_v62, %s15293_s14  ;;  %6940 = vst.msk [vmem:[#allocation7 + $0x118] sm:$0xff] %vm1380_vm2, %v13870_v43  ;;  %v6782_v25 = vadd.f32 %v6781_v41, %v6669_v51  ;;  %v6558_v58 = vpop.f32.mrf.mxu2  ;;  %v15421_v62 = vld [vmem:[#allocation77_spill] sm:$0xff]  ;;  %v6449_v51 = vadd.f32 %v15429_v8, %v6336_v37  ;;  %v15430_v41 = vld [vmem:[#allocation84_spill] sm:$0xff] }
 0x732   : > { %v13878_v4 = vld [vmem:[#allocation6 + $0x52] sm:$0xff]  ;;  %7100 = vst.msk [vmem:[#allocation7 + $0x120] sm:$0xff] %vm1380_vm2, %v13872_v18  ;;  %v6440_v50 = vadd.f32 %v15421_v62, %v6327_v23  ;;  %v6559_v44 = vadd.f32 %v6558_v58, %v6446_v33  ;;  %v7377_v19 = vpop.permute.xlu2 %7376 }
 0x733   : > { %v7731_v39 = vld [vmem:[#allocation6 + $0x50] sm:$0xff]  ;;  %v6831_v29 = vmax.f32 %v6776_v40, %v6782_v25  ;;  %7419 = vst.msk [vmem:[#allocation7 + $0xc0] sm:$0xff] %vm1380_vm2, %v13878_v4 }
 0x734   : > { %v7891_v46 = vld [vmem:[#allocation6 + $0x54] sm:$0xff]  ;;  %7739 = vst.msk [vmem:[#allocation7 + $0x60] sm:$0xff] %vm1380_vm2, %v7731_v39  ;;  %v6553_v14 = vadd.f32 %v13813_v9, %v6440_v50  ;;  %v6672_v26 = vadd.f32 %v6671_v56, %v6559_v44 }
 0x735   : > { %6847 = vst.msk [vmem:[#allocation5 + $0x40] sm:$0xff] %vm1380_vm2, %v6831_v29  ;;  %v15431_v23 = vld [vmem:[#allocation30_spill] sm:$0xff]  ;;  %v15433_v50 = vld [vmem:[#allocation63_spill] sm:$0xff] }
 0x736   : > { %7899 = vst.msk [vmem:[#allocation7 + $0x68] sm:$0xff] %vm1380_vm2, %v7891_v46  ;;  %v6666_v12 = vadd.f32 %v13823_v5, %v6553_v14  ;;  %v6113_v42 = vadd.f32 %v13850_v28, %v15431_v23  ;;  %v15432_v25 = vld [vmem:[#allocation34_spill] sm:$0xff] }
 0x737   : > { %7699 = vrot.lane.b32.xlu2 %v13737_v13, %s15291_s24  ;;  %v6674_v1 = vpop.f32.mrf.mxu3  ;;  %v6119_v39 = vadd.f32 %v13850_v28, %v15432_v25  ;;  %v15434_v56 = vld [vmem:[#allocation70_spill] sm:$0xff] }
 0x738   : > { %7017 = vrot.lane.b32.xlu1 %v13878_v4, %s15283_s16  ;;  %v6784_v34 = vpop.f32.mrf.mxu1  ;;  %v6779_v9 = vadd.f32 %v6778_v47, %v6666_v12  ;;  %v6226_v48 = vadd.f32 %v15433_v50, %v6113_v42 }
 0x739   : > { %6969 = vrot.lane.b32.xlu0 %v13868_v21, %s15293_s14  ;;  %v6785_v17 = vadd.f32 %v6784_v34, %v6672_v26  ;;  %v6561_v57 = vpop.f32.mrf.mxu2  ;;  %v6232_v14 = vadd.f32 %v15434_v56, %v6119_v39  ;;  %v15435_v34 = vld [vmem:[#allocation64_spill] sm:$0xff] }
 0x73a   : > { %v13911_v2 = vpop.permute.xlu2 %7218  ;;  %v6562_v58 = vadd.f32 %v6561_v57, %v6449_v51 }
 0x73b   : > { %v6832_v27 = vmax.f32 %v6779_v9, %v6785_v17  ;;  %v6339_v9 = vadd.f32 %v15435_v34, %v6226_v48  ;;  %v15436_v17 = vld [vmem:[#allocation72_spill] sm:$0xff]  ;;  %v15440_v48 = vld [vmem:[#allocation41_spill] sm:$0xff] }
 0x73c   : > { %v6675_v44 = vadd.f32 %v6674_v1, %v6562_v58  ;;  %v6345_v57 = vadd.f32 %v15436_v17, %v6232_v14  ;;  %v6128_v56 = vadd.f32 %v13850_v28, %v15440_v48  ;;  %v15443_v17 = vld [vmem:[#allocation76_spill] sm:$0xff] }
 0x73d   : > { %6848 = vst.msk [vmem:[#allocation5 + $0x48] sm:$0xff] %vm1380_vm2, %v6832_v27  ;;  %v6452_v53 = vadd.f32 %v15437_v38, %v6339_v9  ;;  %v15445_v38 = vld [vmem:[#allocation86_spill] sm:$0xff] }
 0x73e   : > { %v6458_v63 = vadd.f32 %v15438_v32, %v6345_v57  ;;  %v15446_v32 = vld [vmem:[#allocation89_spill] sm:$0xff] }
 0x73f   : > { %7065 = vrot.lane.b32.xlu2 %v13860_v55, %s15291_s24  ;;  %v13916_v15 = vpop.f32.mrf.mxu3 }
 0x740   : > { %7334 = vrot.lane.b32.xlu1 %v13870_v43, %s15283_s16  ;;  %v6787_v5 = vpop.f32.mrf.mxu1 }
 0x741   : > { %7128 = vrot.lane.b32.xlu0 %v13870_v43, %s15293_s14  ;;  %v13913_v47 = vpop.f32.mrf.mxu2  ;;  %v6788_v27 = vadd.f32 %v6787_v5, %v6675_v44  ;;  %v15441_v44 = vld [vmem:[#allocation74_spill] sm:$0xff] }
 0x742   : > { %v7012_v16 = vpop.permute.xlu1 %7011  ;;  %v6565_v11 = vadd.f32 %v13913_v47, %v6452_v53 }
 0x743   : > { %v6964_v35 = vpop.permute.xlu0 %6963 }
 0x744   : > { %6985 = vst.msk [vmem:[#allocation7 + $0x70] sm:$0xff] %vm1922_vm4, %v6964_v35  ;;  %v6863_v54 = vld [vmem:[#allocation5 + $0x40] ss:$2 sm:$0xff]  ;;  %v6879_v61 = vld [vmem:[#allocation5 + $0x41] ss:$2 sm:$0xff] }
 0x745   : > { %7033 = vst.msk [vmem:[#allocation7 + $0x70] sm:$0xff] %vm2115_vm5, %v7012_v16  ;;  %v6890_v3 = vmax.f32 %v6863_v54, %v6879_v61 }
 0x746   : > { %7081 = vst.msk [vmem:[#allocation7 + $0x70] sm:$0xff] %vm2308_vm6, %v13857_v20  ;;  %v6342_v20 = vadd.f32 %v15428_v0, %v6229_v52  ;;  %v6678_v0 = vadd.f32 %v13916_v15, %v6565_v11  ;;  %v15448_v11 = vld [vmem:[#allocation43_spill] sm:$0xff] }
 0x747   : > { %6923 = vst.msk [vmem:[#allocation6 + $0x62] sm:$0xff] %vm1380_vm2, %v6890_v3  ;;  %7382 = vrot.lane.b32.xlu2 %v13868_v21, %s15291_s24  ;;  %v6680_v31 = vpop.f32.mrf.mxu3 }
 0x748   : > { %7176 = vrot.lane.b32.xlu1 %v13868_v21, %s15283_s16  ;;  %v13934_v36 = vpop.f32.mrf.mxu1  ;;  %v6455_v49 = vadd.f32 %v15430_v41, %v6342_v20 }
 0x749   : > { %7288 = vrot.lane.b32.xlu0 %v13872_v18, %s15293_s14  ;;  %v13938_v6 = vpop.permute.xlu2 %7061  ;;  %v6567_v22 = vpop.f32.mrf.mxu2  ;;  %v6791_v47 = vadd.f32 %v13934_v36, %v6678_v0  ;;  %v15449_v0 = vld [vmem:[#allocation78_spill] sm:$0xff] }
 0x74a   : > { %v7329_v30 = vpop.permute.xlu1 %7328  ;;  %v6568_v62 = vadd.f32 %v6567_v22, %v6455_v49 }
 0x74b   : > { %7352 = vst.msk [vmem:[#allocation7 + $0x10] sm:$0xff] %vm2115_vm5, %v7329_v30  ;;  %v7123_v10 = vpop.permute.xlu0 %7122 }
 0x74c   : > { %7400 = vst.msk [vmem:[#allocation7 + $0x10] sm:$0xff] %vm2308_vm6, %v7377_v19  ;;  %v6681_v12 = vadd.f32 %v6680_v31, %v6568_v62  ;;  %v15439_v62 = vld [vmem:[#allocation37_spill] sm:$0xff] }
 0x74d   : > { %7145 = vst.msk [vmem:[#allocation7 + $0x40] sm:$0xff] %vm1922_vm4, %v7123_v10  ;;  %v7920_v40 = vld [vmem:[#allocation7 + $0x70] sm:$0xff]  ;;  %v6122_v50 = vadd.f32 %v13850_v28, %v15439_v62 }
 0x74e   : > { %8112 = vmatmul.f32.gmra.mxu2 %v7920_v40  ;;  %v13950_v33 = vld [vmem:[#allocation6 + $0x62] sm:$0xff] }
 0x74f   : > { %v13952_v29 = vld [vmem:[#allocation6 + $0x61] sm:$0xff]  ;;  %7224 = vrot.lane.b32.xlu2 %v13878_v4, %s15291_s24  ;;  %v6683_v24 = vpop.f32.mrf.mxu3 }
 0x750   : > { %v13954_v46 = vld [vmem:[#allocation6 + $0x63] sm:$0xff]  ;;  %7019 = vrot.lane.b32.xlu1 %v13950_v33, %s15283_s16  ;;  %v6793_v19 = vpop.f32.mrf.mxu1  ;;  %7580 = vst.msk [vmem:[#allocation7 + $0xc8] sm:$0xff] %vm1380_vm2, %v13952_v29 }
 0x751   : > { %v13961_v26 = vld [vmem:[#allocation6 + $0x60] sm:$0xff]  ;;  %7261 = vst.msk [vmem:[#allocation7 + $0x128] sm:$0xff] %vm1380_vm2, %v13954_v46  ;;  %6971 = vrot.lane.b32.xlu0 %v13952_v29, %s15293_s14  ;;  %v6794_v1 = vadd.f32 %v6793_v19, %v6681_v12  ;;  %v13971_v35 = vpop.permute.xlu2 %7378  ;;  %v6570_v54 = vpop.f32.mrf.mxu2  ;;  %v6235_v12 = vadd.f32 %v15441_v44, %v6122_v50  ;;  %v15442_v19 = vld [vmem:[#allocation81_spill] sm:$0xff] }
 0x752   : > { %6941 = vst.msk [vmem:[#allocation7 + $0x150] sm:$0xff] %vm1380_vm2, %v13961_v26  ;;  %v7171_v16 = vpop.permute.xlu1 %7170  ;;  %v13980_v5 = vld [vmem:[#allocation6 + $0x64] sm:$0xff]  ;;  %v6571_v52 = vadd.f32 %v6570_v54, %v6458_v63  ;;  %v6241_v34 = vadd.f32 %v15442_v19, %v6128_v56 }
 0x753   : > { %7193 = vst.msk [vmem:[#allocation7 + $0x40] sm:$0xff] %vm2115_vm5, %v7171_v16  ;;  %v7283_v61 = vpop.permute.xlu0 %7282  ;;  %v6833_v3 = vmax.f32 %v6788_v27, %v6794_v1  ;;  %v7412_v7 = vld [vmem:[#allocation6 + $0x62] sm:$0xff]  ;;  %v6348_v57 = vadd.f32 %v15443_v17, %v6235_v12  ;;  %v15444_v27 = vld [vmem:[#allocation83_spill] sm:$0xff]  ;;  %v15454_v12 = vld [vmem:[#allocation18_spill] sm:$0xff] }
 0x754   : > { %7241 = vst.msk [vmem:[#allocation7 + $0x40] sm:$0xff] %vm2308_vm6, %v13911_v2  ;;  %v7732_v45 = vld [vmem:[#allocation6 + $0x60] sm:$0xff]  ;;  %v6684_v20 = vadd.f32 %v6683_v24, %v6571_v52  ;;  %v6354_v1 = vadd.f32 %v15444_v27, %v6241_v34  ;;  %v6131_v52 = vadd.f32 %v13850_v28, %v15448_v11 }
 0x755   : > { %7305 = vst.msk [vmem:[#allocation7 + $0x48] sm:$0xff] %vm1922_vm4, %v7283_v61  ;;  %v7892_v37 = vld [vmem:[#allocation6 + $0x64] sm:$0xff]  ;;  %v6461_v53 = vadd.f32 %v15445_v38, %v6348_v57 }
 0x756   : > { %6849 = vst.msk [vmem:[#allocation5 + $0x50] sm:$0xff] %vm1380_vm2, %v6833_v3  ;;  %v6467_v63 = vadd.f32 %v15446_v32, %v6354_v1 }
 0x757   : > { %7101 = vst.msk [vmem:[#allocation7 + $0x158] sm:$0xff] %vm1380_vm2, %v13980_v5  ;;  %7067 = vrot.lane.b32.xlu2 %v13954_v46, %s15291_s24  ;;  %v6686_v49 = vpop.f32.mrf.mxu3 }
 0x758   : > { %7336 = vrot.lane.b32.xlu1 %v13961_v26, %s15283_s16  ;;  %7420 = vst.msk [vmem:[#allocation7 + $0xf8] sm:$0xff] %vm1380_vm2, %v7412_v7  ;;  %v6796_v2 = vpop.f32.mrf.mxu1 }
 0x759   : > { %7130 = vrot.lane.b32.xlu0 %v13961_v26, %s15293_s14  ;;  %7740 = vst.msk [vmem:[#allocation7 + $0x98] sm:$0xff] %vm1380_vm2, %v7732_v45  ;;  %v6797_v30 = vadd.f32 %v6796_v2, %v6684_v20  ;;  %v13997_v15 = vpop.permute.xlu2 %7220  ;;  %v6573_v10 = vpop.f32.mrf.mxu2 }
 0x75a   : > { %v7489_v22 = vpop.permute.xlu1 %7488  ;;  %7900 = vst.msk [vmem:[#allocation7 + $0xa0] sm:$0xff] %vm1380_vm2, %v7892_v37  ;;  %v6574_v45 = vadd.f32 %v6573_v10, %v6461_v53 }
 0x75b   : > { %v7441_v8 = vpop.permute.xlu0 %7440  ;;  %v7914_v51 = vld [vmem:[#allocation7 + $0x40] sm:$0xff]  ;;  %v6834_v41 = vmax.f32 %v6791_v47, %v6797_v30  ;;  %v15450_v30 = vld [vmem:[#allocation13_spill] sm:$0xff] }
 0x75c   : > { %7464 = vst.msk [vmem:[#allocation7 + $0x18] sm:$0xff] %vm1922_vm4, %v7441_v8  ;;  %8150 = vmatmul.f32.gmra.mxu3 %v7914_v51  ;;  %v6687_v8 = vadd.f32 %v6686_v49, %v6574_v45  ;;  %v15451_v49 = vld [vmem:[#allocation80_spill] sm:$0xff] }
 0x75d   : > { %7512 = vst.msk [vmem:[#allocation7 + $0x18] sm:$0xff] %vm2115_vm5, %v7489_v22  ;;  %v6244_v22 = vadd.f32 %v15450_v30, %v6131_v52  ;;  %v15456_v30 = vld [vmem:[#allocation49_spill] sm:$0xff] }
 0x75e   : > { %6850 = vst.msk [vmem:[#allocation5 + $0x58] sm:$0xff] %vm1380_vm2, %v6834_v41 }
 0x75f   : > { %7384 = vrot.lane.b32.xlu2 %v13952_v29, %s15291_s24  ;;  %v14013_v25 = vpop.f32.mrf.mxu3 }
 0x760   : > { %7178 = vrot.lane.b32.xlu1 %v13952_v29, %s15283_s16  ;;  %v6799_v36 = vpop.f32.mrf.mxu1 }
 0x761   : > { %7290 = vrot.lane.b32.xlu0 %v13980_v5, %s15293_s14  ;;  %v7538_v23 = vpop.permute.xlu2 %7537  ;;  %v14009_v31 = vpop.f32.mrf.mxu2 }
 0x762   : > { %v7014_v42 = vpop.permute.xlu1 %7013  ;;  %7561 = vst.msk [vmem:[#allocation7 + $0x18] sm:$0xff] %vm2308_vm6, %v7538_v23 }
 0x763   : > { %v6966_v40 = vpop.permute.xlu0 %6965 }
 0x764   : > { %6986 = vst.msk [vmem:[#allocation7 + $0xa8] sm:$0xff] %vm1922_vm4, %v6966_v40 }
 0x765   : > { %v6865_v39 = vld [vmem:[#allocation5 + $0x50] ss:$2 sm:$0xff]  ;;  %v6881_v58 = vld [vmem:[#allocation5 + $0x51] ss:$2 sm:$0xff]  ;;  %7034 = vst.msk [vmem:[#allocation7 + $0xa8] sm:$0xff] %vm2115_vm5, %v7014_v42 }
 0x766   : > { %v6891_v14 = vmax.f32 %v6865_v39, %v6881_v58  ;;  %7082 = vst.msk [vmem:[#allocation7 + $0xa8] sm:$0xff] %vm2308_vm6, %v13938_v6  ;;  %v6800_v39 = vadd.f32 %v6799_v36, %v6687_v8 }
 0x767   : > { %7226 = vrot.lane.b32.xlu2 %v13950_v33, %s15291_s24  ;;  %v6692_v24 = vpop.f32.mrf.mxu3 }
 0x768   : > { %6924 = vst.msk [vmem:[#allocation6 + $0x72] sm:$0xff] %vm1380_vm2, %v6891_v14  ;;  %7492 = vrot.lane.b32.xlu1 %v13737_v13, %s15283_s16  ;;  %v14029_v9 = vpop.f32.mrf.mxu1  ;;  %v15447_v13 = vld [vmem:[#allocation39_spill] sm:$0xff]  ;;  %v15453_v14 = vld [vmem:[#allocation17_spill] sm:$0xff] }
 0x769   : > { %v14033_v16 = vpop.permute.xlu2 %7697  ;;  %v6579_v54 = vpop.f32.mrf.mxu2  ;;  %v6125_v3 = vadd.f32 %v13850_v28, %v15447_v13 }
 0x76a   : > { %v7331_v6 = vpop.permute.xlu1 %7330  ;;  %v6580_v37 = vadd.f32 %v6579_v54, %v6467_v63 }
 0x76b   : > { %7353 = vst.msk [vmem:[#allocation7 + $0x48] sm:$0xff] %vm2115_vm5, %v7331_v6  ;;  %v7125_v61 = vpop.permute.xlu0 %7124  ;;  %v6238_v20 = vadd.f32 %v15449_v0, %v6125_v3 }
 0x76c   : > { %7401 = vst.msk [vmem:[#allocation7 + $0x48] sm:$0xff] %vm2308_vm6, %v13971_v35  ;;  %v6693_v51 = vadd.f32 %v6692_v24, %v6580_v37 }
 0x76d   : > { %7146 = vst.msk [vmem:[#allocation7 + $0x78] sm:$0xff] %vm1922_vm4, %v7125_v61  ;;  %v7927_v7 = vld [vmem:[#allocation7 + $0xa8] sm:$0xff]  ;;  %v6351_v42 = vadd.f32 %v15451_v49, %v6238_v20  ;;  %v15458_v49 = vld [vmem:[#allocation91_spill] sm:$0xff] }
 0x76e   : > { %8115 = vmatmul.f32.gmra.mxu2 %v7927_v7  ;;  %v15455_v20 = vld [vmem:[#allocation45_spill] sm:$0xff] }
 0x76f   : > { %v14046_v2 = vld [vmem:[#allocation6 + $0x72] sm:$0xff]  ;;  %7541 = vrot.lane.b32.xlu2 %v13870_v43, %s15291_s24  ;;  %v15452_v43 = vld [vmem:[#allocation85_spill] sm:$0xff]  ;;  %v6464_v44 = vadd.f32 %v15453_v14, %v6351_v42  ;;  %v6695_v17 = vpop.f32.mrf.mxu3 }
 0x770   : > { %v14048_v47 = vld [vmem:[#allocation6 + $0x71] sm:$0xff]  ;;  %7021 = vrot.lane.b32.xlu1 %v14046_v2, %s15283_s16  ;;  %v6805_v23 = vpop.f32.mrf.mxu1  ;;  %v6357_v40 = vadd.f32 %v15452_v43, %v6244_v22  ;;  %v6140_v22 = vadd.f32 %v13850_v28, %v15456_v30 }
 0x771   : > { %v14050_v35 = vld [vmem:[#allocation6 + $0x73] sm:$0xff]  ;;  %6973 = vrot.lane.b32.xlu0 %v14048_v47, %s15293_s14  ;;  %v6806_v58 = vadd.f32 %v6805_v23, %v6693_v51  ;;  %v14069_v62 = vpop.permute.xlu2 %7063  ;;  %v6582_v48 = vpop.f32.mrf.mxu2  ;;  %v6577_v27 = vadd.f32 %v14009_v31, %v6464_v44 }
 0x772   : > { %v14057_v10 = vld [vmem:[#allocation6 + $0x70] sm:$0xff]  ;;  %7262 = vst.msk [vmem:[#allocation7 + $0x160] sm:$0xff] %vm1380_vm2, %v14050_v35  ;;  %v7173_v50 = vpop.permute.xlu1 %7172  ;;  %v6470_v19 = vadd.f32 %v15454_v12, %v6357_v40  ;;  %v6253_v42 = vadd.f32 %v15458_v49, %v6140_v22  ;;  %v15459_v40 = vld [vmem:[#allocation87_spill] sm:$0xff] }
 0x773   : > { %v14059_v41 = vld [vmem:[#allocation6 + $0x74] sm:$0xff]  ;;  %6942 = vst.msk [vmem:[#allocation7 + $0x188] sm:$0xff] %vm1380_vm2, %v14057_v10  ;;  %v7285_v56 = vpop.permute.xlu0 %7284  ;;  %v6835_v34 = vmax.f32 %v6800_v39, %v6806_v58  ;;  %v6690_v61 = vadd.f32 %v14013_v25, %v6577_v27  ;;  %v15460_v58 = vld [vmem:[#allocation92_spill] sm:$0xff]  ;;  %v15461_v12 = vld [vmem:[#allocation93_spill] sm:$0xff] }
 0x774   : > { %7102 = vst.msk [vmem:[#allocation7 + $0x190] sm:$0xff] %vm1380_vm2, %v14059_v41  ;;  %v7573_v36 = vld [vmem:[#allocation6 + $0x71] sm:$0xff]  ;;  %v6583_v1 = vadd.f32 %v6582_v48, %v6470_v19  ;;  %v15463_v27 = vld [vmem:[#allocation47_spill] sm:$0xff] }
 0x775   : > { %7194 = vst.msk [vmem:[#allocation7 + $0x78] sm:$0xff] %vm2115_vm5, %v7173_v50  ;;  %v7413_v57 = vld [vmem:[#allocation6 + $0x72] sm:$0xff]  ;;  %v6803_v31 = vadd.f32 %v14029_v9, %v6690_v61  ;;  %v6366_v50 = vadd.f32 %v15460_v58, %v6253_v42  ;;  %v15462_v19 = vld [vmem:[#allocation97_spill] sm:$0xff] }
 0x776   : > { %7242 = vst.msk [vmem:[#allocation7 + $0x78] sm:$0xff] %vm2308_vm6, %v13997_v15  ;;  %v7733_v6 = vld [vmem:[#allocation6 + $0x70] sm:$0xff]  ;;  %v6696_v38 = vadd.f32 %v6695_v17, %v6583_v1  ;;  %v6137_v1 = vadd.f32 %v13850_v28, %v15463_v27 }
 0x777   : > { %7306 = vst.msk [vmem:[#allocation7 + $0x80] sm:$0xff] %vm1922_vm4, %v7285_v56  ;;  %v7893_v54 = vld [vmem:[#allocation6 + $0x74] sm:$0xff]  ;;  %7069 = vrot.lane.b32.xlu2 %v14050_v35, %s15291_s24  ;;  %v6698_v7 = vpop.f32.mrf.mxu3 }
 0x778   : > { %6851 = vst.msk [vmem:[#allocation5 + $0x60] sm:$0xff] %vm1380_vm2, %v6835_v34  ;;  %7653 = vrot.lane.b32.xlu1 %v13860_v55, %s15283_s16  ;;  %v6808_v15 = vpop.f32.mrf.mxu1  ;;  %v15457_v51 = vld [vmem:[#allocation14_spill] sm:$0xff]  ;;  %v6479_v34 = vadd.f32 %v15462_v19, %v6366_v50 }
 0x779   : > { %7581 = vst.msk [vmem:[#allocation7 + $0x100] sm:$0xff] %vm1380_vm2, %v7573_v36  ;;  %7444 = vrot.lane.b32.xlu0 %v13693_v59, %s15293_s14  ;;  %v6809_v53 = vadd.f32 %v6808_v15, %v6696_v38  ;;  %v14092_v32 = vpop.permute.xlu2 %7380  ;;  %v6585_v63 = vpop.f32.mrf.mxu2 }
 0x77a   : > { %7421 = vst.msk [vmem:[#allocation7 + $0x130] sm:$0xff] %vm1380_vm2, %v7413_v57  ;;  %v7650_v25 = vpop.permute.xlu1 %7649 }
 0x77b   : > { %7741 = vst.msk [vmem:[#allocation7 + $0xd0] sm:$0xff] %vm1380_vm2, %v7733_v6  ;;  %v7602_v13 = vpop.permute.xlu0 %7601  ;;  %v6836_v24 = vmax.f32 %v6803_v31, %v6809_v53  ;;  %v15464_v6 = vld [vmem:[#allocation51_spill] sm:$0xff] }
 0x77c   : > { %7901 = vst.msk [vmem:[#allocation7 + $0xd8] sm:$0xff] %vm1380_vm2, %v7893_v54  ;;  %v6143_v54 = vadd.f32 %v13850_v28, %v15464_v6 }
 0x77d   : > { %v7921_v3 = vld [vmem:[#allocation7 + $0x78] sm:$0xff]  ;;  %7625 = vst.msk [vmem:[#allocation7 + $0x20] sm:$0xff] %vm1922_vm4, %v7602_v13 }
 0x77e   : > { %8153 = vmatmul.f32.gmra.mxu3 %v7921_v3  ;;  %7673 = vst.msk [vmem:[#allocation7 + $0x20] sm:$0xff] %vm2115_vm5, %v7650_v25 }
 0x77f   : > { %6852 = vst.msk [vmem:[#allocation5 + $0x68] sm:$0xff] %vm1380_vm2, %v6836_v24  ;;  %7701 = vrot.lane.b32.xlu2 %v13872_v18, %s15291_s24  ;;  %v14111_v37 = vpop.f32.mrf.mxu3 }
 0x780   : > { %7721 = vst.msk [vmem:[#allocation7 + $0x20] sm:$0xff] %vm2308_vm6, %v14033_v16  ;;  %7494 = vrot.lane.b32.xlu1 %v13872_v18, %s15283_s16  ;;  %v6811_v59 = vpop.f32.mrf.mxu1  ;;  %v6134_v18 = vadd.f32 %v13850_v28, %v15455_v20  ;;  %v15466_v28 = vld [vmem:[#allocation94_spill] sm:$0xff] }
 0x781   : > { %7605 = vrot.lane.b32.xlu0 %v13878_v4, %s15293_s14  ;;  %v14106_v9 = vpop.permute.xlu2 %7222  ;;  %v14108_v52 = vpop.f32.mrf.mxu2 }
 0x782   : > { %v7491_v11 = vpop.permute.xlu1 %7490  ;;  %v6247_v23 = vadd.f32 %v15457_v51, %v6134_v18 }
 0x783   : > { %v7443_v45 = vpop.permute.xlu0 %7442 }
 0x784   : > { %7465 = vst.msk [vmem:[#allocation7 + $0x50] sm:$0xff] %vm1922_vm4, %v7443_v45  ;;  %v6360_v39 = vadd.f32 %v15459_v40, %v6247_v23  ;;  %v15467_v45 = vld [vmem:[#allocation90_spill] sm:$0xff] }
 0x785   : > { %7513 = vst.msk [vmem:[#allocation7 + $0x50] sm:$0xff] %vm2115_vm5, %v7491_v11  ;;  %v15470_v23 = vld [vmem:[#allocation98_spill] sm:$0xff] }
 0x786   : > { %v6867_v16 = vld [vmem:[#allocation5 + $0x60] ss:$2 sm:$0xff]  ;;  %v6883_v0 = vld [vmem:[#allocation5 + $0x61] ss:$2 sm:$0xff] }
 0x787   : > { %v6892_v8 = vmax.f32 %v6867_v16, %v6883_v0  ;;  %7543 = vrot.lane.b32.xlu2 %v13961_v26, %s15291_s24  ;;  %v6473_v26 = vadd.f32 %v15461_v12, %v6360_v39  ;;  %v6704_v36 = vpop.f32.mrf.mxu3  ;;  %v15468_v0 = vld [vmem:[#allocation96_spill] sm:$0xff] }
 0x788   : > { %7655 = vrot.lane.b32.xlu1 %v13954_v46, %s15283_s16  ;;  %v14127_v43 = vpop.f32.mrf.mxu1 }
 0x789   : > { %6925 = vst.msk [vmem:[#allocation6 + $0x82] sm:$0xff] %vm1380_vm2, %v6892_v8  ;;  %7446 = vrot.lane.b32.xlu0 %v13860_v55, %s15293_s14  ;;  %v7540_v48 = vpop.permute.xlu2 %7539  ;;  %v6591_v14 = vpop.f32.mrf.mxu2  ;;  %v6586_v17 = vadd.f32 %v6585_v63, %v6473_v26  ;;  %v6256_v63 = vadd.f32 %v15466_v28, %v6143_v54 }
 0x78a   : > { %v7016_v56 = vpop.permute.xlu1 %7015  ;;  %7562 = vst.msk [vmem:[#allocation7 + $0x50] sm:$0xff] %vm2308_vm6, %v7540_v48  ;;  %v6592_v57 = vadd.f32 %v6591_v14, %v6479_v34 }
 0x78b   : > { %v6968_v44 = vpop.permute.xlu0 %6967  ;;  %v6699_v15 = vadd.f32 %v6698_v7, %v6586_v17  ;;  %v6369_v20 = vadd.f32 %v15468_v0, %v6256_v63 }
 0x78c   : > { %6987 = vst.msk [vmem:[#allocation7 + $0xe0] sm:$0xff] %vm1922_vm4, %v6968_v44  ;;  %v6705_v31 = vadd.f32 %v6704_v36, %v6592_v57 }
 0x78d   : > { %7035 = vst.msk [vmem:[#allocation7 + $0xe0] sm:$0xff] %vm2115_vm5, %v7016_v56  ;;  %v6812_v3 = vadd.f32 %v6811_v59, %v6699_v15  ;;  %v15469_v59 = vld [vmem:[#allocation95_spill] sm:$0xff]  ;;  %v6482_v49 = vadd.f32 %v15470_v23, %v6369_v20 }
 0x78e   : > { %7083 = vst.msk [vmem:[#allocation7 + $0xe0] sm:$0xff] %vm2308_vm6, %v14069_v62  ;;  %v15465_v62 = vld [vmem:[#allocation88_spill] sm:$0xff] }
 0x78f   : > { %7703 = vrot.lane.b32.xlu2 %v13980_v5, %s15291_s24  ;;  %v6250_v25 = vadd.f32 %v15465_v62, %v6137_v1 }
 0x790   : > { %v14142_v61 = vld [vmem:[#allocation6 + $0x81] sm:$0xff]  ;;  %7338 = vrot.lane.b32.xlu1 %v14057_v10, %s15283_s16  ;;  %v6817_v13 = vpop.f32.mrf.mxu1 }
 0x791   : > { %v14144_v38 = vld [vmem:[#allocation6 + $0x82] sm:$0xff]  ;;  %7582 = vst.msk [vmem:[#allocation7 + $0x138] sm:$0xff] %vm1380_vm2, %v14142_v61  ;;  %7607 = vrot.lane.b32.xlu0 %v13950_v33, %s15293_s14  ;;  %v6818_v24 = vadd.f32 %v6817_v13, %v6705_v31  ;;  %v7700_v7 = vpop.permute.xlu2 %7699  ;;  %v6363_v16 = vadd.f32 %v15467_v45, %v6250_v25  ;;  %v6594_v30 = vpop.f32.mrf.mxu2  ;;  %v8008_v45 = vld [vmem:[%s15254_s5 + $0x170] sm:$0xff] }
 0x792   : > { %v14150_v53 = vld [vmem:[#allocation6 + $0x83] sm:$0xff]  ;;  %v7333_v11 = vpop.permute.xlu1 %7332  ;;  %7422 = vst.msk [vmem:[#allocation7 + $0x168] sm:$0xff] %vm1380_vm2, %v14144_v38  ;;  %v6595_v58 = vadd.f32 %v6594_v30, %v6482_v49 }
 0x793   : > { %7263 = vst.msk [vmem:[#allocation7 + $0x198] sm:$0xff] %vm1380_vm2, %v14150_v53  ;;  %v7127_v18 = vpop.permute.xlu0 %7126  ;;  %v6837_v22 = vmax.f32 %v6812_v3, %v6818_v24  ;;  %v7734_v8 = vld [vmem:[#allocation6 + $0x80] sm:$0xff]  ;;  %v6476_v51 = vadd.f32 %v15469_v59, %v6363_v16  ;;  %v8007_v16 = vld [vmem:[%s15254_s5 + $0x168] sm:$0xff] }
 0x794   : > { %7354 = vst.msk [vmem:[#allocation7 + $0x80] sm:$0xff] %vm2115_vm5, %v7333_v11  ;;  %v7894_v40 = vld [vmem:[#allocation6 + $0x84] sm:$0xff]  ;;  %v8009_v11 = vld [vmem:[%s15254_s5 + $0x178] sm:$0xff] }
 0x795   : > { %7402 = vst.msk [vmem:[#allocation7 + $0x80] sm:$0xff] %vm2308_vm6, %v14092_v32  ;;  %v7934_v42 = vld [vmem:[#allocation7 + $0xe0] sm:$0xff]  ;;  %v6589_v39 = vadd.f32 %v14108_v52, %v6476_v51  ;;  %8172 = vmatpush.msra.mxu2 %v8009_v11 }
 0x796   : > { %7147 = vst.msk [vmem:[#allocation7 + $0xb0] sm:$0xff] %vm1922_vm4, %v7127_v18  ;;  %8118 = vmatmul.f32.gmra.mxu2 %v7934_v42  ;;  %v14208_v15 = vld [vmem:[#allocation6 + $0x84] sm:$0xff]  ;;  %v8001_v42 = vld [vmem:[%s15254_s5 + $0x138] sm:$0xff] }
 0x797   : > { %6853 = vst.msk [vmem:[#allocation5 + $0x70] sm:$0xff] %vm1380_vm2, %v6837_v22  ;;  %v6707_v50 = vpop.f32.mrf.mxu3  ;;  %7386 = vrot.lane.b32.xlu2 %v14048_v47, %s15291_s24  ;;  %v6702_v32 = vadd.f32 %v14111_v37, %v6589_v39  ;;  %v14187_v37 = vld [vmem:[#allocation6 + $0x80] sm:$0xff]  ;;  %8173 = vmatpush.msra.mxu2 %v8008_v45  ;;  %v8004_v22 = vld [vmem:[%s15254_s5 + $0x150] sm:$0xff] }
 0x798   : > { %7742 = vst.msk [vmem:[#allocation7 + $0x108] sm:$0xff] %vm1380_vm2, %v7734_v8  ;;  %7180 = vrot.lane.b32.xlu1 %v14048_v47, %s15283_s16  ;;  %v6708_v48 = vadd.f32 %v6707_v50, %v6595_v58  ;;  %v6820_v56 = vpop.f32.mrf.mxu1  ;;  %v8006_v30 = vld [vmem:[%s15254_s5 + $0x160] sm:$0xff]  ;;  %v8003_v8 = vld [vmem:[%s15254_s5 + $0x148] sm:$0xff] }
 0x799   : > { %7902 = vst.msk [vmem:[#allocation7 + $0x110] sm:$0xff] %vm1380_vm2, %v7894_v40  ;;  %7132 = vrot.lane.b32.xlu0 %v14057_v10, %s15293_s14  ;;  %v7066_v52 = vpop.permute.xlu2 %7065  ;;  %v6815_v44 = vadd.f32 %v14127_v43, %v6702_v32  ;;  %8174 = vmatpush.msra.mxu2 %v8007_v16  ;;  %v8002_v49 = vld [vmem:[%s15254_s5 + $0x140] sm:$0xff]  ;;  %v8000_v40 = vld [vmem:[%s15254_s5 + $0x130] sm:$0xff]  ;;  %v7999_v32 = vld [vmem:[%s15254_s5 + $0x128] sm:$0xff] }
 0x79a   : > { %v7175_v14 = vpop.permute.xlu1 %7174  ;;  %v6821_v12 = vadd.f32 %v6820_v56, %v6708_v48  ;;  %v7998_v48 = vld [vmem:[%s15254_s5 + $0x120] sm:$0xff]  ;;  %v7908_v16 = vld [vmem:[#allocation7 + $0x10] sm:$0xff] }
 0x79b   : > { %7195 = vst.msk [vmem:[#allocation7 + $0xb0] sm:$0xff] %vm2115_vm5, %v7175_v14  ;;  %v7287_v26 = vpop.permute.xlu0 %7286  ;;  %8175 = vmatpush.msra.mxu2 %v8006_v30  ;;  %v7528_v56 = vld [vmem:[#allocation6 + $0xa0] sm:$0xff]  ;;  %v8040_v30 = vld [vmem:[%s15254_s5 + $0x270] sm:$0xff] }
 0x79c   : > { %7243 = vst.msk [vmem:[#allocation7 + $0xb0] sm:$0xff] %vm2308_vm6, %v14106_v9  ;;  %v6838_v19 = vmax.f32 %v6815_v44, %v6821_v12 }
 0x79d   : > { %7307 = vst.msk [vmem:[#allocation7 + $0xb8] sm:$0xff] %vm1922_vm4, %v7287_v26  ;;  %v7996_v26 = vld [vmem:[%s15254_s5 + $0x110] sm:$0xff] }
 0x79e   : > { %6854 = vst.msk [vmem:[#allocation5 + $0x78] sm:$0xff] %vm1380_vm2, %v6838_v19  ;;  %v7995_v19 = vld [vmem:[%s15254_s5 + $0x108] sm:$0xff] }
 0x79f   : > { %7228 = vrot.lane.b32.xlu2 %v14046_v2, %s15291_s24  ;;  %7744 = vst.msk [vmem:[#allocation7 + $0x178] sm:$0xff] %vm1380_vm2, %v7528_v56 }
 0x7a0   : > { %7340 = vrot.lane.b32.xlu1 %v14187_v37, %s15283_s16 }
 0x7a1   : > { %7292 = vrot.lane.b32.xlu0 %v14059_v41, %s15293_s14  ;;  %v7383_v43 = vpop.permute.xlu2 %7382 }
 0x7a2   : > { %v7652_v34 = vpop.permute.xlu1 %7651 }
 0x7a3   : > { %v7604_v36 = vpop.permute.xlu0 %7603  ;;  %v7928_v9 = vld [vmem:[#allocation7 + $0xb0] sm:$0xff] }
 0x7a4   : > { %7626 = vst.msk [vmem:[#allocation7 + $0x58] sm:$0xff] %vm1922_vm4, %v7604_v36  ;;  %8156 = vmatmul.f32.gmra.mxu3 %v7928_v9 }
 0x7a5   : > { %7674 = vst.msk [vmem:[#allocation7 + $0x58] sm:$0xff] %vm2115_vm5, %v7652_v34  ;;  %v6869_v17 = vld [vmem:[#allocation5 + $0x70] ss:$2 sm:$0xff]  ;;  %v6885_v57 = vld [vmem:[#allocation5 + $0x71] ss:$2 sm:$0xff] }
 0x7a6   : > { %7722 = vst.msk [vmem:[#allocation7 + $0x58] sm:$0xff] %vm2308_vm6, %v7700_v7  ;;  %v6893_v27 = vmax.f32 %v6869_v17, %v6885_v57 }
 0x7a7   : > { %7388 = vrot.lane.b32.xlu2 %v14142_v61, %s15291_s24 }
 0x7a8   : > { %7182 = vrot.lane.b32.xlu1 %v14142_v61, %s15283_s16  ;;  %6926 = vst.msk [vmem:[#allocation6 + $0x92] sm:$0xff] %vm1380_vm2, %v6893_v27 }
 0x7a9   : > { %7134 = vrot.lane.b32.xlu0 %v14187_v37, %s15293_s14  ;;  %v7225_v1 = vpop.permute.xlu2 %7224 }
 0x7aa   : > { %v7018_v6 = vpop.permute.xlu1 %7017 }
 0x7ab   : > { %v6970_v54 = vpop.permute.xlu0 %6969 }
 0x7ac   : > { %6988 = vst.msk [vmem:[#allocation7 + $0x118] sm:$0xff] %vm1922_vm4, %v6970_v54 }
 0x7ad   : > { %7036 = vst.msk [vmem:[#allocation7 + $0x118] sm:$0xff] %vm2115_vm5, %v7018_v6 }
 0x7ae   : > { %7084 = vst.msk [vmem:[#allocation7 + $0x118] sm:$0xff] %vm2308_vm6, %v7066_v52  ;;  %v7997_v52 = vld [vmem:[%s15254_s5 + $0x118] sm:$0xff] }
 0x7af   : > { %7230 = vrot.lane.b32.xlu2 %v14144_v38, %s15291_s24  ;;  %v14212_v31 = vld [vmem:[#allocation6 + $0x90] sm:$0xff] }
 0x7b0   : > { %v14214_v62 = vld [vmem:[#allocation6 + $0x91] sm:$0xff]  ;;  %7342 = vrot.lane.b32.xlu1 %v14212_v31, %s15283_s16 }
 0x7b1   : > { %v14216_v25 = vld [vmem:[#allocation6 + $0x92] sm:$0xff]  ;;  %7294 = vrot.lane.b32.xlu0 %v14208_v15, %s15293_s14  ;;  %7583 = vst.msk [vmem:[#allocation7 + $0x170] sm:$0xff] %vm1380_vm2, %v14214_v62  ;;  %v7068_v28 = vpop.permute.xlu2 %7067 }
 0x7b2   : > { %v7335_v63 = vpop.permute.xlu1 %7334  ;;  %7423 = vst.msk [vmem:[#allocation7 + $0x1a0] sm:$0xff] %vm1380_vm2, %v14216_v25  ;;  %v7735_v3 = vld [vmem:[#allocation6 + $0x90] sm:$0xff] }
 0x7b3   : > { %7355 = vst.msk [vmem:[#allocation7 + $0xb8] sm:$0xff] %vm2115_vm5, %v7335_v63  ;;  %v7129_v13 = vpop.permute.xlu0 %7128  ;;  %v14228_v24 = vld [vmem:[#allocation6 + $0x94] sm:$0xff]  ;;  %v14350_v63 = vld [vmem:[#allocation6 + $0xa3] sm:$0xff] }
 0x7b4   : > { %7403 = vst.msk [vmem:[#allocation7 + $0xb8] sm:$0xff] %vm2308_vm6, %v7383_v43  ;;  %v7994_v43 = vld [vmem:[%s15254_s5 + $0x100] sm:$0xff]  ;;  %v14328_v17 = vld [vmem:[#allocation6 + $0x93] sm:$0xff] }
 0x7b5   : > { %7148 = vst.msk [vmem:[#allocation7 + $0xe8] sm:$0xff] %vm1922_vm4, %v7129_v13  ;;  %v7941_v7 = vld [vmem:[#allocation7 + $0x118] sm:$0xff] }
 0x7b6   : > { %8121 = vmatmul.f32.gmra.mxu2 %v7941_v7  ;;  %7743 = vst.msk [vmem:[#allocation7 + $0x140] sm:$0xff] %vm1380_vm2, %v7735_v3  ;;  %v8025_v13 = vld [vmem:[%s15254_s5 + $0x1f8] sm:$0xff]  ;;  %v8024_v3 = vld [vmem:[%s15254_s5 + $0x1f0] sm:$0xff] }
 0x7b7   : > { %7903 = vst.msk [vmem:[#allocation7 + $0x148] sm:$0xff] %vm1380_vm2, %v14228_v24  ;;  %7390 = vrot.lane.b32.xlu2 %v14214_v62, %s15291_s24  ;;  %8213 = vmatpush.msra.mxu3 %v8025_v13 }
 0x7b8   : > { %7496 = vrot.lane.b32.xlu1 %v13980_v5, %s15283_s16  ;;  %v8005_v5 = vld [vmem:[%s15254_s5 + $0x158] sm:$0xff] }
 0x7b9   : > { %7448 = vrot.lane.b32.xlu0 %v13954_v46, %s15293_s14  ;;  %v7385_v0 = vpop.permute.xlu2 %7384  ;;  %8176 = vmatpush.msra.mxu2 %v8005_v5  ;;  %v7746_v5 = vld [vmem:[#allocation6 + $0x41] sm:$0xff] }
 0x7ba   : > { %v7177_v20 = vpop.permute.xlu1 %7176  ;;  %8214 = vmatpush.msra.mxu3 %v8024_v3 }
 0x7bb   : > { %7196 = vst.msk [vmem:[#allocation7 + $0xe8] sm:$0xff] %vm2115_vm5, %v7177_v20  ;;  %v7289_v18 = vpop.permute.xlu0 %7288  ;;  %8177 = vmatpush.msra.mxu2 %v8004_v22  ;;  %v8041_v20 = vld [vmem:[%s15254_s5 + $0x278] sm:$0xff]  ;;  %v8020_v22 = vld [vmem:[%s15254_s5 + $0x1d0] sm:$0xff] }
 0x7bc   : > { %7244 = vst.msk [vmem:[#allocation7 + $0xe8] sm:$0xff] %vm2308_vm6, %v7225_v1 }
 0x7bd   : > { %7308 = vst.msk [vmem:[#allocation7 + $0xf0] sm:$0xff] %vm1922_vm4, %v7289_v18  ;;  %8178 = vmatpush.msra.mxu2 %v8003_v8  ;;  %v8021_v18 = vld [vmem:[%s15254_s5 + $0x1d8] sm:$0xff] }
 0x7bf   : > { %7545 = vrot.lane.b32.xlu2 %v14057_v10, %s15291_s24  ;;  %8179 = vmatpush.msra.mxu2 %v8002_v49  ;;  %v8018_v49 = vld [vmem:[%s15254_s5 + $0x1c0] sm:$0xff] }
 0x7c0   : > { %7657 = vrot.lane.b32.xlu1 %v14050_v35, %s15283_s16 }
 0x7c1   : > { %7609 = vrot.lane.b32.xlu0 %v14046_v2, %s15293_s14  ;;  %v7227_v59 = vpop.permute.xlu2 %7226  ;;  %8180 = vmatpush.msra.mxu2 %v8001_v42  ;;  %v8038_v42 = vld [vmem:[%s15254_s5 + $0x260] sm:$0xff] }
 0x7c2   : > { %v7020_v51 = vpop.permute.xlu1 %7019 }
 0x7c3   : > { %v6972_v23 = vpop.permute.xlu0 %6971  ;;  %v7935_v10 = vld [vmem:[#allocation7 + $0xe8] sm:$0xff]  ;;  %8181 = vmatpush.msra.mxu2 %v8000_v40 }
 0x7c4   : > { %6989 = vst.msk [vmem:[#allocation7 + $0x150] sm:$0xff] %vm1922_vm4, %v6972_v23  ;;  %8159 = vmatmul.f32.gmra.mxu3 %v7935_v10  ;;  %v8019_v10 = vld [vmem:[%s15254_s5 + $0x1c8] sm:$0xff] }
 0x7c5   : > { %7037 = vst.msk [vmem:[#allocation7 + $0x150] sm:$0xff] %vm2115_vm5, %v7020_v51  ;;  %8182 = vmatpush.msra.mxu2 %v7999_v32  ;;  %v8039_v51 = vld [vmem:[%s15254_s5 + $0x268] sm:$0xff]  ;;  %v8036_v32 = vld [vmem:[%s15254_s5 + $0x250] sm:$0xff] }
 0x7c6   : > { %7085 = vst.msk [vmem:[#allocation7 + $0x150] sm:$0xff] %vm2308_vm6, %v7068_v28  ;;  %v14348_v28 = vld [vmem:[#allocation6 + $0xa2] sm:$0xff] }
 0x7c7   : > { %7705 = vrot.lane.b32.xlu2 %v14059_v41, %s15291_s24  ;;  %8183 = vmatpush.msra.mxu2 %v7998_v48  ;;  %v7842_v40 = vld [vmem:[#allocation6 + $0x43] sm:$0xff] }
 0x7c8   : > { %7498 = vrot.lane.b32.xlu1 %v14059_v41, %s15283_s16 }
 0x7c9   : > { %7450 = vrot.lane.b32.xlu0 %v14050_v35, %s15293_s14  ;;  %v7542_v39 = vpop.permute.xlu2 %7541  ;;  %8184 = vmatpush.msra.mxu2 %v7997_v52  ;;  %v7922_v52 = vld [vmem:[#allocation7 + $0x80] sm:$0xff] }
 0x7ca   : > { %v7337_v58 = vpop.permute.xlu1 %7336 }
 0x7cb   : > { %7356 = vst.msk [vmem:[#allocation7 + $0xf0] sm:$0xff] %vm2115_vm5, %v7337_v58  ;;  %v7131_v50 = vpop.permute.xlu0 %7130  ;;  %8185 = vmatpush.msra.mxu2 %v7996_v26  ;;  %v8037_v58 = vld [vmem:[%s15254_s5 + $0x258] sm:$0xff]  ;;  %v14445_v26 = vld [vmem:[#allocation6 + $0xa1] sm:$0xff] }
 0x7cc   : > { %7404 = vst.msk [vmem:[#allocation7 + $0xf0] sm:$0xff] %vm2308_vm6, %v7385_v0  ;;  %v8022_v0 = vld [vmem:[%s15254_s5 + $0x1e0] sm:$0xff] }
 0x7cd   : > { %7149 = vst.msk [vmem:[#allocation7 + $0x120] sm:$0xff] %vm1922_vm4, %v7131_v50  ;;  %v7948_v41 = vld [vmem:[#allocation7 + $0x150] sm:$0xff]  ;;  %8186 = vmatpush.msra.mxu2 %v7995_v19  ;;  %v8033_v19 = vld [vmem:[%s15254_s5 + $0x238] sm:$0xff] }
 0x7ce   : > { %8124 = vmatmul.f32.gmra.mxu2 %v7948_v41  ;;  %v8016_v50 = vld [vmem:[%s15254_s5 + $0x1b0] sm:$0xff]  ;;  %7584 = vst.msk [vmem:[#allocation7 + $0x1a8] sm:$0xff] %vm1380_vm2, %v14445_v26 }
 0x7cf   : > { %7547 = vrot.lane.b32.xlu2 %v14187_v37, %s15291_s24  ;;  %v7688_v37 = vld [vmem:[#allocation6 + $0xa4] sm:$0xff]  ;;  %8187 = vmatpush.msra.mxu2 %v7994_v43 }
 0x7d0   : > { %7659 = vrot.lane.b32.xlu1 %v14150_v53, %s15283_s16  ;;  %7904 = vst.msk [vmem:[#allocation7 + $0x180] sm:$0xff] %vm1380_vm2, %v7688_v37 }
 0x7d1   : > { %7611 = vrot.lane.b32.xlu0 %v14144_v38, %s15293_s14  ;;  %v7070_v14 = vpop.permute.xlu2 %7069  ;;  %8254 = vmatpush.msrb.mxu2 %v8041_v20  ;;  %v7909_v20 = vld [vmem:[#allocation7 + $0x18] sm:$0xff] }
 0x7d2   : > { %v7179_v44 = vpop.permute.xlu1 %7178 }
 0x7d3   : > { %7197 = vst.msk [vmem:[#allocation7 + $0x120] sm:$0xff] %vm2115_vm5, %v7179_v44  ;;  %v7291_v12 = vpop.permute.xlu0 %7290  ;;  %8255 = vmatpush.msrb.mxu2 %v8040_v30  ;;  %v8034_v44 = vld [vmem:[%s15254_s5 + $0x240] sm:$0xff] }
 0x7d4   : > { %7245 = vst.msk [vmem:[#allocation7 + $0x120] sm:$0xff] %vm2308_vm6, %v7227_v59 }
 0x7d5   : > { %7309 = vst.msk [vmem:[#allocation7 + $0x128] sm:$0xff] %vm1922_vm4, %v7291_v12  ;;  %8256 = vmatpush.msrb.mxu2 %v8039_v51  ;;  %v8013_v12 = vld [vmem:[%s15254_s5 + $0x198] sm:$0xff] }
 0x7d6   : > { %v8057_v51 = vld [vmem:[%s15254_s5 + $0x2f8] sm:$0xff] }
 0x7d7   : > { %7707 = vrot.lane.b32.xlu2 %v14208_v15, %s15291_s24  ;;  %8257 = vmatpush.msrb.mxu2 %v8038_v42 }
 0x7d8   : > { %7500 = vrot.lane.b32.xlu1 %v14208_v15, %s15283_s16 }
 0x7d9   : > { %7452 = vrot.lane.b32.xlu0 %v14150_v53, %s15293_s14  ;;  %v7702_v34 = vpop.permute.xlu2 %7701  ;;  %8258 = vmatpush.msrb.mxu2 %v8037_v58 }
 0x7da   : > { %v7493_v36 = vpop.permute.xlu1 %7492 }
 0x7db   : > { %v7942_v9 = vld [vmem:[#allocation7 + $0x120] sm:$0xff]  ;;  %8259 = vmatpush.msrb.mxu2 %v8036_v32 }
 0x7dc   : > { %8162 = vmatmul.f32.gmra.mxu3 %v7942_v9  ;;  %v8010_v9 = vld [vmem:[%s15254_s5 + $0x180] sm:$0xff] }
 0x7dd   : > { %v8054_v32 = vld [vmem:[%s15254_s5 + $0x2e0] sm:$0xff] }
 0x7df   : > { %7549 = vrot.lane.b32.xlu2 %v14212_v31, %s15291_s24 }
 0x7e0   : > { %7661 = vrot.lane.b32.xlu1 %v14328_v17, %s15283_s16 }
 0x7e1   : > { %7613 = vrot.lane.b32.xlu0 %v14216_v25, %s15293_s14  ;;  %v7544_v57 = vpop.permute.xlu2 %7543 }
 0x7e2   : > { %v7022_v27 = vpop.permute.xlu1 %7021 }
 0x7e3   : > { %v6974_v1 = vpop.permute.xlu0 %6973 }
 0x7e4   : > { %6990 = vst.msk [vmem:[#allocation7 + $0x188] sm:$0xff] %vm1922_vm4, %v6974_v1 }
 0x7e5   : > { %7038 = vst.msk [vmem:[#allocation7 + $0x188] sm:$0xff] %vm2115_vm5, %v7022_v27  ;;  %v8030_v27 = vld [vmem:[%s15254_s5 + $0x220] sm:$0xff] }
 0x7e6   : > { %7086 = vst.msk [vmem:[#allocation7 + $0x188] sm:$0xff] %vm2308_vm6, %v7070_v14  ;;  %v8014_v14 = vld [vmem:[%s15254_s5 + $0x1a0] sm:$0xff] }
 0x7e7   : > { %7709 = vrot.lane.b32.xlu2 %v14228_v24, %s15291_s24 }
 0x7e8   : > { %7502 = vrot.lane.b32.xlu1 %v14228_v24, %s15283_s16  ;;  %v8023_v24 = vld [vmem:[%s15254_s5 + $0x1e8] sm:$0xff] }
 0x7e9   : > { %7454 = vrot.lane.b32.xlu0 %v14328_v17, %s15293_s14  ;;  %v14343_v6 = vpop.permute.xlu2 %7703  ;;  %8215 = vmatpush.msra.mxu3 %v8023_v24 }
 0x7ea   : > { %v7654_v54 = vpop.permute.xlu1 %7653 }
 0x7eb   : > { %v7445_v15 = vpop.permute.xlu0 %7444  ;;  %8216 = vmatpush.msra.mxu3 %v8022_v0 }
 0x7ec   : > { %7466 = vst.msk [vmem:[#allocation7 + $0x88] sm:$0xff] %vm1922_vm4, %v7445_v15  ;;  %v7936_v15 = vld [vmem:[#allocation7 + $0xf0] sm:$0xff] }
 0x7ed   : > { %7514 = vst.msk [vmem:[#allocation7 + $0x88] sm:$0xff] %vm2115_vm5, %v7493_v36  ;;  %v7955_v31 = vld [vmem:[#allocation7 + $0x188] sm:$0xff]  ;;  %8217 = vmatpush.msra.mxu3 %v8021_v18  ;;  %v7929_v36 = vld [vmem:[#allocation7 + $0xb8] sm:$0xff] }
 0x7ee   : > { %7563 = vst.msk [vmem:[#allocation7 + $0x88] sm:$0xff] %vm2308_vm6, %v7542_v39  ;;  %8127 = vmatmul.f32.gmra.mxu2 %v7955_v31  ;;  %v8017_v39 = vld [vmem:[%s15254_s5 + $0x1b8] sm:$0xff]  ;;  %v8027_v31 = vld [vmem:[%s15254_s5 + $0x208] sm:$0xff] }
 0x7ef   : > { %7551 = vrot.lane.b32.xlu2 %v7528_v56, %s15291_s24  ;;  %8218 = vmatpush.msra.mxu3 %v8020_v22  ;;  %v7801_v18 = vld [vmem:[#allocation6 + $0xb2] sm:$0xff] }
 0x7f0   : > { %7663 = vrot.lane.b32.xlu1 %v14350_v63, %s15283_s16  ;;  %v7916_v22 = vld [vmem:[#allocation7 + $0x50] sm:$0xff] }
 0x7f1   : > { %7615 = vrot.lane.b32.xlu0 %v14348_v28, %s15293_s14  ;;  %v7387_v7 = vpop.permute.xlu2 %7386  ;;  %8219 = vmatpush.msra.mxu3 %v8019_v10  ;;  %v14542_v10 = vpop.f32.mrf.mxu2 }
 0x7f2   : > { %v7495_v11 = vpop.permute.xlu1 %7494 }
 0x7f3   : > { %v7606_v45 = vpop.permute.xlu0 %7605  ;;  %8220 = vmatpush.msra.mxu3 %v8018_v49  ;;  %v8055_v49 = vld [vmem:[%s15254_s5 + $0x2e8] sm:$0xff] }
 0x7f4   : > { %7627 = vst.msk [vmem:[#allocation7 + $0x90] sm:$0xff] %vm1922_vm4, %v7606_v45 }
 0x7f5   : > { %7675 = vst.msk [vmem:[#allocation7 + $0x90] sm:$0xff] %vm2115_vm5, %v7654_v54  ;;  %8221 = vmatpush.msra.mxu3 %v8017_v39  ;;  %v7923_v58 = vld [vmem:[#allocation7 + $0x88] sm:$0xff] }
 0x7f6   : > { %7723 = vst.msk [vmem:[#allocation7 + $0x90] sm:$0xff] %vm2308_vm6, %v7702_v34  ;;  %8188 = vmatmul.f32.vlgmr.msra.gmra.mxu2 %v7908_v16 }
 0x7f7   : > { %7711 = vrot.lane.b32.xlu2 %v7688_v37, %s15291_s24  ;;  %8222 = vmatpush.msra.mxu3 %v8016_v50  ;;  %v8012_v37 = vld [vmem:[%s15254_s5 + $0x190] sm:$0xff]  ;;  %v7917_v50 = vld [vmem:[#allocation7 + $0x58] sm:$0xff] }
 0x7f8   : > { %7810 = vrot.lane.b32.xlu1 %v13740_v60, %s15283_s16  ;;  %v7915_v60 = vld [vmem:[#allocation7 + $0x48] sm:$0xff] }
 0x7f9   : > { %7762 = vrot.lane.b32.xlu0 %v7746_v5, %s15293_s14  ;;  %v14388_v8 = vpop.permute.xlu2 %7228 }
 0x7fa   : > { %v7656_v59 = vpop.permute.xlu1 %7655 }
 0x7fb   : > { %v7447_v23 = vpop.permute.xlu0 %7446 }
 0x7fc   : > { %7467 = vst.msk [vmem:[#allocation7 + $0xc0] sm:$0xff] %vm1922_vm4, %v7447_v23  ;;  %v8056_v23 = vld [vmem:[%s15254_s5 + $0x2f0] sm:$0xff] }
 0x7fd   : > { %7515 = vst.msk [vmem:[#allocation7 + $0xc0] sm:$0xff] %vm2115_vm5, %v7495_v11 }
 0x7fe   : > { %7564 = vst.msk [vmem:[#allocation7 + $0xc0] sm:$0xff] %vm2308_vm6, %v7544_v57  ;;  %8191 = vmatmul.f32.gmra.mxu2 %v7915_v60  ;;  %v8031_v57 = vld [vmem:[%s15254_s5 + $0x228] sm:$0xff]  ;;  %v8061_v60 = vld [vmem:[%s15254_s5 + $0x318] sm:$0xff] }
 0x7ff   : > { %7858 = vrot.lane.b32.xlu2 %v7842_v40, %s15291_s24 }
 0x800   : > { %7812 = vrot.lane.b32.xlu1 %v13878_v4, %s15283_s16  ;;  %v8035_v4 = vld [vmem:[%s15254_s5 + $0x248] sm:$0xff] }
 0x801   : > { %7764 = vrot.lane.b32.xlu0 %v13868_v21, %s15293_s14  ;;  %v7389_v41 = vpop.permute.xlu2 %7388  ;;  %v8015_v21 = vld [vmem:[%s15254_s5 + $0x1a8] sm:$0xff]  ;;  %8260 = vmatpush.msrb.mxu2 %v8035_v4 }
 0x802   : > { %v7339_v48 = vpop.permute.xlu1 %7338  ;;  %8223 = vmatpush.msra.mxu3 %v8015_v21  ;;  %v8051_v4 = vld [vmem:[%s15254_s5 + $0x2c8] sm:$0xff] }
 0x803   : > { %7357 = vst.msk [vmem:[#allocation7 + $0x128] sm:$0xff] %vm2115_vm5, %v7339_v48  ;;  %v7608_v56 = vpop.permute.xlu0 %7607  ;;  %8261 = vmatpush.msrb.mxu2 %v8034_v44  ;;  %v8052_v48 = vld [vmem:[%s15254_s5 + $0x2d0] sm:$0xff] }
 0x804   : > { %7405 = vst.msk [vmem:[#allocation7 + $0x128] sm:$0xff] %vm2308_vm6, %v7387_v7  ;;  %8224 = vmatpush.msra.mxu3 %v8014_v14 }
 0x805   : > { %7628 = vst.msk [vmem:[#allocation7 + $0xc8] sm:$0xff] %vm1922_vm4, %v7608_v56  ;;  %8262 = vmatpush.msrb.mxu2 %v8033_v19  ;;  %v14563_v56 = vpop.f32.mrf.mxu2  ;;  %v7930_v44 = vld [vmem:[#allocation7 + $0xc0] sm:$0xff]  ;;  %v8049_v19 = vld [vmem:[%s15254_s5 + $0x2b8] sm:$0xff] }
 0x806   : > { %7676 = vst.msk [vmem:[#allocation7 + $0xc8] sm:$0xff] %vm2115_vm5, %v7656_v59  ;;  %8194 = vmatmul.f32.gmra.mxu2 %v7922_v52  ;;  %8225 = vmatpush.msra.mxu3 %v8013_v12  ;;  %v7849_v59 = vld [vmem:[#allocation6 + $0xb3] sm:$0xff] }
 0x807   : > { %7724 = vst.msk [vmem:[#allocation7 + $0xc8] sm:$0xff] %vm2308_vm6, %v14343_v6  ;;  %7860 = vrot.lane.b32.xlu2 %v13860_v55, %s15291_s24  ;;  %v7924_v12 = vld [vmem:[#allocation7 + $0x90] sm:$0xff] }
 0x808   : > { %7814 = vrot.lane.b32.xlu1 %v13950_v33, %s15283_s16  ;;  %v8011_v33 = vld [vmem:[%s15254_s5 + $0x188] sm:$0xff]  ;;  %8226 = vmatpush.msra.mxu3 %v8012_v37  ;;  %v8060_v37 = vld [vmem:[%s15254_s5 + $0x310] sm:$0xff] }
 0x809   : > { %7766 = vrot.lane.b32.xlu0 %v13952_v29, %s15293_s14  ;;  %v7231_v55 = vpop.permute.xlu2 %7230  ;;  %v8032_v29 = vld [vmem:[%s15254_s5 + $0x230] sm:$0xff] }
 0x80a   : > { %v7181_v43 = vpop.permute.xlu1 %7180  ;;  %8227 = vmatpush.msra.mxu3 %v8011_v33  ;;  %8263 = vmatpush.msrb.mxu2 %v8032_v29  ;;  %v8047_v33 = vld [vmem:[%s15254_s5 + $0x2a8] sm:$0xff] }
 0x80b   : > { %v7133_v34 = vpop.permute.xlu0 %7132 }
 0x80c   : > { %7150 = vst.msk [vmem:[#allocation7 + $0x158] sm:$0xff] %vm1922_vm4, %v7133_v34  ;;  %8228 = vmatpush.msra.mxu3 %v8010_v9  ;;  %8264 = vmatpush.msrb.mxu2 %v8031_v57 }
 0x80d   : > { %7198 = vst.msk [vmem:[#allocation7 + $0x158] sm:$0xff] %vm2115_vm5, %v7181_v43  ;;  %v14583_v43 = vpop.f32.mrf.mxu2 }
 0x80e   : > { %7246 = vst.msk [vmem:[#allocation7 + $0x158] sm:$0xff] %vm2308_vm6, %v14388_v8  ;;  %8197 = vmatmul.f32.gmra.mxu2 %v7929_v36  ;;  %v7910_v8 = vld [vmem:[#allocation7 + $0x20] sm:$0xff]  ;;  %8295 = vmatpush.msrb.mxu3 %v8057_v51  ;;  %v7931_v57 = vld [vmem:[#allocation7 + $0xc8] sm:$0xff] }
 0x80f   : > { %7862 = vrot.lane.b32.xlu2 %v13954_v46, %s15291_s24  ;;  %8265 = vmatpush.msrb.mxu2 %v8030_v27  ;;  %v8029_v46 = vld [vmem:[%s15254_s5 + $0x218] sm:$0xff]  ;;  %v8046_v27 = vld [vmem:[%s15254_s5 + $0x2a0] sm:$0xff] }
 0x810   : > { %7816 = vrot.lane.b32.xlu1 %v14046_v2, %s15283_s16  ;;  %v8028_v2 = vld [vmem:[%s15254_s5 + $0x210] sm:$0xff]  ;;  %8296 = vmatpush.msrb.mxu3 %v8056_v23 }
 0x811   : > { %7768 = vrot.lane.b32.xlu0 %v14048_v47, %s15293_s14  ;;  %v7391_v1 = vpop.permute.xlu2 %7390  ;;  %8266 = vmatpush.msrb.mxu2 %v8029_v46  ;;  %v8043_v46 = vld [vmem:[%s15254_s5 + $0x288] sm:$0xff] }
 0x812   : > { %v7341_v6 = vpop.permute.xlu1 %7340  ;;  %8297 = vmatpush.msrb.mxu3 %v8055_v49  ;;  %v7912_v49 = vld [vmem:[#allocation7 + $0x30] sm:$0xff] }
 0x813   : > { %v7293_v54 = vpop.permute.xlu0 %7292  ;;  %8267 = vmatpush.msrb.mxu2 %v8028_v2 }
 0x814   : > { %7310 = vst.msk [vmem:[#allocation7 + $0x160] sm:$0xff] %vm1922_vm4, %v7293_v54  ;;  %8298 = vmatpush.msrb.mxu3 %v8054_v32  ;;  %v8044_v54 = vld [vmem:[%s15254_s5 + $0x290] sm:$0xff] }
 0x815   : > { %7358 = vst.msk [vmem:[#allocation7 + $0x160] sm:$0xff] %vm2115_vm5, %v7341_v6  ;;  %v7949_v47 = vld [vmem:[#allocation7 + $0x158] sm:$0xff]  ;;  %8268 = vmatpush.msrb.mxu2 %v8027_v31  ;;  %v14597_v6 = vpop.f32.mrf.mxu2  ;;  %v8059_v31 = vld [vmem:[%s15254_s5 + $0x308] sm:$0xff] }
 0x816   : > { %7406 = vst.msk [vmem:[#allocation7 + $0x160] sm:$0xff] %vm2308_vm6, %v7389_v41  ;;  %8165 = vmatmul.f32.gmra.mxu3 %v7949_v47  ;;  %8200 = vmatmul.f32.gmra.mxu2 %v7936_v15  ;;  %v8053_v41 = vld [vmem:[%s15254_s5 + $0x2d8] sm:$0xff] }
 0x817   : > { %7864 = vrot.lane.b32.xlu2 %v14050_v35, %s15291_s24  ;;  %v8026_v35 = vld [vmem:[%s15254_s5 + $0x200] sm:$0xff]  ;;  %8299 = vmatpush.msrb.mxu3 %v8053_v41 }
 0x818   : > { %7818 = vrot.lane.b32.xlu1 %v14144_v38, %s15283_s16  ;;  %8269 = vmatpush.msrb.mxu2 %v8026_v35  ;;  %v8058_v35 = vld [vmem:[%s15254_s5 + $0x300] sm:$0xff] }
 0x819   : > { %7770 = vrot.lane.b32.xlu0 %v14142_v61, %s15293_s14  ;;  %v7546_v13 = vpop.permute.xlu2 %7545  ;;  %v7943_v61 = vld [vmem:[#allocation7 + $0x128] sm:$0xff]  ;;  %8300 = vmatpush.msrb.mxu3 %v8052_v48 }
 0x81a   : > { %v7183_v3 = vpop.permute.xlu1 %7182  ;;  %8348 = vmatpush.msra.mxu2 %v8061_v60  ;;  %v7919_v48 = vld [vmem:[#allocation7 + $0x68] sm:$0xff] }
 0x81b   : > { %v7135_v24 = vpop.permute.xlu0 %7134  ;;  %8301 = vmatpush.msrb.mxu3 %v8051_v4 }
 0x81c   : > { %7151 = vst.msk [vmem:[#allocation7 + $0x190] sm:$0xff] %vm1922_vm4, %v7135_v24  ;;  %8349 = vmatpush.msra.mxu2 %v8060_v37  ;;  %v8042_v24 = vld [vmem:[%s15254_s5 + $0x280] sm:$0xff] }
 0x81d   : > { %7199 = vst.msk [vmem:[#allocation7 + $0x190] sm:$0xff] %vm2115_vm5, %v7183_v3  ;;  %v7950_v16 = vld [vmem:[#allocation7 + $0x160] sm:$0xff] }
 0x81e   : > { %7247 = vst.msk [vmem:[#allocation7 + $0x190] sm:$0xff] %vm2308_vm6, %v7231_v55  ;;  %8203 = vmatmul.f32.gmra.mxu2 %v7943_v61  ;;  %v8048_v55 = vld [vmem:[%s15254_s5 + $0x2b0] sm:$0xff] }
 0x81f   : > { %7866 = vrot.lane.b32.xlu2 %v14150_v53, %s15291_s24  ;;  %8350 = vmatpush.msra.mxu2 %v8059_v31  ;;  %v9244_v61 = vld [vmem:[%s15256_s7 + $0x130] sm:$0xff] }
 0x820   : > { %7820 = vrot.lane.b32.xlu1 %v14216_v25, %s15283_s16 }
 0x821   : > { %7772 = vrot.lane.b32.xlu0 %v14214_v62, %s15293_s14  ;;  %v7706_v38 = vpop.permute.xlu2 %7705  ;;  %8351 = vmatpush.msra.mxu2 %v8058_v35 }
 0x822   : > { %v7343_v11 = vpop.permute.xlu1 %7342 }
 0x823   : > { %v7295_v7 = vpop.permute.xlu0 %7294 }
 0x824   : > { %7311 = vst.msk [vmem:[#allocation7 + $0x198] sm:$0xff] %vm1922_vm4, %v7295_v7 }
 0x825   : > { %7359 = vst.msk [vmem:[#allocation7 + $0x198] sm:$0xff] %vm2115_vm5, %v7343_v11  ;;  %v7956_v45 = vld [vmem:[#allocation7 + $0x190] sm:$0xff] }
 0x826   : > { %7407 = vst.msk [vmem:[#allocation7 + $0x198] sm:$0xff] %vm2308_vm6, %v7391_v1  ;;  %8168 = vmatmul.f32.gmra.mxu3 %v7956_v45  ;;  %8206 = vmatmul.f32.gmra.mxu2 %v7950_v16  ;;  %v8045_v1 = vld [vmem:[%s15254_s5 + $0x298] sm:$0xff] }
 0x827   : > { %7868 = vrot.lane.b32.xlu2 %v14328_v17, %s15291_s24  ;;  %v7753_v17 = vld [vmem:[#allocation6 + $0xb1] sm:$0xff] }
 0x828   : > { %7822 = vrot.lane.b32.xlu1 %v14348_v28, %s15283_s16 }
 0x829   : > { %7774 = vrot.lane.b32.xlu0 %v14445_v26, %s15293_s14  ;;  %v7548_v53 = vpop.permute.xlu2 %7547  ;;  %v8050_v26 = vld [vmem:[%s15254_s5 + $0x2c0] sm:$0xff] }
 0x82a   : > { %v7497_v25 = vpop.permute.xlu1 %7496  ;;  %8302 = vmatpush.msrb.mxu3 %v8050_v26  ;;  %v7926_v26 = vld [vmem:[#allocation7 + $0xa0] sm:$0xff] }
 0x82b   : > { %v7449_v62 = vpop.permute.xlu0 %7448 }
 0x82c   : > { %7468 = vst.msk [vmem:[#allocation7 + $0xf8] sm:$0xff] %vm1922_vm4, %v7449_v62  ;;  %8303 = vmatpush.msrb.mxu3 %v8049_v19 }
 0x82d   : > { %7516 = vst.msk [vmem:[#allocation7 + $0xf8] sm:$0xff] %vm2115_vm5, %v7497_v25  ;;  %v7957_v0 = vld [vmem:[#allocation7 + $0x198] sm:$0xff] }
 0x82e   : > { %7565 = vst.msk [vmem:[#allocation7 + $0xf8] sm:$0xff] %vm2308_vm6, %v7546_v13  ;;  %8209 = vmatmul.f32.gmra.mxu2 %v7957_v0  ;;  %8229 = vmatmul.f32.vlgmr.msra.gmra.mxu3 %v7909_v20 }
 0x82f   : > { %7870 = vrot.lane.b32.xlu2 %v14350_v63, %s15291_s24  ;;  %v9245_v63 = vld [vmem:[%s15256_s7 + $0x138] sm:$0xff]  ;;  %8304 = vmatpush.msrb.mxu3 %v8048_v55 }
 0x830   : > { %7824 = vrot.lane.b32.xlu1 %v7801_v18, %s15283_s16  ;;  %8557 = vmatpush.msra.mxu1 %v9245_v63  ;;  %s378_s16 = scalar_lea.vmem [#allocation9], %s377_s0 }
 0x831   : > { %7776 = vrot.lane.b32.xlu0 %v7753_v17, %s15293_s14  ;;  %v7708_v28 = vpop.permute.xlu2 %7707  ;;  %8305 = vmatpush.msrb.mxu3 %v8047_v33  ;;  %s8978_s13 = sshll.u32 %s378_s16, 4  ;;  %s8979_s13 = int_to_ptr.vmem [resolvable:$true] %s8978_s13 }
 0x832   : > { %v7658_v5 = vpop.permute.xlu1 %7657  ;;  %8558 = vmatpush.msra.mxu1 %v9244_v61 }
 0x833   : > { %v7610_v30 = vpop.permute.xlu0 %7609  ;;  %8306 = vmatpush.msrb.mxu3 %v8046_v27 }
 0x834   : > { %7629 = vst.msk [vmem:[#allocation7 + $0x100] sm:$0xff] %vm1922_vm4, %v7610_v30 }
 0x835   : > { %7677 = vst.msk [vmem:[#allocation7 + $0x100] sm:$0xff] %vm2115_vm5, %v7658_v5  ;;  %v7937_v9 = vld [vmem:[#allocation7 + $0xf8] sm:$0xff]  ;;  %8307 = vmatpush.msrb.mxu3 %v8045_v1 }
 0x836   : > { %7725 = vst.msk [vmem:[#allocation7 + $0x100] sm:$0xff] %vm2308_vm6, %v7706_v38  ;;  %8232 = vmatmul.f32.gmra.mxu3 %v7916_v22  ;;  %8270 = vmatmul.f32.vlgmr.msrb.gmra.mxu2 %v7910_v8  ;;  %v14620_v38 = vpop.f32.mrf.mxu2  ;;  %v14635_v8 = vpop.f32.mrf.mxu3 }
 0x837   : > { %7872 = vrot.lane.b32.xlu2 %v7849_v59, %s15291_s24  ;;  %8308 = vmatpush.msrb.mxu3 %v8044_v54  ;;  %v9242_v54 = vld [vmem:[%s15256_s7 + $0x120] sm:$0xff]  ;;  %s9451_s24 = scalar_lea.hbm %s15260_s11, 2 }
 0x838   : > { %p9453_p1 = scmp.lt.s32.totalorder %s9451_s24, %s9447_s1 }
 0x839   : > { %v7550_v42 = vpop.permute.xlu2 %7549  ;;  %8309 = vmatpush.msrb.mxu3 %v8043_v46 }
 0x83a   : > { %v7499_v39 = vpop.permute.xlu1 %7498  ;;  %p9454_p2 = por %p9453_p1, %p9452_p0 }
 0x83b   : > { %v7451_v40 = vpop.permute.xlu0 %7450  ;;  %8310 = vmatpush.msrb.mxu3 %v8042_v24 }
 0x83c   : > { %7469 = vst.msk [vmem:[#allocation7 + $0x130] sm:$0xff] %vm1922_vm4, %v7451_v40  ;;  %p9455_p3 = pnand %p9454_p2, %p9450_p13 }
 0x83d   : > { %7517 = vst.msk [vmem:[#allocation7 + $0x130] sm:$0xff] %vm2115_vm5, %v7499_v39  ;;  %v7938_v3 = vld [vmem:[#allocation7 + $0x100] sm:$0xff] }
 0x83e   : > { %7566 = vst.msk [vmem:[#allocation7 + $0x130] sm:$0xff] %vm2308_vm6, %v7548_v53  ;;  %8235 = vmatmul.f32.gmra.mxu3 %v7923_v58  ;;  %8273 = vmatmul.f32.gmra.mxu2 %v7917_v50  ;;  %v14625_v62 = vpop.f32.mrf.mxu2  ;;  %v14646_v40 = vpop.f32.mrf.mxu3 }
 0x841   : > { %v7710_v21 = vpop.permute.xlu2 %7709 }
 0x842   : > { %v7660_v14 = vpop.permute.xlu1 %7659 }
 0x843   : > { %v7612_v52 = vpop.permute.xlu0 %7611 }
 0x844   : > { %7630 = vst.msk [vmem:[#allocation7 + $0x138] sm:$0xff] %vm1922_vm4, %v7612_v52  ;;  %v7737_v52 = vld [vmem:[#allocation6 + $0xb0] sm:$0xff] }
 0x845   : > { %7678 = vst.msk [vmem:[#allocation7 + $0x138] sm:$0xff] %vm2115_vm5, %v7660_v14  ;;  %v7944_v13 = vld [vmem:[#allocation7 + $0x130] sm:$0xff] }
 0x846   : > { %7726 = vst.msk [vmem:[#allocation7 + $0x138] sm:$0xff] %vm2308_vm6, %v7708_v28  ;;  %8238 = vmatmul.f32.gmra.mxu3 %v7930_v44  ;;  %8276 = vmatmul.f32.gmra.mxu2 %v7924_v12 }
 0x847   : > { %7745 = vst.msk [vmem:[#allocation7 + $0x1b0] sm:$0xff] %vm1380_vm2, %v7737_v52 }
 0x849   : > { %v7552_v34 = vpop.permute.xlu2 %7551 }
 0x84a   : > { %v7501_v36 = vpop.permute.xlu1 %7500 }
 0x84b   : > { %v7453_v29 = vpop.permute.xlu0 %7452 }
 0x84c   : > { %7470 = vst.msk [vmem:[#allocation7 + $0x168] sm:$0xff] %vm1922_vm4, %v7453_v29 }
 0x84d   : > { %7518 = vst.msk [vmem:[#allocation7 + $0x168] sm:$0xff] %vm2115_vm5, %v7501_v36  ;;  %v7945_v16 = vld [vmem:[#allocation7 + $0x138] sm:$0xff] }
 0x84e   : > { %7567 = vst.msk [vmem:[#allocation7 + $0x168] sm:$0xff] %vm2308_vm6, %v7550_v42  ;;  %8241 = vmatmul.f32.gmra.mxu3 %v7937_v9  ;;  %8279 = vmatmul.f32.gmra.mxu2 %v7931_v57  ;;  %v9243_v42 = vld [vmem:[%s15256_s7 + $0x128] sm:$0xff]  ;;  %v7933_v36 = vld [vmem:[#allocation7 + $0xd8] sm:$0xff] }
 0x84f   : > { %8559 = vmatpush.msra.mxu1 %v9243_v42  ;;  %v7897_v9 = vld [vmem:[#allocation6 + $0xb4] sm:$0xff] }
 0x850   : > { %7905 = vst.msk [vmem:[#allocation7 + $0x1b8] sm:$0xff] %vm1380_vm2, %v7897_v9 }
 0x851   : > { %v7712_v2 = vpop.permute.xlu2 %7711  ;;  %v14630_v28 = vpop.f32.mrf.mxu2  ;;  %8560 = vmatpush.msra.mxu1 %v9242_v54  ;;  %v9240_v54 = vld [vmem:[%s15256_s7 + $0x110] sm:$0xff] }
 0x852   : > { %v7662_v15 = vpop.permute.xlu1 %7661 }
 0x853   : > { %v7614_v47 = vpop.permute.xlu0 %7613 }
 0x854   : > { %7631 = vst.msk [vmem:[#allocation7 + $0x170] sm:$0xff] %vm1922_vm4, %v7614_v47 }
 0x855   : > { %7679 = vst.msk [vmem:[#allocation7 + $0x170] sm:$0xff] %vm2115_vm5, %v7662_v15  ;;  %v7951_v45 = vld [vmem:[#allocation7 + $0x168] sm:$0xff] }
 0x856   : > { %7727 = vst.msk [vmem:[#allocation7 + $0x170] sm:$0xff] %vm2308_vm6, %v7710_v21  ;;  %8244 = vmatmul.f32.gmra.mxu3 %v7944_v13  ;;  %8282 = vmatmul.f32.gmra.mxu2 %v7938_v3  ;;  %v14654_v21 = vpop.f32.mrf.mxu3 }
 0x859   : > { %v7859_v53 = vpop.permute.xlu2 %7858 }
 0x85a   : > { %v7503_v11 = vpop.permute.xlu1 %7502 }
 0x85b   : > { %v7455_v7 = vpop.permute.xlu0 %7454 }
 0x85c   : > { %7471 = vst.msk [vmem:[#allocation7 + $0x1a0] sm:$0xff] %vm1922_vm4, %v7455_v7  ;;  %v7947_v7 = vld [vmem:[#allocation7 + $0x148] sm:$0xff] }
 0x85d   : > { %7519 = vst.msk [vmem:[#allocation7 + $0x1a0] sm:$0xff] %vm2115_vm5, %v7503_v11  ;;  %v7952_v17 = vld [vmem:[#allocation7 + $0x170] sm:$0xff] }
 0x85e   : > { %7568 = vst.msk [vmem:[#allocation7 + $0x1a0] sm:$0xff] %vm2308_vm6, %v7552_v34  ;;  %8247 = vmatmul.f32.gmra.mxu3 %v7951_v45  ;;  %8285 = vmatmul.f32.gmra.mxu2 %v7945_v16  ;;  %v14663_v37 = vpop.f32.mrf.mxu3 }
 0x861   : > { %v7861_v18 = vpop.permute.xlu2 %7860 }
 0x862   : > { %v7664_v0 = vpop.permute.xlu1 %7663 }
 0x863   : > { %v7616_v25 = vpop.permute.xlu0 %7615 }
 0x864   : > { %7632 = vst.msk [vmem:[#allocation7 + $0x1a8] sm:$0xff] %vm1922_vm4, %v7616_v25 }
 0x865   : > { %7680 = vst.msk [vmem:[#allocation7 + $0x1a8] sm:$0xff] %vm2115_vm5, %v7664_v0  ;;  %v7958_v20 = vld [vmem:[#allocation7 + $0x1a0] sm:$0xff] }
 0x866   : > { %7728 = vst.msk [vmem:[#allocation7 + $0x1a8] sm:$0xff] %vm2308_vm6, %v7712_v2  ;;  %8250 = vmatmul.f32.gmra.mxu3 %v7958_v20  ;;  %8288 = vmatmul.f32.gmra.mxu2 %v7952_v17  ;;  %v14672_v27 = vpop.f32.mrf.mxu3  ;;  %v7940_v2 = vld [vmem:[#allocation7 + $0x110] sm:$0xff]  ;;  %v7954_v0 = vld [vmem:[#allocation7 + $0x180] sm:$0xff] }
 0x869   : > { %v7863_v63 = vpop.permute.xlu2 %7862 }
 0x86a   : > { %v7811_v5 = vpop.permute.xlu1 %7810 }
 0x86b   : > { %v7763_v30 = vpop.permute.xlu0 %7762 }
 0x86c   : > { %7786 = vst.msk [vmem:[#allocation7 + $0x28] sm:$0xff] %vm1922_vm4, %v7763_v30  ;;  %v7961_v30 = vld [vmem:[#allocation7 + $0x1b8] sm:$0xff] }
 0x86d   : > { %7834 = vst.msk [vmem:[#allocation7 + $0x28] sm:$0xff] %vm2115_vm5, %v7811_v5  ;;  %v7959_v22 = vld [vmem:[#allocation7 + $0x1a8] sm:$0xff]  ;;  %v14700_v5 = vld [vmem:[%s15255_s6] ss:$0 sm:$0xff] }
 0x86e   : > { %7882 = vst.msk [vmem:[#allocation7 + $0x28] sm:$0xff] %vm2308_vm6, %v7859_v53  ;;  %8291 = vmatmul.f32.gmra.mxu2 %v7959_v22  ;;  %v14683_v13 = vpop.f32.mrf.mxu3 }
 0x871   : > { %v14637_v59 = vpop.f32.mrf.mxu2  ;;  %v7865_v32 = vpop.permute.xlu2 %7864 }
 0x872   : > { %v7813_v23 = vpop.permute.xlu1 %7812 }
 0x873   : > { %v7765_v51 = vpop.permute.xlu0 %7764 }
 0x874   : > { %7787 = vst.msk [vmem:[#allocation7 + $0x60] sm:$0xff] %vm1922_vm4, %v7765_v51  ;;  %v8108_v51 = vadd.f32 %v14700_v5, %v14542_v10 }
 0x875   : > { %7835 = vst.msk [vmem:[#allocation7 + $0x60] sm:$0xff] %vm2115_vm5, %v7813_v23  ;;  %v7911_v60 = vld [vmem:[#allocation7 + $0x28] sm:$0xff] }
 0x876   : > { %7883 = vst.msk [vmem:[#allocation7 + $0x60] sm:$0xff] %vm2308_vm6, %v7861_v18  ;;  %8311 = vmatmul.f32.vlgmr.msrb.gmra.mxu3 %v7911_v60  ;;  %9202 = vmatmul.msk.f32.vlgmr.msra.gmra.mxu2 %vm1380_vm2, %v7912_v49 }
 0x879   : > { %v14648_v39 = vpop.f32.mrf.mxu2  ;;  %v7867_v19 = vpop.permute.xlu2 %7866 }
 0x87a   : > { %v7815_v50 = vpop.permute.xlu1 %7814 }
 0x87b   : > { %v7767_v58 = vpop.permute.xlu0 %7766 }
 0x87c   : > { %7788 = vst.msk [vmem:[#allocation7 + $0x98] sm:$0xff] %vm1922_vm4, %v7767_v58  ;;  %v9241_v58 = vld [vmem:[%s15256_s7 + $0x118] sm:$0xff] }
 0x87d   : > { %7836 = vst.msk [vmem:[#allocation7 + $0x98] sm:$0xff] %vm2115_vm5, %v7815_v50  ;;  %v7918_v41 = vld [vmem:[#allocation7 + $0x60] sm:$0xff]  ;;  %8561 = vmatpush.msra.mxu1 %v9241_v58  ;;  %v8149_v50 = vadd.f32 %v14635_v8, %v8108_v51 }
 0x87e   : > { %7884 = vst.msk [vmem:[#allocation7 + $0x98] sm:$0xff] %vm2308_vm6, %v7863_v63  ;;  %8314 = vmatmul.f32.gmra.mxu3 %v7918_v41  ;;  %9203 = vmatmul.msk.f32.gmra.mxu2 %vm1380_vm2, %v7919_v48  ;;  %v8129_v63 = vadd.f32 %v14700_v5, %v14637_v59  ;;  %v9251_v51 = vld [vmem:[%s15256_s7 + $0x160] sm:$0xff] }
 0x87f   : > { %v8190_v59 = vadd.f32 %v14648_v39, %v8149_v50  ;;  %8562 = vmatpush.msra.mxu1 %v9240_v54  ;;  %v9213_v50 = vld [vmem:[%s15256_s7 + $0x50] sm:$0xff] }
 0x881   : > { %v14656_v4 = vpop.f32.mrf.mxu2  ;;  %v7869_v57 = vpop.permute.xlu2 %7868 }
 0x882   : > { %v7817_v44 = vpop.permute.xlu1 %7816 }
 0x883   : > { %v7769_v14 = vpop.permute.xlu0 %7768 }
 0x884   : > { %7789 = vst.msk [vmem:[#allocation7 + $0xd0] sm:$0xff] %vm1922_vm4, %v7769_v14 }
 0x885   : > { %7837 = vst.msk [vmem:[#allocation7 + $0xd0] sm:$0xff] %vm2115_vm5, %v7817_v44  ;;  %v7925_v12 = vld [vmem:[#allocation7 + $0x98] sm:$0xff]  ;;  %v8114_v44 = vadd.f32 %v14700_v5, %v14583_v43 }
 0x886   : > { %7885 = vst.msk [vmem:[#allocation7 + $0xd0] sm:$0xff] %vm2308_vm6, %v7865_v32  ;;  %8317 = vmatmul.f32.gmra.mxu3 %v7925_v12  ;;  %9204 = vmatmul.msk.f32.gmra.mxu2 %vm1380_vm2, %v7926_v26 }
 0x887   : > { %v8155_v12 = vadd.f32 %v14654_v21, %v8114_v44  ;;  %v8413_v21 = vld [vmem:[%s15256_s7 + $0x38] sm:$0xff] }
 0x888   : > { %8425 = vmatpush.msra.mxu3 %v8413_v21 }
 0x889   : > { %v14665_v55 = vpop.f32.mrf.mxu2  ;;  %v7871_v31 = vpop.permute.xlu2 %7870 }
 0x88a   : > { %v7819_v33 = vpop.permute.xlu1 %7818  ;;  %v8196_v26 = vadd.f32 %v14665_v55, %v8155_v12  ;;  %v8412_v55 = vld [vmem:[%s15256_s7 + $0x30] sm:$0xff] }
 0x88b   : > { %v7771_v34 = vpop.permute.xlu0 %7770  ;;  %8426 = vmatpush.msra.mxu3 %v8412_v55  ;;  %v9270_v55 = vld [vmem:[%s15256_s7 + $0x1e8] sm:$0xff] }
 0x88c   : > { %7790 = vst.msk [vmem:[#allocation7 + $0x108] sm:$0xff] %vm1922_vm4, %v7771_v34 }
 0x88d   : > { %7838 = vst.msk [vmem:[#allocation7 + $0x108] sm:$0xff] %vm2115_vm5, %v7819_v33  ;;  %v7932_v29 = vld [vmem:[#allocation7 + $0xd0] sm:$0xff]  ;;  %v8120_v33 = vadd.f32 %v14700_v5, %v14620_v38  ;;  %v8411_v38 = vld [vmem:[%s15256_s7 + $0x28] sm:$0xff] }
 0x88e   : > { %7886 = vst.msk [vmem:[#allocation7 + $0x108] sm:$0xff] %vm2308_vm6, %v7867_v19  ;;  %8320 = vmatmul.f32.gmra.mxu3 %v7932_v29  ;;  %9205 = vmatmul.msk.f32.gmra.mxu2 %vm1380_vm2, %v7933_v36 }
 0x88f   : > { %v8161_v29 = vadd.f32 %v14672_v27, %v8120_v33  ;;  %8427 = vmatpush.msra.mxu3 %v8411_v38  ;;  %v9247_v33 = vld [vmem:[%s15256_s7 + $0x140] sm:$0xff] }
 0x891   : > { %v14674_v1 = vpop.f32.mrf.mxu2  ;;  %v7873_v16 = vpop.permute.xlu2 %7872 }
 0x892   : > { %v7821_v47 = vpop.permute.xlu1 %7820 }
 0x893   : > { %v7773_v46 = vpop.permute.xlu0 %7772 }
 0x894   : > { %7791 = vst.msk [vmem:[#allocation7 + $0x140] sm:$0xff] %vm1922_vm4, %v7773_v46 }
 0x895   : > { %7839 = vst.msk [vmem:[#allocation7 + $0x140] sm:$0xff] %vm2115_vm5, %v7821_v47  ;;  %v7939_v15 = vld [vmem:[#allocation7 + $0x108] sm:$0xff] }
 0x896   : > { %7887 = vst.msk [vmem:[#allocation7 + $0x140] sm:$0xff] %vm2308_vm6, %v7869_v57  ;;  %8323 = vmatmul.f32.gmra.mxu3 %v7939_v15  ;;  %9206 = vmatmul.msk.f32.gmra.mxu2 %vm1380_vm2, %v7940_v2  ;;  %v8126_v15 = vadd.f32 %v14700_v5, %v14630_v28  ;;  %v8410_v2 = vld [vmem:[%s15256_s7 + $0x20] sm:$0xff]  ;;  %v8407_v28 = vld [vmem:[%s15256_s7 + $0x8] sm:$0xff] }
 0x897   : > { %8428 = vmatpush.msra.mxu3 %v8410_v2  ;;  %v9278_v2 = vld [vmem:[%s15256_s7 + $0x220] sm:$0xff] }
 0x899   : > { %v8201_v3 = vpop.f32.mrf.mxu2  ;;  %v14689_v11 = vpop.f32.mrf.mxu3 }
 0x89a   : > { %v7823_v35 = vpop.permute.xlu1 %7822  ;;  %v8202_v36 = vadd.f32 %v8201_v3, %v8161_v29  ;;  %v8167_v3 = vadd.f32 %v14689_v11, %v8126_v15  ;;  %v8406_v11 = vld [vmem:[%s15256_s7] sm:$0xff]  ;;  %v9272_v29 = vld [vmem:[%s15256_s7 + $0x1f8] sm:$0xff] }
 0x89b   : > { %v7775_v24 = vpop.permute.xlu0 %7774 }
 0x89c   : > { %7792 = vst.msk [vmem:[#allocation7 + $0x178] sm:$0xff] %vm1922_vm4, %v7775_v24  ;;  %v8408_v24 = vld [vmem:[%s15256_s7 + $0x10] sm:$0xff] }
 0x89d   : > { %7840 = vst.msk [vmem:[#allocation7 + $0x178] sm:$0xff] %vm2115_vm5, %v7823_v35  ;;  %v7946_v61 = vld [vmem:[#allocation7 + $0x140] sm:$0xff] }
 0x89e   : > { %7888 = vst.msk [vmem:[#allocation7 + $0x178] sm:$0xff] %vm2308_vm6, %v7871_v31  ;;  %8326 = vmatmul.f32.gmra.mxu3 %v7946_v61  ;;  %9207 = vmatmul.msk.f32.gmra.mxu2 %vm1380_vm2, %v7947_v7  ;;  %v8409_v31 = vld [vmem:[%s15256_s7 + $0x18] sm:$0xff] }
 0x89f   : > { %8429 = vmatpush.msra.mxu3 %v8409_v31 }
 0x8a1   : > { %v14691_v45 = vpop.f32.mrf.mxu2  ;;  %8430 = vmatpush.msra.mxu3 %v8408_v24 }
 0x8a2   : > { %v7825_v25 = vpop.permute.xlu1 %7824 }
 0x8a3   : > { %v7777_v53 = vpop.permute.xlu0 %7776  ;;  %8431 = vmatpush.msra.mxu3 %v8407_v28 }
 0x8a4   : > { %7793 = vst.msk [vmem:[#allocation7 + $0x1b0] sm:$0xff] %vm1922_vm4, %v7777_v53  ;;  %v9218_v53 = vld [vmem:[%s15256_s7 + $0x78] sm:$0xff] }
 0x8a5   : > { %7841 = vst.msk [vmem:[#allocation7 + $0x1b0] sm:$0xff] %vm2115_vm5, %v7825_v25  ;;  %v7953_v20 = vld [vmem:[#allocation7 + $0x178] sm:$0xff]  ;;  %8432 = vmatpush.msra.mxu3 %v8406_v11  ;;  %v9266_v11 = vld [vmem:[%s15256_s7 + $0x1c8] sm:$0xff] }
 0x8a6   : > { %7889 = vst.msk [vmem:[#allocation7 + $0x1b0] sm:$0xff] %vm2308_vm6, %v7873_v16  ;;  %8329 = vmatmul.f32.gmra.mxu3 %v7953_v20  ;;  %9208 = vmatmul.msk.f32.gmra.mxu2 %vm1380_vm2, %v7954_v0  ;;  %v9217_v0 = vld [vmem:[%s15256_s7 + $0x70] sm:$0xff]  ;;  %v9254_v20 = vld [vmem:[%s15256_s7 + $0x178] sm:$0xff] }
 0x8a7   : > { %8458 = vmatpush.msrb.mxu3 %v9218_v53  ;;  %8590 = vmatpush.msrb.mxu2 %v9254_v20 }
 0x8a9   : > { %v8169_v17 = vpop.f32.mrf.mxu3  ;;  %v8207_v18 = vpop.f32.mrf.mxu2  ;;  %8459 = vmatpush.msrb.mxu3 %v9217_v0  ;;  %v9275_v0 = vld [vmem:[%s15256_s7 + $0x208] sm:$0xff] }
 0x8aa   : > { %v8170_v23 = vadd.f32 %v8169_v17, %v8129_v63  ;;  %v8208_v35 = vadd.f32 %v8207_v18, %v8167_v3  ;;  %v9216_v18 = vld [vmem:[%s15256_s7 + $0x68] sm:$0xff] }
 0x8ab   : > { %v9252_v63 = vld [vmem:[%s15256_s7 + $0x168] sm:$0xff]  ;;  %8460 = vmatpush.msrb.mxu3 %v9216_v18  ;;  %v9274_v18 = vld [vmem:[%s15256_s7 + $0x200] sm:$0xff] }
 0x8ad   : > { %v7960_v22 = vld [vmem:[#allocation7 + $0x1b0] sm:$0xff] }
 0x8ae   : > { %8332 = vmatmul.f32.gmra.mxu3 %v7960_v22  ;;  %9209 = vmatmul.msk.f32.gmra.mxu2 %vm1380_vm2, %v7961_v30  ;;  %v9253_v30 = vld [vmem:[%s15256_s7 + $0x170] sm:$0xff]  ;;  %v9215_v22 = vld [vmem:[%s15256_s7 + $0x60] sm:$0xff] }
 0x8af   : > { %8591 = vmatpush.msrb.mxu2 %v9253_v30  ;;  %8461 = vmatpush.msrb.mxu3 %v9215_v22 }
 0x8b1   : > { %v8210_v60 = vpop.f32.mrf.mxu2  ;;  %v8230_v49 = vpop.f32.mrf.mxu3  ;;  %8592 = vmatpush.msrb.mxu2 %v9252_v63 }
 0x8b2   : > { %v14707_v42 = vadd.f32 %v8210_v60, %v8170_v23  ;;  %v8231_v32 = vadd.f32 %v8230_v49, %v8190_v59  ;;  %v9214_v23 = vld [vmem:[%s15256_s7 + $0x58] sm:$0xff]  ;;  %v9212_v59 = vld [vmem:[%s15256_s7 + $0x48] sm:$0xff] }
 0x8b3   : > { %v9250_v60 = vld [vmem:[%s15256_s7 + $0x158] sm:$0xff]  ;;  %8593 = vmatpush.msrb.mxu2 %v9251_v51  ;;  %8462 = vmatpush.msrb.mxu3 %v9214_v23 }
 0x8b5   : > { %8594 = vmatpush.msrb.mxu2 %v9250_v60  ;;  %8463 = vmatpush.msrb.mxu3 %v9213_v50 }
 0x8b7   : > { %8464 = vmatpush.msrb.mxu3 %v9212_v59 }
 0x8b9   : > { %v14714_v41 = vpop.f32.mrf.mxu3  ;;  %v8271_v48 = vpop.f32.mrf.mxu2 }
 0x8ba   : > { %v14716_v52 = vadd.f32 %v8271_v48, %v8231_v32  ;;  %v8111_v32 = vadd.f32 %v14700_v5, %v14563_v56  ;;  %v9211_v48 = vld [vmem:[%s15256_s7 + $0x40] sm:$0xff]  ;;  %v9248_v56 = vld [vmem:[%s15256_s7 + $0x148] sm:$0xff] }
 0x8bb   : > { %8465 = vmatpush.msrb.mxu3 %v9211_v48 }
 0x8c1   : > { %v8236_v10 = vpop.f32.mrf.mxu3  ;;  %v14718_v14 = vpop.f32.mrf.mxu2 }
 0x8c2   : > { %v8237_v19 = vadd.f32 %v8236_v10, %v8196_v26  ;;  %v9249_v10 = vld [vmem:[%s15256_s7 + $0x150] sm:$0xff]  ;;  %v9239_v26 = vld [vmem:[%s15256_s7 + $0x108] sm:$0xff] }
 0x8c3   : > { %8595 = vmatpush.msrb.mxu2 %v9249_v10  ;;  %8563 = vmatpush.msra.mxu1 %v9239_v26 }
 0x8c5   : > { %8596 = vmatpush.msrb.mxu2 %v9248_v56  ;;  %v9223_v56 = vld [vmem:[%s15256_s7 + $0x98] sm:$0xff] }
 0x8c7   : > { %8597 = vmatpush.msrb.mxu2 %v9247_v33 }
 0x8c9   : > { %v14724_v8 = vpop.f32.mrf.mxu3  ;;  %v8277_v39 = vpop.f32.mrf.mxu2 }
 0x8ca   : > { %v14726_v34 = vadd.f32 %v8277_v39, %v8237_v19  ;;  %v8152_v19 = vadd.f32 %v14646_v40, %v8111_v32  ;;  %v9238_v39 = vld [vmem:[%s15256_s7 + $0x100] sm:$0xff] }
 0x8cb   : > { %8564 = vmatpush.msra.mxu1 %v9238_v39 }
 0x8cc   : > { %v8193_v40 = vadd.f32 %v14656_v4, %v8152_v19  ;;  %v9279_v4 = vld [vmem:[%s15256_s7 + $0x228] sm:$0xff] }
 0x8cd   : > { %8656 = vmatpush.msrb.mxu1 %v9272_v29  ;;  %v9222_v29 = vld [vmem:[%s15256_s7 + $0x90] sm:$0xff] }
 0x8ce   : > { %v8234_v21 = vadd.f32 %v14714_v41, %v8193_v40  ;;  %v9236_v40 = vld [vmem:[%s15256_s7 + $0xf8] sm:$0xff] }
 0x8d0   : > { %v8275_v54 = vadd.f32 %v14718_v14, %v8234_v21  ;;  %v9268_v14 = vld [vmem:[%s15256_s7 + $0x1d8] sm:$0xff] }
 0x8d1   : > { %v8242_v9 = vpop.f32.mrf.mxu3  ;;  %v14731_v57 = vpop.f32.mrf.mxu2 }
 0x8d2   : > { %v8243_v43 = vadd.f32 %v8242_v9, %v8202_v36  ;;  %v9281_v36 = vld [vmem:[%s15256_s7 + $0x238] sm:$0xff]  ;;  %v9271_v9 = vld [vmem:[%s15256_s7 + $0x1f0] sm:$0xff] }
 0x8d3   : > { %8689 = vmatpush.msra.mxu2 %v9281_v36  ;;  %8657 = vmatpush.msrb.mxu1 %v9271_v9 }
 0x8d5   : > { %8658 = vmatpush.msrb.mxu1 %v9270_v55 }
 0x8d9   : > { %v14745_v27 = vpop.f32.mrf.mxu3  ;;  %v8283_v46 = vpop.f32.mrf.mxu2 }
 0x8da   : > { %v14747_v47 = vadd.f32 %v8283_v46, %v8243_v43  ;;  %v9280_v43 = vld [vmem:[%s15256_s7 + $0x230] sm:$0xff]  ;;  %v9269_v46 = vld [vmem:[%s15256_s7 + $0x1e0] sm:$0xff] }
 0x8db   : > { %8690 = vmatpush.msra.mxu2 %v9280_v43  ;;  %8659 = vmatpush.msrb.mxu1 %v9269_v46  ;;  %v9235_v46 = vld [vmem:[%s15256_s7 + $0xf0] sm:$0xff] }
 0x8dd   : > { %8691 = vmatpush.msra.mxu2 %v9279_v4  ;;  %8660 = vmatpush.msrb.mxu1 %v9268_v14 }
 0x8df   : > { %8692 = vmatpush.msra.mxu2 %v9278_v2  ;;  %v9234_v2 = vld [vmem:[%s15256_s7 + $0xe8] sm:$0xff] }
 0x8e1   : > { %v8248_v61 = vpop.f32.mrf.mxu3  ;;  %v14764_v7 = vpop.f32.mrf.mxu2 }
 0x8e2   : > { %v8249_v16 = vadd.f32 %v8248_v61, %v8208_v35  ;;  %v9267_v35 = vld [vmem:[%s15256_s7 + $0x1d0] sm:$0xff]  ;;  %v8117_v61 = vadd.f32 %v14700_v5, %v14597_v6  ;;  %v9265_v6 = vld [vmem:[%s15256_s7 + $0x1c0] sm:$0xff] }
 0x8e3   : > { %8661 = vmatpush.msrb.mxu1 %v9267_v35 }
 0x8e4   : > { %v8158_v20 = vadd.f32 %v14663_v37, %v8117_v61  ;;  %v9227_v37 = vld [vmem:[%s15256_s7 + $0xb8] sm:$0xff]  ;;  %v9296_v61 = vld [vmem:[%s15256_s7 + $0x2a0] sm:$0xff] }
 0x8e5   : > { %8662 = vmatpush.msrb.mxu1 %v9266_v11 }
 0x8e6   : > { %v8199_v30 = vadd.f32 %v14674_v1, %v8158_v20  ;;  %v9226_v1 = vld [vmem:[%s15256_s7 + $0xb0] sm:$0xff] }
 0x8e7   : > { %8663 = vmatpush.msrb.mxu1 %v9265_v6  ;;  %v9231_v20 = vld [vmem:[%s15256_s7 + $0xd0] sm:$0xff] }
 0x8e8   : > { %v8240_v22 = vadd.f32 %v14724_v8, %v8199_v30  ;;  %v9294_v30 = vld [vmem:[%s15256_s7 + $0x290] sm:$0xff] }
 0x8e9   : > { %v8289_v25 = vpop.f32.mrf.mxu2  ;;  %v14801_v49 = vpop.f32.mrf.mxu3 }
 0x8ea   : > { %v14778_v17 = vadd.f32 %v8289_v25, %v8249_v16  ;;  %v9276_v16 = vld [vmem:[%s15256_s7 + $0x210] sm:$0xff]  ;;  %v8281_v23 = vadd.f32 %v14731_v57, %v8240_v22  ;;  %v9230_v22 = vld [vmem:[%s15256_s7 + $0xc8] sm:$0xff] }
 0x8f1   : > { %v14803_v58 = vpop.f32.mrf.mxu2 }
 0x8f9   : > { %v8312_v44 = vpop.f32.mrf.mxu3  ;;  %v8353_v12 = vpop.f32.mrf.mxu2 }
 0x8fa   : > { %v8313_v38 = vadd.f32 %v8312_v44, %v14716_v52  ;;  %v9277_v52 = vld [vmem:[%s15256_s7 + $0x218] sm:$0xff]  ;;  %v9224_v44 = vld [vmem:[%s15256_s7 + $0xa0] sm:$0xff] }
 0x8fb   : > { %8693 = vmatpush.msra.mxu2 %v9277_v52  ;;  %v9307_v52 = vld [vmem:[%s15256_s7 + $0x2f0] sm:$0xff] }
 0x8fc   : > { %v8354_v3 = vadd.f32 %v8353_v12, %v8313_v38  ;;  %v8123_v12 = vadd.f32 %v14700_v5, %v14625_v62  ;;  %v9221_v5 = vld [vmem:[%s15256_s7 + $0x88] sm:$0xff] }
 0x8fd   : > { %8694 = vmatpush.msra.mxu2 %v9276_v16  ;;  %v9232_v16 = vld [vmem:[%s15256_s7 + $0xd8] sm:$0xff] }
 0x8fe   : > { %v8164_v33 = vadd.f32 %v14683_v13, %v8123_v12  ;;  %v9220_v13 = vld [vmem:[%s15256_s7 + $0x80] sm:$0xff]  ;;  %v9326_v12 = vld [vmem:[%s15256_s7 + $0x378] sm:$0xff] }
 0x8ff   : > { %8695 = vmatpush.msra.mxu2 %v9275_v0 }
 0x900   : > { %v8205_v62 = vadd.f32 %v14691_v45, %v8164_v33  ;;  %v9325_v33 = vld [vmem:[%s15256_s7 + $0x370] sm:$0xff] }
 0x901   : > { %v8315_v41 = vpop.f32.mrf.mxu3  ;;  %v8356_v15 = vpop.f32.mrf.mxu2  ;;  %8696 = vmatpush.msra.mxu2 %v9274_v18  ;;  %v9304_v18 = vld [vmem:[%s15256_s7 + $0x2d8] sm:$0xff] }
 0x902   : > { %v8316_v31 = vadd.f32 %v8315_v41, %v8275_v54  ;;  %v8246_v36 = vadd.f32 %v14745_v27, %v8205_v62  ;;  %v9299_v27 = vld [vmem:[%s15256_s7 + $0x2b8] sm:$0xff]  ;;  %v9260_v62 = vld [vmem:[%s15256_s7 + $0x1a0] sm:$0xff] }
 0x904   : > { %v8357_v24 = vadd.f32 %v8356_v15, %v8316_v31  ;;  %v8287_v45 = vadd.f32 %v14764_v7, %v8246_v36  ;;  %v9308_v7 = vld [vmem:[%s15256_s7 + $0x2f8] sm:$0xff]  ;;  %v9298_v15 = vld [vmem:[%s15256_s7 + $0x2b0] sm:$0xff]  ;;  %v9324_v36 = vld [vmem:[%s15256_s7 + $0x368] sm:$0xff] }
 0x906   : > { %v8377_v28 = vmax.f32 %v8354_v3, %v8357_v24  ;;  %v9297_v3 = vld [vmem:[%s15256_s7 + $0x2a8] sm:$0xff]  ;;  %v9233_v24 = vld [vmem:[%s15256_s7 + $0xe0] sm:$0xff] }
 0x908   : > { %8382 = vst.msk [vmem:[#allocation8] sm:$0xff] %vm8381_vm7, %v8377_v28  ;;  %v9306_v28 = vld [vmem:[%s15256_s7 + $0x2e8] sm:$0xff] }
 0x909   : > { %v8318_v53 = vpop.f32.mrf.mxu3  ;;  %v8359_v25 = vpop.f32.mrf.mxu2 }
 0x90a   : > { %v8319_v60 = vadd.f32 %v8318_v53, %v14726_v34  ;;  %v9225_v34 = vld [vmem:[%s15256_s7 + $0xa8] sm:$0xff]  ;;  %v9305_v53 = vld [vmem:[%s15256_s7 + $0x2e0] sm:$0xff] }
 0x90c   : > { %v8360_v8 = vadd.f32 %v8359_v25, %v8319_v60  ;;  %v9295_v25 = vld [vmem:[%s15256_s7 + $0x298] sm:$0xff]  ;;  %v8252_v60 = vadd.f32 %v14801_v49, %v14707_v42  ;;  %v9292_v49 = vld [vmem:[%s15256_s7 + $0x280] sm:$0xff] }
 0x90f   : > { %v8386_v63 = vld [vmem:[#allocation8] ss:$2 sm:$0xf]  ;;  %v8394_v51 = vld [vmem:[#allocation8 + $0x1] ss:$2 sm:$0xf] }
 0x910   : > { %v14892_v50 = vmax.f32 %v8386_v63, %v8394_v51  ;;  %v9303_v63 = vld [vmem:[%s15256_s7 + $0x2d0] sm:$0xff]  ;;  %v9293_v51 = vld [vmem:[%s15256_s7 + $0x288] sm:$0xff] }
 0x911   : > { %v8321_v59 = vpop.f32.mrf.mxu3  ;;  %v8362_v32 = vpop.f32.mrf.mxu2 }
 0x912   : > { %v8322_v48 = vadd.f32 %v8321_v59, %v8281_v23  ;;  %9210 = vmatmul.msk.f32.vlgmr.msra.gmra.mxu3 %vm8381_vm7, %v14892_v50  ;;  %v8447_v26 = vrot.slane %v14892_v50, 1  ;;  %v8480_v38 = vrot.slane %v14892_v50, 2  ;;  %v9229_v23 = vld [vmem:[%s15256_s7 + $0xc0] sm:$0xff]  ;;  %v9263_v59 = vld [vmem:[%s15256_s7 + $0x1b8] sm:$0xff] }
 0x913   : > { %8491 = vmatpush.msra.mxu3 %v9227_v37  ;;  %v8513_v37 = vrot.slane %v14892_v50, 3  ;;  %v9301_v50 = vld [vmem:[%s15256_s7 + $0x2c0] sm:$0xff] }
 0x914   : > { %v8363_v57 = vadd.f32 %v8362_v32, %v8322_v48  ;;  %v9302_v32 = vld [vmem:[%s15256_s7 + $0x2c8] sm:$0xff] }
 0x915   : > { %8492 = vmatpush.msra.mxu3 %v9226_v1 }
 0x916   : > { %v8378_v10 = vmax.f32 %v8360_v8, %v8363_v57  ;;  %v8293_v8 = vadd.f32 %v14803_v58, %v8252_v60  ;;  %v9262_v58 = vld [vmem:[%s15256_s7 + $0x1b0] sm:$0xff]  ;;  %v9310_v60 = vld [vmem:[%s15256_s7 + $0x300] sm:$0xff] }
 0x917   : > { %8493 = vmatpush.msra.mxu3 %v9225_v34 }
 0x918   : > { %8383 = vst.msk [vmem:[#allocation8 + $0x8] sm:$0xff] %vm8381_vm7, %v8378_v10 }
 0x919   : > { %8494 = vmatpush.msra.mxu3 %v9224_v44  ;;  %v8324_v19 = vpop.f32.mrf.mxu3  ;;  %v8365_v39 = vpop.f32.mrf.mxu2 }
 0x91a   : > { %9219 = vmatmul.msk.f32.vlgmr.msrb.gmra.mxu3 %vm8381_vm7, %v8447_v26  ;;  %v8325_v21 = vadd.f32 %v8324_v19, %v14747_v47  ;;  %v9335_v26 = vld [vmem:[%s15256_s7 + $0x3b8] sm:$0xff] }
 0x91b   : > { %8495 = vmatpush.msra.mxu3 %v9223_v56  ;;  %v9261_v56 = vld [vmem:[%s15256_s7 + $0x1a8] sm:$0xff] }
 0x91c   : > { %v8366_v31 = vadd.f32 %v8365_v39, %v8325_v21  ;;  %v9258_v21 = vld [vmem:[%s15256_s7 + $0x190] sm:$0xff] }
 0x91d   : > { %8496 = vmatpush.msra.mxu3 %v9222_v29  ;;  %v9334_v29 = vld [vmem:[%s15256_s7 + $0x3b0] sm:$0xff] }
 0x91f   : > { %8497 = vmatpush.msra.mxu3 %v9221_v5  ;;  %v8388_v9 = vld [vmem:[#allocation8 + $0x8] ss:$2 sm:$0xf]  ;;  %v8396_v43 = vld [vmem:[#allocation8 + $0x9] ss:$2 sm:$0xf] }
 0x920   : > { %v14933_v55 = vmax.f32 %v8388_v9, %v8396_v43  ;;  %v9323_v43 = vld [vmem:[%s15256_s7 + $0x360] sm:$0xff] }
 0x921   : > { %8498 = vmatpush.msra.mxu3 %v9220_v13  ;;  %v8327_v4 = vpop.f32.mrf.mxu3  ;;  %v8368_v54 = vpop.f32.mrf.mxu2  ;;  %v9333_v13 = vld [vmem:[%s15256_s7 + $0x3a8] sm:$0xff] }
 0x922   : > { %v8328_v41 = vadd.f32 %v8327_v4, %v8287_v45  ;;  %9246 = vmatmul.msk.f32.vlgmr.msra.gmra.mxu1 %vm8381_vm7, %v14933_v55  ;;  %v8579_v47 = vrot.slane %v14933_v55, 1  ;;  %9228 = vmatmul.msk.f32.vlgmr.msra.gmra.mxu3 %vm8381_vm7, %v8480_v38  ;;  %v8645_v11 = vrot.slane %v14933_v55, 3  ;;  %v9332_v45 = vld [vmem:[%s15256_s7 + $0x3a0] sm:$0xff]  ;;  %v9331_v4 = vld [vmem:[%s15256_s7 + $0x398] sm:$0xff]  ;;  %v9321_v38 = vld [vmem:[%s15256_s7 + $0x350] sm:$0xff] }
 0x923   : > { %8524 = vmatpush.msrb.mxu3 %v9236_v40  ;;  %8755 = vmatpush.msra.mxu1 %v9299_v27  ;;  %v9259_v40 = vld [vmem:[%s15256_s7 + $0x198] sm:$0xff] }
 0x924   : > { %v8369_v14 = vadd.f32 %v8368_v54, %v8328_v41  ;;  %9255 = vmatmul.msk.f32.vlgmr.msrb.gmra.mxu2 %vm8381_vm7, %v8579_v47  ;;  %v9322_v27 = vld [vmem:[%s15256_s7 + $0x358] sm:$0xff]  ;;  %v9257_v54 = vld [vmem:[%s15256_s7 + $0x188] sm:$0xff]  ;;  %v9256_v41 = vld [vmem:[%s15256_s7 + $0x180] sm:$0xff]  ;;  %v8612_v47 = vrot.slane %v14933_v55, 2 }
 0x925   : > { %8525 = vmatpush.msrb.mxu3 %v9235_v46  ;;  %8788 = vmatpush.msrb.mxu2 %v9308_v7  ;;  %v9330_v46 = vld [vmem:[%s15256_s7 + $0x390] sm:$0xff]  ;;  %v9290_v7 = vld [vmem:[%s15256_s7 + $0x278] sm:$0xff]  ;;  %v9319_v55 = vld [vmem:[%s15256_s7 + $0x340] sm:$0xff] }
 0x926   : > { %8756 = vmatpush.msra.mxu1 %v9298_v15  ;;  %v8379_v35 = vmax.f32 %v8366_v31, %v8369_v14  ;;  %v9320_v15 = vld [vmem:[%s15256_s7 + $0x348] sm:$0xff] }
 0x927   : > { %8526 = vmatpush.msrb.mxu3 %v9234_v2  ;;  %8789 = vmatpush.msrb.mxu2 %v9307_v52  ;;  %v9329_v2 = vld [vmem:[%s15256_s7 + $0x388] sm:$0xff] }
 0x928   : > { %8757 = vmatpush.msra.mxu1 %v9297_v3  ;;  %8384 = vst.msk [vmem:[#allocation8 + $0x10] sm:$0xff] %vm8381_vm7, %v8379_v35  ;;  %v9289_v3 = vld [vmem:[%s15256_s7 + $0x270] sm:$0xff] }
 0x929   : > { %8527 = vmatpush.msrb.mxu3 %v9233_v24  ;;  %v8330_v0 = vpop.f32.mrf.mxu3  ;;  %8790 = vmatpush.msrb.mxu2 %v9306_v28  ;;  %v8371_v6 = vpop.f32.mrf.mxu2  ;;  %v9328_v24 = vld [vmem:[%s15256_s7 + $0x380] sm:$0xff] }
 0x92a   : > { %8758 = vmatpush.msra.mxu1 %v9296_v61  ;;  %v8331_v57 = vadd.f32 %v8330_v0, %v14778_v17  ;;  %v9288_v61 = vld [vmem:[%s15256_s7 + $0x268] sm:$0xff]  ;;  %v9283_v0 = vld [vmem:[%s15256_s7 + $0x240] sm:$0xff] }
 0x92b   : > { %8528 = vmatpush.msrb.mxu3 %v9232_v16  ;;  %9273 = vmatmul.msk.f32.vlgmr.msrb.gmra.mxu1 %vm8381_vm7, %v8645_v11  ;;  %v9287_v16 = vld [vmem:[%s15256_s7 + $0x260] sm:$0xff]  ;;  %v9286_v11 = vld [vmem:[%s15256_s7 + $0x258] sm:$0xff] }
 0x92c   : > { %8791 = vmatpush.msrb.mxu2 %v9305_v53  ;;  %8759 = vmatpush.msra.mxu1 %v9295_v25  ;;  %v8372_v19 = vadd.f32 %v8371_v6, %v8331_v57  ;;  %v9285_v53 = vld [vmem:[%s15256_s7 + $0x250] sm:$0xff]  ;;  %v9284_v25 = vld [vmem:[%s15256_s7 + $0x248] sm:$0xff] }
 0x92d   : > { %8529 = vmatpush.msrb.mxu3 %v9231_v20  ;;  %v9317_v20 = vld [vmem:[%s15256_s7 + $0x338] sm:$0xff]  ;;  %v9338_v57 = vld [vmem:[%s15256_s7 + $0x3c8] sm:$0xff] }
 0x92e   : > { %8792 = vmatpush.msrb.mxu2 %v9304_v18  ;;  %8760 = vmatpush.msra.mxu1 %v9294_v30  ;;  %v9316_v18 = vld [vmem:[%s15256_s7 + $0x330] sm:$0xff]  ;;  %v9315_v30 = vld [vmem:[%s15256_s7 + $0x328] sm:$0xff] }
 0x92f   : > { %8530 = vmatpush.msrb.mxu3 %v9230_v22  ;;  %v8390_v48 = vld [vmem:[#allocation8 + $0x10] ss:$2 sm:$0xf]  ;;  %v8398_v1 = vld [vmem:[#allocation8 + $0x11] ss:$2 sm:$0xf] }
 0x930   : > { %8793 = vmatpush.msrb.mxu2 %v9303_v63  ;;  %8761 = vmatpush.msra.mxu1 %v9293_v51  ;;  %v15015_v42 = vmax.f32 %v8390_v48, %v8398_v1  ;;  %v9314_v22 = vld [vmem:[%s15256_s7 + $0x320] sm:$0xff]  ;;  %v9313_v63 = vld [vmem:[%s15256_s7 + $0x318] sm:$0xff]  ;;  %v9312_v51 = vld [vmem:[%s15256_s7 + $0x310] sm:$0xff] }
 0x931   : > { %8531 = vmatpush.msrb.mxu3 %v9229_v23  ;;  %v8333_v34 = vpop.f32.mrf.mxu3  ;;  %v8374_v17 = vpop.f32.mrf.mxu2  ;;  %v9311_v23 = vld [vmem:[%s15256_s7 + $0x308] sm:$0xff]  ;;  %v9341_v48 = vld [vmem:[%s15256_s7 + $0x3e0] sm:$0xff]  ;;  %v9340_v1 = vld [vmem:[%s15256_s7 + $0x3d8] sm:$0xff] }
 0x932   : > { %9237 = vmatmul.msk.f32.vlgmr.msrb.gmra.mxu3 %vm8381_vm7, %v8513_v37  ;;  %8794 = vmatpush.msrb.mxu2 %v9302_v32  ;;  %v8334_v10 = vadd.f32 %v8333_v34, %v8293_v8  ;;  %v8744_v44 = vrot.slane %v15015_v42, 2  ;;  %v8777_v9 = vrot.slane %v15015_v42, 3  ;;  %v8711_v6 = vrot.slane %v15015_v42, 1  ;;  %v9344_v37 = vld [vmem:[%s15256_s7 + $0x3f8] sm:$0xff]  ;;  %v9342_v32 = vld [vmem:[%s15256_s7 + $0x3e8] sm:$0xff]  ;;  %v9339_v8 = vld [vmem:[%s15256_s7 + $0x3d0] sm:$0xff] }
 0x933   : > { %8623 = vmatpush.msra.mxu3 %v9263_v59  ;;  %9282 = vmatmul.msk.f32.vlgmr.msra.gmra.mxu2 %vm8381_vm7, %v15015_v42  ;;  %v9343_v59 = vld [vmem:[%s15256_s7 + $0x3f0] sm:$0xff]  ;;  %v9337_v42 = vld [vmem:[%s15256_s7 + $0x3c0] sm:$0xff] }
 0x934   : > { %8762 = vmatpush.msra.mxu1 %v9292_v49  ;;  %8795 = vmatpush.msrb.mxu2 %v9301_v50  ;;  %v8375_v39 = vadd.f32 %v8374_v17, %v8334_v10  ;;  %v8405_v17 = vld [vmem:[%s15257_s8] sm:$0x1] }
 0x935   : > { %8624 = vmatpush.msra.mxu3 %v9262_v58  ;;  %9300 = vmatmul.msk.f32.vlgmr.msra.gmra.mxu1 %vm8381_vm7, %v8744_v44  ;;  %v8940_v44 = vld [vmem:[%s15258_s9 + $0x38] sm:$0xff] }
 0x936   : > { %8854 = vmatpush.msrb.mxu1 %v9326_v12  ;;  %8887 = vmatpush.msra.mxu2 %v9335_v26  ;;  %v8380_v5 = vmax.f32 %v8372_v19, %v8375_v39  ;;  %v8939_v12 = vld [vmem:[%s15258_s9 + $0x30] sm:$0xff] }
 0x937   : > { %8625 = vmatpush.msra.mxu3 %v9261_v56  ;;  %v8938_v56 = vld [vmem:[%s15258_s9 + $0x28] sm:$0xff] }
 0x938   : > { %8855 = vmatpush.msrb.mxu1 %v9325_v33  ;;  %8888 = vmatpush.msra.mxu2 %v9334_v29  ;;  %8385 = vst.msk [vmem:[#allocation8 + $0x18] sm:$0xff] %vm8381_vm7, %v8380_v5  ;;  %v8937_v33 = vld [vmem:[%s15258_s9 + $0x20] sm:$0xff]  ;;  %v8935_v5 = vld [vmem:[%s15258_s9 + $0x10] sm:$0xff] }
 0x939   : > { %8626 = vmatpush.msra.mxu3 %v9260_v62  ;;  %v8936_v62 = vld [vmem:[%s15258_s9 + $0x18] sm:$0xff] }
 0x93a   : > { %8856 = vmatpush.msrb.mxu1 %v9324_v36  ;;  %8889 = vmatpush.msra.mxu2 %v9333_v13 }
 0x93b   : > { %8627 = vmatpush.msra.mxu3 %v9259_v40  ;;  %9309 = vmatmul.msk.f32.vlgmr.msrb.gmra.mxu2 %vm8381_vm7, %v8777_v9 }
 0x93c   : > { %8857 = vmatpush.msrb.mxu1 %v9323_v43  ;;  %8890 = vmatpush.msra.mxu2 %v9332_v45  ;;  %v8934_v45 = vld [vmem:[%s15258_s9 + $0x8] sm:$0xff] }
 0x93d   : > { %8628 = vmatpush.msra.mxu3 %v9258_v21  ;;  %v8933_v21 = vld [vmem:[%s15258_s9] sm:$0xff] }
 0x93e   : > { %8858 = vmatpush.msrb.mxu1 %v9322_v27  ;;  %8891 = vmatpush.msra.mxu2 %v9331_v4 }
 0x93f   : > { %8629 = vmatpush.msra.mxu3 %v9257_v54  ;;  %v8392_v31 = vld [vmem:[#allocation8 + $0x18] ss:$2 sm:$0xf]  ;;  %v8400_v14 = vld [vmem:[#allocation8 + $0x19] ss:$2 sm:$0xf] }
 0x940   : > { %8859 = vmatpush.msrb.mxu1 %v9321_v38  ;;  %8892 = vmatpush.msra.mxu2 %v9330_v46  ;;  %v15101_v52 = vmax.f32 %v8392_v31, %v8400_v14 }
 0x941   : > { %8630 = vmatpush.msra.mxu3 %v9256_v41 }
 0x942   : > { %9264 = vmatmul.msk.f32.vlgmr.msra.gmra.mxu3 %vm8381_vm7, %v8612_v47  ;;  %8860 = vmatpush.msrb.mxu1 %v9320_v15  ;;  %v8843_v35 = vrot.slane %v15101_v52, 1  ;;  %v8876_v28 = vrot.slane %v15101_v52, 2  ;;  %v8909_v49 = vrot.slane %v15101_v52, 3 }
 0x943   : > { %8722 = vmatpush.msrb.mxu3 %v9290_v7  ;;  %8893 = vmatpush.msra.mxu2 %v9329_v2 }
 0x944   : > { %8861 = vmatpush.msrb.mxu1 %v9319_v55 }
 0x945   : > { %8723 = vmatpush.msrb.mxu3 %v9289_v3  ;;  %8894 = vmatpush.msra.mxu2 %v9328_v24 }
 0x946   : > { %9327 = vmatmul.msk.f32.vlgmr.msrb.gmra.mxu1 %vm8381_vm7, %v8843_v35  ;;  %9336 = vmatmul.msk.f32.vlgmr.msra.gmra.mxu2 %vm8381_vm7, %v8876_v28 }
 0x947   : > { %8724 = vmatpush.msrb.mxu3 %v9288_v61  ;;  %8953 = vmatpush.msra.mxu1 %v8940_v44 }
 0x949   : > { %8725 = vmatpush.msrb.mxu3 %v9287_v16  ;;  %8954 = vmatpush.msra.mxu1 %v8939_v12  ;;  %v8941_v16 = vld [vmem:[%s15259_s10] sm:$0x1] }
 0x94b   : > { %8726 = vmatpush.msrb.mxu3 %v9286_v11  ;;  %8955 = vmatpush.msra.mxu1 %v8938_v56 }
 0x94d   : > { %8727 = vmatpush.msrb.mxu3 %v9285_v53  ;;  %8956 = vmatpush.msra.mxu1 %v8937_v33 }
 0x94f   : > { %8728 = vmatpush.msrb.mxu3 %v9284_v25  ;;  %8957 = vmatpush.msra.mxu1 %v8936_v62 }
 0x951   : > { %8729 = vmatpush.msrb.mxu3 %v9283_v0  ;;  %8958 = vmatpush.msra.mxu1 %v8935_v5 }
 0x952   : > { %9291 = vmatmul.msk.f32.vlgmr.msrb.gmra.mxu3 %vm8381_vm7, %v8711_v6 }
 0x953   : > { %8821 = vmatpush.msra.mxu3 %v9317_v20  ;;  %8959 = vmatpush.msra.mxu1 %v8934_v45 }
 0x955   : > { %8822 = vmatpush.msra.mxu3 %v9316_v18  ;;  %8960 = vmatpush.msra.mxu1 %v8933_v21 }
 0x957   : > { %8823 = vmatpush.msra.mxu3 %v9315_v30 }
 0x959   : > { %8824 = vmatpush.msra.mxu3 %v9314_v22 }
 0x95b   : > { %8825 = vmatpush.msra.mxu3 %v9313_v63 }
 0x95d   : > { %8826 = vmatpush.msra.mxu3 %v9312_v51 }
 0x95f   : > { %8827 = vmatpush.msra.mxu3 %v9311_v23 }
 0x961   : > { %8828 = vmatpush.msra.mxu3 %v9310_v60 }
 0x962   : > { %9318 = vmatmul.msk.f32.vlgmr.msra.gmra.mxu3 %vm8381_vm7, %v15101_v52 }
 0x963   : > { %8920 = vmatpush.msrb.mxu3 %v9344_v37 }
 0x965   : > { %8921 = vmatpush.msrb.mxu3 %v9343_v59 }
 0x967   : > { %8922 = vmatpush.msrb.mxu3 %v9342_v32 }
 0x969   : > { %8923 = vmatpush.msrb.mxu3 %v9341_v48 }
 0x96b   : > { %8924 = vmatpush.msrb.mxu3 %v9340_v1 }
 0x96d   : > { %8925 = vmatpush.msrb.mxu3 %v9339_v8 }
 0x96f   : > { %8926 = vmatpush.msrb.mxu3 %v9338_v57 }
 0x971   : > { %8927 = vmatpush.msrb.mxu3 %v9337_v42 }
 0x972   : > { %9345 = vmatmul.msk.f32.vlgmr.msrb.gmra.mxu3 %vm8381_vm7, %v8909_v49 }
 0x995   : > { %v8434_v50 = vpop.f32.mrf.mxu3 }
 0x996   : > { %v8437_v10 = vadd.f32 %v8434_v50, %v8405_v17 }
 0x99d   : > { %v8467_v34 = vpop.f32.mrf.mxu3 }
 0x99e   : > { %v8470_v26 = vadd.f32 %v8467_v34, %v8437_v10 }
 0x99f   : > { %v8566_v36 = vpop.f32.mrf.mxu1 }
 0x9a5   : > { %v8500_v58 = vpop.f32.mrf.mxu3 }
 0x9a6   : > { %v8503_v39 = vadd.f32 %v8500_v58, %v8470_v26 }
 0x9a7   : > { %v8599_v40 = vpop.f32.mrf.mxu2 }
 0x9a8   : > { %v8665_v4 = vpop.f32.mrf.mxu1 }
 0x9b2   : > { %v8764_v7 = vpop.f32.mrf.mxu1 }
 0x9b5   : > { %v8533_v19 = vpop.f32.mrf.mxu3 }
 0x9b6   : > { %v8536_v29 = vadd.f32 %v8533_v19, %v8503_v39  ;;  %v8698_v38 = vpop.f32.mrf.mxu2 }
 0x9b8   : > { %v8569_v13 = vadd.f32 %v8566_v36, %v8536_v29 }
 0x9ba   : > { %v8602_v43 = vadd.f32 %v8599_v40, %v8569_v13 }
 0x9be   : > { %v8797_v2 = vpop.f32.mrf.mxu2 }
 0x9c3   : > { %v8863_v52 = vpop.f32.mrf.mxu1 }
 0x9c5   : > { %v8632_v9 = vpop.f32.mrf.mxu3 }
 0x9c6   : > { %v8635_v27 = vadd.f32 %v8632_v9, %v8602_v43 }
 0x9c8   : > { %v8668_v54 = vadd.f32 %v8665_v4, %v8635_v27 }
 0x9c9   : > { %v8896_v24 = vpop.f32.mrf.mxu2 }
 0x9ca   : > { %v8701_v41 = vadd.f32 %v8698_v38, %v8668_v54 }
 0x9d5   : > { %v8731_v46 = vpop.f32.mrf.mxu3 }
 0x9d6   : > { %v8734_v47 = vadd.f32 %v8731_v46, %v8701_v41 }
 0x9d8   : > { %v8767_v15 = vadd.f32 %v8764_v7, %v8734_v47 }
 0x9da   : > { %v8800_v14 = vadd.f32 %v8797_v2, %v8767_v15 }
 0x9e5   : > { %v8830_v31 = vpop.f32.mrf.mxu3 }
 0x9e6   : > { %v8833_v55 = vadd.f32 %v8830_v31, %v8800_v14 }
 0x9e8   : > { %v8866_v3 = vadd.f32 %v8863_v52, %v8833_v55 }
 0x9ea   : > { %v8899_v35 = vadd.f32 %v8896_v24, %v8866_v3 }
 0x9f5   : > { %v8929_v28 = vpop.f32.mrf.mxu3 }
 0x9f6   : > { %v8932_v61 = vadd.f32 %v8929_v28, %v8899_v35 }
 0x9f8   : > { %9346 = vmatmul.msk.f32.vlgmr.msra.gmra.mxu1 %vm8381_vm7, %v8932_v61 }
 0xa75   : > { %v8962_v11 = vpop.f32.mrf.mxu1 }
 0xa76   : > { %v8963_v53 = vadd.f32 %v8962_v11, %v8941_v16 }
 0xa78   : > { %8966 = vst.msk [vmem:[%s378_s16] sm:$0x1] %vm8965_vm8, %v8963_v53 }
 0xa79   : > { %9458 = shalt.err (!%p9455_p3)
}
 0xa7a   : > { %9380 = dma.vmem_to_hbm [thread:$0]  (%p9597_p5), %s8979_s13, 16, %s8981_s22, %s8968_s25  }
 0xa7b PF: > { %p9386_p4 = scmp.ge.s32.totalorder %s9493_s20, 2  ;;  %s8992_s0 = sand.u32 1, %s9481_s17  }
 0xa7c   : > { %s8993_s14 = scalar_lea.sflag [#allocation10], %s8992_s0 }
 0xa7d   : > { %p9383_p7 = pnand %p9386_p4, %p9601_p6 }
 0xa7f   : > { %p9384_p8 = pneg %p9383_p7 }
 0xa81   : > { %9476 = dma.done.wait (%p9384_p8), %s8993_s14, 16  }
 0xa82   : > { %9478 = vsyncadd (%p9384_p8), %s8993_s14, 4294967280  ;;  %p21_p9 = scmp.ge.s32.totalorder %s9584_s23, 4   ;;  %s15471_s17 = smov %s9485_s18 }
 0xa83   : > { %s15472_s18 = smov %s9489_s19  ;;  %s15473_s19 = smov %s9595_s26 }
 0xa84   : > { %s15474_s20 = smov %s9584_s23  ;;  %23 = sbr.rel (!%p21_p9) target bundleno = 6 (0x6), region = 207 }
 0xa89   :  { %8998 = vsyncpa [#allocation10], 1 }
 0xa8a   :  { %9000 = vsyncpa [#allocation10 + $0x1], 1 }

</bundles_post_ra>
